<compile_context>
chip_gen: v7x
topology: tpu7x:2x2x1
jax: 0.10.0
libtpu: 0.0.40
codegen_flags: <defaults>
</compile_context>

<pallas_src>
import functools
import math

import numpy as np
import jax
import jax.numpy as jnp
from jax.experimental import pallas as pl
from jax.experimental.pallas import tpu as pltpu

IN_CHANNELS = 3
WINDOW_SIZE = 11
LEVELS = 5
_P = WINDOW_SIZE // 2          # 5
_LANES = 128
_HALO = 8                      # aligned top/bottom halo rows in the cw scratch


def gaussian_window(window_size, sigma):
    # Faithful to the reference module (POSITIVE exponent, exactly as written).
    k = np.array(
        [math.exp((x - window_size // 2) ** 2 / (2.0 * sigma ** 2))
         for x in range(window_size)],
        dtype=np.float64,
    )
    return (k / k.sum()).astype(np.float32)


_W1D = gaussian_window(WINDOW_SIZE, 1.5)   # symmetric: w[j] == w[WS-1-j]


def _round_up(x, m):
    return -(-x // m) * m


def _level_geometry(nc, h, w):
    """Static packing geometry of one pyramid level."""
    if w > _LANES:
        # TODO(synk): W > 128 needs lane-tiling of the W conv (halo'd 128-lane
        # chunks); not required for the small shapes exercised here.
        raise NotImplementedError("image width > 128 not supported")
    hp = h + 2 * _P                       # H-padded plane height
    cap = _LANES // w                     # plane slots per 128-lane slab
    gg = -(-nc // cap)                    # number of row groups (slabs)
    ppg = -(-nc // gg)                    # planes per group (evenly spread)
    rl = gg * hp                          # used rows of the packed layout
    rpad = _round_up(rl, 8)
    return dict(h=h, w=w, hp=hp, gg=gg, ppg=ppg, nc=nc, rpad=rpad)


def _band_blockdiag(w):
    """[128,128] block-diagonal banded matrix: (x @ G) == per-plane 'same'
    Gaussian conv along the lane (W) direction with implicit zero padding."""
    g = np.zeros((_LANES, _LANES), dtype=np.float32)
    cap = _LANES // w
    for s in range(cap):
        o = s * w
        for i in range(w):
            for k in range(w):
                j = i - k + _P
                if 0 <= j < WINDOW_SIZE:
                    g[o + k, o + i] = _W1D[j]
    return g


def _pack_planes(x, geom, r_max):
    """(n, c, H, W) -> (r_max, 128): `ppg` planes side-by-side per 128-lane
    slab, each plane H-padded by P zero rows, slabs stacked along rows."""
    n, c, h, w = x.shape
    nc = n * c
    hp, gg, ppg = geom["hp"], geom["gg"], geom["ppg"]
    x = x.reshape(nc, h, w)
    x = jnp.pad(x, ((0, gg * ppg - nc), (_P, _P), (0, 0)))
    x = x.reshape(gg, ppg, hp, w).transpose(0, 2, 1, 3).reshape(gg * hp, ppg * w)
    return jnp.pad(x, ((0, r_max - gg * hp), (0, _LANES - ppg * w)))


def avg_pool2(x):
    # F.avg_pool2d(x, (2, 2)) for even spatial dims.
    n, c, h, w = x.shape
    return x.reshape(n, c, h // 2, 2, w // 2, 2).mean(axis=(3, 5))


def _level_body(geom, x1_ref, x2_ref, g_ref, out_ref, cw_ref):
    h, w, hp = geom["h"], geom["w"], geom["hp"]
    gg, ppg, nc = geom["gg"], geom["ppg"], geom["nc"]
    rpad = geom["rpad"]

    g = g_ref[0]                               # [128, 128]
    x1 = x1_ref[0][:rpad]                      # aligned slices at offset 0
    x2 = x2_ref[0][:rpad]

    # Valid-pixel mask generated in-kernel (no f32 mask DMA).
    row = jax.lax.broadcasted_iota(jnp.int32, (rpad, _LANES), 0)
    col = jax.lax.broadcasted_iota(jnp.int32, (rpad, _LANES), 1)
    valid = None
    for gi in range(gg):
        npg = min(ppg, nc - gi * ppg)          # planes used by this group
        term = ((row >= gi * hp + _P) & (row < gi * hp + _P + h)
                & (col < npg * w))
        valid = term if valid is None else (valid | term)

    # img_range = img1.max() - img1.min() over this level's real pixels.
    rng = (jnp.max(jnp.where(valid, x1, -jnp.inf))
           - jnp.min(jnp.where(valid, x1, jnp.inf)))
    c1 = (0.01 * rng) ** 2
    c2 = (0.03 * rng) ** 2

    # ---- W (lane) direction Gaussian conv on the MXU, K = N = 128 ----------
    # Operand blocks in the cw scratch: x1, x2, x1^2, x2^2, x1*x2 (products
    # computed in-kernel, never shipped from HBM).
    ops = (x1, x2, x1 * x1, x2 * x2, x1 * x2)
    for b in range(5):
        cw_ref[_HALO + b * rpad:_HALO + (b + 1) * rpad, :] = jnp.dot(
            ops[b], g, preferred_element_type=jnp.float32)

    # ---- H (sublane) direction: symmetric 11-tap conv (6 distinct weights)
    #      as shift-and-accumulate over static slices of the VMEM scratch ----
    def hconv(b):
        base = _HALO + b * rpad
        acc = float(_W1D[_P]) * cw_ref[base:base + rpad, :]
        for d in range(1, _P + 1):
            acc = acc + float(_W1D[_P - d]) * (
                cw_ref[base - d:base - d + rpad, :]
                + cw_ref[base + d:base + d + rpad, :])
        return acc

    mu1 = hconv(0)
    mu2 = hconv(1)
    e11 = hconv(2)
    e22 = hconv(3)
    e12 = hconv(4)

    mu1_sq = mu1 * mu1
    mu2_sq = mu2 * mu2
    mu1_mu2 = mu1 * mu2
    sigma1_sq = e11 - mu1_sq
    sigma2_sq = e22 - mu2_sq
    sigma12 = e12 - mu1_mu2

    v1 = 2.0 * sigma12 + c2
    v2 = sigma1_sq + sigma2_sq + c2
    ratio = v1 / v2                            # exact f32 divide, shared below
    ssim_map = (2.0 * mu1_mu2 + c1) / (mu1_sq + mu2_sq + c1) * ratio

    inv_npix = 1.0 / float(nc * h * w)
    cs = jnp.sum(jnp.where(valid, ratio, 0.0)) * inv_npix
    ret = jnp.sum(jnp.where(valid, ssim_map, 0.0)) * inv_npix

    # Lane-dense (8,128) output tile: [0,0] = ssim, [0,1] = cs.
    r8 = jax.lax.broadcasted_iota(jnp.int32, (8, _LANES), 0)
    c8 = jax.lax.broadcasted_iota(jnp.int32, (8, _LANES), 1)
    tile = jnp.where((r8 == 0) & (c8 == 0), ret,
                     jnp.where((r8 == 0) & (c8 == 1), cs, 0.0))
    out_ref[0] = tile


def _make_kernel(geoms):
    def kernel(x1_ref, x2_ref, g_ref, out_ref, cw_ref):
        lvl = pl.program_id(0)
        for level in range(LEVELS):
            pl.when(lvl == level)(functools.partial(
                _level_body, geoms[level],
                x1_ref, x2_ref, g_ref, out_ref, cw_ref))
    return kernel


def mssim_forward(img1, img2):
    # Mirrors MSSIM.forward (in_channels=3, window_size=11, size_average=True).
    n, c, h, w = img1.shape
    nc = n * c
    if h % 16 != 0 or w % 16 != 0:
        raise ValueError("spatial dims must be divisible by 16 (5 pyramid levels)")
    weights = jnp.array([0.0448, 0.2856, 0.3001, 0.2363, 0.1333], jnp.float32)

    # Image pyramid (tiny tensors; XLA, same jit).
    # TODO(synk): the 2x2 avg-pool downsample stays in XLA; in-kernel
    # sublane-direction strided downsampling is not guaranteed on all Mosaic
    # versions.
    x1s, x2s = [img1], [img2]
    for _ in range(LEVELS - 1):
        x1s.append(avg_pool2(x1s[-1]))
        x2s.append(avg_pool2(x2s[-1]))

    geoms = [_level_geometry(nc, x.shape[2], x.shape[3]) for x in x1s]
    r_max = max(gm["rpad"] for gm in geoms)

    x1_stack = jnp.stack([_pack_planes(x1s[l], geoms[l], r_max)
                          for l in range(LEVELS)])
    x2_stack = jnp.stack([_pack_planes(x2s[l], geoms[l], r_max)
                          for l in range(LEVELS)])
    g_stack = jnp.asarray(np.stack([_band_blockdiag(gm["w"]) for gm in geoms]))

    out = pl.pallas_call(
        _make_kernel(geoms),
        out_shape=jax.ShapeDtypeStruct((LEVELS, 8, _LANES), jnp.float32),
        grid_spec=pltpu.PrefetchScalarGridSpec(
            num_scalar_prefetch=0,
            grid=(LEVELS,),
            in_specs=[
                pl.BlockSpec((1, r_max, _LANES), lambda l: (l, 0, 0)),
                pl.BlockSpec((1, r_max, _LANES), lambda l: (l, 0, 0)),
                pl.BlockSpec((1, _LANES, _LANES), lambda l: (l, 0, 0)),
            ],
            out_specs=pl.BlockSpec((1, 8, _LANES), lambda l: (l, 0, 0)),
            scratch_shapes=[
                pltpu.VMEM((5 * r_max + 2 * _HALO, _LANES), jnp.float32),
            ],
        ),
        compiler_params=pltpu.CompilerParams(
            dimension_semantics=("parallel",),
            vmem_limit_bytes=32 * 1024 * 1024,
        ),
    )(x1_stack, x2_stack, g_stack)

    mssim = out[:, 0, 0]
    mcs = out[:, 0, 1]
    pow1 = mcs ** weights
    pow2 = mssim ** weights
    # Faithful to the reference combine: torch.prod(pow1[:-1] * pow2[-1]).
    output = jnp.prod(pow1[:-1] * pow2[-1])
    # TODO(synk): size_average=False branch is not exercised by the reference
    # forward and is not implemented.
    return 1.0 - output


if __name__ == "__main__":
    # Spatial must be >= 32 so all 5 pyramid levels exist (level 5 is 2x2),
    # matching what the PyTorch module requires.
    key = jax.random.PRNGKey(0)
    k1, k2 = jax.random.split(key)
    img1 = jax.random.uniform(k1, (2, IN_CHANNELS, 32, 32), dtype=jnp.float32)
    img2 = jax.random.uniform(k2, (2, IN_CHANNELS, 32, 32), dtype=jnp.float32)

    loss = jax.jit(mssim_forward)(img1, img2)
    jax.block_until_ready(loss)
    print("KERNEL_OK")
</pallas_src>

<mosaic_0001>
module attributes {stable_mosaic.version = 11 : i64} {
  func.func @kernel(%arg0: i32, %arg1: memref<1x88x128xf32, #tpu.memory_space<vmem>>, %arg2: memref<1x88x128xf32, #tpu.memory_space<vmem>>, %arg3: memref<1x128x128xf32, #tpu.memory_space<vmem>>, %arg4: memref<1x8x128xf32, #tpu.memory_space<vmem>>, %arg5: memref<456x128xf32, #tpu.memory_space<vmem>>) attributes {dimension_semantics = [#tpu.dimension_semantics<parallel>], iteration_bounds = array<i64: 5>, scalar_prefetch = 0 : i64, scratch_operands = 1 : i64, tpu.core_type = #tpu.core_type<tc>, window_params = [{transform_indices = @transform_0, window_bounds = array<i64: 1, 88, 128>}, {transform_indices = @transform_1, window_bounds = array<i64: 1, 88, 128>}, {transform_indices = @transform_2, window_bounds = array<i64: 1, 128, 128>}, {transform_indices = @transform_3, window_bounds = array<i64: 1, 8, 128>}]} {
    %c0_i32 = arith.constant 0 : i32
    %0 = arith.cmpi eq, %arg0, %c0_i32 : i32
    %1 = arith.extui %0 : i1 to i32
    %c0_i32_0 = arith.constant 0 : i32
    %2 = arith.cmpi ne, %1, %c0_i32_0 : i32
    scf.if %2 {
      %c0 = arith.constant 0 : index
      %c0_5 = arith.constant 0 : index
      %c0_6 = arith.constant 0 : index
      %15 = vector.load %arg3[%c0, %c0_5, %c0_6] : memref<1x128x128xf32, #tpu.memory_space<vmem>>, vector<1x128x128xf32>
      %16 = vector.shape_cast %15 : vector<1x128x128xf32> to vector<128x128xf32>
      %c0_7 = arith.constant 0 : index
      %c0_8 = arith.constant 0 : index
      %c0_9 = arith.constant 0 : index
      %17 = vector.load %arg1[%c0_7, %c0_8, %c0_9] : memref<1x88x128xf32, #tpu.memory_space<vmem>>, vector<1x88x128xf32>
      %18 = vector.shape_cast %17 : vector<1x88x128xf32> to vector<88x128xf32>
      %c0_10 = arith.constant 0 : index
      %c0_11 = arith.constant 0 : index
      %c0_12 = arith.constant 0 : index
      %19 = vector.load %arg2[%c0_10, %c0_11, %c0_12] : memref<1x88x128xf32, #tpu.memory_space<vmem>>, vector<1x88x128xf32>
      %20 = vector.shape_cast %19 : vector<1x88x128xf32> to vector<88x128xf32>
      %21 = tpu.iota {dimensions = array<i32: 0>} : vector<88x128xi32>
      %22 = tpu.iota {dimensions = array<i32: 1>} : vector<88x128xi32>
      %c5_i32 = arith.constant 5 : i32
      %23 = vector.broadcast %c5_i32 : i32 to vector<88x128xi32>
      %24 = arith.cmpi sge, %21, %23 : vector<88x128xi32>
      %c37_i32 = arith.constant 37 : i32
      %25 = vector.broadcast %c37_i32 : i32 to vector<88x128xi32>
      %26 = arith.cmpi slt, %21, %25 : vector<88x128xi32>
      %27 = arith.andi %24, %26 : vector<88x128xi1>
      %c96_i32 = arith.constant 96 : i32
      %28 = vector.broadcast %c96_i32 : i32 to vector<88x128xi32>
      %29 = arith.cmpi slt, %22, %28 : vector<88x128xi32>
      %30 = arith.andi %27, %29 : vector<88x128xi1>
      %c47_i32 = arith.constant 47 : i32
      %31 = vector.broadcast %c47_i32 : i32 to vector<88x128xi32>
      %32 = arith.cmpi sge, %21, %31 : vector<88x128xi32>
      %c79_i32 = arith.constant 79 : i32
      %33 = vector.broadcast %c79_i32 : i32 to vector<88x128xi32>
      %34 = arith.cmpi slt, %21, %33 : vector<88x128xi32>
      %35 = arith.andi %32, %34 : vector<88x128xi1>
      %c96_i32_13 = arith.constant 96 : i32
      %36 = vector.broadcast %c96_i32_13 : i32 to vector<88x128xi32>
      %37 = arith.cmpi slt, %22, %36 : vector<88x128xi32>
      %38 = arith.andi %35, %37 : vector<88x128xi1>
      %39 = arith.ori %30, %38 : vector<88x128xi1>
      %cst = arith.constant 0xFF800000 : f32
      %40 = vector.broadcast %cst : f32 to vector<88x128xf32>
      %41 = arith.select %39, %18, %40 : vector<88x128xi1>, vector<88x128xf32>
      %42 = vector.shape_cast %41 : vector<88x128xf32> to vector<1x88x128xf32>
      %cst_14 = arith.constant dense<0xFF800000> : vector<1xf32>
      %43 = vector.multi_reduction <maximumf>, %42, %cst_14 [1, 2] : vector<1x88x128xf32> to vector<1xf32>
      %44 = vector.shape_cast %43 : vector<1xf32> to vector<1x1x1xf32>
      %45 = vector.extract %44[0, 0, 0] : f32 from vector<1x1x1xf32>
      %cst_15 = arith.constant 0x7F800000 : f32
      %46 = vector.broadcast %cst_15 : f32 to vector<88x128xf32>
      %47 = arith.select %39, %18, %46 : vector<88x128xi1>, vector<88x128xf32>
      %48 = vector.shape_cast %47 : vector<88x128xf32> to vector<1x88x128xf32>
      %cst_16 = arith.constant dense<0x7F800000> : vector<1xf32>
      %49 = vector.multi_reduction <minimumf>, %48, %cst_16 [1, 2] : vector<1x88x128xf32> to vector<1xf32>
      %50 = vector.shape_cast %49 : vector<1xf32> to vector<1x1x1xf32>
      %51 = vector.extract %50[0, 0, 0] : f32 from vector<1x1x1xf32>
      %52 = arith.subf %45, %51 : f32
      %cst_17 = arith.constant 0.00999999977 : f32
      %53 = arith.mulf %cst_17, %52 : f32
      %54 = arith.mulf %53, %53 : f32
      %cst_18 = arith.constant 3.000000e-02 : f32
      %55 = arith.mulf %cst_18, %52 : f32
      %56 = arith.mulf %55, %55 : f32
      %57 = arith.mulf %18, %18 : vector<88x128xf32>
      %58 = arith.mulf %20, %20 : vector<88x128xf32>
      %59 = arith.mulf %18, %20 : vector<88x128xf32>
      %cst_19 = arith.constant dense<0.000000e+00> : vector<88x128xf32>
      %60 = tpu.matmul %18, %16, %cst_19 {dimension_numbers = #tpu.dot_dimension_numbers<[1], [0], [0], [1], [0, 0, 1, 1], [], []>} : vector<88x128xf32>, vector<128x128xf32>, vector<88x128xf32> -> vector<88x128xf32>
      %c8 = arith.constant 8 : index
      %c0_20 = arith.constant 0 : index
      %61 = vector.load %arg5[%c8, %c0_20] : memref<456x128xf32, #tpu.memory_space<vmem>>, vector<88x128xf32>
      tpu.vector_store %arg5[%c8, %c0_20], %60 {strides = array<i32>} : memref<456x128xf32, #tpu.memory_space<vmem>>, vector<88x128xf32>,
      %cst_21 = arith.constant dense<0.000000e+00> : vector<88x128xf32>
      %62 = tpu.matmul %20, %16, %cst_21 {dimension_numbers = #tpu.dot_dimension_numbers<[1], [0], [0], [1], [0, 0, 1, 1], [], []>} : vector<88x128xf32>, vector<128x128xf32>, vector<88x128xf32> -> vector<88x128xf32>
      %c96 = arith.constant 96 : index
      %c0_22 = arith.constant 0 : index
      %63 = vector.load %arg5[%c96, %c0_22] : memref<456x128xf32, #tpu.memory_space<vmem>>, vector<88x128xf32>
      tpu.vector_store %arg5[%c96, %c0_22], %62 {strides = array<i32>} : memref<456x128xf32, #tpu.memory_space<vmem>>, vector<88x128xf32>,
      %cst_23 = arith.constant dense<0.000000e+00> : vector<88x128xf32>
      %64 = tpu.matmul %57, %16, %cst_23 {dimension_numbers = #tpu.dot_dimension_numbers<[1], [0], [0], [1], [0, 0, 1, 1], [], []>} : vector<88x128xf32>, vector<128x128xf32>, vector<88x128xf32> -> vector<88x128xf32>
      %c184 = arith.constant 184 : index
      %c0_24 = arith.constant 0 : index
      %65 = vector.load %arg5[%c184, %c0_24] : memref<456x128xf32, #tpu.memory_space<vmem>>, vector<88x128xf32>
      tpu.vector_store %arg5[%c184, %c0_24], %64 {strides = array<i32>} : memref<456x128xf32, #tpu.memory_space<vmem>>, vector<88x128xf32>,
      %cst_25 = arith.constant dense<0.000000e+00> : vector<88x128xf32>
      %66 = tpu.matmul %58, %16, %cst_25 {dimension_numbers = #tpu.dot_dimension_numbers<[1], [0], [0], [1], [0, 0, 1, 1], [], []>} : vector<88x128xf32>, vector<128x128xf32>, vector<88x128xf32> -> vector<88x128xf32>
      %c272 = arith.constant 272 : index
      %c0_26 = arith.constant 0 : index
      %67 = vector.load %arg5[%c272, %c0_26] : memref<456x128xf32, #tpu.memory_space<vmem>>, vector<88x128xf32>
      tpu.vector_store %arg5[%c272, %c0_26], %66 {strides = array<i32>} : memref<456x128xf32, #tpu.memory_space<vmem>>, vector<88x128xf32>,
      %cst_27 = arith.constant dense<0.000000e+00> : vector<88x128xf32>
      %68 = tpu.matmul %59, %16, %cst_27 {dimension_numbers = #tpu.dot_dimension_numbers<[1], [0], [0], [1], [0, 0, 1, 1], [], []>} : vector<88x128xf32>, vector<128x128xf32>, vector<88x128xf32> -> vector<88x128xf32>
      %c360 = arith.constant 360 : index
      %c0_28 = arith.constant 0 : index
      %69 = vector.load %arg5[%c360, %c0_28] : memref<456x128xf32, #tpu.memory_space<vmem>>, vector<88x128xf32>
      tpu.vector_store %arg5[%c360, %c0_28], %68 {strides = array<i32>} : memref<456x128xf32, #tpu.memory_space<vmem>>, vector<88x128xf32>,
      %c8_29 = arith.constant 8 : index
      %c0_30 = arith.constant 0 : index
      %70 = vector.load %arg5[%c8_29, %c0_30] : memref<456x128xf32, #tpu.memory_space<vmem>>, vector<88x128xf32>
      %cst_31 = arith.constant 0.00163801119 : f32
      %71 = vector.broadcast %cst_31 : f32 to vector<88x128xf32>
      %72 = arith.mulf %71, %70 : vector<88x128xf32>
      %c7 = arith.constant 7 : index
      %c0_32 = arith.constant 0 : index
      %73 = vector.load %arg5[%c7, %c0_32] : memref<456x128xf32, #tpu.memory_space<vmem>>, vector<88x128xf32>
      %c9 = arith.constant 9 : index
      %c0_33 = arith.constant 0 : index
      %74 = vector.load %arg5[%c9, %c0_33] : memref<456x128xf32, #tpu.memory_space<vmem>>, vector<88x128xf32>
      %75 = arith.addf %73, %74 : vector<88x128xf32>
      %cst_34 = arith.constant 0.00204562838 : f32
      %76 = vector.broadcast %cst_34 : f32 to vector<88x128xf32>
      %77 = arith.mulf %76, %75 : vector<88x128xf32>
      %78 = arith.addf %72, %77 : vector<88x128xf32>
      %c6 = arith.constant 6 : index
      %c0_35 = arith.constant 0 : index
      %79 = vector.load %arg5[%c6, %c0_35] : memref<456x128xf32, #tpu.memory_space<vmem>>, vector<88x128xf32>
      %c10 = arith.constant 10 : index
      %c0_36 = arith.constant 0 : index
      %80 = vector.load %arg5[%c10, %c0_36] : memref<456x128xf32, #tpu.memory_space<vmem>>, vector<88x128xf32>
      %81 = arith.addf %79, %80 : vector<88x128xf32>
      %cst_37 = arith.constant 3.984340e-03 : f32
      %82 = vector.broadcast %cst_37 : f32 to vector<88x128xf32>
      %83 = arith.mulf %82, %81 : vector<88x128xf32>
      %84 = arith.addf %78, %83 : vector<88x128xf32>
      %c5 = arith.constant 5 : index
      %c0_38 = arith.constant 0 : index
      %85 = vector.load %arg5[%c5, %c0_38] : memref<456x128xf32, #tpu.memory_space<vmem>>, vector<88x128xf32>
      %c11 = arith.constant 11 : index
      %c0_39 = arith.constant 0 : index
      %86 = vector.load %arg5[%c11, %c0_39] : memref<456x128xf32, #tpu.memory_space<vmem>>, vector<88x128xf32>
      %87 = arith.addf %85, %86 : vector<88x128xf32>
      %cst_40 = arith.constant 0.0121033564 : f32
      %88 = vector.broadcast %cst_40 : f32 to vector<88x128xf32>
      %89 = arith.mulf %88, %87 : vector<88x128xf32>
      %90 = arith.addf %84, %89 : vector<88x128xf32>
      %c4 = arith.constant 4 : index
      %c0_41 = arith.constant 0 : index
      %91 = vector.load %arg5[%c4, %c0_41] : memref<456x128xf32, #tpu.memory_space<vmem>>, vector<88x128xf32>
      %c12 = arith.constant 12 : index
      %c0_42 = arith.constant 0 : index
      %92 = vector.load %arg5[%c12, %c0_42] : memref<456x128xf32, #tpu.memory_space<vmem>>, vector<88x128xf32>
      %93 = arith.addf %91, %92 : vector<88x128xf32>
      %cst_43 = arith.constant 0.0573422872 : f32
      %94 = vector.broadcast %cst_43 : f32 to vector<88x128xf32>
      %95 = arith.mulf %94, %93 : vector<88x128xf32>
      %96 = arith.addf %90, %95 : vector<88x128xf32>
      %c3 = arith.constant 3 : index
      %c0_44 = arith.constant 0 : index
      %97 = vector.load %arg5[%c3, %c0_44] : memref<456x128xf32, #tpu.memory_space<vmem>>, vector<88x128xf32>
      %c13 = arith.constant 13 : index
      %c0_45 = arith.constant 0 : index
      %98 = vector.load %arg5[%c13, %c0_45] : memref<456x128xf32, #tpu.memory_space<vmem>>, vector<88x128xf32>
      %99 = arith.addf %97, %98 : vector<88x128xf32>
      %cst_46 = arith.constant 0.423705369 : f32
      %100 = vector.broadcast %cst_46 : f32 to vector<88x128xf32>
      %101 = arith.mulf %100, %99 : vector<88x128xf32>
      %102 = arith.addf %96, %101 : vector<88x128xf32>
      %c96_47 = arith.constant 96 : index
      %c0_48 = arith.constant 0 : index
      %103 = vector.load %arg5[%c96_47, %c0_48] : memref<456x128xf32, #tpu.memory_space<vmem>>, vector<88x128xf32>
      %cst_49 = arith.constant 0.00163801119 : f32
      %104 = vector.broadcast %cst_49 : f32 to vector<88x128xf32>
      %105 = arith.mulf %104, %103 : vector<88x128xf32>
      %c95 = arith.constant 95 : index
      %c0_50 = arith.constant 0 : index
      %106 = vector.load %arg5[%c95, %c0_50] : memref<456x128xf32, #tpu.memory_space<vmem>>, vector<88x128xf32>
      %c97 = arith.constant 97 : index
      %c0_51 = arith.constant 0 : index
      %107 = vector.load %arg5[%c97, %c0_51] : memref<456x128xf32, #tpu.memory_space<vmem>>, vector<88x128xf32>
      %108 = arith.addf %106, %107 : vector<88x128xf32>
      %cst_52 = arith.constant 0.00204562838 : f32
      %109 = vector.broadcast %cst_52 : f32 to vector<88x128xf32>
      %110 = arith.mulf %109, %108 : vector<88x128xf32>
      %111 = arith.addf %105, %110 : vector<88x128xf32>
      %c94 = arith.constant 94 : index
      %c0_53 = arith.constant 0 : index
      %112 = vector.load %arg5[%c94, %c0_53] : memref<456x128xf32, #tpu.memory_space<vmem>>, vector<88x128xf32>
      %c98 = arith.constant 98 : index
      %c0_54 = arith.constant 0 : index
      %113 = vector.load %arg5[%c98, %c0_54] : memref<456x128xf32, #tpu.memory_space<vmem>>, vector<88x128xf32>
      %114 = arith.addf %112, %113 : vector<88x128xf32>
      %cst_55 = arith.constant 3.984340e-03 : f32
      %115 = vector.broadcast %cst_55 : f32 to vector<88x128xf32>
      %116 = arith.mulf %115, %114 : vector<88x128xf32>
      %117 = arith.addf %111, %116 : vector<88x128xf32>
      %c93 = arith.constant 93 : index
      %c0_56 = arith.constant 0 : index
      %118 = vector.load %arg5[%c93, %c0_56] : memref<456x128xf32, #tpu.memory_space<vmem>>, vector<88x128xf32>
      %c99 = arith.constant 99 : index
      %c0_57 = arith.constant 0 : index
      %119 = vector.load %arg5[%c99, %c0_57] : memref<456x128xf32, #tpu.memory_space<vmem>>, vector<88x128xf32>
      %120 = arith.addf %118, %119 : vector<88x128xf32>
      %cst_58 = arith.constant 0.0121033564 : f32
      %121 = vector.broadcast %cst_58 : f32 to vector<88x128xf32>
      %122 = arith.mulf %121, %120 : vector<88x128xf32>
      %123 = arith.addf %117, %122 : vector<88x128xf32>
      %c92 = arith.constant 92 : index
      %c0_59 = arith.constant 0 : index
      %124 = vector.load %arg5[%c92, %c0_59] : memref<456x128xf32, #tpu.memory_space<vmem>>, vector<88x128xf32>
      %c100 = arith.constant 100 : index
      %c0_60 = arith.constant 0 : index
      %125 = vector.load %arg5[%c100, %c0_60] : memref<456x128xf32, #tpu.memory_space<vmem>>, vector<88x128xf32>
      %126 = arith.addf %124, %125 : vector<88x128xf32>
      %cst_61 = arith.constant 0.0573422872 : f32
      %127 = vector.broadcast %cst_61 : f32 to vector<88x128xf32>
      %128 = arith.mulf %127, %126 : vector<88x128xf32>
      %129 = arith.addf %123, %128 : vector<88x128xf32>
      %c91 = arith.constant 91 : index
      %c0_62 = arith.constant 0 : index
      %130 = vector.load %arg5[%c91, %c0_62] : memref<456x128xf32, #tpu.memory_space<vmem>>, vector<88x128xf32>
      %c101 = arith.constant 101 : index
      %c0_63 = arith.constant 0 : index
      %131 = vector.load %arg5[%c101, %c0_63] : memref<456x128xf32, #tpu.memory_space<vmem>>, vector<88x128xf32>
      %132 = arith.addf %130, %131 : vector<88x128xf32>
      %cst_64 = arith.constant 0.423705369 : f32
      %133 = vector.broadcast %cst_64 : f32 to vector<88x128xf32>
      %134 = arith.mulf %133, %132 : vector<88x128xf32>
      %135 = arith.addf %129, %134 : vector<88x128xf32>
      %c184_65 = arith.constant 184 : index
      %c0_66 = arith.constant 0 : index
      %136 = vector.load %arg5[%c184_65, %c0_66] : memref<456x128xf32, #tpu.memory_space<vmem>>, vector<88x128xf32>
      %cst_67 = arith.constant 0.00163801119 : f32
      %137 = vector.broadcast %cst_67 : f32 to vector<88x128xf32>
      %138 = arith.mulf %137, %136 : vector<88x128xf32>
      %c183 = arith.constant 183 : index
      %c0_68 = arith.constant 0 : index
      %139 = vector.load %arg5[%c183, %c0_68] : memref<456x128xf32, #tpu.memory_space<vmem>>, vector<88x128xf32>
      %c185 = arith.constant 185 : index
      %c0_69 = arith.constant 0 : index
      %140 = vector.load %arg5[%c185, %c0_69] : memref<456x128xf32, #tpu.memory_space<vmem>>, vector<88x128xf32>
      %141 = arith.addf %139, %140 : vector<88x128xf32>
      %cst_70 = arith.constant 0.00204562838 : f32
      %142 = vector.broadcast %cst_70 : f32 to vector<88x128xf32>
      %143 = arith.mulf %142, %141 : vector<88x128xf32>
      %144 = arith.addf %138, %143 : vector<88x128xf32>
      %c182 = arith.constant 182 : index
      %c0_71 = arith.constant 0 : index
      %145 = vector.load %arg5[%c182, %c0_71] : memref<456x128xf32, #tpu.memory_space<vmem>>, vector<88x128xf32>
      %c186 = arith.constant 186 : index
      %c0_72 = arith.constant 0 : index
      %146 = vector.load %arg5[%c186, %c0_72] : memref<456x128xf32, #tpu.memory_space<vmem>>, vector<88x128xf32>
      %147 = arith.addf %145, %146 : vector<88x128xf32>
      %cst_73 = arith.constant 3.984340e-03 : f32
      %148 = vector.broadcast %cst_73 : f32 to vector<88x128xf32>
      %149 = arith.mulf %148, %147 : vector<88x128xf32>
      %150 = arith.addf %144, %149 : vector<88x128xf32>
      %c181 = arith.constant 181 : index
      %c0_74 = arith.constant 0 : index
      %151 = vector.load %arg5[%c181, %c0_74] : memref<456x128xf32, #tpu.memory_space<vmem>>, vector<88x128xf32>
      %c187 = arith.constant 187 : index
      %c0_75 = arith.constant 0 : index
      %152 = vector.load %arg5[%c187, %c0_75] : memref<456x128xf32, #tpu.memory_space<vmem>>, vector<88x128xf32>
      %153 = arith.addf %151, %152 : vector<88x128xf32>
      %cst_76 = arith.constant 0.0121033564 : f32
      %154 = vector.broadcast %cst_76 : f32 to vector<88x128xf32>
      %155 = arith.mulf %154, %153 : vector<88x128xf32>
      %156 = arith.addf %150, %155 : vector<88x128xf32>
      %c180 = arith.constant 180 : index
      %c0_77 = arith.constant 0 : index
      %157 = vector.load %arg5[%c180, %c0_77] : memref<456x128xf32, #tpu.memory_space<vmem>>, vector<88x128xf32>
      %c188 = arith.constant 188 : index
      %c0_78 = arith.constant 0 : index
      %158 = vector.load %arg5[%c188, %c0_78] : memref<456x128xf32, #tpu.memory_space<vmem>>, vector<88x128xf32>
      %159 = arith.addf %157, %158 : vector<88x128xf32>
      %cst_79 = arith.constant 0.0573422872 : f32
      %160 = vector.broadcast %cst_79 : f32 to vector<88x128xf32>
      %161 = arith.mulf %160, %159 : vector<88x128xf32>
      %162 = arith.addf %156, %161 : vector<88x128xf32>
      %c179 = arith.constant 179 : index
      %c0_80 = arith.constant 0 : index
      %163 = vector.load %arg5[%c179, %c0_80] : memref<456x128xf32, #tpu.memory_space<vmem>>, vector<88x128xf32>
      %c189 = arith.constant 189 : index
      %c0_81 = arith.constant 0 : index
      %164 = vector.load %arg5[%c189, %c0_81] : memref<456x128xf32, #tpu.memory_space<vmem>>, vector<88x128xf32>
      %165 = arith.addf %163, %164 : vector<88x128xf32>
      %cst_82 = arith.constant 0.423705369 : f32
      %166 = vector.broadcast %cst_82 : f32 to vector<88x128xf32>
      %167 = arith.mulf %166, %165 : vector<88x128xf32>
      %168 = arith.addf %162, %167 : vector<88x128xf32>
      %c272_83 = arith.constant 272 : index
      %c0_84 = arith.constant 0 : index
      %169 = vector.load %arg5[%c272_83, %c0_84] : memref<456x128xf32, #tpu.memory_space<vmem>>, vector<88x128xf32>
      %cst_85 = arith.constant 0.00163801119 : f32
      %170 = vector.broadcast %cst_85 : f32 to vector<88x128xf32>
      %171 = arith.mulf %170, %169 : vector<88x128xf32>
      %c271 = arith.constant 271 : index
      %c0_86 = arith.constant 0 : index
      %172 = vector.load %arg5[%c271, %c0_86] : memref<456x128xf32, #tpu.memory_space<vmem>>, vector<88x128xf32>
      %c273 = arith.constant 273 : index
      %c0_87 = arith.constant 0 : index
      %173 = vector.load %arg5[%c273, %c0_87] : memref<456x128xf32, #tpu.memory_space<vmem>>, vector<88x128xf32>
      %174 = arith.addf %172, %173 : vector<88x128xf32>
      %cst_88 = arith.constant 0.00204562838 : f32
      %175 = vector.broadcast %cst_88 : f32 to vector<88x128xf32>
      %176 = arith.mulf %175, %174 : vector<88x128xf32>
      %177 = arith.addf %171, %176 : vector<88x128xf32>
      %c270 = arith.constant 270 : index
      %c0_89 = arith.constant 0 : index
      %178 = vector.load %arg5[%c270, %c0_89] : memref<456x128xf32, #tpu.memory_space<vmem>>, vector<88x128xf32>
      %c274 = arith.constant 274 : index
      %c0_90 = arith.constant 0 : index
      %179 = vector.load %arg5[%c274, %c0_90] : memref<456x128xf32, #tpu.memory_space<vmem>>, vector<88x128xf32>
      %180 = arith.addf %178, %179 : vector<88x128xf32>
      %cst_91 = arith.constant 3.984340e-03 : f32
      %181 = vector.broadcast %cst_91 : f32 to vector<88x128xf32>
      %182 = arith.mulf %181, %180 : vector<88x128xf32>
      %183 = arith.addf %177, %182 : vector<88x128xf32>
      %c269 = arith.constant 269 : index
      %c0_92 = arith.constant 0 : index
      %184 = vector.load %arg5[%c269, %c0_92] : memref<456x128xf32, #tpu.memory_space<vmem>>, vector<88x128xf32>
      %c275 = arith.constant 275 : index
      %c0_93 = arith.constant 0 : index
      %185 = vector.load %arg5[%c275, %c0_93] : memref<456x128xf32, #tpu.memory_space<vmem>>, vector<88x128xf32>
      %186 = arith.addf %184, %185 : vector<88x128xf32>
      %cst_94 = arith.constant 0.0121033564 : f32
      %187 = vector.broadcast %cst_94 : f32 to vector<88x128xf32>
      %188 = arith.mulf %187, %186 : vector<88x128xf32>
      %189 = arith.addf %183, %188 : vector<88x128xf32>
      %c268 = arith.constant 268 : index
      %c0_95 = arith.constant 0 : index
      %190 = vector.load %arg5[%c268, %c0_95] : memref<456x128xf32, #tpu.memory_space<vmem>>, vector<88x128xf32>
      %c276 = arith.constant 276 : index
      %c0_96 = arith.constant 0 : index
      %191 = vector.load %arg5[%c276, %c0_96] : memref<456x128xf32, #tpu.memory_space<vmem>>, vector<88x128xf32>
      %192 = arith.addf %190, %191 : vector<88x128xf32>
      %cst_97 = arith.constant 0.0573422872 : f32
      %193 = vector.broadcast %cst_97 : f32 to vector<88x128xf32>
      %194 = arith.mulf %193, %192 : vector<88x128xf32>
      %195 = arith.addf %189, %194 : vector<88x128xf32>
      %c267 = arith.constant 267 : index
      %c0_98 = arith.constant 0 : index
      %196 = vector.load %arg5[%c267, %c0_98] : memref<456x128xf32, #tpu.memory_space<vmem>>, vector<88x128xf32>
      %c277 = arith.constant 277 : index
      %c0_99 = arith.constant 0 : index
      %197 = vector.load %arg5[%c277, %c0_99] : memref<456x128xf32, #tpu.memory_space<vmem>>, vector<88x128xf32>
      %198 = arith.addf %196, %197 : vector<88x128xf32>
      %cst_100 = arith.constant 0.423705369 : f32
      %199 = vector.broadcast %cst_100 : f32 to vector<88x128xf32>
      %200 = arith.mulf %199, %198 : vector<88x128xf32>
      %201 = arith.addf %195, %200 : vector<88x128xf32>
      %c360_101 = arith.constant 360 : index
      %c0_102 = arith.constant 0 : index
      %202 = vector.load %arg5[%c360_101, %c0_102] : memref<456x128xf32, #tpu.memory_space<vmem>>, vector<88x128xf32>
      %cst_103 = arith.constant 0.00163801119 : f32
      %203 = vector.broadcast %cst_103 : f32 to vector<88x128xf32>
      %204 = arith.mulf %203, %202 : vector<88x128xf32>
      %c359 = arith.constant 359 : index
      %c0_104 = arith.constant 0 : index
      %205 = vector.load %arg5[%c359, %c0_104] : memref<456x128xf32, #tpu.memory_space<vmem>>, vector<88x128xf32>
      %c361 = arith.constant 361 : index
      %c0_105 = arith.constant 0 : index
      %206 = vector.load %arg5[%c361, %c0_105] : memref<456x128xf32, #tpu.memory_space<vmem>>, vector<88x128xf32>
      %207 = arith.addf %205, %206 : vector<88x128xf32>
      %cst_106 = arith.constant 0.00204562838 : f32
      %208 = vector.broadcast %cst_106 : f32 to vector<88x128xf32>
      %209 = arith.mulf %208, %207 : vector<88x128xf32>
      %210 = arith.addf %204, %209 : vector<88x128xf32>
      %c358 = arith.constant 358 : index
      %c0_107 = arith.constant 0 : index
      %211 = vector.load %arg5[%c358, %c0_107] : memref<456x128xf32, #tpu.memory_space<vmem>>, vector<88x128xf32>
      %c362 = arith.constant 362 : index
      %c0_108 = arith.constant 0 : index
      %212 = vector.load %arg5[%c362, %c0_108] : memref<456x128xf32, #tpu.memory_space<vmem>>, vector<88x128xf32>
      %213 = arith.addf %211, %212 : vector<88x128xf32>
      %cst_109 = arith.constant 3.984340e-03 : f32
      %214 = vector.broadcast %cst_109 : f32 to vector<88x128xf32>
      %215 = arith.mulf %214, %213 : vector<88x128xf32>
      %216 = arith.addf %210, %215 : vector<88x128xf32>
      %c357 = arith.constant 357 : index
      %c0_110 = arith.constant 0 : index
      %217 = vector.load %arg5[%c357, %c0_110] : memref<456x128xf32, #tpu.memory_space<vmem>>, vector<88x128xf32>
      %c363 = arith.constant 363 : index
      %c0_111 = arith.constant 0 : index
      %218 = vector.load %arg5[%c363, %c0_111] : memref<456x128xf32, #tpu.memory_space<vmem>>, vector<88x128xf32>
      %219 = arith.addf %217, %218 : vector<88x128xf32>
      %cst_112 = arith.constant 0.0121033564 : f32
      %220 = vector.broadcast %cst_112 : f32 to vector<88x128xf32>
      %221 = arith.mulf %220, %219 : vector<88x128xf32>
      %222 = arith.addf %216, %221 : vector<88x128xf32>
      %c356 = arith.constant 356 : index
      %c0_113 = arith.constant 0 : index
      %223 = vector.load %arg5[%c356, %c0_113] : memref<456x128xf32, #tpu.memory_space<vmem>>, vector<88x128xf32>
      %c364 = arith.constant 364 : index
      %c0_114 = arith.constant 0 : index
      %224 = vector.load %arg5[%c364, %c0_114] : memref<456x128xf32, #tpu.memory_space<vmem>>, vector<88x128xf32>
      %225 = arith.addf %223, %224 : vector<88x128xf32>
      %cst_115 = arith.constant 0.0573422872 : f32
      %226 = vector.broadcast %cst_115 : f32 to vector<88x128xf32>
      %227 = arith.mulf %226, %225 : vector<88x128xf32>
      %228 = arith.addf %222, %227 : vector<88x128xf32>
      %c355 = arith.constant 355 : index
      %c0_116 = arith.constant 0 : index
      %229 = vector.load %arg5[%c355, %c0_116] : memref<456x128xf32, #tpu.memory_space<vmem>>, vector<88x128xf32>
      %c365 = arith.constant 365 : index
      %c0_117 = arith.constant 0 : index
      %230 = vector.load %arg5[%c365, %c0_117] : memref<456x128xf32, #tpu.memory_space<vmem>>, vector<88x128xf32>
      %231 = arith.addf %229, %230 : vector<88x128xf32>
      %cst_118 = arith.constant 0.423705369 : f32
      %232 = vector.broadcast %cst_118 : f32 to vector<88x128xf32>
      %233 = arith.mulf %232, %231 : vector<88x128xf32>
      %234 = arith.addf %228, %233 : vector<88x128xf32>
      %235 = arith.mulf %102, %102 : vector<88x128xf32>
      %236 = arith.mulf %135, %135 : vector<88x128xf32>
      %237 = arith.mulf %102, %135 : vector<88x128xf32>
      %238 = arith.subf %168, %235 : vector<88x128xf32>
      %239 = arith.subf %201, %236 : vector<88x128xf32>
      %240 = arith.subf %234, %237 : vector<88x128xf32>
      %cst_119 = arith.constant 2.000000e+00 : f32
      %241 = vector.broadcast %cst_119 : f32 to vector<88x128xf32>
      %242 = arith.mulf %241, %240 : vector<88x128xf32>
      %243 = vector.broadcast %56 : f32 to vector<88x128xf32>
      %244 = arith.addf %242, %243 : vector<88x128xf32>
      %245 = arith.addf %238, %239 : vector<88x128xf32>
      %246 = vector.broadcast %56 : f32 to vector<88x128xf32>
      %247 = arith.addf %245, %246 : vector<88x128xf32>
      %248 = arith.divf %244, %247 : vector<88x128xf32>
      %cst_120 = arith.constant 2.000000e+00 : f32
      %249 = vector.broadcast %cst_120 : f32 to vector<88x128xf32>
      %250 = arith.mulf %249, %237 : vector<88x128xf32>
      %251 = vector.broadcast %54 : f32 to vector<88x128xf32>
      %252 = arith.addf %250, %251 : vector<88x128xf32>
      %253 = arith.addf %235, %236 : vector<88x128xf32>
      %254 = vector.broadcast %54 : f32 to vector<88x128xf32>
      %255 = arith.addf %253, %254 : vector<88x128xf32>
      %256 = arith.divf %252, %255 : vector<88x128xf32>
      %257 = arith.mulf %256, %248 : vector<88x128xf32>
      %cst_121 = arith.constant 0.000000e+00 : f32
      %258 = vector.broadcast %cst_121 : f32 to vector<88x128xf32>
      %259 = arith.select %39, %248, %258 : vector<88x128xi1>, vector<88x128xf32>
      %260 = vector.shape_cast %259 : vector<88x128xf32> to vector<1x88x128xf32>
      %cst_122 = arith.constant dense<0.000000e+00> : vector<1xf32>
      %261 = vector.multi_reduction <add>, %260, %cst_122 [1, 2] : vector<1x88x128xf32> to vector<1xf32>
      %262 = vector.shape_cast %261 : vector<1xf32> to vector<1x1x1xf32>
      %263 = vector.extract %262[0, 0, 0] : f32 from vector<1x1x1xf32>
      %cst_123 = arith.constant 1.62760422E-4 : f32
      %264 = arith.mulf %263, %cst_123 : f32
      %cst_124 = arith.constant 0.000000e+00 : f32
      %265 = vector.broadcast %cst_124 : f32 to vector<88x128xf32>
      %266 = arith.select %39, %257, %265 : vector<88x128xi1>, vector<88x128xf32>
      %267 = vector.shape_cast %266 : vector<88x128xf32> to vector<1x88x128xf32>
      %cst_125 = arith.constant dense<0.000000e+00> : vector<1xf32>
      %268 = vector.multi_reduction <add>, %267, %cst_125 [1, 2] : vector<1x88x128xf32> to vector<1xf32>
      %269 = vector.shape_cast %268 : vector<1xf32> to vector<1x1x1xf32>
      %270 = vector.extract %269[0, 0, 0] : f32 from vector<1x1x1xf32>
      %cst_126 = arith.constant 1.62760422E-4 : f32
      %271 = arith.mulf %270, %cst_126 : f32
      %272 = tpu.iota {dimensions = array<i32: 0>} : vector<8x128xi32>
      %273 = tpu.iota {dimensions = array<i32: 1>} : vector<8x128xi32>
      %c0_i32_127 = arith.constant 0 : i32
      %274 = vector.broadcast %c0_i32_127 : i32 to vector<8x128xi32>
      %275 = arith.cmpi eq, %272, %274 : vector<8x128xi32>
      %c0_i32_128 = arith.constant 0 : i32
      %276 = vector.broadcast %c0_i32_128 : i32 to vector<8x128xi32>
      %277 = arith.cmpi eq, %273, %276 : vector<8x128xi32>
      %278 = arith.andi %275, %277 : vector<8x128xi1>
      %c0_i32_129 = arith.constant 0 : i32
      %279 = vector.broadcast %c0_i32_129 : i32 to vector<8x128xi32>
      %280 = arith.cmpi eq, %272, %279 : vector<8x128xi32>
      %c1_i32_130 = arith.constant 1 : i32
      %281 = vector.broadcast %c1_i32_130 : i32 to vector<8x128xi32>
      %282 = arith.cmpi eq, %273, %281 : vector<8x128xi32>
      %283 = arith.andi %280, %282 : vector<8x128xi1>
      %cst_131 = arith.constant 0.000000e+00 : f32
      %284 = vector.broadcast %264 : f32 to vector<8x128xf32>
      %285 = vector.broadcast %cst_131 : f32 to vector<8x128xf32>
      %286 = arith.select %283, %284, %285 : vector<8x128xi1>, vector<8x128xf32>
      %287 = vector.broadcast %271 : f32 to vector<8x128xf32>
      %288 = arith.select %278, %287, %286 : vector<8x128xi1>, vector<8x128xf32>
      %c0_132 = arith.constant 0 : index
      %c0_133 = arith.constant 0 : index
      %c0_134 = arith.constant 0 : index
      %289 = vector.load %arg4[%c0_132, %c0_133, %c0_134] : memref<1x8x128xf32, #tpu.memory_space<vmem>>, vector<1x8x128xf32>
      %290 = vector.shape_cast %289 : vector<1x8x128xf32> to vector<8x128xf32>
      %291 = vector.shape_cast %288 : vector<8x128xf32> to vector<1x8x128xf32>
      tpu.vector_store %arg4[%c0_132, %c0_133, %c0_134], %291 {strides = array<i32>} : memref<1x8x128xf32, #tpu.memory_space<vmem>>, vector<1x8x128xf32>,
    } else {
    }
    %c1_i32 = arith.constant 1 : i32
    %3 = arith.cmpi eq, %arg0, %c1_i32 : i32
    %4 = arith.extui %3 : i1 to i32
    %c0_i32_1 = arith.constant 0 : i32
    %5 = arith.cmpi ne, %4, %c0_i32_1 : i32
    scf.if %5 {
      %c0 = arith.constant 0 : index
      %c0_5 = arith.constant 0 : index
      %c0_6 = arith.constant 0 : index
      %15 = vector.load %arg3[%c0, %c0_5, %c0_6] : memref<1x128x128xf32, #tpu.memory_space<vmem>>, vector<1x128x128xf32>
      %16 = vector.shape_cast %15 : vector<1x128x128xf32> to vector<128x128xf32>
      %c0_7 = arith.constant 0 : index
      %c0_8 = arith.constant 0 : index
      %c0_9 = arith.constant 0 : index
      %17 = vector.load %arg1[%c0_7, %c0_8, %c0_9] : memref<1x88x128xf32, #tpu.memory_space<vmem>>, vector<1x88x128xf32>
      %18 = vector.shape_cast %17 : vector<1x88x128xf32> to vector<88x128xf32>
      %19 = vector.extract_strided_slice %18 {offsets = [0, 0], sizes = [32, 128], strides = [1, 1]} : vector<88x128xf32> to vector<32x128xf32>
      %c0_10 = arith.constant 0 : index
      %c0_11 = arith.constant 0 : index
      %c0_12 = arith.constant 0 : index
      %20 = vector.load %arg2[%c0_10, %c0_11, %c0_12] : memref<1x88x128xf32, #tpu.memory_space<vmem>>, vector<1x88x128xf32>
      %21 = vector.shape_cast %20 : vector<1x88x128xf32> to vector<88x128xf32>
      %22 = vector.extract_strided_slice %21 {offsets = [0, 0], sizes = [32, 128], strides = [1, 1]} : vector<88x128xf32> to vector<32x128xf32>
      %23 = tpu.iota {dimensions = array<i32: 0>} : vector<32x128xi32>
      %24 = tpu.iota {dimensions = array<i32: 1>} : vector<32x128xi32>
      %c5_i32 = arith.constant 5 : i32
      %25 = vector.broadcast %c5_i32 : i32 to vector<32x128xi32>
      %26 = arith.cmpi sge, %23, %25 : vector<32x128xi32>
      %c21_i32 = arith.constant 21 : i32
      %27 = vector.broadcast %c21_i32 : i32 to vector<32x128xi32>
      %28 = arith.cmpi slt, %23, %27 : vector<32x128xi32>
      %29 = arith.andi %26, %28 : vector<32x128xi1>
      %c96_i32 = arith.constant 96 : i32
      %30 = vector.broadcast %c96_i32 : i32 to vector<32x128xi32>
      %31 = arith.cmpi slt, %24, %30 : vector<32x128xi32>
      %32 = arith.andi %29, %31 : vector<32x128xi1>
      %cst = arith.constant 0xFF800000 : f32
      %33 = vector.broadcast %cst : f32 to vector<32x128xf32>
      %34 = arith.select %32, %19, %33 : vector<32x128xi1>, vector<32x128xf32>
      %35 = vector.shape_cast %34 : vector<32x128xf32> to vector<1x32x128xf32>
      %cst_13 = arith.constant dense<0xFF800000> : vector<1xf32>
      %36 = vector.multi_reduction <maximumf>, %35, %cst_13 [1, 2] : vector<1x32x128xf32> to vector<1xf32>
      %37 = vector.shape_cast %36 : vector<1xf32> to vector<1x1x1xf32>
      %38 = vector.extract %37[0, 0, 0] : f32 from vector<1x1x1xf32>
      %cst_14 = arith.constant 0x7F800000 : f32
      %39 = vector.broadcast %cst_14 : f32 to vector<32x128xf32>
      %40 = arith.select %32, %19, %39 : vector<32x128xi1>, vector<32x128xf32>
      %41 = vector.shape_cast %40 : vector<32x128xf32> to vector<1x32x128xf32>
      %cst_15 = arith.constant dense<0x7F800000> : vector<1xf32>
      %42 = vector.multi_reduction <minimumf>, %41, %cst_15 [1, 2] : vector<1x32x128xf32> to vector<1xf32>
      %43 = vector.shape_cast %42 : vector<1xf32> to vector<1x1x1xf32>
      %44 = vector.extract %43[0, 0, 0] : f32 from vector<1x1x1xf32>
      %45 = arith.subf %38, %44 : f32
      %cst_16 = arith.constant 0.00999999977 : f32
      %46 = arith.mulf %cst_16, %45 : f32
      %47 = arith.mulf %46, %46 : f32
      %cst_17 = arith.constant 3.000000e-02 : f32
      %48 = arith.mulf %cst_17, %45 : f32
      %49 = arith.mulf %48, %48 : f32
      %50 = arith.mulf %19, %19 : vector<32x128xf32>
      %51 = arith.mulf %22, %22 : vector<32x128xf32>
      %52 = arith.mulf %19, %22 : vector<32x128xf32>
      %cst_18 = arith.constant dense<0.000000e+00> : vector<32x128xf32>
      %53 = tpu.matmul %19, %16, %cst_18 {dimension_numbers = #tpu.dot_dimension_numbers<[1], [0], [0], [1], [0, 0, 1, 1], [], []>} : vector<32x128xf32>, vector<128x128xf32>, vector<32x128xf32> -> vector<32x128xf32>
      %c8 = arith.constant 8 : index
      %c0_19 = arith.constant 0 : index
      %54 = vector.load %arg5[%c8, %c0_19] : memref<456x128xf32, #tpu.memory_space<vmem>>, vector<32x128xf32>
      tpu.vector_store %arg5[%c8, %c0_19], %53 {strides = array<i32>} : memref<456x128xf32, #tpu.memory_space<vmem>>, vector<32x128xf32>,
      %cst_20 = arith.constant dense<0.000000e+00> : vector<32x128xf32>
      %55 = tpu.matmul %22, %16, %cst_20 {dimension_numbers = #tpu.dot_dimension_numbers<[1], [0], [0], [1], [0, 0, 1, 1], [], []>} : vector<32x128xf32>, vector<128x128xf32>, vector<32x128xf32> -> vector<32x128xf32>
      %c40 = arith.constant 40 : index
      %c0_21 = arith.constant 0 : index
      %56 = vector.load %arg5[%c40, %c0_21] : memref<456x128xf32, #tpu.memory_space<vmem>>, vector<32x128xf32>
      tpu.vector_store %arg5[%c40, %c0_21], %55 {strides = array<i32>} : memref<456x128xf32, #tpu.memory_space<vmem>>, vector<32x128xf32>,
      %cst_22 = arith.constant dense<0.000000e+00> : vector<32x128xf32>
      %57 = tpu.matmul %50, %16, %cst_22 {dimension_numbers = #tpu.dot_dimension_numbers<[1], [0], [0], [1], [0, 0, 1, 1], [], []>} : vector<32x128xf32>, vector<128x128xf32>, vector<32x128xf32> -> vector<32x128xf32>
      %c72 = arith.constant 72 : index
      %c0_23 = arith.constant 0 : index
      %58 = vector.load %arg5[%c72, %c0_23] : memref<456x128xf32, #tpu.memory_space<vmem>>, vector<32x128xf32>
      tpu.vector_store %arg5[%c72, %c0_23], %57 {strides = array<i32>} : memref<456x128xf32, #tpu.memory_space<vmem>>, vector<32x128xf32>,
      %cst_24 = arith.constant dense<0.000000e+00> : vector<32x128xf32>
      %59 = tpu.matmul %51, %16, %cst_24 {dimension_numbers = #tpu.dot_dimension_numbers<[1], [0], [0], [1], [0, 0, 1, 1], [], []>} : vector<32x128xf32>, vector<128x128xf32>, vector<32x128xf32> -> vector<32x128xf32>
      %c104 = arith.constant 104 : index
      %c0_25 = arith.constant 0 : index
      %60 = vector.load %arg5[%c104, %c0_25] : memref<456x128xf32, #tpu.memory_space<vmem>>, vector<32x128xf32>
      tpu.vector_store %arg5[%c104, %c0_25], %59 {strides = array<i32>} : memref<456x128xf32, #tpu.memory_space<vmem>>, vector<32x128xf32>,
      %cst_26 = arith.constant dense<0.000000e+00> : vector<32x128xf32>
      %61 = tpu.matmul %52, %16, %cst_26 {dimension_numbers = #tpu.dot_dimension_numbers<[1], [0], [0], [1], [0, 0, 1, 1], [], []>} : vector<32x128xf32>, vector<128x128xf32>, vector<32x128xf32> -> vector<32x128xf32>
      %c136 = arith.constant 136 : index
      %c0_27 = arith.constant 0 : index
      %62 = vector.load %arg5[%c136, %c0_27] : memref<456x128xf32, #tpu.memory_space<vmem>>, vector<32x128xf32>
      tpu.vector_store %arg5[%c136, %c0_27], %61 {strides = array<i32>} : memref<456x128xf32, #tpu.memory_space<vmem>>, vector<32x128xf32>,
      %c8_28 = arith.constant 8 : index
      %c0_29 = arith.constant 0 : index
      %63 = vector.load %arg5[%c8_28, %c0_29] : memref<456x128xf32, #tpu.memory_space<vmem>>, vector<32x128xf32>
      %cst_30 = arith.constant 0.00163801119 : f32
      %64 = vector.broadcast %cst_30 : f32 to vector<32x128xf32>
      %65 = arith.mulf %64, %63 : vector<32x128xf32>
      %c7 = arith.constant 7 : index
      %c0_31 = arith.constant 0 : index
      %66 = vector.load %arg5[%c7, %c0_31] : memref<456x128xf32, #tpu.memory_space<vmem>>, vector<32x128xf32>
      %c9 = arith.constant 9 : index
      %c0_32 = arith.constant 0 : index
      %67 = vector.load %arg5[%c9, %c0_32] : memref<456x128xf32, #tpu.memory_space<vmem>>, vector<32x128xf32>
      %68 = arith.addf %66, %67 : vector<32x128xf32>
      %cst_33 = arith.constant 0.00204562838 : f32
      %69 = vector.broadcast %cst_33 : f32 to vector<32x128xf32>
      %70 = arith.mulf %69, %68 : vector<32x128xf32>
      %71 = arith.addf %65, %70 : vector<32x128xf32>
      %c6 = arith.constant 6 : index
      %c0_34 = arith.constant 0 : index
      %72 = vector.load %arg5[%c6, %c0_34] : memref<456x128xf32, #tpu.memory_space<vmem>>, vector<32x128xf32>
      %c10 = arith.constant 10 : index
      %c0_35 = arith.constant 0 : index
      %73 = vector.load %arg5[%c10, %c0_35] : memref<456x128xf32, #tpu.memory_space<vmem>>, vector<32x128xf32>
      %74 = arith.addf %72, %73 : vector<32x128xf32>
      %cst_36 = arith.constant 3.984340e-03 : f32
      %75 = vector.broadcast %cst_36 : f32 to vector<32x128xf32>
      %76 = arith.mulf %75, %74 : vector<32x128xf32>
      %77 = arith.addf %71, %76 : vector<32x128xf32>
      %c5 = arith.constant 5 : index
      %c0_37 = arith.constant 0 : index
      %78 = vector.load %arg5[%c5, %c0_37] : memref<456x128xf32, #tpu.memory_space<vmem>>, vector<32x128xf32>
      %c11 = arith.constant 11 : index
      %c0_38 = arith.constant 0 : index
      %79 = vector.load %arg5[%c11, %c0_38] : memref<456x128xf32, #tpu.memory_space<vmem>>, vector<32x128xf32>
      %80 = arith.addf %78, %79 : vector<32x128xf32>
      %cst_39 = arith.constant 0.0121033564 : f32
      %81 = vector.broadcast %cst_39 : f32 to vector<32x128xf32>
      %82 = arith.mulf %81, %80 : vector<32x128xf32>
      %83 = arith.addf %77, %82 : vector<32x128xf32>
      %c4 = arith.constant 4 : index
      %c0_40 = arith.constant 0 : index
      %84 = vector.load %arg5[%c4, %c0_40] : memref<456x128xf32, #tpu.memory_space<vmem>>, vector<32x128xf32>
      %c12 = arith.constant 12 : index
      %c0_41 = arith.constant 0 : index
      %85 = vector.load %arg5[%c12, %c0_41] : memref<456x128xf32, #tpu.memory_space<vmem>>, vector<32x128xf32>
      %86 = arith.addf %84, %85 : vector<32x128xf32>
      %cst_42 = arith.constant 0.0573422872 : f32
      %87 = vector.broadcast %cst_42 : f32 to vector<32x128xf32>
      %88 = arith.mulf %87, %86 : vector<32x128xf32>
      %89 = arith.addf %83, %88 : vector<32x128xf32>
      %c3 = arith.constant 3 : index
      %c0_43 = arith.constant 0 : index
      %90 = vector.load %arg5[%c3, %c0_43] : memref<456x128xf32, #tpu.memory_space<vmem>>, vector<32x128xf32>
      %c13 = arith.constant 13 : index
      %c0_44 = arith.constant 0 : index
      %91 = vector.load %arg5[%c13, %c0_44] : memref<456x128xf32, #tpu.memory_space<vmem>>, vector<32x128xf32>
      %92 = arith.addf %90, %91 : vector<32x128xf32>
      %cst_45 = arith.constant 0.423705369 : f32
      %93 = vector.broadcast %cst_45 : f32 to vector<32x128xf32>
      %94 = arith.mulf %93, %92 : vector<32x128xf32>
      %95 = arith.addf %89, %94 : vector<32x128xf32>
      %c40_46 = arith.constant 40 : index
      %c0_47 = arith.constant 0 : index
      %96 = vector.load %arg5[%c40_46, %c0_47] : memref<456x128xf32, #tpu.memory_space<vmem>>, vector<32x128xf32>
      %cst_48 = arith.constant 0.00163801119 : f32
      %97 = vector.broadcast %cst_48 : f32 to vector<32x128xf32>
      %98 = arith.mulf %97, %96 : vector<32x128xf32>
      %c39 = arith.constant 39 : index
      %c0_49 = arith.constant 0 : index
      %99 = vector.load %arg5[%c39, %c0_49] : memref<456x128xf32, #tpu.memory_space<vmem>>, vector<32x128xf32>
      %c41 = arith.constant 41 : index
      %c0_50 = arith.constant 0 : index
      %100 = vector.load %arg5[%c41, %c0_50] : memref<456x128xf32, #tpu.memory_space<vmem>>, vector<32x128xf32>
      %101 = arith.addf %99, %100 : vector<32x128xf32>
      %cst_51 = arith.constant 0.00204562838 : f32
      %102 = vector.broadcast %cst_51 : f32 to vector<32x128xf32>
      %103 = arith.mulf %102, %101 : vector<32x128xf32>
      %104 = arith.addf %98, %103 : vector<32x128xf32>
      %c38 = arith.constant 38 : index
      %c0_52 = arith.constant 0 : index
      %105 = vector.load %arg5[%c38, %c0_52] : memref<456x128xf32, #tpu.memory_space<vmem>>, vector<32x128xf32>
      %c42 = arith.constant 42 : index
      %c0_53 = arith.constant 0 : index
      %106 = vector.load %arg5[%c42, %c0_53] : memref<456x128xf32, #tpu.memory_space<vmem>>, vector<32x128xf32>
      %107 = arith.addf %105, %106 : vector<32x128xf32>
      %cst_54 = arith.constant 3.984340e-03 : f32
      %108 = vector.broadcast %cst_54 : f32 to vector<32x128xf32>
      %109 = arith.mulf %108, %107 : vector<32x128xf32>
      %110 = arith.addf %104, %109 : vector<32x128xf32>
      %c37 = arith.constant 37 : index
      %c0_55 = arith.constant 0 : index
      %111 = vector.load %arg5[%c37, %c0_55] : memref<456x128xf32, #tpu.memory_space<vmem>>, vector<32x128xf32>
      %c43 = arith.constant 43 : index
      %c0_56 = arith.constant 0 : index
      %112 = vector.load %arg5[%c43, %c0_56] : memref<456x128xf32, #tpu.memory_space<vmem>>, vector<32x128xf32>
      %113 = arith.addf %111, %112 : vector<32x128xf32>
      %cst_57 = arith.constant 0.0121033564 : f32
      %114 = vector.broadcast %cst_57 : f32 to vector<32x128xf32>
      %115 = arith.mulf %114, %113 : vector<32x128xf32>
      %116 = arith.addf %110, %115 : vector<32x128xf32>
      %c36 = arith.constant 36 : index
      %c0_58 = arith.constant 0 : index
      %117 = vector.load %arg5[%c36, %c0_58] : memref<456x128xf32, #tpu.memory_space<vmem>>, vector<32x128xf32>
      %c44 = arith.constant 44 : index
      %c0_59 = arith.constant 0 : index
      %118 = vector.load %arg5[%c44, %c0_59] : memref<456x128xf32, #tpu.memory_space<vmem>>, vector<32x128xf32>
      %119 = arith.addf %117, %118 : vector<32x128xf32>
      %cst_60 = arith.constant 0.0573422872 : f32
      %120 = vector.broadcast %cst_60 : f32 to vector<32x128xf32>
      %121 = arith.mulf %120, %119 : vector<32x128xf32>
      %122 = arith.addf %116, %121 : vector<32x128xf32>
      %c35 = arith.constant 35 : index
      %c0_61 = arith.constant 0 : index
      %123 = vector.load %arg5[%c35, %c0_61] : memref<456x128xf32, #tpu.memory_space<vmem>>, vector<32x128xf32>
      %c45 = arith.constant 45 : index
      %c0_62 = arith.constant 0 : index
      %124 = vector.load %arg5[%c45, %c0_62] : memref<456x128xf32, #tpu.memory_space<vmem>>, vector<32x128xf32>
      %125 = arith.addf %123, %124 : vector<32x128xf32>
      %cst_63 = arith.constant 0.423705369 : f32
      %126 = vector.broadcast %cst_63 : f32 to vector<32x128xf32>
      %127 = arith.mulf %126, %125 : vector<32x128xf32>
      %128 = arith.addf %122, %127 : vector<32x128xf32>
      %c72_64 = arith.constant 72 : index
      %c0_65 = arith.constant 0 : index
      %129 = vector.load %arg5[%c72_64, %c0_65] : memref<456x128xf32, #tpu.memory_space<vmem>>, vector<32x128xf32>
      %cst_66 = arith.constant 0.00163801119 : f32
      %130 = vector.broadcast %cst_66 : f32 to vector<32x128xf32>
      %131 = arith.mulf %130, %129 : vector<32x128xf32>
      %c71 = arith.constant 71 : index
      %c0_67 = arith.constant 0 : index
      %132 = vector.load %arg5[%c71, %c0_67] : memref<456x128xf32, #tpu.memory_space<vmem>>, vector<32x128xf32>
      %c73 = arith.constant 73 : index
      %c0_68 = arith.constant 0 : index
      %133 = vector.load %arg5[%c73, %c0_68] : memref<456x128xf32, #tpu.memory_space<vmem>>, vector<32x128xf32>
      %134 = arith.addf %132, %133 : vector<32x128xf32>
      %cst_69 = arith.constant 0.00204562838 : f32
      %135 = vector.broadcast %cst_69 : f32 to vector<32x128xf32>
      %136 = arith.mulf %135, %134 : vector<32x128xf32>
      %137 = arith.addf %131, %136 : vector<32x128xf32>
      %c70 = arith.constant 70 : index
      %c0_70 = arith.constant 0 : index
      %138 = vector.load %arg5[%c70, %c0_70] : memref<456x128xf32, #tpu.memory_space<vmem>>, vector<32x128xf32>
      %c74 = arith.constant 74 : index
      %c0_71 = arith.constant 0 : index
      %139 = vector.load %arg5[%c74, %c0_71] : memref<456x128xf32, #tpu.memory_space<vmem>>, vector<32x128xf32>
      %140 = arith.addf %138, %139 : vector<32x128xf32>
      %cst_72 = arith.constant 3.984340e-03 : f32
      %141 = vector.broadcast %cst_72 : f32 to vector<32x128xf32>
      %142 = arith.mulf %141, %140 : vector<32x128xf32>
      %143 = arith.addf %137, %142 : vector<32x128xf32>
      %c69 = arith.constant 69 : index
      %c0_73 = arith.constant 0 : index
      %144 = vector.load %arg5[%c69, %c0_73] : memref<456x128xf32, #tpu.memory_space<vmem>>, vector<32x128xf32>
      %c75 = arith.constant 75 : index
      %c0_74 = arith.constant 0 : index
      %145 = vector.load %arg5[%c75, %c0_74] : memref<456x128xf32, #tpu.memory_space<vmem>>, vector<32x128xf32>
      %146 = arith.addf %144, %145 : vector<32x128xf32>
      %cst_75 = arith.constant 0.0121033564 : f32
      %147 = vector.broadcast %cst_75 : f32 to vector<32x128xf32>
      %148 = arith.mulf %147, %146 : vector<32x128xf32>
      %149 = arith.addf %143, %148 : vector<32x128xf32>
      %c68 = arith.constant 68 : index
      %c0_76 = arith.constant 0 : index
      %150 = vector.load %arg5[%c68, %c0_76] : memref<456x128xf32, #tpu.memory_space<vmem>>, vector<32x128xf32>
      %c76 = arith.constant 76 : index
      %c0_77 = arith.constant 0 : index
      %151 = vector.load %arg5[%c76, %c0_77] : memref<456x128xf32, #tpu.memory_space<vmem>>, vector<32x128xf32>
      %152 = arith.addf %150, %151 : vector<32x128xf32>
      %cst_78 = arith.constant 0.0573422872 : f32
      %153 = vector.broadcast %cst_78 : f32 to vector<32x128xf32>
      %154 = arith.mulf %153, %152 : vector<32x128xf32>
      %155 = arith.addf %149, %154 : vector<32x128xf32>
      %c67 = arith.constant 67 : index
      %c0_79 = arith.constant 0 : index
      %156 = vector.load %arg5[%c67, %c0_79] : memref<456x128xf32, #tpu.memory_space<vmem>>, vector<32x128xf32>
      %c77 = arith.constant 77 : index
      %c0_80 = arith.constant 0 : index
      %157 = vector.load %arg5[%c77, %c0_80] : memref<456x128xf32, #tpu.memory_space<vmem>>, vector<32x128xf32>
      %158 = arith.addf %156, %157 : vector<32x128xf32>
      %cst_81 = arith.constant 0.423705369 : f32
      %159 = vector.broadcast %cst_81 : f32 to vector<32x128xf32>
      %160 = arith.mulf %159, %158 : vector<32x128xf32>
      %161 = arith.addf %155, %160 : vector<32x128xf32>
      %c104_82 = arith.constant 104 : index
      %c0_83 = arith.constant 0 : index
      %162 = vector.load %arg5[%c104_82, %c0_83] : memref<456x128xf32, #tpu.memory_space<vmem>>, vector<32x128xf32>
      %cst_84 = arith.constant 0.00163801119 : f32
      %163 = vector.broadcast %cst_84 : f32 to vector<32x128xf32>
      %164 = arith.mulf %163, %162 : vector<32x128xf32>
      %c103 = arith.constant 103 : index
      %c0_85 = arith.constant 0 : index
      %165 = vector.load %arg5[%c103, %c0_85] : memref<456x128xf32, #tpu.memory_space<vmem>>, vector<32x128xf32>
      %c105 = arith.constant 105 : index
      %c0_86 = arith.constant 0 : index
      %166 = vector.load %arg5[%c105, %c0_86] : memref<456x128xf32, #tpu.memory_space<vmem>>, vector<32x128xf32>
      %167 = arith.addf %165, %166 : vector<32x128xf32>
      %cst_87 = arith.constant 0.00204562838 : f32
      %168 = vector.broadcast %cst_87 : f32 to vector<32x128xf32>
      %169 = arith.mulf %168, %167 : vector<32x128xf32>
      %170 = arith.addf %164, %169 : vector<32x128xf32>
      %c102 = arith.constant 102 : index
      %c0_88 = arith.constant 0 : index
      %171 = vector.load %arg5[%c102, %c0_88] : memref<456x128xf32, #tpu.memory_space<vmem>>, vector<32x128xf32>
      %c106 = arith.constant 106 : index
      %c0_89 = arith.constant 0 : index
      %172 = vector.load %arg5[%c106, %c0_89] : memref<456x128xf32, #tpu.memory_space<vmem>>, vector<32x128xf32>
      %173 = arith.addf %171, %172 : vector<32x128xf32>
      %cst_90 = arith.constant 3.984340e-03 : f32
      %174 = vector.broadcast %cst_90 : f32 to vector<32x128xf32>
      %175 = arith.mulf %174, %173 : vector<32x128xf32>
      %176 = arith.addf %170, %175 : vector<32x128xf32>
      %c101 = arith.constant 101 : index
      %c0_91 = arith.constant 0 : index
      %177 = vector.load %arg5[%c101, %c0_91] : memref<456x128xf32, #tpu.memory_space<vmem>>, vector<32x128xf32>
      %c107 = arith.constant 107 : index
      %c0_92 = arith.constant 0 : index
      %178 = vector.load %arg5[%c107, %c0_92] : memref<456x128xf32, #tpu.memory_space<vmem>>, vector<32x128xf32>
      %179 = arith.addf %177, %178 : vector<32x128xf32>
      %cst_93 = arith.constant 0.0121033564 : f32
      %180 = vector.broadcast %cst_93 : f32 to vector<32x128xf32>
      %181 = arith.mulf %180, %179 : vector<32x128xf32>
      %182 = arith.addf %176, %181 : vector<32x128xf32>
      %c100 = arith.constant 100 : index
      %c0_94 = arith.constant 0 : index
      %183 = vector.load %arg5[%c100, %c0_94] : memref<456x128xf32, #tpu.memory_space<vmem>>, vector<32x128xf32>
      %c108 = arith.constant 108 : index
      %c0_95 = arith.constant 0 : index
      %184 = vector.load %arg5[%c108, %c0_95] : memref<456x128xf32, #tpu.memory_space<vmem>>, vector<32x128xf32>
      %185 = arith.addf %183, %184 : vector<32x128xf32>
      %cst_96 = arith.constant 0.0573422872 : f32
      %186 = vector.broadcast %cst_96 : f32 to vector<32x128xf32>
      %187 = arith.mulf %186, %185 : vector<32x128xf32>
      %188 = arith.addf %182, %187 : vector<32x128xf32>
      %c99 = arith.constant 99 : index
      %c0_97 = arith.constant 0 : index
      %189 = vector.load %arg5[%c99, %c0_97] : memref<456x128xf32, #tpu.memory_space<vmem>>, vector<32x128xf32>
      %c109 = arith.constant 109 : index
      %c0_98 = arith.constant 0 : index
      %190 = vector.load %arg5[%c109, %c0_98] : memref<456x128xf32, #tpu.memory_space<vmem>>, vector<32x128xf32>
      %191 = arith.addf %189, %190 : vector<32x128xf32>
      %cst_99 = arith.constant 0.423705369 : f32
      %192 = vector.broadcast %cst_99 : f32 to vector<32x128xf32>
      %193 = arith.mulf %192, %191 : vector<32x128xf32>
      %194 = arith.addf %188, %193 : vector<32x128xf32>
      %c136_100 = arith.constant 136 : index
      %c0_101 = arith.constant 0 : index
      %195 = vector.load %arg5[%c136_100, %c0_101] : memref<456x128xf32, #tpu.memory_space<vmem>>, vector<32x128xf32>
      %cst_102 = arith.constant 0.00163801119 : f32
      %196 = vector.broadcast %cst_102 : f32 to vector<32x128xf32>
      %197 = arith.mulf %196, %195 : vector<32x128xf32>
      %c135 = arith.constant 135 : index
      %c0_103 = arith.constant 0 : index
      %198 = vector.load %arg5[%c135, %c0_103] : memref<456x128xf32, #tpu.memory_space<vmem>>, vector<32x128xf32>
      %c137 = arith.constant 137 : index
      %c0_104 = arith.constant 0 : index
      %199 = vector.load %arg5[%c137, %c0_104] : memref<456x128xf32, #tpu.memory_space<vmem>>, vector<32x128xf32>
      %200 = arith.addf %198, %199 : vector<32x128xf32>
      %cst_105 = arith.constant 0.00204562838 : f32
      %201 = vector.broadcast %cst_105 : f32 to vector<32x128xf32>
      %202 = arith.mulf %201, %200 : vector<32x128xf32>
      %203 = arith.addf %197, %202 : vector<32x128xf32>
      %c134 = arith.constant 134 : index
      %c0_106 = arith.constant 0 : index
      %204 = vector.load %arg5[%c134, %c0_106] : memref<456x128xf32, #tpu.memory_space<vmem>>, vector<32x128xf32>
      %c138 = arith.constant 138 : index
      %c0_107 = arith.constant 0 : index
      %205 = vector.load %arg5[%c138, %c0_107] : memref<456x128xf32, #tpu.memory_space<vmem>>, vector<32x128xf32>
      %206 = arith.addf %204, %205 : vector<32x128xf32>
      %cst_108 = arith.constant 3.984340e-03 : f32
      %207 = vector.broadcast %cst_108 : f32 to vector<32x128xf32>
      %208 = arith.mulf %207, %206 : vector<32x128xf32>
      %209 = arith.addf %203, %208 : vector<32x128xf32>
      %c133 = arith.constant 133 : index
      %c0_109 = arith.constant 0 : index
      %210 = vector.load %arg5[%c133, %c0_109] : memref<456x128xf32, #tpu.memory_space<vmem>>, vector<32x128xf32>
      %c139 = arith.constant 139 : index
      %c0_110 = arith.constant 0 : index
      %211 = vector.load %arg5[%c139, %c0_110] : memref<456x128xf32, #tpu.memory_space<vmem>>, vector<32x128xf32>
      %212 = arith.addf %210, %211 : vector<32x128xf32>
      %cst_111 = arith.constant 0.0121033564 : f32
      %213 = vector.broadcast %cst_111 : f32 to vector<32x128xf32>
      %214 = arith.mulf %213, %212 : vector<32x128xf32>
      %215 = arith.addf %209, %214 : vector<32x128xf32>
      %c132 = arith.constant 132 : index
      %c0_112 = arith.constant 0 : index
      %216 = vector.load %arg5[%c132, %c0_112] : memref<456x128xf32, #tpu.memory_space<vmem>>, vector<32x128xf32>
      %c140 = arith.constant 140 : index
      %c0_113 = arith.constant 0 : index
      %217 = vector.load %arg5[%c140, %c0_113] : memref<456x128xf32, #tpu.memory_space<vmem>>, vector<32x128xf32>
      %218 = arith.addf %216, %217 : vector<32x128xf32>
      %cst_114 = arith.constant 0.0573422872 : f32
      %219 = vector.broadcast %cst_114 : f32 to vector<32x128xf32>
      %220 = arith.mulf %219, %218 : vector<32x128xf32>
      %221 = arith.addf %215, %220 : vector<32x128xf32>
      %c131 = arith.constant 131 : index
      %c0_115 = arith.constant 0 : index
      %222 = vector.load %arg5[%c131, %c0_115] : memref<456x128xf32, #tpu.memory_space<vmem>>, vector<32x128xf32>
      %c141 = arith.constant 141 : index
      %c0_116 = arith.constant 0 : index
      %223 = vector.load %arg5[%c141, %c0_116] : memref<456x128xf32, #tpu.memory_space<vmem>>, vector<32x128xf32>
      %224 = arith.addf %222, %223 : vector<32x128xf32>
      %cst_117 = arith.constant 0.423705369 : f32
      %225 = vector.broadcast %cst_117 : f32 to vector<32x128xf32>
      %226 = arith.mulf %225, %224 : vector<32x128xf32>
      %227 = arith.addf %221, %226 : vector<32x128xf32>
      %228 = arith.mulf %95, %95 : vector<32x128xf32>
      %229 = arith.mulf %128, %128 : vector<32x128xf32>
      %230 = arith.mulf %95, %128 : vector<32x128xf32>
      %231 = arith.subf %161, %228 : vector<32x128xf32>
      %232 = arith.subf %194, %229 : vector<32x128xf32>
      %233 = arith.subf %227, %230 : vector<32x128xf32>
      %cst_118 = arith.constant 2.000000e+00 : f32
      %234 = vector.broadcast %cst_118 : f32 to vector<32x128xf32>
      %235 = arith.mulf %234, %233 : vector<32x128xf32>
      %236 = vector.broadcast %49 : f32 to vector<32x128xf32>
      %237 = arith.addf %235, %236 : vector<32x128xf32>
      %238 = arith.addf %231, %232 : vector<32x128xf32>
      %239 = vector.broadcast %49 : f32 to vector<32x128xf32>
      %240 = arith.addf %238, %239 : vector<32x128xf32>
      %241 = arith.divf %237, %240 : vector<32x128xf32>
      %cst_119 = arith.constant 2.000000e+00 : f32
      %242 = vector.broadcast %cst_119 : f32 to vector<32x128xf32>
      %243 = arith.mulf %242, %230 : vector<32x128xf32>
      %244 = vector.broadcast %47 : f32 to vector<32x128xf32>
      %245 = arith.addf %243, %244 : vector<32x128xf32>
      %246 = arith.addf %228, %229 : vector<32x128xf32>
      %247 = vector.broadcast %47 : f32 to vector<32x128xf32>
      %248 = arith.addf %246, %247 : vector<32x128xf32>
      %249 = arith.divf %245, %248 : vector<32x128xf32>
      %250 = arith.mulf %249, %241 : vector<32x128xf32>
      %cst_120 = arith.constant 0.000000e+00 : f32
      %251 = vector.broadcast %cst_120 : f32 to vector<32x128xf32>
      %252 = arith.select %32, %241, %251 : vector<32x128xi1>, vector<32x128xf32>
      %253 = vector.shape_cast %252 : vector<32x128xf32> to vector<1x32x128xf32>
      %cst_121 = arith.constant dense<0.000000e+00> : vector<1xf32>
      %254 = vector.multi_reduction <add>, %253, %cst_121 [1, 2] : vector<1x32x128xf32> to vector<1xf32>
      %255 = vector.shape_cast %254 : vector<1xf32> to vector<1x1x1xf32>
      %256 = vector.extract %255[0, 0, 0] : f32 from vector<1x1x1xf32>
      %cst_122 = arith.constant 6.51041686E-4 : f32
      %257 = arith.mulf %256, %cst_122 : f32
      %cst_123 = arith.constant 0.000000e+00 : f32
      %258 = vector.broadcast %cst_123 : f32 to vector<32x128xf32>
      %259 = arith.select %32, %250, %258 : vector<32x128xi1>, vector<32x128xf32>
      %260 = vector.shape_cast %259 : vector<32x128xf32> to vector<1x32x128xf32>
      %cst_124 = arith.constant dense<0.000000e+00> : vector<1xf32>
      %261 = vector.multi_reduction <add>, %260, %cst_124 [1, 2] : vector<1x32x128xf32> to vector<1xf32>
      %262 = vector.shape_cast %261 : vector<1xf32> to vector<1x1x1xf32>
      %263 = vector.extract %262[0, 0, 0] : f32 from vector<1x1x1xf32>
      %cst_125 = arith.constant 6.51041686E-4 : f32
      %264 = arith.mulf %263, %cst_125 : f32
      %265 = tpu.iota {dimensions = array<i32: 0>} : vector<8x128xi32>
      %266 = tpu.iota {dimensions = array<i32: 1>} : vector<8x128xi32>
      %c0_i32_126 = arith.constant 0 : i32
      %267 = vector.broadcast %c0_i32_126 : i32 to vector<8x128xi32>
      %268 = arith.cmpi eq, %265, %267 : vector<8x128xi32>
      %c0_i32_127 = arith.constant 0 : i32
      %269 = vector.broadcast %c0_i32_127 : i32 to vector<8x128xi32>
      %270 = arith.cmpi eq, %266, %269 : vector<8x128xi32>
      %271 = arith.andi %268, %270 : vector<8x128xi1>
      %c0_i32_128 = arith.constant 0 : i32
      %272 = vector.broadcast %c0_i32_128 : i32 to vector<8x128xi32>
      %273 = arith.cmpi eq, %265, %272 : vector<8x128xi32>
      %c1_i32_129 = arith.constant 1 : i32
      %274 = vector.broadcast %c1_i32_129 : i32 to vector<8x128xi32>
      %275 = arith.cmpi eq, %266, %274 : vector<8x128xi32>
      %276 = arith.andi %273, %275 : vector<8x128xi1>
      %cst_130 = arith.constant 0.000000e+00 : f32
      %277 = vector.broadcast %257 : f32 to vector<8x128xf32>
      %278 = vector.broadcast %cst_130 : f32 to vector<8x128xf32>
      %279 = arith.select %276, %277, %278 : vector<8x128xi1>, vector<8x128xf32>
      %280 = vector.broadcast %264 : f32 to vector<8x128xf32>
      %281 = arith.select %271, %280, %279 : vector<8x128xi1>, vector<8x128xf32>
      %c0_131 = arith.constant 0 : index
      %c0_132 = arith.constant 0 : index
      %c0_133 = arith.constant 0 : index
      %282 = vector.load %arg4[%c0_131, %c0_132, %c0_133] : memref<1x8x128xf32, #tpu.memory_space<vmem>>, vector<1x8x128xf32>
      %283 = vector.shape_cast %282 : vector<1x8x128xf32> to vector<8x128xf32>
      %284 = vector.shape_cast %281 : vector<8x128xf32> to vector<1x8x128xf32>
      tpu.vector_store %arg4[%c0_131, %c0_132, %c0_133], %284 {strides = array<i32>} : memref<1x8x128xf32, #tpu.memory_space<vmem>>, vector<1x8x128xf32>,
    } else {
    }
    %c2_i32 = arith.constant 2 : i32
    %6 = arith.cmpi eq, %arg0, %c2_i32 : i32
    %7 = arith.extui %6 : i1 to i32
    %c0_i32_2 = arith.constant 0 : i32
    %8 = arith.cmpi ne, %7, %c0_i32_2 : i32
    scf.if %8 {
      %c0 = arith.constant 0 : index
      %c0_5 = arith.constant 0 : index
      %c0_6 = arith.constant 0 : index
      %15 = vector.load %arg3[%c0, %c0_5, %c0_6] : memref<1x128x128xf32, #tpu.memory_space<vmem>>, vector<1x128x128xf32>
      %16 = vector.shape_cast %15 : vector<1x128x128xf32> to vector<128x128xf32>
      %c0_7 = arith.constant 0 : index
      %c0_8 = arith.constant 0 : index
      %c0_9 = arith.constant 0 : index
      %17 = vector.load %arg1[%c0_7, %c0_8, %c0_9] : memref<1x88x128xf32, #tpu.memory_space<vmem>>, vector<1x88x128xf32>
      %18 = vector.shape_cast %17 : vector<1x88x128xf32> to vector<88x128xf32>
      %19 = vector.extract_strided_slice %18 {offsets = [0, 0], sizes = [24, 128], strides = [1, 1]} : vector<88x128xf32> to vector<24x128xf32>
      %c0_10 = arith.constant 0 : index
      %c0_11 = arith.constant 0 : index
      %c0_12 = arith.constant 0 : index
      %20 = vector.load %arg2[%c0_10, %c0_11, %c0_12] : memref<1x88x128xf32, #tpu.memory_space<vmem>>, vector<1x88x128xf32>
      %21 = vector.shape_cast %20 : vector<1x88x128xf32> to vector<88x128xf32>
      %22 = vector.extract_strided_slice %21 {offsets = [0, 0], sizes = [24, 128], strides = [1, 1]} : vector<88x128xf32> to vector<24x128xf32>
      %23 = tpu.iota {dimensions = array<i32: 0>} : vector<24x128xi32>
      %24 = tpu.iota {dimensions = array<i32: 1>} : vector<24x128xi32>
      %c5_i32 = arith.constant 5 : i32
      %25 = vector.broadcast %c5_i32 : i32 to vector<24x128xi32>
      %26 = arith.cmpi sge, %23, %25 : vector<24x128xi32>
      %c13_i32 = arith.constant 13 : i32
      %27 = vector.broadcast %c13_i32 : i32 to vector<24x128xi32>
      %28 = arith.cmpi slt, %23, %27 : vector<24x128xi32>
      %29 = arith.andi %26, %28 : vector<24x128xi1>
      %c48_i32 = arith.constant 48 : i32
      %30 = vector.broadcast %c48_i32 : i32 to vector<24x128xi32>
      %31 = arith.cmpi slt, %24, %30 : vector<24x128xi32>
      %32 = arith.andi %29, %31 : vector<24x128xi1>
      %cst = arith.constant 0xFF800000 : f32
      %33 = vector.broadcast %cst : f32 to vector<24x128xf32>
      %34 = arith.select %32, %19, %33 : vector<24x128xi1>, vector<24x128xf32>
      %35 = vector.shape_cast %34 : vector<24x128xf32> to vector<1x24x128xf32>
      %cst_13 = arith.constant dense<0xFF800000> : vector<1xf32>
      %36 = vector.multi_reduction <maximumf>, %35, %cst_13 [1, 2] : vector<1x24x128xf32> to vector<1xf32>
      %37 = vector.shape_cast %36 : vector<1xf32> to vector<1x1x1xf32>
      %38 = vector.extract %37[0, 0, 0] : f32 from vector<1x1x1xf32>
      %cst_14 = arith.constant 0x7F800000 : f32
      %39 = vector.broadcast %cst_14 : f32 to vector<24x128xf32>
      %40 = arith.select %32, %19, %39 : vector<24x128xi1>, vector<24x128xf32>
      %41 = vector.shape_cast %40 : vector<24x128xf32> to vector<1x24x128xf32>
      %cst_15 = arith.constant dense<0x7F800000> : vector<1xf32>
      %42 = vector.multi_reduction <minimumf>, %41, %cst_15 [1, 2] : vector<1x24x128xf32> to vector<1xf32>
      %43 = vector.shape_cast %42 : vector<1xf32> to vector<1x1x1xf32>
      %44 = vector.extract %43[0, 0, 0] : f32 from vector<1x1x1xf32>
      %45 = arith.subf %38, %44 : f32
      %cst_16 = arith.constant 0.00999999977 : f32
      %46 = arith.mulf %cst_16, %45 : f32
      %47 = arith.mulf %46, %46 : f32
      %cst_17 = arith.constant 3.000000e-02 : f32
      %48 = arith.mulf %cst_17, %45 : f32
      %49 = arith.mulf %48, %48 : f32
      %50 = arith.mulf %19, %19 : vector<24x128xf32>
      %51 = arith.mulf %22, %22 : vector<24x128xf32>
      %52 = arith.mulf %19, %22 : vector<24x128xf32>
      %cst_18 = arith.constant dense<0.000000e+00> : vector<24x128xf32>
      %53 = tpu.matmul %19, %16, %cst_18 {dimension_numbers = #tpu.dot_dimension_numbers<[1], [0], [0], [1], [0, 0, 1, 1], [], []>} : vector<24x128xf32>, vector<128x128xf32>, vector<24x128xf32> -> vector<24x128xf32>
      %c8 = arith.constant 8 : index
      %c0_19 = arith.constant 0 : index
      %54 = vector.load %arg5[%c8, %c0_19] : memref<456x128xf32, #tpu.memory_space<vmem>>, vector<24x128xf32>
      tpu.vector_store %arg5[%c8, %c0_19], %53 {strides = array<i32>} : memref<456x128xf32, #tpu.memory_space<vmem>>, vector<24x128xf32>,
      %cst_20 = arith.constant dense<0.000000e+00> : vector<24x128xf32>
      %55 = tpu.matmul %22, %16, %cst_20 {dimension_numbers = #tpu.dot_dimension_numbers<[1], [0], [0], [1], [0, 0, 1, 1], [], []>} : vector<24x128xf32>, vector<128x128xf32>, vector<24x128xf32> -> vector<24x128xf32>
      %c32 = arith.constant 32 : index
      %c0_21 = arith.constant 0 : index
      %56 = vector.load %arg5[%c32, %c0_21] : memref<456x128xf32, #tpu.memory_space<vmem>>, vector<24x128xf32>
      tpu.vector_store %arg5[%c32, %c0_21], %55 {strides = array<i32>} : memref<456x128xf32, #tpu.memory_space<vmem>>, vector<24x128xf32>,
      %cst_22 = arith.constant dense<0.000000e+00> : vector<24x128xf32>
      %57 = tpu.matmul %50, %16, %cst_22 {dimension_numbers = #tpu.dot_dimension_numbers<[1], [0], [0], [1], [0, 0, 1, 1], [], []>} : vector<24x128xf32>, vector<128x128xf32>, vector<24x128xf32> -> vector<24x128xf32>
      %c56 = arith.constant 56 : index
      %c0_23 = arith.constant 0 : index
      %58 = vector.load %arg5[%c56, %c0_23] : memref<456x128xf32, #tpu.memory_space<vmem>>, vector<24x128xf32>
      tpu.vector_store %arg5[%c56, %c0_23], %57 {strides = array<i32>} : memref<456x128xf32, #tpu.memory_space<vmem>>, vector<24x128xf32>,
      %cst_24 = arith.constant dense<0.000000e+00> : vector<24x128xf32>
      %59 = tpu.matmul %51, %16, %cst_24 {dimension_numbers = #tpu.dot_dimension_numbers<[1], [0], [0], [1], [0, 0, 1, 1], [], []>} : vector<24x128xf32>, vector<128x128xf32>, vector<24x128xf32> -> vector<24x128xf32>
      %c80 = arith.constant 80 : index
      %c0_25 = arith.constant 0 : index
      %60 = vector.load %arg5[%c80, %c0_25] : memref<456x128xf32, #tpu.memory_space<vmem>>, vector<24x128xf32>
      tpu.vector_store %arg5[%c80, %c0_25], %59 {strides = array<i32>} : memref<456x128xf32, #tpu.memory_space<vmem>>, vector<24x128xf32>,
      %cst_26 = arith.constant dense<0.000000e+00> : vector<24x128xf32>
      %61 = tpu.matmul %52, %16, %cst_26 {dimension_numbers = #tpu.dot_dimension_numbers<[1], [0], [0], [1], [0, 0, 1, 1], [], []>} : vector<24x128xf32>, vector<128x128xf32>, vector<24x128xf32> -> vector<24x128xf32>
      %c104 = arith.constant 104 : index
      %c0_27 = arith.constant 0 : index
      %62 = vector.load %arg5[%c104, %c0_27] : memref<456x128xf32, #tpu.memory_space<vmem>>, vector<24x128xf32>
      tpu.vector_store %arg5[%c104, %c0_27], %61 {strides = array<i32>} : memref<456x128xf32, #tpu.memory_space<vmem>>, vector<24x128xf32>,
      %c8_28 = arith.constant 8 : index
      %c0_29 = arith.constant 0 : index
      %63 = vector.load %arg5[%c8_28, %c0_29] : memref<456x128xf32, #tpu.memory_space<vmem>>, vector<24x128xf32>
      %cst_30 = arith.constant 0.00163801119 : f32
      %64 = vector.broadcast %cst_30 : f32 to vector<24x128xf32>
      %65 = arith.mulf %64, %63 : vector<24x128xf32>
      %c7 = arith.constant 7 : index
      %c0_31 = arith.constant 0 : index
      %66 = vector.load %arg5[%c7, %c0_31] : memref<456x128xf32, #tpu.memory_space<vmem>>, vector<24x128xf32>
      %c9 = arith.constant 9 : index
      %c0_32 = arith.constant 0 : index
      %67 = vector.load %arg5[%c9, %c0_32] : memref<456x128xf32, #tpu.memory_space<vmem>>, vector<24x128xf32>
      %68 = arith.addf %66, %67 : vector<24x128xf32>
      %cst_33 = arith.constant 0.00204562838 : f32
      %69 = vector.broadcast %cst_33 : f32 to vector<24x128xf32>
      %70 = arith.mulf %69, %68 : vector<24x128xf32>
      %71 = arith.addf %65, %70 : vector<24x128xf32>
      %c6 = arith.constant 6 : index
      %c0_34 = arith.constant 0 : index
      %72 = vector.load %arg5[%c6, %c0_34] : memref<456x128xf32, #tpu.memory_space<vmem>>, vector<24x128xf32>
      %c10 = arith.constant 10 : index
      %c0_35 = arith.constant 0 : index
      %73 = vector.load %arg5[%c10, %c0_35] : memref<456x128xf32, #tpu.memory_space<vmem>>, vector<24x128xf32>
      %74 = arith.addf %72, %73 : vector<24x128xf32>
      %cst_36 = arith.constant 3.984340e-03 : f32
      %75 = vector.broadcast %cst_36 : f32 to vector<24x128xf32>
      %76 = arith.mulf %75, %74 : vector<24x128xf32>
      %77 = arith.addf %71, %76 : vector<24x128xf32>
      %c5 = arith.constant 5 : index
      %c0_37 = arith.constant 0 : index
      %78 = vector.load %arg5[%c5, %c0_37] : memref<456x128xf32, #tpu.memory_space<vmem>>, vector<24x128xf32>
      %c11 = arith.constant 11 : index
      %c0_38 = arith.constant 0 : index
      %79 = vector.load %arg5[%c11, %c0_38] : memref<456x128xf32, #tpu.memory_space<vmem>>, vector<24x128xf32>
      %80 = arith.addf %78, %79 : vector<24x128xf32>
      %cst_39 = arith.constant 0.0121033564 : f32
      %81 = vector.broadcast %cst_39 : f32 to vector<24x128xf32>
      %82 = arith.mulf %81, %80 : vector<24x128xf32>
      %83 = arith.addf %77, %82 : vector<24x128xf32>
      %c4 = arith.constant 4 : index
      %c0_40 = arith.constant 0 : index
      %84 = vector.load %arg5[%c4, %c0_40] : memref<456x128xf32, #tpu.memory_space<vmem>>, vector<24x128xf32>
      %c12 = arith.constant 12 : index
      %c0_41 = arith.constant 0 : index
      %85 = vector.load %arg5[%c12, %c0_41] : memref<456x128xf32, #tpu.memory_space<vmem>>, vector<24x128xf32>
      %86 = arith.addf %84, %85 : vector<24x128xf32>
      %cst_42 = arith.constant 0.0573422872 : f32
      %87 = vector.broadcast %cst_42 : f32 to vector<24x128xf32>
      %88 = arith.mulf %87, %86 : vector<24x128xf32>
      %89 = arith.addf %83, %88 : vector<24x128xf32>
      %c3 = arith.constant 3 : index
      %c0_43 = arith.constant 0 : index
      %90 = vector.load %arg5[%c3, %c0_43] : memref<456x128xf32, #tpu.memory_space<vmem>>, vector<24x128xf32>
      %c13 = arith.constant 13 : index
      %c0_44 = arith.constant 0 : index
      %91 = vector.load %arg5[%c13, %c0_44] : memref<456x128xf32, #tpu.memory_space<vmem>>, vector<24x128xf32>
      %92 = arith.addf %90, %91 : vector<24x128xf32>
      %cst_45 = arith.constant 0.423705369 : f32
      %93 = vector.broadcast %cst_45 : f32 to vector<24x128xf32>
      %94 = arith.mulf %93, %92 : vector<24x128xf32>
      %95 = arith.addf %89, %94 : vector<24x128xf32>
      %c32_46 = arith.constant 32 : index
      %c0_47 = arith.constant 0 : index
      %96 = vector.load %arg5[%c32_46, %c0_47] : memref<456x128xf32, #tpu.memory_space<vmem>>, vector<24x128xf32>
      %cst_48 = arith.constant 0.00163801119 : f32
      %97 = vector.broadcast %cst_48 : f32 to vector<24x128xf32>
      %98 = arith.mulf %97, %96 : vector<24x128xf32>
      %c31 = arith.constant 31 : index
      %c0_49 = arith.constant 0 : index
      %99 = vector.load %arg5[%c31, %c0_49] : memref<456x128xf32, #tpu.memory_space<vmem>>, vector<24x128xf32>
      %c33 = arith.constant 33 : index
      %c0_50 = arith.constant 0 : index
      %100 = vector.load %arg5[%c33, %c0_50] : memref<456x128xf32, #tpu.memory_space<vmem>>, vector<24x128xf32>
      %101 = arith.addf %99, %100 : vector<24x128xf32>
      %cst_51 = arith.constant 0.00204562838 : f32
      %102 = vector.broadcast %cst_51 : f32 to vector<24x128xf32>
      %103 = arith.mulf %102, %101 : vector<24x128xf32>
      %104 = arith.addf %98, %103 : vector<24x128xf32>
      %c30 = arith.constant 30 : index
      %c0_52 = arith.constant 0 : index
      %105 = vector.load %arg5[%c30, %c0_52] : memref<456x128xf32, #tpu.memory_space<vmem>>, vector<24x128xf32>
      %c34 = arith.constant 34 : index
      %c0_53 = arith.constant 0 : index
      %106 = vector.load %arg5[%c34, %c0_53] : memref<456x128xf32, #tpu.memory_space<vmem>>, vector<24x128xf32>
      %107 = arith.addf %105, %106 : vector<24x128xf32>
      %cst_54 = arith.constant 3.984340e-03 : f32
      %108 = vector.broadcast %cst_54 : f32 to vector<24x128xf32>
      %109 = arith.mulf %108, %107 : vector<24x128xf32>
      %110 = arith.addf %104, %109 : vector<24x128xf32>
      %c29 = arith.constant 29 : index
      %c0_55 = arith.constant 0 : index
      %111 = vector.load %arg5[%c29, %c0_55] : memref<456x128xf32, #tpu.memory_space<vmem>>, vector<24x128xf32>
      %c35 = arith.constant 35 : index
      %c0_56 = arith.constant 0 : index
      %112 = vector.load %arg5[%c35, %c0_56] : memref<456x128xf32, #tpu.memory_space<vmem>>, vector<24x128xf32>
      %113 = arith.addf %111, %112 : vector<24x128xf32>
      %cst_57 = arith.constant 0.0121033564 : f32
      %114 = vector.broadcast %cst_57 : f32 to vector<24x128xf32>
      %115 = arith.mulf %114, %113 : vector<24x128xf32>
      %116 = arith.addf %110, %115 : vector<24x128xf32>
      %c28 = arith.constant 28 : index
      %c0_58 = arith.constant 0 : index
      %117 = vector.load %arg5[%c28, %c0_58] : memref<456x128xf32, #tpu.memory_space<vmem>>, vector<24x128xf32>
      %c36 = arith.constant 36 : index
      %c0_59 = arith.constant 0 : index
      %118 = vector.load %arg5[%c36, %c0_59] : memref<456x128xf32, #tpu.memory_space<vmem>>, vector<24x128xf32>
      %119 = arith.addf %117, %118 : vector<24x128xf32>
      %cst_60 = arith.constant 0.0573422872 : f32
      %120 = vector.broadcast %cst_60 : f32 to vector<24x128xf32>
      %121 = arith.mulf %120, %119 : vector<24x128xf32>
      %122 = arith.addf %116, %121 : vector<24x128xf32>
      %c27 = arith.constant 27 : index
      %c0_61 = arith.constant 0 : index
      %123 = vector.load %arg5[%c27, %c0_61] : memref<456x128xf32, #tpu.memory_space<vmem>>, vector<24x128xf32>
      %c37 = arith.constant 37 : index
      %c0_62 = arith.constant 0 : index
      %124 = vector.load %arg5[%c37, %c0_62] : memref<456x128xf32, #tpu.memory_space<vmem>>, vector<24x128xf32>
      %125 = arith.addf %123, %124 : vector<24x128xf32>
      %cst_63 = arith.constant 0.423705369 : f32
      %126 = vector.broadcast %cst_63 : f32 to vector<24x128xf32>
      %127 = arith.mulf %126, %125 : vector<24x128xf32>
      %128 = arith.addf %122, %127 : vector<24x128xf32>
      %c56_64 = arith.constant 56 : index
      %c0_65 = arith.constant 0 : index
      %129 = vector.load %arg5[%c56_64, %c0_65] : memref<456x128xf32, #tpu.memory_space<vmem>>, vector<24x128xf32>
      %cst_66 = arith.constant 0.00163801119 : f32
      %130 = vector.broadcast %cst_66 : f32 to vector<24x128xf32>
      %131 = arith.mulf %130, %129 : vector<24x128xf32>
      %c55 = arith.constant 55 : index
      %c0_67 = arith.constant 0 : index
      %132 = vector.load %arg5[%c55, %c0_67] : memref<456x128xf32, #tpu.memory_space<vmem>>, vector<24x128xf32>
      %c57 = arith.constant 57 : index
      %c0_68 = arith.constant 0 : index
      %133 = vector.load %arg5[%c57, %c0_68] : memref<456x128xf32, #tpu.memory_space<vmem>>, vector<24x128xf32>
      %134 = arith.addf %132, %133 : vector<24x128xf32>
      %cst_69 = arith.constant 0.00204562838 : f32
      %135 = vector.broadcast %cst_69 : f32 to vector<24x128xf32>
      %136 = arith.mulf %135, %134 : vector<24x128xf32>
      %137 = arith.addf %131, %136 : vector<24x128xf32>
      %c54 = arith.constant 54 : index
      %c0_70 = arith.constant 0 : index
      %138 = vector.load %arg5[%c54, %c0_70] : memref<456x128xf32, #tpu.memory_space<vmem>>, vector<24x128xf32>
      %c58 = arith.constant 58 : index
      %c0_71 = arith.constant 0 : index
      %139 = vector.load %arg5[%c58, %c0_71] : memref<456x128xf32, #tpu.memory_space<vmem>>, vector<24x128xf32>
      %140 = arith.addf %138, %139 : vector<24x128xf32>
      %cst_72 = arith.constant 3.984340e-03 : f32
      %141 = vector.broadcast %cst_72 : f32 to vector<24x128xf32>
      %142 = arith.mulf %141, %140 : vector<24x128xf32>
      %143 = arith.addf %137, %142 : vector<24x128xf32>
      %c53 = arith.constant 53 : index
      %c0_73 = arith.constant 0 : index
      %144 = vector.load %arg5[%c53, %c0_73] : memref<456x128xf32, #tpu.memory_space<vmem>>, vector<24x128xf32>
      %c59 = arith.constant 59 : index
      %c0_74 = arith.constant 0 : index
      %145 = vector.load %arg5[%c59, %c0_74] : memref<456x128xf32, #tpu.memory_space<vmem>>, vector<24x128xf32>
      %146 = arith.addf %144, %145 : vector<24x128xf32>
      %cst_75 = arith.constant 0.0121033564 : f32
      %147 = vector.broadcast %cst_75 : f32 to vector<24x128xf32>
      %148 = arith.mulf %147, %146 : vector<24x128xf32>
      %149 = arith.addf %143, %148 : vector<24x128xf32>
      %c52 = arith.constant 52 : index
      %c0_76 = arith.constant 0 : index
      %150 = vector.load %arg5[%c52, %c0_76] : memref<456x128xf32, #tpu.memory_space<vmem>>, vector<24x128xf32>
      %c60 = arith.constant 60 : index
      %c0_77 = arith.constant 0 : index
      %151 = vector.load %arg5[%c60, %c0_77] : memref<456x128xf32, #tpu.memory_space<vmem>>, vector<24x128xf32>
      %152 = arith.addf %150, %151 : vector<24x128xf32>
      %cst_78 = arith.constant 0.0573422872 : f32
      %153 = vector.broadcast %cst_78 : f32 to vector<24x128xf32>
      %154 = arith.mulf %153, %152 : vector<24x128xf32>
      %155 = arith.addf %149, %154 : vector<24x128xf32>
      %c51 = arith.constant 51 : index
      %c0_79 = arith.constant 0 : index
      %156 = vector.load %arg5[%c51, %c0_79] : memref<456x128xf32, #tpu.memory_space<vmem>>, vector<24x128xf32>
      %c61 = arith.constant 61 : index
      %c0_80 = arith.constant 0 : index
      %157 = vector.load %arg5[%c61, %c0_80] : memref<456x128xf32, #tpu.memory_space<vmem>>, vector<24x128xf32>
      %158 = arith.addf %156, %157 : vector<24x128xf32>
      %cst_81 = arith.constant 0.423705369 : f32
      %159 = vector.broadcast %cst_81 : f32 to vector<24x128xf32>
      %160 = arith.mulf %159, %158 : vector<24x128xf32>
      %161 = arith.addf %155, %160 : vector<24x128xf32>
      %c80_82 = arith.constant 80 : index
      %c0_83 = arith.constant 0 : index
      %162 = vector.load %arg5[%c80_82, %c0_83] : memref<456x128xf32, #tpu.memory_space<vmem>>, vector<24x128xf32>
      %cst_84 = arith.constant 0.00163801119 : f32
      %163 = vector.broadcast %cst_84 : f32 to vector<24x128xf32>
      %164 = arith.mulf %163, %162 : vector<24x128xf32>
      %c79 = arith.constant 79 : index
      %c0_85 = arith.constant 0 : index
      %165 = vector.load %arg5[%c79, %c0_85] : memref<456x128xf32, #tpu.memory_space<vmem>>, vector<24x128xf32>
      %c81 = arith.constant 81 : index
      %c0_86 = arith.constant 0 : index
      %166 = vector.load %arg5[%c81, %c0_86] : memref<456x128xf32, #tpu.memory_space<vmem>>, vector<24x128xf32>
      %167 = arith.addf %165, %166 : vector<24x128xf32>
      %cst_87 = arith.constant 0.00204562838 : f32
      %168 = vector.broadcast %cst_87 : f32 to vector<24x128xf32>
      %169 = arith.mulf %168, %167 : vector<24x128xf32>
      %170 = arith.addf %164, %169 : vector<24x128xf32>
      %c78 = arith.constant 78 : index
      %c0_88 = arith.constant 0 : index
      %171 = vector.load %arg5[%c78, %c0_88] : memref<456x128xf32, #tpu.memory_space<vmem>>, vector<24x128xf32>
      %c82 = arith.constant 82 : index
      %c0_89 = arith.constant 0 : index
      %172 = vector.load %arg5[%c82, %c0_89] : memref<456x128xf32, #tpu.memory_space<vmem>>, vector<24x128xf32>
      %173 = arith.addf %171, %172 : vector<24x128xf32>
      %cst_90 = arith.constant 3.984340e-03 : f32
      %174 = vector.broadcast %cst_90 : f32 to vector<24x128xf32>
      %175 = arith.mulf %174, %173 : vector<24x128xf32>
      %176 = arith.addf %170, %175 : vector<24x128xf32>
      %c77 = arith.constant 77 : index
      %c0_91 = arith.constant 0 : index
      %177 = vector.load %arg5[%c77, %c0_91] : memref<456x128xf32, #tpu.memory_space<vmem>>, vector<24x128xf32>
      %c83 = arith.constant 83 : index
      %c0_92 = arith.constant 0 : index
      %178 = vector.load %arg5[%c83, %c0_92] : memref<456x128xf32, #tpu.memory_space<vmem>>, vector<24x128xf32>
      %179 = arith.addf %177, %178 : vector<24x128xf32>
      %cst_93 = arith.constant 0.0121033564 : f32
      %180 = vector.broadcast %cst_93 : f32 to vector<24x128xf32>
      %181 = arith.mulf %180, %179 : vector<24x128xf32>
      %182 = arith.addf %176, %181 : vector<24x128xf32>
      %c76 = arith.constant 76 : index
      %c0_94 = arith.constant 0 : index
      %183 = vector.load %arg5[%c76, %c0_94] : memref<456x128xf32, #tpu.memory_space<vmem>>, vector<24x128xf32>
      %c84 = arith.constant 84 : index
      %c0_95 = arith.constant 0 : index
      %184 = vector.load %arg5[%c84, %c0_95] : memref<456x128xf32, #tpu.memory_space<vmem>>, vector<24x128xf32>
      %185 = arith.addf %183, %184 : vector<24x128xf32>
      %cst_96 = arith.constant 0.0573422872 : f32
      %186 = vector.broadcast %cst_96 : f32 to vector<24x128xf32>
      %187 = arith.mulf %186, %185 : vector<24x128xf32>
      %188 = arith.addf %182, %187 : vector<24x128xf32>
      %c75 = arith.constant 75 : index
      %c0_97 = arith.constant 0 : index
      %189 = vector.load %arg5[%c75, %c0_97] : memref<456x128xf32, #tpu.memory_space<vmem>>, vector<24x128xf32>
      %c85 = arith.constant 85 : index
      %c0_98 = arith.constant 0 : index
      %190 = vector.load %arg5[%c85, %c0_98] : memref<456x128xf32, #tpu.memory_space<vmem>>, vector<24x128xf32>
      %191 = arith.addf %189, %190 : vector<24x128xf32>
      %cst_99 = arith.constant 0.423705369 : f32
      %192 = vector.broadcast %cst_99 : f32 to vector<24x128xf32>
      %193 = arith.mulf %192, %191 : vector<24x128xf32>
      %194 = arith.addf %188, %193 : vector<24x128xf32>
      %c104_100 = arith.constant 104 : index
      %c0_101 = arith.constant 0 : index
      %195 = vector.load %arg5[%c104_100, %c0_101] : memref<456x128xf32, #tpu.memory_space<vmem>>, vector<24x128xf32>
      %cst_102 = arith.constant 0.00163801119 : f32
      %196 = vector.broadcast %cst_102 : f32 to vector<24x128xf32>
      %197 = arith.mulf %196, %195 : vector<24x128xf32>
      %c103 = arith.constant 103 : index
      %c0_103 = arith.constant 0 : index
      %198 = vector.load %arg5[%c103, %c0_103] : memref<456x128xf32, #tpu.memory_space<vmem>>, vector<24x128xf32>
      %c105 = arith.constant 105 : index
      %c0_104 = arith.constant 0 : index
      %199 = vector.load %arg5[%c105, %c0_104] : memref<456x128xf32, #tpu.memory_space<vmem>>, vector<24x128xf32>
      %200 = arith.addf %198, %199 : vector<24x128xf32>
      %cst_105 = arith.constant 0.00204562838 : f32
      %201 = vector.broadcast %cst_105 : f32 to vector<24x128xf32>
      %202 = arith.mulf %201, %200 : vector<24x128xf32>
      %203 = arith.addf %197, %202 : vector<24x128xf32>
      %c102 = arith.constant 102 : index
      %c0_106 = arith.constant 0 : index
      %204 = vector.load %arg5[%c102, %c0_106] : memref<456x128xf32, #tpu.memory_space<vmem>>, vector<24x128xf32>
      %c106 = arith.constant 106 : index
      %c0_107 = arith.constant 0 : index
      %205 = vector.load %arg5[%c106, %c0_107] : memref<456x128xf32, #tpu.memory_space<vmem>>, vector<24x128xf32>
      %206 = arith.addf %204, %205 : vector<24x128xf32>
      %cst_108 = arith.constant 3.984340e-03 : f32
      %207 = vector.broadcast %cst_108 : f32 to vector<24x128xf32>
      %208 = arith.mulf %207, %206 : vector<24x128xf32>
      %209 = arith.addf %203, %208 : vector<24x128xf32>
      %c101 = arith.constant 101 : index
      %c0_109 = arith.constant 0 : index
      %210 = vector.load %arg5[%c101, %c0_109] : memref<456x128xf32, #tpu.memory_space<vmem>>, vector<24x128xf32>
      %c107 = arith.constant 107 : index
      %c0_110 = arith.constant 0 : index
      %211 = vector.load %arg5[%c107, %c0_110] : memref<456x128xf32, #tpu.memory_space<vmem>>, vector<24x128xf32>
      %212 = arith.addf %210, %211 : vector<24x128xf32>
      %cst_111 = arith.constant 0.0121033564 : f32
      %213 = vector.broadcast %cst_111 : f32 to vector<24x128xf32>
      %214 = arith.mulf %213, %212 : vector<24x128xf32>
      %215 = arith.addf %209, %214 : vector<24x128xf32>
      %c100 = arith.constant 100 : index
      %c0_112 = arith.constant 0 : index
      %216 = vector.load %arg5[%c100, %c0_112] : memref<456x128xf32, #tpu.memory_space<vmem>>, vector<24x128xf32>
      %c108 = arith.constant 108 : index
      %c0_113 = arith.constant 0 : index
      %217 = vector.load %arg5[%c108, %c0_113] : memref<456x128xf32, #tpu.memory_space<vmem>>, vector<24x128xf32>
      %218 = arith.addf %216, %217 : vector<24x128xf32>
      %cst_114 = arith.constant 0.0573422872 : f32
      %219 = vector.broadcast %cst_114 : f32 to vector<24x128xf32>
      %220 = arith.mulf %219, %218 : vector<24x128xf32>
      %221 = arith.addf %215, %220 : vector<24x128xf32>
      %c99 = arith.constant 99 : index
      %c0_115 = arith.constant 0 : index
      %222 = vector.load %arg5[%c99, %c0_115] : memref<456x128xf32, #tpu.memory_space<vmem>>, vector<24x128xf32>
      %c109 = arith.constant 109 : index
      %c0_116 = arith.constant 0 : index
      %223 = vector.load %arg5[%c109, %c0_116] : memref<456x128xf32, #tpu.memory_space<vmem>>, vector<24x128xf32>
      %224 = arith.addf %222, %223 : vector<24x128xf32>
      %cst_117 = arith.constant 0.423705369 : f32
      %225 = vector.broadcast %cst_117 : f32 to vector<24x128xf32>
      %226 = arith.mulf %225, %224 : vector<24x128xf32>
      %227 = arith.addf %221, %226 : vector<24x128xf32>
      %228 = arith.mulf %95, %95 : vector<24x128xf32>
      %229 = arith.mulf %128, %128 : vector<24x128xf32>
      %230 = arith.mulf %95, %128 : vector<24x128xf32>
      %231 = arith.subf %161, %228 : vector<24x128xf32>
      %232 = arith.subf %194, %229 : vector<24x128xf32>
      %233 = arith.subf %227, %230 : vector<24x128xf32>
      %cst_118 = arith.constant 2.000000e+00 : f32
      %234 = vector.broadcast %cst_118 : f32 to vector<24x128xf32>
      %235 = arith.mulf %234, %233 : vector<24x128xf32>
      %236 = vector.broadcast %49 : f32 to vector<24x128xf32>
      %237 = arith.addf %235, %236 : vector<24x128xf32>
      %238 = arith.addf %231, %232 : vector<24x128xf32>
      %239 = vector.broadcast %49 : f32 to vector<24x128xf32>
      %240 = arith.addf %238, %239 : vector<24x128xf32>
      %241 = arith.divf %237, %240 : vector<24x128xf32>
      %cst_119 = arith.constant 2.000000e+00 : f32
      %242 = vector.broadcast %cst_119 : f32 to vector<24x128xf32>
      %243 = arith.mulf %242, %230 : vector<24x128xf32>
      %244 = vector.broadcast %47 : f32 to vector<24x128xf32>
      %245 = arith.addf %243, %244 : vector<24x128xf32>
      %246 = arith.addf %228, %229 : vector<24x128xf32>
      %247 = vector.broadcast %47 : f32 to vector<24x128xf32>
      %248 = arith.addf %246, %247 : vector<24x128xf32>
      %249 = arith.divf %245, %248 : vector<24x128xf32>
      %250 = arith.mulf %249, %241 : vector<24x128xf32>
      %cst_120 = arith.constant 0.000000e+00 : f32
      %251 = vector.broadcast %cst_120 : f32 to vector<24x128xf32>
      %252 = arith.select %32, %241, %251 : vector<24x128xi1>, vector<24x128xf32>
      %253 = vector.shape_cast %252 : vector<24x128xf32> to vector<1x24x128xf32>
      %cst_121 = arith.constant dense<0.000000e+00> : vector<1xf32>
      %254 = vector.multi_reduction <add>, %253, %cst_121 [1, 2] : vector<1x24x128xf32> to vector<1xf32>
      %255 = vector.shape_cast %254 : vector<1xf32> to vector<1x1x1xf32>
      %256 = vector.extract %255[0, 0, 0] : f32 from vector<1x1x1xf32>
      %cst_122 = arith.constant 0.00260416674 : f32
      %257 = arith.mulf %256, %cst_122 : f32
      %cst_123 = arith.constant 0.000000e+00 : f32
      %258 = vector.broadcast %cst_123 : f32 to vector<24x128xf32>
      %259 = arith.select %32, %250, %258 : vector<24x128xi1>, vector<24x128xf32>
      %260 = vector.shape_cast %259 : vector<24x128xf32> to vector<1x24x128xf32>
      %cst_124 = arith.constant dense<0.000000e+00> : vector<1xf32>
      %261 = vector.multi_reduction <add>, %260, %cst_124 [1, 2] : vector<1x24x128xf32> to vector<1xf32>
      %262 = vector.shape_cast %261 : vector<1xf32> to vector<1x1x1xf32>
      %263 = vector.extract %262[0, 0, 0] : f32 from vector<1x1x1xf32>
      %cst_125 = arith.constant 0.00260416674 : f32
      %264 = arith.mulf %263, %cst_125 : f32
      %265 = tpu.iota {dimensions = array<i32: 0>} : vector<8x128xi32>
      %266 = tpu.iota {dimensions = array<i32: 1>} : vector<8x128xi32>
      %c0_i32_126 = arith.constant 0 : i32
      %267 = vector.broadcast %c0_i32_126 : i32 to vector<8x128xi32>
      %268 = arith.cmpi eq, %265, %267 : vector<8x128xi32>
      %c0_i32_127 = arith.constant 0 : i32
      %269 = vector.broadcast %c0_i32_127 : i32 to vector<8x128xi32>
      %270 = arith.cmpi eq, %266, %269 : vector<8x128xi32>
      %271 = arith.andi %268, %270 : vector<8x128xi1>
      %c0_i32_128 = arith.constant 0 : i32
      %272 = vector.broadcast %c0_i32_128 : i32 to vector<8x128xi32>
      %273 = arith.cmpi eq, %265, %272 : vector<8x128xi32>
      %c1_i32_129 = arith.constant 1 : i32
      %274 = vector.broadcast %c1_i32_129 : i32 to vector<8x128xi32>
      %275 = arith.cmpi eq, %266, %274 : vector<8x128xi32>
      %276 = arith.andi %273, %275 : vector<8x128xi1>
      %cst_130 = arith.constant 0.000000e+00 : f32
      %277 = vector.broadcast %257 : f32 to vector<8x128xf32>
      %278 = vector.broadcast %cst_130 : f32 to vector<8x128xf32>
      %279 = arith.select %276, %277, %278 : vector<8x128xi1>, vector<8x128xf32>
      %280 = vector.broadcast %264 : f32 to vector<8x128xf32>
      %281 = arith.select %271, %280, %279 : vector<8x128xi1>, vector<8x128xf32>
      %c0_131 = arith.constant 0 : index
      %c0_132 = arith.constant 0 : index
      %c0_133 = arith.constant 0 : index
      %282 = vector.load %arg4[%c0_131, %c0_132, %c0_133] : memref<1x8x128xf32, #tpu.memory_space<vmem>>, vector<1x8x128xf32>
      %283 = vector.shape_cast %282 : vector<1x8x128xf32> to vector<8x128xf32>
      %284 = vector.shape_cast %281 : vector<8x128xf32> to vector<1x8x128xf32>
      tpu.vector_store %arg4[%c0_131, %c0_132, %c0_133], %284 {strides = array<i32>} : memref<1x8x128xf32, #tpu.memory_space<vmem>>, vector<1x8x128xf32>,
    } else {
    }
    %c3_i32 = arith.constant 3 : i32
    %9 = arith.cmpi eq, %arg0, %c3_i32 : i32
    %10 = arith.extui %9 : i1 to i32
    %c0_i32_3 = arith.constant 0 : i32
    %11 = arith.cmpi ne, %10, %c0_i32_3 : i32
    scf.if %11 {
      %c0 = arith.constant 0 : index
      %c0_5 = arith.constant 0 : index
      %c0_6 = arith.constant 0 : index
      %15 = vector.load %arg3[%c0, %c0_5, %c0_6] : memref<1x128x128xf32, #tpu.memory_space<vmem>>, vector<1x128x128xf32>
      %16 = vector.shape_cast %15 : vector<1x128x128xf32> to vector<128x128xf32>
      %c0_7 = arith.constant 0 : index
      %c0_8 = arith.constant 0 : index
      %c0_9 = arith.constant 0 : index
      %17 = vector.load %arg1[%c0_7, %c0_8, %c0_9] : memref<1x88x128xf32, #tpu.memory_space<vmem>>, vector<1x88x128xf32>
      %18 = vector.shape_cast %17 : vector<1x88x128xf32> to vector<88x128xf32>
      %19 = vector.extract_strided_slice %18 {offsets = [0, 0], sizes = [16, 128], strides = [1, 1]} : vector<88x128xf32> to vector<16x128xf32>
      %c0_10 = arith.constant 0 : index
      %c0_11 = arith.constant 0 : index
      %c0_12 = arith.constant 0 : index
      %20 = vector.load %arg2[%c0_10, %c0_11, %c0_12] : memref<1x88x128xf32, #tpu.memory_space<vmem>>, vector<1x88x128xf32>
      %21 = vector.shape_cast %20 : vector<1x88x128xf32> to vector<88x128xf32>
      %22 = vector.extract_strided_slice %21 {offsets = [0, 0], sizes = [16, 128], strides = [1, 1]} : vector<88x128xf32> to vector<16x128xf32>
      %23 = tpu.iota {dimensions = array<i32: 0>} : vector<16x128xi32>
      %24 = tpu.iota {dimensions = array<i32: 1>} : vector<16x128xi32>
      %c5_i32 = arith.constant 5 : i32
      %25 = vector.broadcast %c5_i32 : i32 to vector<16x128xi32>
      %26 = arith.cmpi sge, %23, %25 : vector<16x128xi32>
      %c9_i32 = arith.constant 9 : i32
      %27 = vector.broadcast %c9_i32 : i32 to vector<16x128xi32>
      %28 = arith.cmpi slt, %23, %27 : vector<16x128xi32>
      %29 = arith.andi %26, %28 : vector<16x128xi1>
      %c24_i32 = arith.constant 24 : i32
      %30 = vector.broadcast %c24_i32 : i32 to vector<16x128xi32>
      %31 = arith.cmpi slt, %24, %30 : vector<16x128xi32>
      %32 = arith.andi %29, %31 : vector<16x128xi1>
      %cst = arith.constant 0xFF800000 : f32
      %33 = vector.broadcast %cst : f32 to vector<16x128xf32>
      %34 = arith.select %32, %19, %33 : vector<16x128xi1>, vector<16x128xf32>
      %35 = vector.shape_cast %34 : vector<16x128xf32> to vector<1x16x128xf32>
      %cst_13 = arith.constant dense<0xFF800000> : vector<1xf32>
      %36 = vector.multi_reduction <maximumf>, %35, %cst_13 [1, 2] : vector<1x16x128xf32> to vector<1xf32>
      %37 = vector.shape_cast %36 : vector<1xf32> to vector<1x1x1xf32>
      %38 = vector.extract %37[0, 0, 0] : f32 from vector<1x1x1xf32>
      %cst_14 = arith.constant 0x7F800000 : f32
      %39 = vector.broadcast %cst_14 : f32 to vector<16x128xf32>
      %40 = arith.select %32, %19, %39 : vector<16x128xi1>, vector<16x128xf32>
      %41 = vector.shape_cast %40 : vector<16x128xf32> to vector<1x16x128xf32>
      %cst_15 = arith.constant dense<0x7F800000> : vector<1xf32>
      %42 = vector.multi_reduction <minimumf>, %41, %cst_15 [1, 2] : vector<1x16x128xf32> to vector<1xf32>
      %43 = vector.shape_cast %42 : vector<1xf32> to vector<1x1x1xf32>
      %44 = vector.extract %43[0, 0, 0] : f32 from vector<1x1x1xf32>
      %45 = arith.subf %38, %44 : f32
      %cst_16 = arith.constant 0.00999999977 : f32
      %46 = arith.mulf %cst_16, %45 : f32
      %47 = arith.mulf %46, %46 : f32
      %cst_17 = arith.constant 3.000000e-02 : f32
      %48 = arith.mulf %cst_17, %45 : f32
      %49 = arith.mulf %48, %48 : f32
      %50 = arith.mulf %19, %19 : vector<16x128xf32>
      %51 = arith.mulf %22, %22 : vector<16x128xf32>
      %52 = arith.mulf %19, %22 : vector<16x128xf32>
      %cst_18 = arith.constant dense<0.000000e+00> : vector<16x128xf32>
      %53 = tpu.matmul %19, %16, %cst_18 {dimension_numbers = #tpu.dot_dimension_numbers<[1], [0], [0], [1], [0, 0, 1, 1], [], []>} : vector<16x128xf32>, vector<128x128xf32>, vector<16x128xf32> -> vector<16x128xf32>
      %c8 = arith.constant 8 : index
      %c0_19 = arith.constant 0 : index
      %54 = vector.load %arg5[%c8, %c0_19] : memref<456x128xf32, #tpu.memory_space<vmem>>, vector<16x128xf32>
      tpu.vector_store %arg5[%c8, %c0_19], %53 {strides = array<i32>} : memref<456x128xf32, #tpu.memory_space<vmem>>, vector<16x128xf32>,
      %cst_20 = arith.constant dense<0.000000e+00> : vector<16x128xf32>
      %55 = tpu.matmul %22, %16, %cst_20 {dimension_numbers = #tpu.dot_dimension_numbers<[1], [0], [0], [1], [0, 0, 1, 1], [], []>} : vector<16x128xf32>, vector<128x128xf32>, vector<16x128xf32> -> vector<16x128xf32>
      %c24 = arith.constant 24 : index
      %c0_21 = arith.constant 0 : index
      %56 = vector.load %arg5[%c24, %c0_21] : memref<456x128xf32, #tpu.memory_space<vmem>>, vector<16x128xf32>
      tpu.vector_store %arg5[%c24, %c0_21], %55 {strides = array<i32>} : memref<456x128xf32, #tpu.memory_space<vmem>>, vector<16x128xf32>,
      %cst_22 = arith.constant dense<0.000000e+00> : vector<16x128xf32>
      %57 = tpu.matmul %50, %16, %cst_22 {dimension_numbers = #tpu.dot_dimension_numbers<[1], [0], [0], [1], [0, 0, 1, 1], [], []>} : vector<16x128xf32>, vector<128x128xf32>, vector<16x128xf32> -> vector<16x128xf32>
      %c40 = arith.constant 40 : index
      %c0_23 = arith.constant 0 : index
      %58 = vector.load %arg5[%c40, %c0_23] : memref<456x128xf32, #tpu.memory_space<vmem>>, vector<16x128xf32>
      tpu.vector_store %arg5[%c40, %c0_23], %57 {strides = array<i32>} : memref<456x128xf32, #tpu.memory_space<vmem>>, vector<16x128xf32>,
      %cst_24 = arith.constant dense<0.000000e+00> : vector<16x128xf32>
      %59 = tpu.matmul %51, %16, %cst_24 {dimension_numbers = #tpu.dot_dimension_numbers<[1], [0], [0], [1], [0, 0, 1, 1], [], []>} : vector<16x128xf32>, vector<128x128xf32>, vector<16x128xf32> -> vector<16x128xf32>
      %c56 = arith.constant 56 : index
      %c0_25 = arith.constant 0 : index
      %60 = vector.load %arg5[%c56, %c0_25] : memref<456x128xf32, #tpu.memory_space<vmem>>, vector<16x128xf32>
      tpu.vector_store %arg5[%c56, %c0_25], %59 {strides = array<i32>} : memref<456x128xf32, #tpu.memory_space<vmem>>, vector<16x128xf32>,
      %cst_26 = arith.constant dense<0.000000e+00> : vector<16x128xf32>
      %61 = tpu.matmul %52, %16, %cst_26 {dimension_numbers = #tpu.dot_dimension_numbers<[1], [0], [0], [1], [0, 0, 1, 1], [], []>} : vector<16x128xf32>, vector<128x128xf32>, vector<16x128xf32> -> vector<16x128xf32>
      %c72 = arith.constant 72 : index
      %c0_27 = arith.constant 0 : index
      %62 = vector.load %arg5[%c72, %c0_27] : memref<456x128xf32, #tpu.memory_space<vmem>>, vector<16x128xf32>
      tpu.vector_store %arg5[%c72, %c0_27], %61 {strides = array<i32>} : memref<456x128xf32, #tpu.memory_space<vmem>>, vector<16x128xf32>,
      %c8_28 = arith.constant 8 : index
      %c0_29 = arith.constant 0 : index
      %63 = vector.load %arg5[%c8_28, %c0_29] : memref<456x128xf32, #tpu.memory_space<vmem>>, vector<16x128xf32>
      %cst_30 = arith.constant 0.00163801119 : f32
      %64 = vector.broadcast %cst_30 : f32 to vector<16x128xf32>
      %65 = arith.mulf %64, %63 : vector<16x128xf32>
      %c7 = arith.constant 7 : index
      %c0_31 = arith.constant 0 : index
      %66 = vector.load %arg5[%c7, %c0_31] : memref<456x128xf32, #tpu.memory_space<vmem>>, vector<16x128xf32>
      %c9 = arith.constant 9 : index
      %c0_32 = arith.constant 0 : index
      %67 = vector.load %arg5[%c9, %c0_32] : memref<456x128xf32, #tpu.memory_space<vmem>>, vector<16x128xf32>
      %68 = arith.addf %66, %67 : vector<16x128xf32>
      %cst_33 = arith.constant 0.00204562838 : f32
      %69 = vector.broadcast %cst_33 : f32 to vector<16x128xf32>
      %70 = arith.mulf %69, %68 : vector<16x128xf32>
      %71 = arith.addf %65, %70 : vector<16x128xf32>
      %c6 = arith.constant 6 : index
      %c0_34 = arith.constant 0 : index
      %72 = vector.load %arg5[%c6, %c0_34] : memref<456x128xf32, #tpu.memory_space<vmem>>, vector<16x128xf32>
      %c10 = arith.constant 10 : index
      %c0_35 = arith.constant 0 : index
      %73 = vector.load %arg5[%c10, %c0_35] : memref<456x128xf32, #tpu.memory_space<vmem>>, vector<16x128xf32>
      %74 = arith.addf %72, %73 : vector<16x128xf32>
      %cst_36 = arith.constant 3.984340e-03 : f32
      %75 = vector.broadcast %cst_36 : f32 to vector<16x128xf32>
      %76 = arith.mulf %75, %74 : vector<16x128xf32>
      %77 = arith.addf %71, %76 : vector<16x128xf32>
      %c5 = arith.constant 5 : index
      %c0_37 = arith.constant 0 : index
      %78 = vector.load %arg5[%c5, %c0_37] : memref<456x128xf32, #tpu.memory_space<vmem>>, vector<16x128xf32>
      %c11 = arith.constant 11 : index
      %c0_38 = arith.constant 0 : index
      %79 = vector.load %arg5[%c11, %c0_38] : memref<456x128xf32, #tpu.memory_space<vmem>>, vector<16x128xf32>
      %80 = arith.addf %78, %79 : vector<16x128xf32>
      %cst_39 = arith.constant 0.0121033564 : f32
      %81 = vector.broadcast %cst_39 : f32 to vector<16x128xf32>
      %82 = arith.mulf %81, %80 : vector<16x128xf32>
      %83 = arith.addf %77, %82 : vector<16x128xf32>
      %c4 = arith.constant 4 : index
      %c0_40 = arith.constant 0 : index
      %84 = vector.load %arg5[%c4, %c0_40] : memref<456x128xf32, #tpu.memory_space<vmem>>, vector<16x128xf32>
      %c12 = arith.constant 12 : index
      %c0_41 = arith.constant 0 : index
      %85 = vector.load %arg5[%c12, %c0_41] : memref<456x128xf32, #tpu.memory_space<vmem>>, vector<16x128xf32>
      %86 = arith.addf %84, %85 : vector<16x128xf32>
      %cst_42 = arith.constant 0.0573422872 : f32
      %87 = vector.broadcast %cst_42 : f32 to vector<16x128xf32>
      %88 = arith.mulf %87, %86 : vector<16x128xf32>
      %89 = arith.addf %83, %88 : vector<16x128xf32>
      %c3 = arith.constant 3 : index
      %c0_43 = arith.constant 0 : index
      %90 = vector.load %arg5[%c3, %c0_43] : memref<456x128xf32, #tpu.memory_space<vmem>>, vector<16x128xf32>
      %c13 = arith.constant 13 : index
      %c0_44 = arith.constant 0 : index
      %91 = vector.load %arg5[%c13, %c0_44] : memref<456x128xf32, #tpu.memory_space<vmem>>, vector<16x128xf32>
      %92 = arith.addf %90, %91 : vector<16x128xf32>
      %cst_45 = arith.constant 0.423705369 : f32
      %93 = vector.broadcast %cst_45 : f32 to vector<16x128xf32>
      %94 = arith.mulf %93, %92 : vector<16x128xf32>
      %95 = arith.addf %89, %94 : vector<16x128xf32>
      %c24_46 = arith.constant 24 : index
      %c0_47 = arith.constant 0 : index
      %96 = vector.load %arg5[%c24_46, %c0_47] : memref<456x128xf32, #tpu.memory_space<vmem>>, vector<16x128xf32>
      %cst_48 = arith.constant 0.00163801119 : f32
      %97 = vector.broadcast %cst_48 : f32 to vector<16x128xf32>
      %98 = arith.mulf %97, %96 : vector<16x128xf32>
      %c23 = arith.constant 23 : index
      %c0_49 = arith.constant 0 : index
      %99 = vector.load %arg5[%c23, %c0_49] : memref<456x128xf32, #tpu.memory_space<vmem>>, vector<16x128xf32>
      %c25 = arith.constant 25 : index
      %c0_50 = arith.constant 0 : index
      %100 = vector.load %arg5[%c25, %c0_50] : memref<456x128xf32, #tpu.memory_space<vmem>>, vector<16x128xf32>
      %101 = arith.addf %99, %100 : vector<16x128xf32>
      %cst_51 = arith.constant 0.00204562838 : f32
      %102 = vector.broadcast %cst_51 : f32 to vector<16x128xf32>
      %103 = arith.mulf %102, %101 : vector<16x128xf32>
      %104 = arith.addf %98, %103 : vector<16x128xf32>
      %c22 = arith.constant 22 : index
      %c0_52 = arith.constant 0 : index
      %105 = vector.load %arg5[%c22, %c0_52] : memref<456x128xf32, #tpu.memory_space<vmem>>, vector<16x128xf32>
      %c26 = arith.constant 26 : index
      %c0_53 = arith.constant 0 : index
      %106 = vector.load %arg5[%c26, %c0_53] : memref<456x128xf32, #tpu.memory_space<vmem>>, vector<16x128xf32>
      %107 = arith.addf %105, %106 : vector<16x128xf32>
      %cst_54 = arith.constant 3.984340e-03 : f32
      %108 = vector.broadcast %cst_54 : f32 to vector<16x128xf32>
      %109 = arith.mulf %108, %107 : vector<16x128xf32>
      %110 = arith.addf %104, %109 : vector<16x128xf32>
      %c21 = arith.constant 21 : index
      %c0_55 = arith.constant 0 : index
      %111 = vector.load %arg5[%c21, %c0_55] : memref<456x128xf32, #tpu.memory_space<vmem>>, vector<16x128xf32>
      %c27 = arith.constant 27 : index
      %c0_56 = arith.constant 0 : index
      %112 = vector.load %arg5[%c27, %c0_56] : memref<456x128xf32, #tpu.memory_space<vmem>>, vector<16x128xf32>
      %113 = arith.addf %111, %112 : vector<16x128xf32>
      %cst_57 = arith.constant 0.0121033564 : f32
      %114 = vector.broadcast %cst_57 : f32 to vector<16x128xf32>
      %115 = arith.mulf %114, %113 : vector<16x128xf32>
      %116 = arith.addf %110, %115 : vector<16x128xf32>
      %c20 = arith.constant 20 : index
      %c0_58 = arith.constant 0 : index
      %117 = vector.load %arg5[%c20, %c0_58] : memref<456x128xf32, #tpu.memory_space<vmem>>, vector<16x128xf32>
      %c28 = arith.constant 28 : index
      %c0_59 = arith.constant 0 : index
      %118 = vector.load %arg5[%c28, %c0_59] : memref<456x128xf32, #tpu.memory_space<vmem>>, vector<16x128xf32>
      %119 = arith.addf %117, %118 : vector<16x128xf32>
      %cst_60 = arith.constant 0.0573422872 : f32
      %120 = vector.broadcast %cst_60 : f32 to vector<16x128xf32>
      %121 = arith.mulf %120, %119 : vector<16x128xf32>
      %122 = arith.addf %116, %121 : vector<16x128xf32>
      %c19 = arith.constant 19 : index
      %c0_61 = arith.constant 0 : index
      %123 = vector.load %arg5[%c19, %c0_61] : memref<456x128xf32, #tpu.memory_space<vmem>>, vector<16x128xf32>
      %c29 = arith.constant 29 : index
      %c0_62 = arith.constant 0 : index
      %124 = vector.load %arg5[%c29, %c0_62] : memref<456x128xf32, #tpu.memory_space<vmem>>, vector<16x128xf32>
      %125 = arith.addf %123, %124 : vector<16x128xf32>
      %cst_63 = arith.constant 0.423705369 : f32
      %126 = vector.broadcast %cst_63 : f32 to vector<16x128xf32>
      %127 = arith.mulf %126, %125 : vector<16x128xf32>
      %128 = arith.addf %122, %127 : vector<16x128xf32>
      %c40_64 = arith.constant 40 : index
      %c0_65 = arith.constant 0 : index
      %129 = vector.load %arg5[%c40_64, %c0_65] : memref<456x128xf32, #tpu.memory_space<vmem>>, vector<16x128xf32>
      %cst_66 = arith.constant 0.00163801119 : f32
      %130 = vector.broadcast %cst_66 : f32 to vector<16x128xf32>
      %131 = arith.mulf %130, %129 : vector<16x128xf32>
      %c39 = arith.constant 39 : index
      %c0_67 = arith.constant 0 : index
      %132 = vector.load %arg5[%c39, %c0_67] : memref<456x128xf32, #tpu.memory_space<vmem>>, vector<16x128xf32>
      %c41 = arith.constant 41 : index
      %c0_68 = arith.constant 0 : index
      %133 = vector.load %arg5[%c41, %c0_68] : memref<456x128xf32, #tpu.memory_space<vmem>>, vector<16x128xf32>
      %134 = arith.addf %132, %133 : vector<16x128xf32>
      %cst_69 = arith.constant 0.00204562838 : f32
      %135 = vector.broadcast %cst_69 : f32 to vector<16x128xf32>
      %136 = arith.mulf %135, %134 : vector<16x128xf32>
      %137 = arith.addf %131, %136 : vector<16x128xf32>
      %c38 = arith.constant 38 : index
      %c0_70 = arith.constant 0 : index
      %138 = vector.load %arg5[%c38, %c0_70] : memref<456x128xf32, #tpu.memory_space<vmem>>, vector<16x128xf32>
      %c42 = arith.constant 42 : index
      %c0_71 = arith.constant 0 : index
      %139 = vector.load %arg5[%c42, %c0_71] : memref<456x128xf32, #tpu.memory_space<vmem>>, vector<16x128xf32>
      %140 = arith.addf %138, %139 : vector<16x128xf32>
      %cst_72 = arith.constant 3.984340e-03 : f32
      %141 = vector.broadcast %cst_72 : f32 to vector<16x128xf32>
      %142 = arith.mulf %141, %140 : vector<16x128xf32>
      %143 = arith.addf %137, %142 : vector<16x128xf32>
      %c37 = arith.constant 37 : index
      %c0_73 = arith.constant 0 : index
      %144 = vector.load %arg5[%c37, %c0_73] : memref<456x128xf32, #tpu.memory_space<vmem>>, vector<16x128xf32>
      %c43 = arith.constant 43 : index
      %c0_74 = arith.constant 0 : index
      %145 = vector.load %arg5[%c43, %c0_74] : memref<456x128xf32, #tpu.memory_space<vmem>>, vector<16x128xf32>
      %146 = arith.addf %144, %145 : vector<16x128xf32>
      %cst_75 = arith.constant 0.0121033564 : f32
      %147 = vector.broadcast %cst_75 : f32 to vector<16x128xf32>
      %148 = arith.mulf %147, %146 : vector<16x128xf32>
      %149 = arith.addf %143, %148 : vector<16x128xf32>
      %c36 = arith.constant 36 : index
      %c0_76 = arith.constant 0 : index
      %150 = vector.load %arg5[%c36, %c0_76] : memref<456x128xf32, #tpu.memory_space<vmem>>, vector<16x128xf32>
      %c44 = arith.constant 44 : index
      %c0_77 = arith.constant 0 : index
      %151 = vector.load %arg5[%c44, %c0_77] : memref<456x128xf32, #tpu.memory_space<vmem>>, vector<16x128xf32>
      %152 = arith.addf %150, %151 : vector<16x128xf32>
      %cst_78 = arith.constant 0.0573422872 : f32
      %153 = vector.broadcast %cst_78 : f32 to vector<16x128xf32>
      %154 = arith.mulf %153, %152 : vector<16x128xf32>
      %155 = arith.addf %149, %154 : vector<16x128xf32>
      %c35 = arith.constant 35 : index
      %c0_79 = arith.constant 0 : index
      %156 = vector.load %arg5[%c35, %c0_79] : memref<456x128xf32, #tpu.memory_space<vmem>>, vector<16x128xf32>
      %c45 = arith.constant 45 : index
      %c0_80 = arith.constant 0 : index
      %157 = vector.load %arg5[%c45, %c0_80] : memref<456x128xf32, #tpu.memory_space<vmem>>, vector<16x128xf32>
      %158 = arith.addf %156, %157 : vector<16x128xf32>
      %cst_81 = arith.constant 0.423705369 : f32
      %159 = vector.broadcast %cst_81 : f32 to vector<16x128xf32>
      %160 = arith.mulf %159, %158 : vector<16x128xf32>
      %161 = arith.addf %155, %160 : vector<16x128xf32>
      %c56_82 = arith.constant 56 : index
      %c0_83 = arith.constant 0 : index
      %162 = vector.load %arg5[%c56_82, %c0_83] : memref<456x128xf32, #tpu.memory_space<vmem>>, vector<16x128xf32>
      %cst_84 = arith.constant 0.00163801119 : f32
      %163 = vector.broadcast %cst_84 : f32 to vector<16x128xf32>
      %164 = arith.mulf %163, %162 : vector<16x128xf32>
      %c55 = arith.constant 55 : index
      %c0_85 = arith.constant 0 : index
      %165 = vector.load %arg5[%c55, %c0_85] : memref<456x128xf32, #tpu.memory_space<vmem>>, vector<16x128xf32>
      %c57 = arith.constant 57 : index
      %c0_86 = arith.constant 0 : index
      %166 = vector.load %arg5[%c57, %c0_86] : memref<456x128xf32, #tpu.memory_space<vmem>>, vector<16x128xf32>
      %167 = arith.addf %165, %166 : vector<16x128xf32>
      %cst_87 = arith.constant 0.00204562838 : f32
      %168 = vector.broadcast %cst_87 : f32 to vector<16x128xf32>
      %169 = arith.mulf %168, %167 : vector<16x128xf32>
      %170 = arith.addf %164, %169 : vector<16x128xf32>
      %c54 = arith.constant 54 : index
      %c0_88 = arith.constant 0 : index
      %171 = vector.load %arg5[%c54, %c0_88] : memref<456x128xf32, #tpu.memory_space<vmem>>, vector<16x128xf32>
      %c58 = arith.constant 58 : index
      %c0_89 = arith.constant 0 : index
      %172 = vector.load %arg5[%c58, %c0_89] : memref<456x128xf32, #tpu.memory_space<vmem>>, vector<16x128xf32>
      %173 = arith.addf %171, %172 : vector<16x128xf32>
      %cst_90 = arith.constant 3.984340e-03 : f32
      %174 = vector.broadcast %cst_90 : f32 to vector<16x128xf32>
      %175 = arith.mulf %174, %173 : vector<16x128xf32>
      %176 = arith.addf %170, %175 : vector<16x128xf32>
      %c53 = arith.constant 53 : index
      %c0_91 = arith.constant 0 : index
      %177 = vector.load %arg5[%c53, %c0_91] : memref<456x128xf32, #tpu.memory_space<vmem>>, vector<16x128xf32>
      %c59 = arith.constant 59 : index
      %c0_92 = arith.constant 0 : index
      %178 = vector.load %arg5[%c59, %c0_92] : memref<456x128xf32, #tpu.memory_space<vmem>>, vector<16x128xf32>
      %179 = arith.addf %177, %178 : vector<16x128xf32>
      %cst_93 = arith.constant 0.0121033564 : f32
      %180 = vector.broadcast %cst_93 : f32 to vector<16x128xf32>
      %181 = arith.mulf %180, %179 : vector<16x128xf32>
      %182 = arith.addf %176, %181 : vector<16x128xf32>
      %c52 = arith.constant 52 : index
      %c0_94 = arith.constant 0 : index
      %183 = vector.load %arg5[%c52, %c0_94] : memref<456x128xf32, #tpu.memory_space<vmem>>, vector<16x128xf32>
      %c60 = arith.constant 60 : index
      %c0_95 = arith.constant 0 : index
      %184 = vector.load %arg5[%c60, %c0_95] : memref<456x128xf32, #tpu.memory_space<vmem>>, vector<16x128xf32>
      %185 = arith.addf %183, %184 : vector<16x128xf32>
      %cst_96 = arith.constant 0.0573422872 : f32
      %186 = vector.broadcast %cst_96 : f32 to vector<16x128xf32>
      %187 = arith.mulf %186, %185 : vector<16x128xf32>
      %188 = arith.addf %182, %187 : vector<16x128xf32>
      %c51 = arith.constant 51 : index
      %c0_97 = arith.constant 0 : index
      %189 = vector.load %arg5[%c51, %c0_97] : memref<456x128xf32, #tpu.memory_space<vmem>>, vector<16x128xf32>
      %c61 = arith.constant 61 : index
      %c0_98 = arith.constant 0 : index
      %190 = vector.load %arg5[%c61, %c0_98] : memref<456x128xf32, #tpu.memory_space<vmem>>, vector<16x128xf32>
      %191 = arith.addf %189, %190 : vector<16x128xf32>
      %cst_99 = arith.constant 0.423705369 : f32
      %192 = vector.broadcast %cst_99 : f32 to vector<16x128xf32>
      %193 = arith.mulf %192, %191 : vector<16x128xf32>
      %194 = arith.addf %188, %193 : vector<16x128xf32>
      %c72_100 = arith.constant 72 : index
      %c0_101 = arith.constant 0 : index
      %195 = vector.load %arg5[%c72_100, %c0_101] : memref<456x128xf32, #tpu.memory_space<vmem>>, vector<16x128xf32>
      %cst_102 = arith.constant 0.00163801119 : f32
      %196 = vector.broadcast %cst_102 : f32 to vector<16x128xf32>
      %197 = arith.mulf %196, %195 : vector<16x128xf32>
      %c71 = arith.constant 71 : index
      %c0_103 = arith.constant 0 : index
      %198 = vector.load %arg5[%c71, %c0_103] : memref<456x128xf32, #tpu.memory_space<vmem>>, vector<16x128xf32>
      %c73 = arith.constant 73 : index
      %c0_104 = arith.constant 0 : index
      %199 = vector.load %arg5[%c73, %c0_104] : memref<456x128xf32, #tpu.memory_space<vmem>>, vector<16x128xf32>
      %200 = arith.addf %198, %199 : vector<16x128xf32>
      %cst_105 = arith.constant 0.00204562838 : f32
      %201 = vector.broadcast %cst_105 : f32 to vector<16x128xf32>
      %202 = arith.mulf %201, %200 : vector<16x128xf32>
      %203 = arith.addf %197, %202 : vector<16x128xf32>
      %c70 = arith.constant 70 : index
      %c0_106 = arith.constant 0 : index
      %204 = vector.load %arg5[%c70, %c0_106] : memref<456x128xf32, #tpu.memory_space<vmem>>, vector<16x128xf32>
      %c74 = arith.constant 74 : index
      %c0_107 = arith.constant 0 : index
      %205 = vector.load %arg5[%c74, %c0_107] : memref<456x128xf32, #tpu.memory_space<vmem>>, vector<16x128xf32>
      %206 = arith.addf %204, %205 : vector<16x128xf32>
      %cst_108 = arith.constant 3.984340e-03 : f32
      %207 = vector.broadcast %cst_108 : f32 to vector<16x128xf32>
      %208 = arith.mulf %207, %206 : vector<16x128xf32>
      %209 = arith.addf %203, %208 : vector<16x128xf32>
      %c69 = arith.constant 69 : index
      %c0_109 = arith.constant 0 : index
      %210 = vector.load %arg5[%c69, %c0_109] : memref<456x128xf32, #tpu.memory_space<vmem>>, vector<16x128xf32>
      %c75 = arith.constant 75 : index
      %c0_110 = arith.constant 0 : index
      %211 = vector.load %arg5[%c75, %c0_110] : memref<456x128xf32, #tpu.memory_space<vmem>>, vector<16x128xf32>
      %212 = arith.addf %210, %211 : vector<16x128xf32>
      %cst_111 = arith.constant 0.0121033564 : f32
      %213 = vector.broadcast %cst_111 : f32 to vector<16x128xf32>
      %214 = arith.mulf %213, %212 : vector<16x128xf32>
      %215 = arith.addf %209, %214 : vector<16x128xf32>
      %c68 = arith.constant 68 : index
      %c0_112 = arith.constant 0 : index
      %216 = vector.load %arg5[%c68, %c0_112] : memref<456x128xf32, #tpu.memory_space<vmem>>, vector<16x128xf32>
      %c76 = arith.constant 76 : index
      %c0_113 = arith.constant 0 : index
      %217 = vector.load %arg5[%c76, %c0_113] : memref<456x128xf32, #tpu.memory_space<vmem>>, vector<16x128xf32>
      %218 = arith.addf %216, %217 : vector<16x128xf32>
      %cst_114 = arith.constant 0.0573422872 : f32
      %219 = vector.broadcast %cst_114 : f32 to vector<16x128xf32>
      %220 = arith.mulf %219, %218 : vector<16x128xf32>
      %221 = arith.addf %215, %220 : vector<16x128xf32>
      %c67 = arith.constant 67 : index
      %c0_115 = arith.constant 0 : index
      %222 = vector.load %arg5[%c67, %c0_115] : memref<456x128xf32, #tpu.memory_space<vmem>>, vector<16x128xf32>
      %c77 = arith.constant 77 : index
      %c0_116 = arith.constant 0 : index
      %223 = vector.load %arg5[%c77, %c0_116] : memref<456x128xf32, #tpu.memory_space<vmem>>, vector<16x128xf32>
      %224 = arith.addf %222, %223 : vector<16x128xf32>
      %cst_117 = arith.constant 0.423705369 : f32
      %225 = vector.broadcast %cst_117 : f32 to vector<16x128xf32>
      %226 = arith.mulf %225, %224 : vector<16x128xf32>
      %227 = arith.addf %221, %226 : vector<16x128xf32>
      %228 = arith.mulf %95, %95 : vector<16x128xf32>
      %229 = arith.mulf %128, %128 : vector<16x128xf32>
      %230 = arith.mulf %95, %128 : vector<16x128xf32>
      %231 = arith.subf %161, %228 : vector<16x128xf32>
      %232 = arith.subf %194, %229 : vector<16x128xf32>
      %233 = arith.subf %227, %230 : vector<16x128xf32>
      %cst_118 = arith.constant 2.000000e+00 : f32
      %234 = vector.broadcast %cst_118 : f32 to vector<16x128xf32>
      %235 = arith.mulf %234, %233 : vector<16x128xf32>
      %236 = vector.broadcast %49 : f32 to vector<16x128xf32>
      %237 = arith.addf %235, %236 : vector<16x128xf32>
      %238 = arith.addf %231, %232 : vector<16x128xf32>
      %239 = vector.broadcast %49 : f32 to vector<16x128xf32>
      %240 = arith.addf %238, %239 : vector<16x128xf32>
      %241 = arith.divf %237, %240 : vector<16x128xf32>
      %cst_119 = arith.constant 2.000000e+00 : f32
      %242 = vector.broadcast %cst_119 : f32 to vector<16x128xf32>
      %243 = arith.mulf %242, %230 : vector<16x128xf32>
      %244 = vector.broadcast %47 : f32 to vector<16x128xf32>
      %245 = arith.addf %243, %244 : vector<16x128xf32>
      %246 = arith.addf %228, %229 : vector<16x128xf32>
      %247 = vector.broadcast %47 : f32 to vector<16x128xf32>
      %248 = arith.addf %246, %247 : vector<16x128xf32>
      %249 = arith.divf %245, %248 : vector<16x128xf32>
      %250 = arith.mulf %249, %241 : vector<16x128xf32>
      %cst_120 = arith.constant 0.000000e+00 : f32
      %251 = vector.broadcast %cst_120 : f32 to vector<16x128xf32>
      %252 = arith.select %32, %241, %251 : vector<16x128xi1>, vector<16x128xf32>
      %253 = vector.shape_cast %252 : vector<16x128xf32> to vector<1x16x128xf32>
      %cst_121 = arith.constant dense<0.000000e+00> : vector<1xf32>
      %254 = vector.multi_reduction <add>, %253, %cst_121 [1, 2] : vector<1x16x128xf32> to vector<1xf32>
      %255 = vector.shape_cast %254 : vector<1xf32> to vector<1x1x1xf32>
      %256 = vector.extract %255[0, 0, 0] : f32 from vector<1x1x1xf32>
      %cst_122 = arith.constant 0.010416667 : f32
      %257 = arith.mulf %256, %cst_122 : f32
      %cst_123 = arith.constant 0.000000e+00 : f32
      %258 = vector.broadcast %cst_123 : f32 to vector<16x128xf32>
      %259 = arith.select %32, %250, %258 : vector<16x128xi1>, vector<16x128xf32>
      %260 = vector.shape_cast %259 : vector<16x128xf32> to vector<1x16x128xf32>
      %cst_124 = arith.constant dense<0.000000e+00> : vector<1xf32>
      %261 = vector.multi_reduction <add>, %260, %cst_124 [1, 2] : vector<1x16x128xf32> to vector<1xf32>
      %262 = vector.shape_cast %261 : vector<1xf32> to vector<1x1x1xf32>
      %263 = vector.extract %262[0, 0, 0] : f32 from vector<1x1x1xf32>
      %cst_125 = arith.constant 0.010416667 : f32
      %264 = arith.mulf %263, %cst_125 : f32
      %265 = tpu.iota {dimensions = array<i32: 0>} : vector<8x128xi32>
      %266 = tpu.iota {dimensions = array<i32: 1>} : vector<8x128xi32>
      %c0_i32_126 = arith.constant 0 : i32
      %267 = vector.broadcast %c0_i32_126 : i32 to vector<8x128xi32>
      %268 = arith.cmpi eq, %265, %267 : vector<8x128xi32>
      %c0_i32_127 = arith.constant 0 : i32
      %269 = vector.broadcast %c0_i32_127 : i32 to vector<8x128xi32>
      %270 = arith.cmpi eq, %266, %269 : vector<8x128xi32>
      %271 = arith.andi %268, %270 : vector<8x128xi1>
      %c0_i32_128 = arith.constant 0 : i32
      %272 = vector.broadcast %c0_i32_128 : i32 to vector<8x128xi32>
      %273 = arith.cmpi eq, %265, %272 : vector<8x128xi32>
      %c1_i32_129 = arith.constant 1 : i32
      %274 = vector.broadcast %c1_i32_129 : i32 to vector<8x128xi32>
      %275 = arith.cmpi eq, %266, %274 : vector<8x128xi32>
      %276 = arith.andi %273, %275 : vector<8x128xi1>
      %cst_130 = arith.constant 0.000000e+00 : f32
      %277 = vector.broadcast %257 : f32 to vector<8x128xf32>
      %278 = vector.broadcast %cst_130 : f32 to vector<8x128xf32>
      %279 = arith.select %276, %277, %278 : vector<8x128xi1>, vector<8x128xf32>
      %280 = vector.broadcast %264 : f32 to vector<8x128xf32>
      %281 = arith.select %271, %280, %279 : vector<8x128xi1>, vector<8x128xf32>
      %c0_131 = arith.constant 0 : index
      %c0_132 = arith.constant 0 : index
      %c0_133 = arith.constant 0 : index
      %282 = vector.load %arg4[%c0_131, %c0_132, %c0_133] : memref<1x8x128xf32, #tpu.memory_space<vmem>>, vector<1x8x128xf32>
      %283 = vector.shape_cast %282 : vector<1x8x128xf32> to vector<8x128xf32>
      %284 = vector.shape_cast %281 : vector<8x128xf32> to vector<1x8x128xf32>
      tpu.vector_store %arg4[%c0_131, %c0_132, %c0_133], %284 {strides = array<i32>} : memref<1x8x128xf32, #tpu.memory_space<vmem>>, vector<1x8x128xf32>,
    } else {
    }
    %c4_i32 = arith.constant 4 : i32
    %12 = arith.cmpi eq, %arg0, %c4_i32 : i32
    %13 = arith.extui %12 : i1 to i32
    %c0_i32_4 = arith.constant 0 : i32
    %14 = arith.cmpi ne, %13, %c0_i32_4 : i32
    scf.if %14 {
      %c0 = arith.constant 0 : index
      %c0_5 = arith.constant 0 : index
      %c0_6 = arith.constant 0 : index
      %15 = vector.load %arg3[%c0, %c0_5, %c0_6] : memref<1x128x128xf32, #tpu.memory_space<vmem>>, vector<1x128x128xf32>
      %16 = vector.shape_cast %15 : vector<1x128x128xf32> to vector<128x128xf32>
      %c0_7 = arith.constant 0 : index
      %c0_8 = arith.constant 0 : index
      %c0_9 = arith.constant 0 : index
      %17 = vector.load %arg1[%c0_7, %c0_8, %c0_9] : memref<1x88x128xf32, #tpu.memory_space<vmem>>, vector<1x88x128xf32>
      %18 = vector.shape_cast %17 : vector<1x88x128xf32> to vector<88x128xf32>
      %19 = vector.extract_strided_slice %18 {offsets = [0, 0], sizes = [16, 128], strides = [1, 1]} : vector<88x128xf32> to vector<16x128xf32>
      %c0_10 = arith.constant 0 : index
      %c0_11 = arith.constant 0 : index
      %c0_12 = arith.constant 0 : index
      %20 = vector.load %arg2[%c0_10, %c0_11, %c0_12] : memref<1x88x128xf32, #tpu.memory_space<vmem>>, vector<1x88x128xf32>
      %21 = vector.shape_cast %20 : vector<1x88x128xf32> to vector<88x128xf32>
      %22 = vector.extract_strided_slice %21 {offsets = [0, 0], sizes = [16, 128], strides = [1, 1]} : vector<88x128xf32> to vector<16x128xf32>
      %23 = tpu.iota {dimensions = array<i32: 0>} : vector<16x128xi32>
      %24 = tpu.iota {dimensions = array<i32: 1>} : vector<16x128xi32>
      %c5_i32 = arith.constant 5 : i32
      %25 = vector.broadcast %c5_i32 : i32 to vector<16x128xi32>
      %26 = arith.cmpi sge, %23, %25 : vector<16x128xi32>
      %c7_i32 = arith.constant 7 : i32
      %27 = vector.broadcast %c7_i32 : i32 to vector<16x128xi32>
      %28 = arith.cmpi slt, %23, %27 : vector<16x128xi32>
      %29 = arith.andi %26, %28 : vector<16x128xi1>
      %c12_i32 = arith.constant 12 : i32
      %30 = vector.broadcast %c12_i32 : i32 to vector<16x128xi32>
      %31 = arith.cmpi slt, %24, %30 : vector<16x128xi32>
      %32 = arith.andi %29, %31 : vector<16x128xi1>
      %cst = arith.constant 0xFF800000 : f32
      %33 = vector.broadcast %cst : f32 to vector<16x128xf32>
      %34 = arith.select %32, %19, %33 : vector<16x128xi1>, vector<16x128xf32>
      %35 = vector.shape_cast %34 : vector<16x128xf32> to vector<1x16x128xf32>
      %cst_13 = arith.constant dense<0xFF800000> : vector<1xf32>
      %36 = vector.multi_reduction <maximumf>, %35, %cst_13 [1, 2] : vector<1x16x128xf32> to vector<1xf32>
      %37 = vector.shape_cast %36 : vector<1xf32> to vector<1x1x1xf32>
      %38 = vector.extract %37[0, 0, 0] : f32 from vector<1x1x1xf32>
      %cst_14 = arith.constant 0x7F800000 : f32
      %39 = vector.broadcast %cst_14 : f32 to vector<16x128xf32>
      %40 = arith.select %32, %19, %39 : vector<16x128xi1>, vector<16x128xf32>
      %41 = vector.shape_cast %40 : vector<16x128xf32> to vector<1x16x128xf32>
      %cst_15 = arith.constant dense<0x7F800000> : vector<1xf32>
      %42 = vector.multi_reduction <minimumf>, %41, %cst_15 [1, 2] : vector<1x16x128xf32> to vector<1xf32>
      %43 = vector.shape_cast %42 : vector<1xf32> to vector<1x1x1xf32>
      %44 = vector.extract %43[0, 0, 0] : f32 from vector<1x1x1xf32>
      %45 = arith.subf %38, %44 : f32
      %cst_16 = arith.constant 0.00999999977 : f32
      %46 = arith.mulf %cst_16, %45 : f32
      %47 = arith.mulf %46, %46 : f32
      %cst_17 = arith.constant 3.000000e-02 : f32
      %48 = arith.mulf %cst_17, %45 : f32
      %49 = arith.mulf %48, %48 : f32
      %50 = arith.mulf %19, %19 : vector<16x128xf32>
      %51 = arith.mulf %22, %22 : vector<16x128xf32>
      %52 = arith.mulf %19, %22 : vector<16x128xf32>
      %cst_18 = arith.constant dense<0.000000e+00> : vector<16x128xf32>
      %53 = tpu.matmul %19, %16, %cst_18 {dimension_numbers = #tpu.dot_dimension_numbers<[1], [0], [0], [1], [0, 0, 1, 1], [], []>} : vector<16x128xf32>, vector<128x128xf32>, vector<16x128xf32> -> vector<16x128xf32>
      %c8 = arith.constant 8 : index
      %c0_19 = arith.constant 0 : index
      %54 = vector.load %arg5[%c8, %c0_19] : memref<456x128xf32, #tpu.memory_space<vmem>>, vector<16x128xf32>
      tpu.vector_store %arg5[%c8, %c0_19], %53 {strides = array<i32>} : memref<456x128xf32, #tpu.memory_space<vmem>>, vector<16x128xf32>,
      %cst_20 = arith.constant dense<0.000000e+00> : vector<16x128xf32>
      %55 = tpu.matmul %22, %16, %cst_20 {dimension_numbers = #tpu.dot_dimension_numbers<[1], [0], [0], [1], [0, 0, 1, 1], [], []>} : vector<16x128xf32>, vector<128x128xf32>, vector<16x128xf32> -> vector<16x128xf32>
      %c24 = arith.constant 24 : index
      %c0_21 = arith.constant 0 : index
      %56 = vector.load %arg5[%c24, %c0_21] : memref<456x128xf32, #tpu.memory_space<vmem>>, vector<16x128xf32>
      tpu.vector_store %arg5[%c24, %c0_21], %55 {strides = array<i32>} : memref<456x128xf32, #tpu.memory_space<vmem>>, vector<16x128xf32>,
      %cst_22 = arith.constant dense<0.000000e+00> : vector<16x128xf32>
      %57 = tpu.matmul %50, %16, %cst_22 {dimension_numbers = #tpu.dot_dimension_numbers<[1], [0], [0], [1], [0, 0, 1, 1], [], []>} : vector<16x128xf32>, vector<128x128xf32>, vector<16x128xf32> -> vector<16x128xf32>
      %c40 = arith.constant 40 : index
      %c0_23 = arith.constant 0 : index
      %58 = vector.load %arg5[%c40, %c0_23] : memref<456x128xf32, #tpu.memory_space<vmem>>, vector<16x128xf32>
      tpu.vector_store %arg5[%c40, %c0_23], %57 {strides = array<i32>} : memref<456x128xf32, #tpu.memory_space<vmem>>, vector<16x128xf32>,
      %cst_24 = arith.constant dense<0.000000e+00> : vector<16x128xf32>
      %59 = tpu.matmul %51, %16, %cst_24 {dimension_numbers = #tpu.dot_dimension_numbers<[1], [0], [0], [1], [0, 0, 1, 1], [], []>} : vector<16x128xf32>, vector<128x128xf32>, vector<16x128xf32> -> vector<16x128xf32>
      %c56 = arith.constant 56 : index
      %c0_25 = arith.constant 0 : index
      %60 = vector.load %arg5[%c56, %c0_25] : memref<456x128xf32, #tpu.memory_space<vmem>>, vector<16x128xf32>
      tpu.vector_store %arg5[%c56, %c0_25], %59 {strides = array<i32>} : memref<456x128xf32, #tpu.memory_space<vmem>>, vector<16x128xf32>,
      %cst_26 = arith.constant dense<0.000000e+00> : vector<16x128xf32>
      %61 = tpu.matmul %52, %16, %cst_26 {dimension_numbers = #tpu.dot_dimension_numbers<[1], [0], [0], [1], [0, 0, 1, 1], [], []>} : vector<16x128xf32>, vector<128x128xf32>, vector<16x128xf32> -> vector<16x128xf32>
      %c72 = arith.constant 72 : index
      %c0_27 = arith.constant 0 : index
      %62 = vector.load %arg5[%c72, %c0_27] : memref<456x128xf32, #tpu.memory_space<vmem>>, vector<16x128xf32>
      tpu.vector_store %arg5[%c72, %c0_27], %61 {strides = array<i32>} : memref<456x128xf32, #tpu.memory_space<vmem>>, vector<16x128xf32>,
      %c8_28 = arith.constant 8 : index
      %c0_29 = arith.constant 0 : index
      %63 = vector.load %arg5[%c8_28, %c0_29] : memref<456x128xf32, #tpu.memory_space<vmem>>, vector<16x128xf32>
      %cst_30 = arith.constant 0.00163801119 : f32
      %64 = vector.broadcast %cst_30 : f32 to vector<16x128xf32>
      %65 = arith.mulf %64, %63 : vector<16x128xf32>
      %c7 = arith.constant 7 : index
      %c0_31 = arith.constant 0 : index
      %66 = vector.load %arg5[%c7, %c0_31] : memref<456x128xf32, #tpu.memory_space<vmem>>, vector<16x128xf32>
      %c9 = arith.constant 9 : index
      %c0_32 = arith.constant 0 : index
      %67 = vector.load %arg5[%c9, %c0_32] : memref<456x128xf32, #tpu.memory_space<vmem>>, vector<16x128xf32>
      %68 = arith.addf %66, %67 : vector<16x128xf32>
      %cst_33 = arith.constant 0.00204562838 : f32
      %69 = vector.broadcast %cst_33 : f32 to vector<16x128xf32>
      %70 = arith.mulf %69, %68 : vector<16x128xf32>
      %71 = arith.addf %65, %70 : vector<16x128xf32>
      %c6 = arith.constant 6 : index
      %c0_34 = arith.constant 0 : index
      %72 = vector.load %arg5[%c6, %c0_34] : memref<456x128xf32, #tpu.memory_space<vmem>>, vector<16x128xf32>
      %c10 = arith.constant 10 : index
      %c0_35 = arith.constant 0 : index
      %73 = vector.load %arg5[%c10, %c0_35] : memref<456x128xf32, #tpu.memory_space<vmem>>, vector<16x128xf32>
      %74 = arith.addf %72, %73 : vector<16x128xf32>
      %cst_36 = arith.constant 3.984340e-03 : f32
      %75 = vector.broadcast %cst_36 : f32 to vector<16x128xf32>
      %76 = arith.mulf %75, %74 : vector<16x128xf32>
      %77 = arith.addf %71, %76 : vector<16x128xf32>
      %c5 = arith.constant 5 : index
      %c0_37 = arith.constant 0 : index
      %78 = vector.load %arg5[%c5, %c0_37] : memref<456x128xf32, #tpu.memory_space<vmem>>, vector<16x128xf32>
      %c11 = arith.constant 11 : index
      %c0_38 = arith.constant 0 : index
      %79 = vector.load %arg5[%c11, %c0_38] : memref<456x128xf32, #tpu.memory_space<vmem>>, vector<16x128xf32>
      %80 = arith.addf %78, %79 : vector<16x128xf32>
      %cst_39 = arith.constant 0.0121033564 : f32
      %81 = vector.broadcast %cst_39 : f32 to vector<16x128xf32>
      %82 = arith.mulf %81, %80 : vector<16x128xf32>
      %83 = arith.addf %77, %82 : vector<16x128xf32>
      %c4 = arith.constant 4 : index
      %c0_40 = arith.constant 0 : index
      %84 = vector.load %arg5[%c4, %c0_40] : memref<456x128xf32, #tpu.memory_space<vmem>>, vector<16x128xf32>
      %c12 = arith.constant 12 : index
      %c0_41 = arith.constant 0 : index
      %85 = vector.load %arg5[%c12, %c0_41] : memref<456x128xf32, #tpu.memory_space<vmem>>, vector<16x128xf32>
      %86 = arith.addf %84, %85 : vector<16x128xf32>
      %cst_42 = arith.constant 0.0573422872 : f32
      %87 = vector.broadcast %cst_42 : f32 to vector<16x128xf32>
      %88 = arith.mulf %87, %86 : vector<16x128xf32>
      %89 = arith.addf %83, %88 : vector<16x128xf32>
      %c3 = arith.constant 3 : index
      %c0_43 = arith.constant 0 : index
      %90 = vector.load %arg5[%c3, %c0_43] : memref<456x128xf32, #tpu.memory_space<vmem>>, vector<16x128xf32>
      %c13 = arith.constant 13 : index
      %c0_44 = arith.constant 0 : index
      %91 = vector.load %arg5[%c13, %c0_44] : memref<456x128xf32, #tpu.memory_space<vmem>>, vector<16x128xf32>
      %92 = arith.addf %90, %91 : vector<16x128xf32>
      %cst_45 = arith.constant 0.423705369 : f32
      %93 = vector.broadcast %cst_45 : f32 to vector<16x128xf32>
      %94 = arith.mulf %93, %92 : vector<16x128xf32>
      %95 = arith.addf %89, %94 : vector<16x128xf32>
      %c24_46 = arith.constant 24 : index
      %c0_47 = arith.constant 0 : index
      %96 = vector.load %arg5[%c24_46, %c0_47] : memref<456x128xf32, #tpu.memory_space<vmem>>, vector<16x128xf32>
      %cst_48 = arith.constant 0.00163801119 : f32
      %97 = vector.broadcast %cst_48 : f32 to vector<16x128xf32>
      %98 = arith.mulf %97, %96 : vector<16x128xf32>
      %c23 = arith.constant 23 : index
      %c0_49 = arith.constant 0 : index
      %99 = vector.load %arg5[%c23, %c0_49] : memref<456x128xf32, #tpu.memory_space<vmem>>, vector<16x128xf32>
      %c25 = arith.constant 25 : index
      %c0_50 = arith.constant 0 : index
      %100 = vector.load %arg5[%c25, %c0_50] : memref<456x128xf32, #tpu.memory_space<vmem>>, vector<16x128xf32>
      %101 = arith.addf %99, %100 : vector<16x128xf32>
      %cst_51 = arith.constant 0.00204562838 : f32
      %102 = vector.broadcast %cst_51 : f32 to vector<16x128xf32>
      %103 = arith.mulf %102, %101 : vector<16x128xf32>
      %104 = arith.addf %98, %103 : vector<16x128xf32>
      %c22 = arith.constant 22 : index
      %c0_52 = arith.constant 0 : index
      %105 = vector.load %arg5[%c22, %c0_52] : memref<456x128xf32, #tpu.memory_space<vmem>>, vector<16x128xf32>
      %c26 = arith.constant 26 : index
      %c0_53 = arith.constant 0 : index
      %106 = vector.load %arg5[%c26, %c0_53] : memref<456x128xf32, #tpu.memory_space<vmem>>, vector<16x128xf32>
      %107 = arith.addf %105, %106 : vector<16x128xf32>
      %cst_54 = arith.constant 3.984340e-03 : f32
      %108 = vector.broadcast %cst_54 : f32 to vector<16x128xf32>
      %109 = arith.mulf %108, %107 : vector<16x128xf32>
      %110 = arith.addf %104, %109 : vector<16x128xf32>
      %c21 = arith.constant 21 : index
      %c0_55 = arith.constant 0 : index
      %111 = vector.load %arg5[%c21, %c0_55] : memref<456x128xf32, #tpu.memory_space<vmem>>, vector<16x128xf32>
      %c27 = arith.constant 27 : index
      %c0_56 = arith.constant 0 : index
      %112 = vector.load %arg5[%c27, %c0_56] : memref<456x128xf32, #tpu.memory_space<vmem>>, vector<16x128xf32>
      %113 = arith.addf %111, %112 : vector<16x128xf32>
      %cst_57 = arith.constant 0.0121033564 : f32
      %114 = vector.broadcast %cst_57 : f32 to vector<16x128xf32>
      %115 = arith.mulf %114, %113 : vector<16x128xf32>
      %116 = arith.addf %110, %115 : vector<16x128xf32>
      %c20 = arith.constant 20 : index
      %c0_58 = arith.constant 0 : index
      %117 = vector.load %arg5[%c20, %c0_58] : memref<456x128xf32, #tpu.memory_space<vmem>>, vector<16x128xf32>
      %c28 = arith.constant 28 : index
      %c0_59 = arith.constant 0 : index
      %118 = vector.load %arg5[%c28, %c0_59] : memref<456x128xf32, #tpu.memory_space<vmem>>, vector<16x128xf32>
      %119 = arith.addf %117, %118 : vector<16x128xf32>
      %cst_60 = arith.constant 0.0573422872 : f32
      %120 = vector.broadcast %cst_60 : f32 to vector<16x128xf32>
      %121 = arith.mulf %120, %119 : vector<16x128xf32>
      %122 = arith.addf %116, %121 : vector<16x128xf32>
      %c19 = arith.constant 19 : index
      %c0_61 = arith.constant 0 : index
      %123 = vector.load %arg5[%c19, %c0_61] : memref<456x128xf32, #tpu.memory_space<vmem>>, vector<16x128xf32>
      %c29 = arith.constant 29 : index
      %c0_62 = arith.constant 0 : index
      %124 = vector.load %arg5[%c29, %c0_62] : memref<456x128xf32, #tpu.memory_space<vmem>>, vector<16x128xf32>
      %125 = arith.addf %123, %124 : vector<16x128xf32>
      %cst_63 = arith.constant 0.423705369 : f32
      %126 = vector.broadcast %cst_63 : f32 to vector<16x128xf32>
      %127 = arith.mulf %126, %125 : vector<16x128xf32>
      %128 = arith.addf %122, %127 : vector<16x128xf32>
      %c40_64 = arith.constant 40 : index
      %c0_65 = arith.constant 0 : index
      %129 = vector.load %arg5[%c40_64, %c0_65] : memref<456x128xf32, #tpu.memory_space<vmem>>, vector<16x128xf32>
      %cst_66 = arith.constant 0.00163801119 : f32
      %130 = vector.broadcast %cst_66 : f32 to vector<16x128xf32>
      %131 = arith.mulf %130, %129 : vector<16x128xf32>
      %c39 = arith.constant 39 : index
      %c0_67 = arith.constant 0 : index
      %132 = vector.load %arg5[%c39, %c0_67] : memref<456x128xf32, #tpu.memory_space<vmem>>, vector<16x128xf32>
      %c41 = arith.constant 41 : index
      %c0_68 = arith.constant 0 : index
      %133 = vector.load %arg5[%c41, %c0_68] : memref<456x128xf32, #tpu.memory_space<vmem>>, vector<16x128xf32>
      %134 = arith.addf %132, %133 : vector<16x128xf32>
      %cst_69 = arith.constant 0.00204562838 : f32
      %135 = vector.broadcast %cst_69 : f32 to vector<16x128xf32>
      %136 = arith.mulf %135, %134 : vector<16x128xf32>
      %137 = arith.addf %131, %136 : vector<16x128xf32>
      %c38 = arith.constant 38 : index
      %c0_70 = arith.constant 0 : index
      %138 = vector.load %arg5[%c38, %c0_70] : memref<456x128xf32, #tpu.memory_space<vmem>>, vector<16x128xf32>
      %c42 = arith.constant 42 : index
      %c0_71 = arith.constant 0 : index
      %139 = vector.load %arg5[%c42, %c0_71] : memref<456x128xf32, #tpu.memory_space<vmem>>, vector<16x128xf32>
      %140 = arith.addf %138, %139 : vector<16x128xf32>
      %cst_72 = arith.constant 3.984340e-03 : f32
      %141 = vector.broadcast %cst_72 : f32 to vector<16x128xf32>
      %142 = arith.mulf %141, %140 : vector<16x128xf32>
      %143 = arith.addf %137, %142 : vector<16x128xf32>
      %c37 = arith.constant 37 : index
      %c0_73 = arith.constant 0 : index
      %144 = vector.load %arg5[%c37, %c0_73] : memref<456x128xf32, #tpu.memory_space<vmem>>, vector<16x128xf32>
      %c43 = arith.constant 43 : index
      %c0_74 = arith.constant 0 : index
      %145 = vector.load %arg5[%c43, %c0_74] : memref<456x128xf32, #tpu.memory_space<vmem>>, vector<16x128xf32>
      %146 = arith.addf %144, %145 : vector<16x128xf32>
      %cst_75 = arith.constant 0.0121033564 : f32
      %147 = vector.broadcast %cst_75 : f32 to vector<16x128xf32>
      %148 = arith.mulf %147, %146 : vector<16x128xf32>
      %149 = arith.addf %143, %148 : vector<16x128xf32>
      %c36 = arith.constant 36 : index
      %c0_76 = arith.constant 0 : index
      %150 = vector.load %arg5[%c36, %c0_76] : memref<456x128xf32, #tpu.memory_space<vmem>>, vector<16x128xf32>
      %c44 = arith.constant 44 : index
      %c0_77 = arith.constant 0 : index
      %151 = vector.load %arg5[%c44, %c0_77] : memref<456x128xf32, #tpu.memory_space<vmem>>, vector<16x128xf32>
      %152 = arith.addf %150, %151 : vector<16x128xf32>
      %cst_78 = arith.constant 0.0573422872 : f32
      %153 = vector.broadcast %cst_78 : f32 to vector<16x128xf32>
      %154 = arith.mulf %153, %152 : vector<16x128xf32>
      %155 = arith.addf %149, %154 : vector<16x128xf32>
      %c35 = arith.constant 35 : index
      %c0_79 = arith.constant 0 : index
      %156 = vector.load %arg5[%c35, %c0_79] : memref<456x128xf32, #tpu.memory_space<vmem>>, vector<16x128xf32>
      %c45 = arith.constant 45 : index
      %c0_80 = arith.constant 0 : index
      %157 = vector.load %arg5[%c45, %c0_80] : memref<456x128xf32, #tpu.memory_space<vmem>>, vector<16x128xf32>
      %158 = arith.addf %156, %157 : vector<16x128xf32>
      %cst_81 = arith.constant 0.423705369 : f32
      %159 = vector.broadcast %cst_81 : f32 to vector<16x128xf32>
      %160 = arith.mulf %159, %158 : vector<16x128xf32>
      %161 = arith.addf %155, %160 : vector<16x128xf32>
      %c56_82 = arith.constant 56 : index
      %c0_83 = arith.constant 0 : index
      %162 = vector.load %arg5[%c56_82, %c0_83] : memref<456x128xf32, #tpu.memory_space<vmem>>, vector<16x128xf32>
      %cst_84 = arith.constant 0.00163801119 : f32
      %163 = vector.broadcast %cst_84 : f32 to vector<16x128xf32>
      %164 = arith.mulf %163, %162 : vector<16x128xf32>
      %c55 = arith.constant 55 : index
      %c0_85 = arith.constant 0 : index
      %165 = vector.load %arg5[%c55, %c0_85] : memref<456x128xf32, #tpu.memory_space<vmem>>, vector<16x128xf32>
      %c57 = arith.constant 57 : index
      %c0_86 = arith.constant 0 : index
      %166 = vector.load %arg5[%c57, %c0_86] : memref<456x128xf32, #tpu.memory_space<vmem>>, vector<16x128xf32>
      %167 = arith.addf %165, %166 : vector<16x128xf32>
      %cst_87 = arith.constant 0.00204562838 : f32
      %168 = vector.broadcast %cst_87 : f32 to vector<16x128xf32>
      %169 = arith.mulf %168, %167 : vector<16x128xf32>
      %170 = arith.addf %164, %169 : vector<16x128xf32>
      %c54 = arith.constant 54 : index
      %c0_88 = arith.constant 0 : index
      %171 = vector.load %arg5[%c54, %c0_88] : memref<456x128xf32, #tpu.memory_space<vmem>>, vector<16x128xf32>
      %c58 = arith.constant 58 : index
      %c0_89 = arith.constant 0 : index
      %172 = vector.load %arg5[%c58, %c0_89] : memref<456x128xf32, #tpu.memory_space<vmem>>, vector<16x128xf32>
      %173 = arith.addf %171, %172 : vector<16x128xf32>
      %cst_90 = arith.constant 3.984340e-03 : f32
      %174 = vector.broadcast %cst_90 : f32 to vector<16x128xf32>
      %175 = arith.mulf %174, %173 : vector<16x128xf32>
      %176 = arith.addf %170, %175 : vector<16x128xf32>
      %c53 = arith.constant 53 : index
      %c0_91 = arith.constant 0 : index
      %177 = vector.load %arg5[%c53, %c0_91] : memref<456x128xf32, #tpu.memory_space<vmem>>, vector<16x128xf32>
      %c59 = arith.constant 59 : index
      %c0_92 = arith.constant 0 : index
      %178 = vector.load %arg5[%c59, %c0_92] : memref<456x128xf32, #tpu.memory_space<vmem>>, vector<16x128xf32>
      %179 = arith.addf %177, %178 : vector<16x128xf32>
      %cst_93 = arith.constant 0.0121033564 : f32
      %180 = vector.broadcast %cst_93 : f32 to vector<16x128xf32>
      %181 = arith.mulf %180, %179 : vector<16x128xf32>
      %182 = arith.addf %176, %181 : vector<16x128xf32>
      %c52 = arith.constant 52 : index
      %c0_94 = arith.constant 0 : index
      %183 = vector.load %arg5[%c52, %c0_94] : memref<456x128xf32, #tpu.memory_space<vmem>>, vector<16x128xf32>
      %c60 = arith.constant 60 : index
      %c0_95 = arith.constant 0 : index
      %184 = vector.load %arg5[%c60, %c0_95] : memref<456x128xf32, #tpu.memory_space<vmem>>, vector<16x128xf32>
      %185 = arith.addf %183, %184 : vector<16x128xf32>
      %cst_96 = arith.constant 0.0573422872 : f32
      %186 = vector.broadcast %cst_96 : f32 to vector<16x128xf32>
      %187 = arith.mulf %186, %185 : vector<16x128xf32>
      %188 = arith.addf %182, %187 : vector<16x128xf32>
      %c51 = arith.constant 51 : index
      %c0_97 = arith.constant 0 : index
      %189 = vector.load %arg5[%c51, %c0_97] : memref<456x128xf32, #tpu.memory_space<vmem>>, vector<16x128xf32>
      %c61 = arith.constant 61 : index
      %c0_98 = arith.constant 0 : index
      %190 = vector.load %arg5[%c61, %c0_98] : memref<456x128xf32, #tpu.memory_space<vmem>>, vector<16x128xf32>
      %191 = arith.addf %189, %190 : vector<16x128xf32>
      %cst_99 = arith.constant 0.423705369 : f32
      %192 = vector.broadcast %cst_99 : f32 to vector<16x128xf32>
      %193 = arith.mulf %192, %191 : vector<16x128xf32>
      %194 = arith.addf %188, %193 : vector<16x128xf32>
      %c72_100 = arith.constant 72 : index
      %c0_101 = arith.constant 0 : index
      %195 = vector.load %arg5[%c72_100, %c0_101] : memref<456x128xf32, #tpu.memory_space<vmem>>, vector<16x128xf32>
      %cst_102 = arith.constant 0.00163801119 : f32
      %196 = vector.broadcast %cst_102 : f32 to vector<16x128xf32>
      %197 = arith.mulf %196, %195 : vector<16x128xf32>
      %c71 = arith.constant 71 : index
      %c0_103 = arith.constant 0 : index
      %198 = vector.load %arg5[%c71, %c0_103] : memref<456x128xf32, #tpu.memory_space<vmem>>, vector<16x128xf32>
      %c73 = arith.constant 73 : index
      %c0_104 = arith.constant 0 : index
      %199 = vector.load %arg5[%c73, %c0_104] : memref<456x128xf32, #tpu.memory_space<vmem>>, vector<16x128xf32>
      %200 = arith.addf %198, %199 : vector<16x128xf32>
      %cst_105 = arith.constant 0.00204562838 : f32
      %201 = vector.broadcast %cst_105 : f32 to vector<16x128xf32>
      %202 = arith.mulf %201, %200 : vector<16x128xf32>
      %203 = arith.addf %197, %202 : vector<16x128xf32>
      %c70 = arith.constant 70 : index
      %c0_106 = arith.constant 0 : index
      %204 = vector.load %arg5[%c70, %c0_106] : memref<456x128xf32, #tpu.memory_space<vmem>>, vector<16x128xf32>
      %c74 = arith.constant 74 : index
      %c0_107 = arith.constant 0 : index
      %205 = vector.load %arg5[%c74, %c0_107] : memref<456x128xf32, #tpu.memory_space<vmem>>, vector<16x128xf32>
      %206 = arith.addf %204, %205 : vector<16x128xf32>
      %cst_108 = arith.constant 3.984340e-03 : f32
      %207 = vector.broadcast %cst_108 : f32 to vector<16x128xf32>
      %208 = arith.mulf %207, %206 : vector<16x128xf32>
      %209 = arith.addf %203, %208 : vector<16x128xf32>
      %c69 = arith.constant 69 : index
      %c0_109 = arith.constant 0 : index
      %210 = vector.load %arg5[%c69, %c0_109] : memref<456x128xf32, #tpu.memory_space<vmem>>, vector<16x128xf32>
      %c75 = arith.constant 75 : index
      %c0_110 = arith.constant 0 : index
      %211 = vector.load %arg5[%c75, %c0_110] : memref<456x128xf32, #tpu.memory_space<vmem>>, vector<16x128xf32>
      %212 = arith.addf %210, %211 : vector<16x128xf32>
      %cst_111 = arith.constant 0.0121033564 : f32
      %213 = vector.broadcast %cst_111 : f32 to vector<16x128xf32>
      %214 = arith.mulf %213, %212 : vector<16x128xf32>
      %215 = arith.addf %209, %214 : vector<16x128xf32>
      %c68 = arith.constant 68 : index
      %c0_112 = arith.constant 0 : index
      %216 = vector.load %arg5[%c68, %c0_112] : memref<456x128xf32, #tpu.memory_space<vmem>>, vector<16x128xf32>
      %c76 = arith.constant 76 : index
      %c0_113 = arith.constant 0 : index
      %217 = vector.load %arg5[%c76, %c0_113] : memref<456x128xf32, #tpu.memory_space<vmem>>, vector<16x128xf32>
      %218 = arith.addf %216, %217 : vector<16x128xf32>
      %cst_114 = arith.constant 0.0573422872 : f32
      %219 = vector.broadcast %cst_114 : f32 to vector<16x128xf32>
      %220 = arith.mulf %219, %218 : vector<16x128xf32>
      %221 = arith.addf %215, %220 : vector<16x128xf32>
      %c67 = arith.constant 67 : index
      %c0_115 = arith.constant 0 : index
      %222 = vector.load %arg5[%c67, %c0_115] : memref<456x128xf32, #tpu.memory_space<vmem>>, vector<16x128xf32>
      %c77 = arith.constant 77 : index
      %c0_116 = arith.constant 0 : index
      %223 = vector.load %arg5[%c77, %c0_116] : memref<456x128xf32, #tpu.memory_space<vmem>>, vector<16x128xf32>
      %224 = arith.addf %222, %223 : vector<16x128xf32>
      %cst_117 = arith.constant 0.423705369 : f32
      %225 = vector.broadcast %cst_117 : f32 to vector<16x128xf32>
      %226 = arith.mulf %225, %224 : vector<16x128xf32>
      %227 = arith.addf %221, %226 : vector<16x128xf32>
      %228 = arith.mulf %95, %95 : vector<16x128xf32>
      %229 = arith.mulf %128, %128 : vector<16x128xf32>
      %230 = arith.mulf %95, %128 : vector<16x128xf32>
      %231 = arith.subf %161, %228 : vector<16x128xf32>
      %232 = arith.subf %194, %229 : vector<16x128xf32>
      %233 = arith.subf %227, %230 : vector<16x128xf32>
      %cst_118 = arith.constant 2.000000e+00 : f32
      %234 = vector.broadcast %cst_118 : f32 to vector<16x128xf32>
      %235 = arith.mulf %234, %233 : vector<16x128xf32>
      %236 = vector.broadcast %49 : f32 to vector<16x128xf32>
      %237 = arith.addf %235, %236 : vector<16x128xf32>
      %238 = arith.addf %231, %232 : vector<16x128xf32>
      %239 = vector.broadcast %49 : f32 to vector<16x128xf32>
      %240 = arith.addf %238, %239 : vector<16x128xf32>
      %241 = arith.divf %237, %240 : vector<16x128xf32>
      %cst_119 = arith.constant 2.000000e+00 : f32
      %242 = vector.broadcast %cst_119 : f32 to vector<16x128xf32>
      %243 = arith.mulf %242, %230 : vector<16x128xf32>
      %244 = vector.broadcast %47 : f32 to vector<16x128xf32>
      %245 = arith.addf %243, %244 : vector<16x128xf32>
      %246 = arith.addf %228, %229 : vector<16x128xf32>
      %247 = vector.broadcast %47 : f32 to vector<16x128xf32>
      %248 = arith.addf %246, %247 : vector<16x128xf32>
      %249 = arith.divf %245, %248 : vector<16x128xf32>
      %250 = arith.mulf %249, %241 : vector<16x128xf32>
      %cst_120 = arith.constant 0.000000e+00 : f32
      %251 = vector.broadcast %cst_120 : f32 to vector<16x128xf32>
      %252 = arith.select %32, %241, %251 : vector<16x128xi1>, vector<16x128xf32>
      %253 = vector.shape_cast %252 : vector<16x128xf32> to vector<1x16x128xf32>
      %cst_121 = arith.constant dense<0.000000e+00> : vector<1xf32>
      %254 = vector.multi_reduction <add>, %253, %cst_121 [1, 2] : vector<1x16x128xf32> to vector<1xf32>
      %255 = vector.shape_cast %254 : vector<1xf32> to vector<1x1x1xf32>
      %256 = vector.extract %255[0, 0, 0] : f32 from vector<1x1x1xf32>
      %cst_122 = arith.constant 0.0416666679 : f32
      %257 = arith.mulf %256, %cst_122 : f32
      %cst_123 = arith.constant 0.000000e+00 : f32
      %258 = vector.broadcast %cst_123 : f32 to vector<16x128xf32>
      %259 = arith.select %32, %250, %258 : vector<16x128xi1>, vector<16x128xf32>
      %260 = vector.shape_cast %259 : vector<16x128xf32> to vector<1x16x128xf32>
      %cst_124 = arith.constant dense<0.000000e+00> : vector<1xf32>
      %261 = vector.multi_reduction <add>, %260, %cst_124 [1, 2] : vector<1x16x128xf32> to vector<1xf32>
      %262 = vector.shape_cast %261 : vector<1xf32> to vector<1x1x1xf32>
      %263 = vector.extract %262[0, 0, 0] : f32 from vector<1x1x1xf32>
      %cst_125 = arith.constant 0.0416666679 : f32
      %264 = arith.mulf %263, %cst_125 : f32
      %265 = tpu.iota {dimensions = array<i32: 0>} : vector<8x128xi32>
      %266 = tpu.iota {dimensions = array<i32: 1>} : vector<8x128xi32>
      %c0_i32_126 = arith.constant 0 : i32
      %267 = vector.broadcast %c0_i32_126 : i32 to vector<8x128xi32>
      %268 = arith.cmpi eq, %265, %267 : vector<8x128xi32>
      %c0_i32_127 = arith.constant 0 : i32
      %269 = vector.broadcast %c0_i32_127 : i32 to vector<8x128xi32>
      %270 = arith.cmpi eq, %266, %269 : vector<8x128xi32>
      %271 = arith.andi %268, %270 : vector<8x128xi1>
      %c0_i32_128 = arith.constant 0 : i32
      %272 = vector.broadcast %c0_i32_128 : i32 to vector<8x128xi32>
      %273 = arith.cmpi eq, %265, %272 : vector<8x128xi32>
      %c1_i32_129 = arith.constant 1 : i32
      %274 = vector.broadcast %c1_i32_129 : i32 to vector<8x128xi32>
      %275 = arith.cmpi eq, %266, %274 : vector<8x128xi32>
      %276 = arith.andi %273, %275 : vector<8x128xi1>
      %cst_130 = arith.constant 0.000000e+00 : f32
      %277 = vector.broadcast %257 : f32 to vector<8x128xf32>
      %278 = vector.broadcast %cst_130 : f32 to vector<8x128xf32>
      %279 = arith.select %276, %277, %278 : vector<8x128xi1>, vector<8x128xf32>
      %280 = vector.broadcast %264 : f32 to vector<8x128xf32>
      %281 = arith.select %271, %280, %279 : vector<8x128xi1>, vector<8x128xf32>
      %c0_131 = arith.constant 0 : index
      %c0_132 = arith.constant 0 : index
      %c0_133 = arith.constant 0 : index
      %282 = vector.load %arg4[%c0_131, %c0_132, %c0_133] : memref<1x8x128xf32, #tpu.memory_space<vmem>>, vector<1x8x128xf32>
      %283 = vector.shape_cast %282 : vector<1x8x128xf32> to vector<8x128xf32>
      %284 = vector.shape_cast %281 : vector<8x128xf32> to vector<1x8x128xf32>
      tpu.vector_store %arg4[%c0_131, %c0_132, %c0_133], %284 {strides = array<i32>} : memref<1x8x128xf32, #tpu.memory_space<vmem>>, vector<1x8x128xf32>,
    } else {
    }
    return
  }
  func.func @transform_0(%arg0: i32) -> (i32, i32, i32) {
    %c0_i32 = arith.constant 0 : i32
    %c0_i32_0 = arith.constant 0 : i32
    %c0_i32_1 = arith.constant 0 : i32
    return %arg0, %c0_i32, %c0_i32_0 : i32, i32, i32
  }
  func.func @transform_1(%arg0: i32) -> (i32, i32, i32) {
    %c0_i32 = arith.constant 0 : i32
    %c0_i32_0 = arith.constant 0 : i32
    %c0_i32_1 = arith.constant 0 : i32
    return %arg0, %c0_i32, %c0_i32_0 : i32, i32, i32
  }
  func.func @transform_2(%arg0: i32) -> (i32, i32, i32) {
    %c0_i32 = arith.constant 0 : i32
    %c0_i32_0 = arith.constant 0 : i32
    %c0_i32_1 = arith.constant 0 : i32
    return %arg0, %c0_i32, %c0_i32_0 : i32, i32, i32
  }
  func.func @transform_3(%arg0: i32) -> (i32, i32, i32) {
    %c0_i32 = arith.constant 0 : i32
    %c0_i32_0 = arith.constant 0 : i32
    %c0_i32_1 = arith.constant 0 : i32
    return %arg0, %c0_i32, %c0_i32_0 : i32, i32, i32
  }
}

</mosaic_0001>

<bundles_post_ra>
// kernel: mssim_forward.1
= control target key start
LH: loop header
LB: loop body
LE: loop exit
PB: predicated region body
PF: predicated region fallthrough
CT: control target
= control target key end

     0   :  { %s9001_s12 = smov 0   ;;  %s11965_s0 = inlined_call_operand.vmem [shape: f32[5,88,128], index: 0, kind: input, shape index: {}]   ;;  %s11966_s1 = inlined_call_operand.vmem [shape: f32[5,88,128], index: 1, kind: input, shape index: {}]   ;;  %s11967_s2 = inlined_call_operand.vmem [shape: f32[5,128,128], index: 2, kind: input, shape index: {}]   ;;  %s11968_s3 = inlined_call_operand.vmem [shape: f32[5,8,128], index: 3, kind: output, shape index: {}]  }
   0x1 LB: > { %s9007_s13 = sadd.s32 4294967295, %s8973_s12   ;;  %p6474_p0 = scmp.ge.s32.totalorder %s8973_s12, 1  ;;  %s8973_s12 = sphi %s9001_s12, %s13_s12  }
   0x2   : > { %p157_p1 = scmp.lt.s32.totalorder %s8973_s12, 6 }
   0x4   : > { %p158_p2 = pnand %p6474_p0, %p157_p1 }
   0x5   : > { %p190_p3 = scmp.lt.s32.totalorder (!%p158_p2), %s9007_s13, 4  ;;  %p6480_p4 = scmp.ne.s32.totalorder (!%p158_p2), %s9007_s13, 0 }
   0x6   : > { %161 = sbr.rel (%p158_p2) target bundleno = 3052 (0xbec), region = 32 }
   0xd   : > { %s191_s14 = scalar_select %p190_p3, %s9007_s13, 4 }
   0xe   : > { %212 = sbr.rel (%p6480_p4) target bundleno = 796 (0x31c), region = 36 }
   0xf   : > { %s8836_s15 = smul.u32 88, %s191_s14  ;;  %s6487_s16 = sshll.u32 %s191_s14, 7 }
  0x10   : > { %s9016_s19 = scalar_lea.vmem %s11967_s2, %s6487_s16  ;;  %s6479_s20 = sshll.u32 %s191_s14, 3 }
  0x11   : > { %s9021_s23 = scalar_lea.vmem %s11965_s0, %s8836_s15  ;;  %s9026_s26 = scalar_lea.vmem %s11966_s1, %s8836_s15 }
  0x12   : > { %s9031_s29 = scalar_lea.vmem %s11968_s3, %s6479_s20 }
  0x15   : > { %v213_v0 = vld [vmem:[%s9016_s19] sm:$0xff]  ;;  %v214_v1 = vld [vmem:[%s9016_s19 + $0x8] sm:$0xff]  ;;  %v215_v2 = vld [vmem:[%s9016_s19 + $0x10] sm:$0xff]  ;;  %v251_v3 = vlaneseq  ;;  %v8975_v4 = vmov 0.0|0.0   ;;  %vm8976_vm0 = vmmov 0   ;;  %v8977_v7 = vmov 0.0  }
  0x16   : > { %8068 = vmatprep.subr.bf16.mxu0 %v8975_v4  ;;  %8092 = vmatprep.subr.bf16.mxu1 %v8975_v4  ;;  %v9039_v5 = vpack.c.bf16 %v214_v1, %v213_v0  ;;  %v216_v6 = vld [vmem:[%s9016_s19 + $0x18] sm:$0xff]  ;;  %v217_v10 = vld [vmem:[%s9016_s19 + $0x20] sm:$0xff]  ;;  %v218_v11 = vld [vmem:[%s9016_s19 + $0x28] sm:$0xff]  ;;  %v12028_v37 = vmov 0  ;;  %v12031_v44 = vmov 0  ;;  %v12034_v50 = vmov 0 }
  0x17   : > { %7030 = vmatprep.mubr.msk.f32.mxu0 %vm8976_vm0, %v8977_v7  ;;  %7095 = vmatprep.mubr.msk.f32.mxu1 %vm8976_vm0, %v8977_v7  ;;  %v9046_v8 = vshrl.u32 %v251_v3, 7  ;;  %v9050_v9 = vpack.c.bf16 %v216_v6, %v215_v2  ;;  %v9054_v12 = vand.u32 127, %v251_v3  ;;  %v219_v13 = vld [vmem:[%s9016_s19 + $0x30] sm:$0xff]  ;;  %v220_v14 = vld [vmem:[%s9016_s19 + $0x38] sm:$0xff]  ;;  %v221_v15 = vld [vmem:[%s9016_s19 + $0x40] sm:$0xff]  ;;  %v9077_v23 = vpack.c.bf16 %v218_v11, %v217_v10 }
  0x18   : > { %8070 = vmatpush3.bf16.msra.mxu0 %v9039_v5  ;;  %8094 = vmatpush3.bf16.msra.mxu1 %v9039_v5  ;;  %v222_v16 = vld [vmem:[%s9016_s19 + $0x48] sm:$0xff]  ;;  %v9063_v17 = vld [vmem:[%s9021_s23] sm:$0xff]  ;;  %v9082_v24 = vpack.c.bf16 %v220_v14, %v219_v13  ;;  %v9090_v27 = vld [vmem:[%s9021_s23 + $0x10] sm:$0xff]  ;;  %v12037_v55 = vmov 0 }
  0x19   : > { %12026 = vst [vmem:[#allocation3_spill] sm:$0xff] %v9046_v8  ;;  %12027 = vst [vmem:[#allocation4_spill] sm:$0xff] %v9054_v12  ;;  %8071 = vmatprep.subr.bf16.mxu0 %v8975_v4  ;;  %8095 = vmatprep.subr.bf16.mxu1 %v8975_v4  ;;  %v9066_v18 = vld [vmem:[%s9026_s26] sm:$0xff]  ;;  %v256_v19 = vadd.s32 32, %v9046_v8  ;;  %v257_v20 = vadd.s32 40, %v9046_v8  ;;  %v261_v21 = vadd.s32 72, %v9046_v8  ;;  %v9084_v25 = vpack.c.bf16 %v222_v16, %v221_v15 }
  0x1a   : > { %v9073_v22 = vmul.f32 %v9066_v18, %v9063_v17  ;;  %vm298_vm1 = vcmp.lt.s32.totalorder %v9054_v12, 96  ;;  %v9087_v26 = vld [vmem:[%s9021_s23 + $0x8] sm:$0xff]  ;;  %vm265_vm2 = vcmp.ge.s32.totalorder %v9046_v8, 5  ;;  %v9094_v28 = vld [vmem:[%s9021_s23 + $0x18] sm:$0xff]  ;;  %v9097_v29 = vld [vmem:[%s9021_s23 + $0x30] sm:$0xff] }
  0x1b   : > { %vm280_vm3 = vcmp.lt.s32.totalorder %v256_v19, 37  ;;  %vm315_vm4 = vcmp.ge.s32.totalorder %v257_v20, 47  ;;  %vm330_vm5 = vcmp.lt.s32.totalorder %v261_v21, 79  ;;  %v367_v30 = vsel %vm298_vm1, %v9090_v27, -inf  ;;  %v9103_v31 = vld [vmem:[%s9021_s23 + $0x38] sm:$0xff]  ;;  %v9106_v32 = vld [vmem:[%s9021_s23 + $0x40] sm:$0xff]  ;;  %vm9126_vm6 = vmand %vm265_vm2, %vm298_vm1 }
  0x1c   : > { %8073 = vmatpush3.bf16.msra.mxu0 %v9050_v9  ;;  %8097 = vmatpush3.bf16.msra.mxu1 %v9050_v9  ;;  %v366_v33 = vsel %vm298_vm1, %v9087_v26, -inf  ;;  %v368_v34 = vsel %vm298_vm1, %v9094_v28, -inf  ;;  %v371_v35 = vsel %vm298_vm1, %v9097_v29, -inf  ;;  %v396_v36 = vsel %vm298_vm1, %v9087_v26, inf  ;;  %v9145_v42 = vld [vmem:[%s9021_s23 + $0x20] sm:$0xff]  ;;  %v9148_v43 = vld [vmem:[%s9021_s23 + $0x48] sm:$0xff]  ;;  %vm9153_vm7 = vmand %vm280_vm3, %vm298_vm1 }
  0x1d   : > { %8074 = vmatprep.subr.bf16.mxu0 %v8975_v4  ;;  %8098 = vmatprep.subr.bf16.mxu1 %v8975_v4  ;;  %v12029_v37 = vsel %vm9126_vm6, 4294967295, %v12028_v37  ;;  %v372_v38 = vsel %vm298_vm1, %v9103_v31, -inf  ;;  %v397_v39 = vsel %vm298_vm1, %v9090_v27, inf  ;;  %v398_v40 = vsel %vm298_vm1, %v9094_v28, inf  ;;  %v9167_v49 = vld [vmem:[%s9021_s23 + $0x28] sm:$0xff]  ;;  %vm9172_vm8 = vmand %vm315_vm4, %vm298_vm1  ;;  %v223_v0 = vld [vmem:[%s9016_s19 + $0x50] sm:$0xff] }
  0x1e   : > { %12030 = vst [vmem:[#allocation5_spill] sm:$0xff] %v12029_v37  ;;  %v401_v41 = vsel %vm298_vm1, %v9097_v29, inf  ;;  %v12032_v44 = vsel %vm9153_vm7, 4294967295, %v12031_v44  ;;  %v365_v45 = vsel %vm9126_vm6, %v9063_v17, -inf  ;;  %v373_v46 = vsel %vm298_vm1, %v9106_v32, -inf  ;;  %vm9188_vm9 = vmand %vm330_vm5, %vm298_vm1  ;;  %v224_v1 = vld [vmem:[%s9016_s19 + $0x58] sm:$0xff] }
  0x1f   : > { %12033 = vst [vmem:[#allocation6_spill] sm:$0xff] %v12032_v44  ;;  %v378_v47 = vmax.f32 %v367_v30, %v371_v35  ;;  %v395_v48 = vsel %vm9126_vm6, %v9063_v17, inf  ;;  %v12035_v50 = vsel %vm9172_vm8, 4294967295, %v12034_v50  ;;  %v369_v51 = vsel %vm9153_vm7, %v9145_v42, -inf  ;;  %v225_v20 = vld [vmem:[%s9016_s19 + $0x60] sm:$0xff]  ;;  %v226_v21 = vld [vmem:[%s9016_s19 + $0x68] sm:$0xff] }
  0x20   : > { %8076 = vmatpush3.bf16.msra.mxu0 %v9077_v23  ;;  %8100 = vmatpush3.bf16.msra.mxu1 %v9077_v23  ;;  %12036 = vst [vmem:[#allocation7_spill] sm:$0xff] %v12035_v50  ;;  %v379_v52 = vmax.f32 %v368_v34, %v372_v38  ;;  %v399_v53 = vsel %vm9153_vm7, %v9145_v42, inf  ;;  %v402_v54 = vsel %vm298_vm1, %v9103_v31, inf  ;;  %v12038_v55 = vsel %vm9188_vm9, 4294967295, %v12037_v55  ;;  %v9222_v35 = vld [vmem:[%s9026_s26 + $0x8] sm:$0xff]  ;;  %v227_v38 = vld [vmem:[%s9016_s19 + $0x70] sm:$0xff] }
  0x21   : > { %8077 = vmatprep.subr.bf16.mxu0 %v8975_v4  ;;  %8101 = vmatprep.subr.bf16.mxu1 %v8975_v4  ;;  %12039 = vst [vmem:[#allocation8_spill] sm:$0xff] %v12038_v55  ;;  %v370_v56 = vsel %vm9172_vm8, %v9167_v49, -inf  ;;  %v376_v57 = vmax.f32 %v365_v45, %v369_v51  ;;  %v400_v58 = vsel %vm9172_vm8, %v9167_v49, inf  ;;  %v403_v59 = vsel %vm298_vm1, %v9106_v32, inf  ;;  %v228_v45 = vld [vmem:[%s9016_s19 + $0x78] sm:$0xff] }
  0x22   : > { %v374_v60 = vsel %vm9188_vm9, %v9148_v43, -inf  ;;  %v377_v61 = vmax.f32 %v366_v33, %v370_v56  ;;  %v404_v62 = vsel %vm9188_vm9, %v9148_v43, inf  ;;  %v406_v63 = vmin.f32 %v395_v48, %v399_v53 }
  0x23   : > { %v380_v2 = vmax.f32 %v376_v57, %v373_v46  ;;  %v407_v3 = vmin.f32 %v396_v36, %v400_v58  ;;  %v408_v6 = vmin.f32 %v397_v39, %v401_v41  ;;  %v384_v11 = vmax.f32 %v378_v47, %v379_v52  ;;  %v9230_v39 = vld [vmem:[%s9026_s26 + $0x10] sm:$0xff]  ;;  %v9243_v46 = vld [vmem:[%s9026_s26 + $0x20] sm:$0xff]  ;;  %v9246_v47 = vld [vmem:[%s9026_s26 + $0x28] sm:$0xff] }
  0x24   : > { %8079 = vmatpush3.bf16.msra.mxu0 %v9082_v24  ;;  %8103 = vmatpush3.bf16.msra.mxu1 %v9082_v24  ;;  %v381_v10 = vmax.f32 %v377_v61, %v374_v60  ;;  %v409_v13 = vmin.f32 %v398_v40, %v402_v54  ;;  %v410_v14 = vmin.f32 %v406_v63, %v403_v59  ;;  %v9233_v40 = vld [vmem:[%s9026_s26 + $0x18] sm:$0xff]  ;;  %v9330_v57 = vld [vmem:[%s9026_s26 + $0x30] sm:$0xff]  ;;  %v9356_v59 = vld [vmem:[%s9026_s26 + $0x40] sm:$0xff] }
  0x25   : > { %8080 = vmatprep.subr.bf16.mxu0 %v8975_v4  ;;  %8104 = vmatprep.subr.bf16.mxu1 %v8975_v4  ;;  %v411_v15 = vmin.f32 %v407_v3, %v404_v62  ;;  %v9215_v16 = vpack.c.bf16 %v224_v1, %v223_v0  ;;  %v9226_v36 = vpack.c.bf16 %v226_v21, %v225_v20  ;;  %v9343_v58 = vld [vmem:[%s9026_s26 + $0x38] sm:$0xff]  ;;  %v9369_v60 = vld [vmem:[%s9026_s26 + $0x48] sm:$0xff]  ;;  %v9379_v61 = vld [vmem:[%s9021_s23 + $0x50] sm:$0xff] }
  0x26   : > { %v383_v19 = vmax.f32 %v380_v2, %v381_v10  ;;  %v414_v34 = vmin.f32 %v408_v6, %v409_v13  ;;  %v9237_v41 = vmul.f32 %v9222_v35, %v9087_v26  ;;  %v9250_v48 = vmul.f32 %v9230_v39, %v9090_v27  ;;  %v9382_v62 = vld [vmem:[%s9026_s26 + $0x50] sm:$0xff] }
  0x27   : > { %v413_v33 = vmin.f32 %v410_v14, %v411_v15  ;;  %v9254_v51 = vmul.f32 %v9233_v40, %v9094_v28  ;;  %v9258_v53 = vmul.f32 %v9243_v46, %v9145_v42  ;;  %v9262_v54 = vmul.f32 %v9246_v47, %v9167_v49 }
  0x28   : > { %8082 = vmatpush3.bf16.msra.mxu0 %v9084_v25  ;;  %8106 = vmatpush3.bf16.msra.mxu1 %v9084_v25  ;;  %v385_v30 = vmax.f32 %v383_v19, %v384_v11  ;;  %v9266_v56 = vpack.c.bf16 %v228_v45, %v227_v38  ;;  %v441_v63 = vmul.f32 %v9066_v18, %v9066_v18 }
  0x29   : > { %8083 = vmatprep.subr.bf16.mxu0 %v8975_v4  ;;  %8107 = vmatprep.subr.bf16.mxu1 %v8975_v4  ;;  %v415_v52 = vmin.f32 %v413_v33, %v414_v34  ;;  %v430_v0 = vmul.f32 %v9063_v17, %v9063_v17  ;;  %v431_v1 = vmul.f32 %v9087_v26, %v9087_v26 }
  0x2a   : > { %386 = vmax.xlane.f32.xlu0 %v385_v30  ;;  %v448_v2 = vmul.f32 %v9343_v58, %v9343_v58  ;;  %v438_v3 = vmul.f32 %v9106_v32, %v9106_v32  ;;  %v449_v6 = vmul.f32 %v9356_v59, %v9356_v59  ;;  %v439_v10 = vmul.f32 %v9148_v43, %v9148_v43 }
  0x2b   : > { %v450_v11 = vmul.f32 %v9369_v60, %v9369_v60  ;;  %v451_v13 = vmul.f32 %v9382_v62, %v9382_v62  ;;  %v458_v14 = vmul.f32 %v9330_v57, %v9097_v29  ;;  %v459_v15 = vmul.f32 %v9343_v58, %v9103_v31 }
  0x2c   : > { %8085 = vmatpush3.bf16.msra.mxu0 %v9215_v16  ;;  %8109 = vmatpush3.bf16.msra.mxu1 %v9215_v16 }
  0x2d   : > { %8086 = vmatprep.subr.bf16.mxu0 %v8975_v4  ;;  %8110 = vmatprep.subr.bf16.mxu1 %v8975_v4 }
  0x2e   : > { %416 = vmin.xlane.f32.xlu0 %v415_v52 }
  0x30   : > { %8088 = vmatpush3.bf16.msra.mxu0 %v9226_v36  ;;  %8112 = vmatpush3.bf16.msra.mxu1 %v9226_v36 }
  0x31   : > { %8089 = vmatprep.subr.bf16.mxu0 %v8975_v4  ;;  %8113 = vmatprep.subr.bf16.mxu1 %v8975_v4 }
  0x34   : > { %8091 = vmatpush3.bf16.msra.mxu0 %v9266_v56  ;;  %8115 = vmatpush3.bf16.msra.mxu1 %v9266_v56 }
  0x35   : > { %8116 = vmatprep.subr.bf16.mxu0 %v8975_v4  ;;  %8140 = vmatprep.subr.bf16.mxu1 %v8975_v4 }
  0x37   : > { %7031 = vmatmul.mubr.f32.vlgmr.msra.gmra.mrb[0].mxu0 %v9063_v17  ;;  %7096 = vmatmul.mubr.f32.vlgmr.msra.gmra.mrb[0].mxu1 %v9066_v18  ;;  %v442_v18 = vmul.f32 %v9222_v35, %v9222_v35  ;;  %v432_v17 = vmul.f32 %v9090_v27, %v9090_v27 }
  0x38   : > { %8118 = vmatpush3.bf16.msra.mxu0 %v9039_v5  ;;  %7033 = vmatprep.mubr.msk.f32.mxu0 %vm8976_vm0, %v8977_v7 }
  0x39   : > { %7098 = vmatprep.mubr.msk.f32.mxu1 %vm8976_vm0, %v8977_v7  ;;  %8119 = vmatprep.subr.bf16.mxu0 %v8975_v4 }
  0x3a   : > { %8142 = vmatpush3.bf16.msra.mxu1 %v9039_v5 }
  0x3b   : > { %7034 = vmatmul.mubr.f32.gmra.mrb[2].mxu0 %v9087_v26  ;;  %7099 = vmatmul.mubr.f32.gmra.mrb[2].mxu1 %v9222_v35  ;;  %v443_v26 = vmul.f32 %v9230_v39, %v9230_v39 }
  0x3c   : > { %7036 = vmatprep.mubr.msk.f32.mxu0 %vm8976_vm0, %v8977_v7  ;;  %7101 = vmatprep.mubr.msk.f32.mxu1 %vm8976_vm0, %v8977_v7 }
  0x3d   : > { %8121 = vmatpush3.bf16.msra.mxu0 %v9050_v9  ;;  %8143 = vmatprep.subr.bf16.mxu1 %v8975_v4 }
  0x3e   : > { %8122 = vmatprep.subr.bf16.mxu0 %v8975_v4  ;;  %8145 = vmatpush3.bf16.msra.mxu1 %v9050_v9 }
  0x3f   : > { %7037 = vmatmul.mubr.f32.gmra.mrb[4].mxu0 %v9090_v27  ;;  %7102 = vmatmul.mubr.f32.gmra.mrb[4].mxu1 %v9230_v39  ;;  %v444_v27 = vmul.f32 %v9233_v40, %v9233_v40 }
  0x40   : > { %7039 = vmatprep.mubr.msk.f32.mxu0 %vm8976_vm0, %v8977_v7  ;;  %7104 = vmatprep.mubr.msk.f32.mxu1 %vm8976_vm0, %v8977_v7 }
  0x41   : > { %8124 = vmatpush3.bf16.msra.mxu0 %v9077_v23  ;;  %8146 = vmatprep.subr.bf16.mxu1 %v8975_v4 }
  0x42   : > { %8125 = vmatprep.subr.bf16.mxu0 %v8975_v4  ;;  %8148 = vmatpush3.bf16.msra.mxu1 %v9077_v23 }
  0x43   : > { %7040 = vmatmul.mubr.f32.gmra.mrb[6].mxu0 %v9094_v28  ;;  %7105 = vmatmul.mubr.f32.gmra.mrb[6].mxu1 %v9233_v40 }
  0x44   : > { %7042 = vmatprep.mubr.msk.f32.mxu0 %vm8976_vm0, %v8977_v7  ;;  %7107 = vmatprep.mubr.msk.f32.mxu1 %vm8976_vm0, %v8977_v7 }
  0x45   : > { %8127 = vmatpush3.bf16.msra.mxu0 %v9082_v24  ;;  %8149 = vmatprep.subr.bf16.mxu1 %v8975_v4 }
  0x46   : > { %8128 = vmatprep.subr.bf16.mxu0 %v8975_v4  ;;  %8151 = vmatpush3.bf16.msra.mxu1 %v9082_v24 }
  0x47   : > { %7043 = vmatmul.mubr.f32.gmra.mrb[8].mxu0 %v9145_v42  ;;  %7108 = vmatmul.mubr.f32.gmra.mrb[8].mxu1 %v9243_v46 }
  0x48   : > { %7045 = vmatprep.mubr.msk.f32.mxu0 %vm8976_vm0, %v8977_v7  ;;  %7110 = vmatprep.mubr.msk.f32.mxu1 %vm8976_vm0, %v8977_v7 }
  0x49   : > { %8130 = vmatpush3.bf16.msra.mxu0 %v9084_v25  ;;  %8152 = vmatprep.subr.bf16.mxu1 %v8975_v4 }
  0x4a   : > { %8131 = vmatprep.subr.bf16.mxu0 %v8975_v4  ;;  %8154 = vmatpush3.bf16.msra.mxu1 %v9084_v25 }
  0x4b   : > { %7046 = vmatmul.mubr.f32.gmra.mrb[10].mxu0 %v9167_v49  ;;  %7111 = vmatmul.mubr.f32.gmra.mrb[10].mxu1 %v9246_v47 }
  0x4c   : > { %7048 = vmatprep.mubr.msk.f32.mxu0 %vm8976_vm0, %v8977_v7  ;;  %7113 = vmatprep.mubr.msk.f32.mxu1 %vm8976_vm0, %v8977_v7 }
  0x4d   : > { %8133 = vmatpush3.bf16.msra.mxu0 %v9215_v16  ;;  %8155 = vmatprep.subr.bf16.mxu1 %v8975_v4 }
  0x4e   : > { %8134 = vmatprep.subr.bf16.mxu0 %v8975_v4  ;;  %8157 = vmatpush3.bf16.msra.mxu1 %v9215_v16 }
  0x4f   : > { %7049 = vmatmul.mubr.f32.gmra.mrb[12].mxu0 %v9097_v29  ;;  %7114 = vmatmul.mubr.f32.gmra.mrb[12].mxu1 %v9330_v57 }
  0x50   : > { %7051 = vmatprep.mubr.msk.f32.mxu0 %vm8976_vm0, %v8977_v7  ;;  %7116 = vmatprep.mubr.msk.f32.mxu1 %vm8976_vm0, %v8977_v7 }
  0x51   : > { %8136 = vmatpush3.bf16.msra.mxu0 %v9226_v36  ;;  %8158 = vmatprep.subr.bf16.mxu1 %v8975_v4 }
  0x52   : > { %8160 = vmatpush3.bf16.msra.mxu1 %v9226_v36  ;;  %8137 = vmatprep.subr.bf16.mxu0 %v8975_v4 }
  0x53   : > { %7052 = vmatmul.mubr.f32.gmra.mrb[14].mxu0 %v9103_v31  ;;  %7117 = vmatmul.mubr.f32.gmra.mrb[14].mxu1 %v9343_v58 }
  0x54   : > { %7054 = vmatprep.mubr.msk.f32.mxu0 %vm8976_vm0, %v8977_v7  ;;  %7119 = vmatprep.mubr.msk.f32.mxu1 %vm8976_vm0, %v8977_v7 }
  0x55   : > { %8139 = vmatpush3.bf16.msra.mxu0 %v9266_v56  ;;  %8161 = vmatprep.subr.bf16.mxu1 %v8975_v4 }
  0x56   : > { %8163 = vmatpush3.bf16.msra.mxu1 %v9266_v56  ;;  %8164 = vmatprep.subr.bf16.mxu0 %v8975_v4 }
  0x57   : > { %7055 = vmatmul.mubr.f32.gmra.mrb[16].mxu0 %v9106_v32  ;;  %7120 = vmatmul.mubr.f32.gmra.mrb[16].mxu1 %v9356_v59 }
  0x58   : > { %7057 = vmatprep.mubr.msk.f32.mxu0 %vm8976_vm0, %v8977_v7  ;;  %7122 = vmatprep.mubr.msk.f32.mxu1 %vm8976_vm0, %v8977_v7 }
  0x59   : > { %8788 = vmatprep.subr.bf16.mxu1 %v8975_v4 }
  0x5b   : > { %7058 = vmatmul.mubr.f32.gmra.mrb[18].mxu0 %v9148_v43  ;;  %7123 = vmatmul.mubr.f32.gmra.mrb[18].mxu1 %v9369_v60 }
  0x5c   : > { %7060 = vmatprep.mubr.msk.f32.mxu0 %vm8976_vm0, %v8977_v7  ;;  %7125 = vmatprep.mubr.msk.f32.mxu1 %vm8976_vm0, %v8977_v7 }
  0x5f   : > { %7061 = vmatmul.mubr.f32.gmra.mrb[20].mxu0 %v9379_v61  ;;  %7126 = vmatmul.mubr.f32.gmra.mrb[20].mxu1 %v9382_v62 }
  0x60   : > { %7160 = vmatprep.mubr.msk.f32.mxu0 %vm8976_vm0, %v8977_v7  ;;  %7225 = vmatprep.mubr.msk.f32.mxu1 %vm8976_vm0, %v8977_v7 }
  0x63   : > { %7161 = vmatmul.mubr.f32.vlgmr.msra.gmra.mrb[22].mxu0 %v430_v0  ;;  %7226 = vmatmul.mubr.f32.vlgmr.msra.gmra.mrb[22].mxu1 %v441_v63 }
  0x64   : > { %8166 = vmatpush3.bf16.msra.mxu0 %v9039_v5  ;;  %7163 = vmatprep.mubr.msk.f32.mxu0 %vm8976_vm0, %v8977_v7 }
  0x65   : > { %7228 = vmatprep.mubr.msk.f32.mxu1 %vm8976_vm0, %v8977_v7  ;;  %8167 = vmatprep.subr.bf16.mxu0 %v8975_v4 }
  0x66   : > { %8796 = vmatpush3.bf16.msra.mxu1 %v9039_v5  ;;  %v433_v5 = vmul.f32 %v9094_v28, %v9094_v28  ;;  %v445_v28 = vmul.f32 %v9243_v46, %v9243_v46 }
  0x67   : > { %7164 = vmatmul.mubr.f32.gmra.mrb[24].mxu0 %v431_v1  ;;  %7229 = vmatmul.mubr.f32.gmra.mrb[24].mxu1 %v442_v18 }
  0x68   : > { %7166 = vmatprep.mubr.msk.f32.mxu0 %vm8976_vm0, %v8977_v7  ;;  %7231 = vmatprep.mubr.msk.f32.mxu1 %vm8976_vm0, %v8977_v7 }
  0x69   : > { %8169 = vmatpush3.bf16.msra.mxu0 %v9050_v9  ;;  %8789 = vmatprep.subr.bf16.mxu1 %v8975_v4 }
  0x6a   : > { %8170 = vmatprep.subr.bf16.mxu0 %v8975_v4  ;;  %8797 = vmatpush3.bf16.msra.mxu1 %v9050_v9  ;;  %v434_v9 = vmul.f32 %v9145_v42, %v9145_v42  ;;  %v446_v42 = vmul.f32 %v9246_v47, %v9246_v47 }
  0x6b   : > { %7167 = vmatmul.mubr.f32.gmra.mrb[26].mxu0 %v432_v17  ;;  %7232 = vmatmul.mubr.f32.gmra.mrb[26].mxu1 %v443_v26 }
  0x6c   : > { %7169 = vmatprep.mubr.msk.f32.mxu0 %vm8976_vm0, %v8977_v7  ;;  %7234 = vmatprep.mubr.msk.f32.mxu1 %vm8976_vm0, %v8977_v7 }
  0x6d   : > { %8172 = vmatpush3.bf16.msra.mxu0 %v9077_v23  ;;  %8790 = vmatprep.subr.bf16.mxu1 %v8975_v4 }
  0x6e   : > { %8173 = vmatprep.subr.bf16.mxu0 %v8975_v4  ;;  %8798 = vmatpush3.bf16.msra.mxu1 %v9077_v23  ;;  %v435_v23 = vmul.f32 %v9167_v49, %v9167_v49  ;;  %v447_v49 = vmul.f32 %v9330_v57, %v9330_v57 }
  0x6f   : > { %7170 = vmatmul.mubr.f32.gmra.mrb[28].mxu0 %v433_v5  ;;  %7235 = vmatmul.mubr.f32.gmra.mrb[28].mxu1 %v444_v27 }
  0x70   : > { %7172 = vmatprep.mubr.msk.f32.mxu0 %vm8976_vm0, %v8977_v7  ;;  %7237 = vmatprep.mubr.msk.f32.mxu1 %vm8976_vm0, %v8977_v7 }
  0x71   : > { %8175 = vmatpush3.bf16.msra.mxu0 %v9082_v24  ;;  %8791 = vmatprep.subr.bf16.mxu1 %v8975_v4 }
  0x72   : > { %8176 = vmatprep.subr.bf16.mxu0 %v8975_v4  ;;  %8799 = vmatpush3.bf16.msra.mxu1 %v9082_v24  ;;  %v436_v24 = vmul.f32 %v9097_v29, %v9097_v29  ;;  %v460_v29 = vmul.f32 %v9356_v59, %v9106_v32 }
  0x73   : > { %7173 = vmatmul.mubr.f32.gmra.mrb[30].mxu0 %v434_v9  ;;  %7238 = vmatmul.mubr.f32.gmra.mrb[30].mxu1 %v445_v28 }
  0x74   : > { %7175 = vmatprep.mubr.msk.f32.mxu0 %vm8976_vm0, %v8977_v7  ;;  %7240 = vmatprep.mubr.msk.f32.mxu1 %vm8976_vm0, %v8977_v7 }
  0x75   : > { %8178 = vmatpush3.bf16.msra.mxu0 %v9084_v25  ;;  %8792 = vmatprep.subr.bf16.mxu1 %v8975_v4 }
  0x76   : > { %8179 = vmatprep.subr.bf16.mxu0 %v8975_v4  ;;  %8800 = vmatpush3.bf16.msra.mxu1 %v9084_v25  ;;  %v437_v25 = vmul.f32 %v9103_v31, %v9103_v31  ;;  %v462_v31 = vmul.f32 %v9382_v62, %v9379_v61 }
  0x77   : > { %7176 = vmatmul.mubr.f32.gmra.mrb[32].mxu0 %v435_v23  ;;  %7241 = vmatmul.mubr.f32.gmra.mrb[32].mxu1 %v446_v42 }
  0x78   : > { %7178 = vmatprep.mubr.msk.f32.mxu0 %vm8976_vm0, %v8977_v7  ;;  %7243 = vmatprep.mubr.msk.f32.mxu1 %vm8976_vm0, %v8977_v7 }
  0x79   : > { %8181 = vmatpush3.bf16.msra.mxu0 %v9215_v16  ;;  %8793 = vmatprep.subr.bf16.mxu1 %v8975_v4 }
  0x7a   : > { %8801 = vmatpush3.bf16.msra.mxu1 %v9215_v16  ;;  %8182 = vmatprep.subr.bf16.mxu0 %v8975_v4 }
  0x7b   : > { %7179 = vmatmul.mubr.f32.gmra.mrb[34].mxu0 %v436_v24  ;;  %7244 = vmatmul.mubr.f32.gmra.mrb[34].mxu1 %v447_v49 }
  0x7c   : > { %7181 = vmatprep.mubr.msk.f32.mxu0 %vm8976_vm0, %v8977_v7  ;;  %7246 = vmatprep.mubr.msk.f32.mxu1 %vm8976_vm0, %v8977_v7 }
  0x7d   : > { %8184 = vmatpush3.bf16.msra.mxu0 %v9226_v36  ;;  %8794 = vmatprep.subr.bf16.mxu1 %v8975_v4 }
  0x7e   : > { %8802 = vmatpush3.bf16.msra.mxu1 %v9226_v36  ;;  %8185 = vmatprep.subr.bf16.mxu0 %v8975_v4 }
  0x7f   : > { %7182 = vmatmul.mubr.f32.gmra.mrb[36].mxu0 %v437_v25  ;;  %7247 = vmatmul.mubr.f32.gmra.mrb[36].mxu1 %v448_v2 }
  0x80   : > { %7184 = vmatprep.mubr.msk.f32.mxu0 %vm8976_vm0, %v8977_v7  ;;  %7249 = vmatprep.mubr.msk.f32.mxu1 %vm8976_vm0, %v8977_v7 }
  0x81   : > { %8795 = vmatprep.subr.bf16.mxu1 %v8975_v4  ;;  %8187 = vmatpush3.bf16.msra.mxu0 %v9266_v56  ;;  %v440_v4 = vmul.f32 %v9379_v61, %v9379_v61 }
  0x82   : > { %8803 = vmatpush3.bf16.msra.mxu1 %v9266_v56 }
  0x83   : > { %7185 = vmatmul.mubr.f32.gmra.mrb[38].mxu0 %v438_v3  ;;  %7250 = vmatmul.mubr.f32.gmra.mrb[38].mxu1 %v449_v6 }
  0x84   : > { %7187 = vmatprep.mubr.msk.f32.mxu0 %vm8976_vm0, %v8977_v7  ;;  %7252 = vmatprep.mubr.msk.f32.mxu1 %vm8976_vm0, %v8977_v7 }
  0x87   : > { %7188 = vmatmul.mubr.f32.gmra.mrb[40].mxu0 %v439_v10  ;;  %7253 = vmatmul.mubr.f32.gmra.mrb[40].mxu1 %v450_v11 }
  0x88   : > { %7190 = vmatprep.mubr.msk.f32.mxu0 %vm8976_vm0, %v8977_v7  ;;  %7255 = vmatprep.mubr.msk.f32.mxu1 %vm8976_vm0, %v8977_v7 }
  0x8b   : > { %7191 = vmatmul.mubr.f32.gmra.mrb[42].mxu0 %v440_v4  ;;  %7256 = vmatmul.mubr.f32.gmra.mrb[42].mxu1 %v451_v13 }
  0x8c   : > { %7290 = vmatprep.mubr.msk.f32.mxu0 %vm8976_vm0, %v8977_v7  ;;  %7308 = vmatprep.mubr.msk.f32.mxu1 %vm8976_vm0, %v8977_v7 }
  0x8f   : > { %7291 = vmatmul.mubr.f32.vlgmr.msra.gmra.mrb[44].mxu0 %v9073_v22  ;;  %7309 = vmatmul.mubr.f32.vlgmr.msra.gmra.mrb[44].mxu1 %v458_v14  ;;  %v461_v22 = vmul.f32 %v9369_v60, %v9148_v43 }
  0x90   : > { %7293 = vmatprep.mubr.msk.f32.mxu0 %vm8976_vm0, %v8977_v7  ;;  %7311 = vmatprep.mubr.msk.f32.mxu1 %vm8976_vm0, %v8977_v7 }
  0x93   : > { %7294 = vmatmul.mubr.f32.gmra.mrb[46].mxu0 %v9237_v41  ;;  %7312 = vmatmul.mubr.f32.gmra.mrb[46].mxu1 %v459_v15 }
  0x94   : > { %7296 = vmatprep.mubr.msk.f32.mxu0 %vm8976_vm0, %v8977_v7  ;;  %7314 = vmatprep.mubr.msk.f32.mxu1 %vm8976_vm0, %v8977_v7 }
  0x97   : > { %7297 = vmatmul.mubr.f32.gmra.mrb[48].mxu0 %v9250_v48  ;;  %7315 = vmatmul.mubr.f32.gmra.mrb[48].mxu1 %v460_v29 }
  0x98   : > { %7299 = vmatprep.mubr.msk.f32.mxu0 %vm8976_vm0, %v8977_v7  ;;  %7317 = vmatprep.mubr.msk.f32.mxu1 %vm8976_vm0, %v8977_v7 }
  0x9b   : > { %7300 = vmatmul.mubr.f32.gmra.mrb[50].mxu0 %v9254_v51  ;;  %7318 = vmatmul.mubr.f32.gmra.mrb[50].mxu1 %v461_v22 }
  0x9c   : > { %7302 = vmatprep.mubr.msk.f32.mxu0 %vm8976_vm0, %v8977_v7  ;;  %7320 = vmatprep.mubr.msk.f32.mxu1 %vm8976_vm0, %v8977_v7 }
  0x9f   : > { %7303 = vmatmul.mubr.f32.gmra.mrb[52].mxu0 %v9258_v53  ;;  %7321 = vmatmul.mubr.f32.gmra.mrb[52].mxu1 %v462_v31 }
  0xa0   : > { %7305 = vmatprep.mubr.msk.f32.mxu0 %vm8976_vm0, %v8977_v7 }
  0xa3   : > { %7306 = vmatmul.mubr.f32.gmra.mrb[54].mxu0 %v9262_v54 }
  0xb7   : > { %v387_v32 = vpop.xlane.xlu0 %386 }
  0xb8   : > { %v388_v43 = vrot.slane %v387_v32, 4 }
  0xba   : > { %v389_v16 = vmax.f32 %v387_v32, %v388_v43 }
  0xbb   : > { %v417_v19 = vpop.xlane.xlu0 %416 }
  0xbc   : > { %v390_v20 = vrot.slane %v389_v16, 2  ;;  %v418_v21 = vrot.slane %v417_v19, 4 }
  0xbe   : > { %v419_v30 = vmin.f32 %v417_v19, %v418_v21  ;;  %v391_v33 = vmax.f32 %v389_v16, %v390_v20 }
  0xc0   : > { %v420_v34 = vrot.slane %v419_v30, 2  ;;  %v392_v35 = vrot.slane %v391_v33, 1 }
  0xc2   : > { %v421_v36 = vmin.f32 %v419_v30, %v420_v34  ;;  %v393_v38 = vmax.f32 %v391_v33, %v392_v35 }
  0xc4   : > { %8837 = vpush %v393_v38  ;;  %v422_v39 = vrot.slane %v421_v36, 1 }
  0xc6   : > { %v423_v40 = vmin.f32 %v421_v36, %v422_v39 }
  0xc8   : > { %8839 = vpush %v423_v40 }
  0xf5   : > { %s8838_s30 = spop %8837 }
  0xf9   : > { %s8840_s4 = spop %8839 }
  0xfa   : > { %s9545_s5 = ssub.f32 %s8838_s30, %s8840_s4 }
  0xfc   : > { %s428_s6 = smul.f32 0.03, %s9545_s5 }
  0xfd   : > { %s426_s8 = smul.f32 0.01, %s9545_s5 }
  0xfe   : > { %s429_s7 = smul.f32 %s428_s6, %s428_s6 }
  0xff   : > { %s427_s9 = smul.f32 %s426_s8, %s426_s8 }
 0x10a   : > { %v529_v41 = vpop.f32.mrb[0].mxu0  ;;  %v660_v7 = vpop.f32.mrb[0].mxu1 }
 0x10b   : > { %583 = vst [vmem:[#allocation2 + $0x8] sm:$0xff] %v529_v41  ;;  %v7032_v45 = vpop.f32.mrb[1].mxu0  ;;  %714 = vst [vmem:[#allocation2 + $0x60] sm:$0xff] %v660_v7  ;;  %v7097_v46 = vpop.f32.mrb[1].mxu1  ;;  %v1129_v5 = vmul.f32 0.0016380112, %v529_v41 }
 0x10c   : > { %v9550_v28 = vmul.f32 0.0016380112, %v660_v7 }
 0x10e   : > { %v534_v47 = vpop.f32.mrb[2].mxu0  ;;  %v665_v48 = vpop.f32.mrb[2].mxu1 }
 0x10f   : > { %584 = vst [vmem:[#allocation2 + $0x10] sm:$0xff] %v534_v47  ;;  %v7035_v51 = vpop.f32.mrb[3].mxu0  ;;  %715 = vst [vmem:[#allocation2 + $0x68] sm:$0xff] %v665_v48  ;;  %v7100_v52 = vpop.f32.mrb[3].mxu1  ;;  %v9553_v25 = vmul.f32 0.0016380112, %v534_v47 }
 0x110   : > { %v9555_v11 = vmul.f32 0.0016380112, %v665_v48 }
 0x112   : > { %v539_v53 = vpop.f32.mrb[4].mxu0  ;;  %v670_v54 = vpop.f32.mrb[4].mxu1  ;;  %v1140_v18 = vld [vmem:[#allocation2 + $0x7] sm:$0xff] }
 0x113   : > { %585 = vst [vmem:[#allocation2 + $0x18] sm:$0xff] %v539_v53  ;;  %716 = vst [vmem:[#allocation2 + $0x70] sm:$0xff] %v670_v54  ;;  %v7038_v56 = vpop.f32.mrb[5].mxu0  ;;  %v7103_v57 = vpop.f32.mrb[5].mxu1  ;;  %v1195_v49 = vld [vmem:[#allocation2 + $0x6] sm:$0xff] }
 0x114   : > { %v9561_v29 = vmul.f32 0.0016380112, %v539_v53  ;;  %v1250_v16 = vld [vmem:[#allocation2 + $0x5] sm:$0xff]  ;;  %v9564_v20 = vmul.f32 0.0016380112, %v670_v54 }
 0x116   : > { %v544_v58 = vpop.f32.mrb[6].mxu0  ;;  %v675_v59 = vpop.f32.mrb[6].mxu1  ;;  %v1151_v62 = vld [vmem:[#allocation2 + $0x9] sm:$0xff] }
 0x117   : > { %586 = vst [vmem:[#allocation2 + $0x20] sm:$0xff] %v544_v58  ;;  %717 = vst [vmem:[#allocation2 + $0x78] sm:$0xff] %v675_v59  ;;  %v7041_v60 = vpop.f32.mrb[7].mxu0  ;;  %v7106_v61 = vpop.f32.mrb[7].mxu1  ;;  %v1162_v26 = vadd.f32 %v1151_v62, %v1140_v18  ;;  %v1206_v27 = vld [vmem:[#allocation2 + $0xa] sm:$0xff] }
 0x118   : > { %v1141_v6 = vld [vmem:[#allocation2 + $0xf] sm:$0xff]  ;;  %v1217_v10 = vadd.f32 %v1206_v27, %v1195_v49  ;;  %v1408_v15 = vld [vmem:[#allocation2 + $0x67] sm:$0xff]  ;;  %v9566_v34 = vmul.f32 0.0016380112, %v544_v58  ;;  %v9568_v36 = vmul.f32 0.0016380112, %v675_v59 }
 0x119   : > { %v1173_v2 = vmul.f32 0.0020456284, %v1162_v26  ;;  %v9559_v14 = vld [vmem:[#allocation2 + $0xb] sm:$0xff]  ;;  %v1350_v18 = vld [vmem:[#allocation2 + $0x3] sm:$0xff] }
 0x11a   : > { %v9542_v63 = vpop.f32.mrb[8].mxu0  ;;  %v680_v0 = vpop.f32.mrb[8].mxu1  ;;  %v1152_v23 = vld [vmem:[#allocation2 + $0x11] sm:$0xff]  ;;  %v1419_v32 = vld [vmem:[#allocation2 + $0x69] sm:$0xff]  ;;  %12040 = vst [vmem:[#allocation9_spill] sm:$0xff] %v9568_v36  ;;  %v1272_v39 = vadd.f32 %v9559_v14, %v1250_v16 }
 0x11b   : > { %587 = vst [vmem:[#allocation2 + $0x28] sm:$0xff] %v9542_v63  ;;  %v7044_v1 = vpop.f32.mrb[9].mxu0  ;;  %718 = vst [vmem:[#allocation2 + $0x80] sm:$0xff] %v680_v0  ;;  %v7109_v17 = vpop.f32.mrb[9].mxu1  ;;  %v1163_v22 = vadd.f32 %v1152_v23, %v1141_v6  ;;  %v1207_v31 = vld [vmem:[#allocation2 + $0x12] sm:$0xff]  ;;  %v1463_v19 = vld [vmem:[#allocation2 + $0x66] sm:$0xff]  ;;  %v1184_v38 = vadd.f32 %v1173_v2, %v1129_v5  ;;  %v1430_v46 = vadd.f32 %v1419_v32, %v1408_v15 }
 0x11c   : > { %v1474_v21 = vld [vmem:[#allocation2 + $0x6a] sm:$0xff]  ;;  %v1228_v40 = vmul.f32 0.00398434, %v1217_v10  ;;  %v1142_v52 = vld [vmem:[#allocation2 + $0x17] sm:$0xff]  ;;  %v9578_v61 = vmul.f32 0.0016380112, %v9542_v63  ;;  %v9584_v63 = vstv %s429_s7 }
 0x11d   : > { %v1196_v33 = vld [vmem:[#allocation2 + $0xe] sm:$0xff]  ;;  %v1174_v53 = vmul.f32 0.0020456284, %v1163_v22  ;;  %v1485_v54 = vadd.f32 %v1474_v21, %v1463_v19  ;;  %v1305_v59 = vld [vmem:[#allocation2 + $0x4] sm:$0xff]  ;;  %v1197_v17 = vld [vmem:[#allocation2 + $0x16] sm:$0xff]  ;;  %12041 = vst [vmem:[#allocation10_spill] sm:$0xff] %v9584_v63 }
 0x11e   : > { %v9547_v9 = vpop.f32.mrb[10].mxu0  ;;  %v685_v42 = vpop.f32.mrb[10].mxu1  ;;  %v1153_v35 = vld [vmem:[#allocation2 + $0x19] sm:$0xff]  ;;  %v1306_v41 = vld [vmem:[#allocation2 + $0xc] sm:$0xff]  ;;  %v1218_v7 = vadd.f32 %v1207_v31, %v1196_v33  ;;  %v1283_v49 = vmul.f32 0.012103356, %v1272_v39 }
 0x11f   : > { %588 = vst [vmem:[#allocation2 + $0x30] sm:$0xff] %v9547_v9  ;;  %v7047_v24 = vpop.f32.mrb[11].mxu0  ;;  %719 = vst [vmem:[#allocation2 + $0x88] sm:$0xff] %v685_v42  ;;  %v7112_v3 = vpop.f32.mrb[11].mxu1  ;;  %v1409_v45 = vld [vmem:[#allocation2 + $0x6f] sm:$0xff]  ;;  %v1164_v60 = vadd.f32 %v1153_v35, %v1142_v52  ;;  %v1143_v26 = vld [vmem:[#allocation2 + $0x1f] sm:$0xff]  ;;  %v1239_v42 = vadd.f32 %v1228_v40, %v1184_v38  ;;  %v1185_v19 = vadd.f32 %v1174_v53, %v9553_v25 }
 0x120   : > { %v1420_v47 = vld [vmem:[#allocation2 + $0x71] sm:$0xff]  ;;  %v1208_v5 = vld [vmem:[#allocation2 + $0x1a] sm:$0xff]  ;;  %v1229_v2 = vmul.f32 0.00398434, %v1218_v7  ;;  %v1441_v3 = vmul.f32 0.0020456284, %v1430_v46  ;;  %v9592_v21 = vadd.f32 %v1306_v41, %v1305_v59 }
 0x121   : > { %v1251_v62 = vld [vmem:[#allocation2 + $0xd] sm:$0xff]  ;;  %v1431_v27 = vadd.f32 %v1420_v47, %v1409_v45  ;;  %v1252_v24 = vld [vmem:[#allocation2 + $0x15] sm:$0xff]  ;;  %v9588_v22 = vmul.f32 0.00398434, %v1485_v54  ;;  %v1198_v31 = vld [vmem:[#allocation2 + $0x1e] sm:$0xff]  ;;  %v1219_v35 = vadd.f32 %v1208_v5, %v1197_v17  ;;  %v9606_v52 = vadd.f32 %v1283_v49, %v1239_v42 }
 0x122   : > { %v9557_v4 = vpop.f32.mrb[12].mxu0  ;;  %v690_v13 = vpop.f32.mrb[12].mxu1  ;;  %v1154_v56 = vld [vmem:[#allocation2 + $0x21] sm:$0xff]  ;;  %v9580_v0 = vld [vmem:[#allocation2 + $0x13] sm:$0xff]  ;;  %v1175_v33 = vmul.f32 0.0020456284, %v1164_v60  ;;  %v9623_v49 = vadd.f32 %v1229_v2, %v1185_v19 }
 0x123   : > { %589 = vst [vmem:[#allocation2 + $0x38] sm:$0xff] %v9557_v4  ;;  %720 = vst [vmem:[#allocation2 + $0x90] sm:$0xff] %v690_v13  ;;  %v7050_v43 = vpop.f32.mrb[13].mxu0  ;;  %v7115_v30 = vpop.f32.mrb[13].mxu1  ;;  %v9582_v1 = vld [vmem:[#allocation2 + $0x14] sm:$0xff]  ;;  %v1209_v23 = vld [vmem:[#allocation2 + $0x22] sm:$0xff]  ;;  %v1165_v10 = vadd.f32 %v1154_v56, %v1143_v26  ;;  %v1273_v25 = vadd.f32 %v9580_v0, %v1251_v62  ;;  %v9614_v26 = vadd.f32 %v9559_v14, %v1252_v24 }
 0x124   : > { %v1464_v6 = vld [vmem:[#allocation2 + $0x6e] sm:$0xff]  ;;  %v9594_v30 = vadd.f32 %v1350_v18, %v1251_v62  ;;  %v9597_v39 = vmul.f32 0.0016380112, %v9547_v9  ;;  %v1220_v40 = vadd.f32 %v1209_v23, %v1198_v31  ;;  %v9599_v7 = vld [vmem:[#allocation2 + $0x1b] sm:$0xff]  ;;  %v9601_v45 = vmul.f32 0.0020456284, %v1431_v27 }
 0x125   : > { %v1475_v38 = vld [vmem:[#allocation2 + $0x72] sm:$0xff]  ;;  %v1144_v46 = vld [vmem:[#allocation2 + $0x27] sm:$0xff]  ;;  %v1253_v47 = vld [vmem:[#allocation2 + $0x1d] sm:$0xff]  ;;  %v9609_v53 = vadd.f32 %v9582_v1, %v1306_v41  ;;  %v1176_v18 = vmul.f32 0.0020456284, %v1165_v10  ;;  %12043 = vst [vmem:[#allocation12_spill] sm:$0xff] %v9614_v26  ;;  %v1452_v62 = vadd.f32 %v1441_v3, %v9555_v11  ;;  %v1274_v14 = vadd.f32 %v9599_v7, %v1252_v24 }
 0x126   : > { %v9574_v48 = vpop.f32.mrb[14].mxu0  ;;  %v695_v51 = vpop.f32.mrb[14].mxu1  ;;  %v1155_v32 = vld [vmem:[#allocation2 + $0x29] sm:$0xff]  ;;  %12042 = vst [vmem:[#allocation11_spill] sm:$0xff] %v9594_v30  ;;  %v1410_v54 = vld [vmem:[#allocation2 + $0x77] sm:$0xff]  ;;  %v9617_v5 = vadd.f32 %v1475_v38, %v1464_v6  ;;  %v1186_v11 = vadd.f32 %v1175_v33, %v9561_v29  ;;  %v9636_v19 = vadd.f32 %v9580_v0, %v1253_v47  ;;  %v1411_v24 = vld [vmem:[#allocation2 + $0x7f] sm:$0xff] }
 0x127   : > { %590 = vst [vmem:[#allocation2 + $0x40] sm:$0xff] %v9574_v48  ;;  %721 = vst [vmem:[#allocation2 + $0x98] sm:$0xff] %v695_v51  ;;  %v7053_v57 = vpop.f32.mrb[15].mxu0  ;;  %v7118_v58 = vpop.f32.mrb[15].mxu1  ;;  %v9603_v51 = vld [vmem:[#allocation2 + $0x23] sm:$0xff]  ;;  %v1465_v56 = vld [vmem:[#allocation2 + $0x76] sm:$0xff]  ;;  %v1166_v60 = vadd.f32 %v1155_v32, %v1144_v46 }
 0x128   : > { %v1421_v9 = vld [vmem:[#allocation2 + $0x79] sm:$0xff]  ;;  %v1210_v17 = vld [vmem:[#allocation2 + $0x2a] sm:$0xff]  ;;  %12044 = vst [vmem:[#allocation13_spill] sm:$0xff] %v9617_v5  ;;  %v9621_v23 = vmul.f32 0.0016380112, %v9557_v4  ;;  %v1275_v32 = vadd.f32 %v9603_v51, %v1253_v47  ;;  %12045 = vst [vmem:[#allocation14_spill] sm:$0xff] %v9636_v19 }
 0x129   : > { %v1476_v57 = vld [vmem:[#allocation2 + $0x7a] sm:$0xff]  ;;  %v1199_v42 = vld [vmem:[#allocation2 + $0x26] sm:$0xff]  ;;  %v1230_v3 = vmul.f32 0.00398434, %v1219_v35  ;;  %v1231_v6 = vmul.f32 0.00398434, %v1220_v40  ;;  %v1187_v35 = vadd.f32 %v1176_v18, %v9566_v34 }
 0x12a   : > { %v9586_v13 = vpop.f32.mrb[16].mxu0  ;;  %v700_v15 = vpop.f32.mrb[16].mxu1  ;;  %v9625_v10 = vld [vmem:[#allocation2 + $0x2b] sm:$0xff]  ;;  %v1284_v38 = vmul.f32 0.012103356, %v1273_v25  ;;  %v9633_v2 = vld [vmem:[#allocation2 + $0x1c] sm:$0xff]  ;;  %v9645_v25 = vadd.f32 %v1421_v9, %v1410_v54  ;;  %v9647_v55 = vadd.f32 %v1476_v57, %v1465_v56  ;;  %v9654_v54 = vadd.f32 %v9601_v45, %v9564_v20 }
 0x12b   : > { %591 = vst [vmem:[#allocation2 + $0x48] sm:$0xff] %v9586_v13  ;;  %722 = vst [vmem:[#allocation2 + $0xa0] sm:$0xff] %v700_v15  ;;  %v7056_v43 = vpop.f32.mrb[17].mxu0  ;;  %v7121_v16 = vpop.f32.mrb[17].mxu1  ;;  %v1156_v15 = vld [vmem:[#allocation2 + $0x31] sm:$0xff]  ;;  %v1254_v31 = vld [vmem:[#allocation2 + $0x25] sm:$0xff]  ;;  %v1241_v50 = vadd.f32 %v1230_v3, %v1186_v11  ;;  %v1242_v3 = vadd.f32 %v1231_v6, %v1187_v35 }
 0x12c   : > { %v9631_v43 = vmul.f32 0.0016380112, %v9574_v48  ;;  %v1145_v4 = vld [vmem:[#allocation2 + $0x2f] sm:$0xff]  ;;  %v1221_v16 = vadd.f32 %v1210_v17, %v1199_v42  ;;  %v1422_v46 = vld [vmem:[#allocation2 + $0x81] sm:$0xff]  ;;  %v1177_v33 = vmul.f32 0.0020456284, %v1166_v60  ;;  %v1276_v48 = vadd.f32 %v9625_v10, %v1254_v31 }
 0x12d   : > { %v1211_v40 = vld [vmem:[#allocation2 + $0x32] sm:$0xff]  ;;  %v9643_v17 = vadd.f32 %v9588_v22, %v1452_v62  ;;  %12047 = vst [vmem:[#allocation16_spill] sm:$0xff] %v9645_v25  ;;  %v1285_v60 = vmul.f32 0.012103356, %v1274_v14  ;;  %12048 = vst [vmem:[#allocation17_spill] sm:$0xff] %v9647_v55  ;;  %v1309_v12 = vld [vmem:[#allocation2 + $0x24] sm:$0xff]  ;;  %v9650_v22 = vadd.f32 %v9599_v7, %v1254_v31  ;;  %v9674_v6 = vadd.f32 %v1422_v46, %v1411_v24 }
 0x12e   : > { %v9611_v58 = vpop.f32.mrb[18].mxu0  ;;  %v705_v59 = vpop.f32.mrb[18].mxu1  ;;  %v1200_v42 = vld [vmem:[#allocation2 + $0x2e] sm:$0xff]  ;;  %v1146_v34 = vld [vmem:[#allocation2 + $0x37] sm:$0xff]  ;;  %v1286_v44 = vmul.f32 0.012103356, %v1275_v32  ;;  %v1188_v7 = vadd.f32 %v1177_v33, %v9578_v61 }
 0x12f   : > { %592 = vst [vmem:[#allocation2 + $0x50] sm:$0xff] %v9611_v58  ;;  %723 = vst [vmem:[#allocation2 + $0xa8] sm:$0xff] %v705_v59  ;;  %v7059_v41 = vpop.f32.mrb[19].mxu0  ;;  %v7124_v27 = vpop.f32.mrb[19].mxu1  ;;  %v1255_v8 = vld [vmem:[#allocation2 + $0x2d] sm:$0xff]  ;;  %v1157_v18 = vld [vmem:[#allocation2 + $0x39] sm:$0xff]  ;;  %v1222_v14 = vadd.f32 %v1211_v40, %v1200_v42 }
 0x130   : > { %v9639_v41 = vld [vmem:[#allocation2 + $0x33] sm:$0xff]  ;;  %12046 = vst [vmem:[#allocation15_spill] sm:$0xff] %v9643_v17  ;;  %v1167_v27 = vadd.f32 %v1156_v15, %v1145_v4  ;;  %12049 = vst [vmem:[#allocation18_spill] sm:$0xff] %v9650_v22  ;;  %v9657_v9 = vmul.f32 0.0016380112, %v9586_v13  ;;  %v9665_v32 = vld [vmem:[#allocation2 + $0x3b] sm:$0xff]  ;;  %v1319_v13 = vadd.f32 %v9633_v2, %v9582_v1 }
 0x131   : > { %12050 = vst [vmem:[#allocation19_spill] sm:$0xff] %v9654_v54  ;;  %v1201_v62 = vld [vmem:[#allocation2 + $0x36] sm:$0xff]  ;;  %v1232_v56 = vmul.f32 0.00398434, %v1221_v16  ;;  %v1277_v57 = vadd.f32 %v9639_v41, %v1255_v8  ;;  %v1287_v20 = vmul.f32 0.012103356, %v1276_v48  ;;  %v9679_v48 = vadd.f32 %v1285_v60, %v1241_v50 }
 0x132   : > { %v579_v59 = vpop.f32.mrb[20].mxu0  ;;  %v710_v29 = vpop.f32.mrb[20].mxu1  ;;  %v1212_v15 = vld [vmem:[#allocation2 + $0x3a] sm:$0xff]  ;;  %v1178_v40 = vmul.f32 0.0020456284, %v1167_v27  ;;  %v1310_v61 = vld [vmem:[#allocation2 + $0x2c] sm:$0xff] }
 0x133   : > { %593 = vst [vmem:[#allocation2 + $0x58] sm:$0xff] %v579_v59  ;;  %724 = vst [vmem:[#allocation2 + $0xb0] sm:$0xff] %v710_v29  ;;  %v7062_v0 = vpop.f32.mrb[21].mxu0  ;;  %v7127_v47 = vpop.f32.mrb[21].mxu1  ;;  %v1256_v31 = vld [vmem:[#allocation2 + $0x35] sm:$0xff]  ;;  %v1158_v59 = vld [vmem:[#allocation2 + $0x41] sm:$0xff]  ;;  %v1168_v29 = vadd.f32 %v1157_v18, %v1146_v34  ;;  %v1223_v1 = vadd.f32 %v1212_v15, %v1201_v62  ;;  %v1243_v62 = vadd.f32 %v1232_v56, %v1188_v7 }
 0x134   : > { %v9672_v0 = vadd.f32 %v1284_v38, %v9623_v49  ;;  %12051 = vst [vmem:[#allocation20_spill] sm:$0xff] %v9674_v6  ;;  %v9677_v33 = vmul.f32 0.0016380112, %v9611_v58  ;;  %v1147_v35 = vld [vmem:[#allocation2 + $0x3f] sm:$0xff]  ;;  %v1311_v47 = vld [vmem:[#allocation2 + $0x34] sm:$0xff]  ;;  %v1278_v27 = vadd.f32 %v9665_v32, %v1256_v31  ;;  %v9686_v38 = vadd.f32 %v1309_v12, %v9633_v2  ;;  %v1148_v2 = vld [vmem:[#allocation2 + $0x47] sm:$0xff] }
 0x135   : > { %v1328_v42 = vmul.f32 0.057342287, %v9592_v21  ;;  %v1233_v34 = vmul.f32 0.00398434, %v1222_v14  ;;  %v9683_v49 = vmul.f32 0.012103356, %v1277_v57  ;;  %v1169_v18 = vadd.f32 %v1158_v59, %v1147_v35 }
 0x136   : > { %v9660_v4 = vpop.f32.mrb[22].mxu0  ;;  %v9662_v11 = vpop.f32.mrb[22].mxu1  ;;  %v1159_v46 = vld [vmem:[#allocation2 + $0x49] sm:$0xff]  ;;  %v9688_v50 = vld [vmem:[#allocation2 + $0x3d] sm:$0xff]  ;;  %v9692_v21 = vadd.f32 %v1286_v44, %v1242_v3  ;;  %v9697_v14 = vadd.f32 %v9603_v51, %v1255_v8  ;;  %v1179_v37 = vmul.f32 0.0020456284, %v1168_v29  ;;  %v9699_v63 = vadd.f32 %v1310_v61, %v1309_v12 }
 0x137   : > { %845 = vst [vmem:[#allocation2 + $0xb8] sm:$0xff] %v9660_v4  ;;  %v7162_v45 = vpop.f32.mrb[23].mxu0  ;;  %976 = vst [vmem:[#allocation2 + $0x110] sm:$0xff] %v9662_v11  ;;  %v7227_v16 = vpop.f32.mrb[23].mxu1  ;;  %v9690_v60 = vld [vmem:[#allocation2 + $0x43] sm:$0xff]  ;;  %v9705_v7 = vadd.f32 %v9625_v10, %v1256_v31  ;;  %v1189_v35 = vadd.f32 %v1178_v40, %v9597_v39  ;;  %v9708_v54 = vadd.f32 %v1311_v47, %v1310_v61  ;;  %v9712_v55 = vld [vmem:[#allocation2 + $0x4b] sm:$0xff] }
 0x138   : > { %v1202_v45 = vld [vmem:[#allocation2 + $0x3e] sm:$0xff]  ;;  %12052 = vst [vmem:[#allocation21_spill] sm:$0xff] %v9697_v14  ;;  %v9702_v56 = vmul.f32 0.057342287, %v9609_v53  ;;  %v1203_v8 = vld [vmem:[#allocation2 + $0x46] sm:$0xff]  ;;  %v1170_v29 = vadd.f32 %v1159_v46, %v1148_v2  ;;  %v1279_v53 = vadd.f32 %v9690_v60, %v9688_v50  ;;  %v1149_v5 = vld [vmem:[#allocation2 + $0x4f] sm:$0xff] }
 0x139   : > { %v1213_v16 = vld [vmem:[#allocation2 + $0x42] sm:$0xff]  ;;  %12053 = vst [vmem:[#allocation22_spill] sm:$0xff] %v9705_v7  ;;  %v1214_v51 = vld [vmem:[#allocation2 + $0x4a] sm:$0xff]  ;;  %v9716_v10 = vmul.f32 0.012103356, %v1278_v27 }
 0x13a   : > { %v796_v24 = vpop.f32.mrb[24].mxu0  ;;  %v927_v58 = vpop.f32.mrb[24].mxu1  ;;  %v9694_v15 = vld [vmem:[#allocation2 + $0x3c] sm:$0xff]  ;;  %v1224_v17 = vadd.f32 %v1213_v16, %v1202_v45  ;;  %v9710_v12 = vld [vmem:[#allocation2 + $0x45] sm:$0xff]  ;;  %v9718_v31 = vmul.f32 0.057342287, %v1319_v13  ;;  %v9723_v45 = vadd.f32 %v1287_v20, %v1243_v62  ;;  %v9726_v16 = vadd.f32 %v1328_v42, %v9606_v52 }
 0x13b   : > { %846 = vst [vmem:[#allocation2 + $0xc0] sm:$0xff] %v796_v24  ;;  %v7165_v57 = vpop.f32.mrb[25].mxu0  ;;  %977 = vst [vmem:[#allocation2 + $0x118] sm:$0xff] %v927_v58  ;;  %v1418_v44 = vld [vmem:[#allocation2 + $0x61] sm:$0xff]  ;;  %v7230_v59 = vpop.f32.mrb[25].mxu1  ;;  %v1160_v36 = vld [vmem:[#allocation2 + $0x51] sm:$0xff]  ;;  %v1225_v6 = vadd.f32 %v1214_v51, %v1203_v8  ;;  %v1190_v20 = vadd.f32 %v1179_v37, %v9621_v23 }
 0x13c   : > { %v1407_v3 = vld [vmem:[#allocation2 + $0x5f] sm:$0xff]  ;;  %v1234_v57 = vmul.f32 0.00398434, %v1223_v1  ;;  %v9721_v40 = vmul.f32 0.0016380112, %v9660_v4  ;;  %12054 = vst [vmem:[#allocation23_spill] sm:$0xff] %v9726_v16  ;;  %v9732_v4 = vadd.f32 %v9694_v15, %v1311_v47  ;;  %v1171_v7 = vadd.f32 %v1160_v36, %v1149_v5 }
 0x13d   : > { %v1473_v59 = vld [vmem:[#allocation2 + $0x62] sm:$0xff]  ;;  %v1180_v61 = vmul.f32 0.0020456284, %v1169_v18  ;;  %v1429_v46 = vadd.f32 %v1418_v44, %v1407_v3  ;;  %v9729_v2 = vmul.f32 0.0016380112, %v9662_v11  ;;  %v1204_v62 = vld [vmem:[#allocation2 + $0x4e] sm:$0xff]  ;;  %v1244_v44 = vadd.f32 %v1233_v34, %v1189_v35 }
 0x13e   : > { %v1462_v39 = vld [vmem:[#allocation2 + $0x5e] sm:$0xff]  ;;  %v801_v1 = vpop.f32.mrb[26].mxu0  ;;  %v932_v27 = vpop.f32.mrb[26].mxu1  ;;  %v1215_v52 = vld [vmem:[#allocation2 + $0x52] sm:$0xff]  ;;  %v1235_v42 = vmul.f32 0.00398434, %v1224_v17  ;;  %v1280_v11 = vadd.f32 %v9712_v55, %v9710_v12  ;;  %v9750_v35 = vadd.f32 %v9639_v41, %v9688_v50  ;;  %v1245_v5 = vadd.f32 %v1234_v57, %v1190_v20 }
 0x13f   : > { %12055 = vst [vmem:[#allocation24_spill] sm:$0xff] %v9729_v2  ;;  %847 = vst [vmem:[#allocation2 + $0xc8] sm:$0xff] %v801_v1  ;;  %v7168_v13 = vpop.f32.mrb[27].mxu0  ;;  %v7233_v18 = vpop.f32.mrb[27].mxu1  ;;  %v1270_v3 = vld [vmem:[#allocation2 + $0x53] sm:$0xff]  ;;  %v9737_v25 = vld [vmem:[#allocation2 + $0x44] sm:$0xff]  ;;  %v1191_v17 = vadd.f32 %v1180_v61, %v9631_v43  ;;  %v9758_v61 = vadd.f32 %v9683_v49, %v1244_v44  ;;  %v9764_v50 = vadd.f32 %v9702_v56, %v9672_v0 }
 0x140   : > { %978 = vst [vmem:[#allocation2 + $0x120] sm:$0xff] %v932_v27  ;;  %v1484_v13 = vadd.f32 %v1473_v59, %v1462_v39  ;;  %v9739_v2 = vmul.f32 0.0016380112, %v796_v24  ;;  %v1181_v8 = vmul.f32 0.0020456284, %v1170_v29  ;;  %v9746_v34 = vld [vmem:[#allocation2 + $0x4d] sm:$0xff]  ;;  %v1226_v29 = vadd.f32 %v1215_v52, %v1204_v62 }
 0x141   : > { %v9741_v47 = vmul.f32 0.012103356, %v1279_v53  ;;  %v9743_v18 = vmul.f32 0.0016380112, %v927_v58  ;;  %12056 = vst [vmem:[#allocation25_spill] sm:$0xff] %v9750_v35  ;;  %v1281_v58 = vadd.f32 %v1270_v3, %v9746_v34  ;;  %v1671_v39 = vld [vmem:[#allocation2 + $0xb7] sm:$0xff]  ;;  %v9774_v57 = vadd.f32 %v9737_v25, %v9694_v15 }
 0x142   : > { %v1682_v51 = vld [vmem:[#allocation2 + $0xb9] sm:$0xff]  ;;  %v806_v37 = vpop.f32.mrb[28].mxu0  ;;  %v937_v23 = vpop.f32.mrb[28].mxu1  ;;  %v9752_v59 = vmul.f32 0.0020456284, %v1429_v46  ;;  %12057 = vst [vmem:[#allocation26_spill] sm:$0xff] %v9758_v61  ;;  %v1192_v56 = vadd.f32 %v1181_v8, %v9657_v9  ;;  %v1246_v35 = vadd.f32 %v1235_v42, %v1191_v17 }
 0x143   : > { %848 = vst [vmem:[#allocation2 + $0xd0] sm:$0xff] %v806_v37  ;;  %979 = vst [vmem:[#allocation2 + $0x128] sm:$0xff] %v937_v23  ;;  %v7171_v24 = vpop.f32.mrb[29].mxu0  ;;  %v1236_v53 = vmul.f32 0.00398434, %v1225_v6  ;;  %v1737_v16 = vld [vmem:[#allocation2 + $0xba] sm:$0xff]  ;;  %v1693_v62 = vadd.f32 %v1682_v51, %v1671_v39  ;;  %v9783_v51 = vadd.f32 %v9718_v31, %v9679_v48 }
 0x144   : > { %v7236_v36 = vpop.f32.mrb[29].mxu1  ;;  %v9755_v43 = vmul.f32 0.012103356, %v1280_v11  ;;  %v9760_v41 = vld [vmem:[#allocation2 + $0x4c] sm:$0xff]  ;;  %12058 = vst [vmem:[#allocation27_spill] sm:$0xff] %v9764_v50  ;;  %v1615_v6 = vld [vmem:[#allocation2 + $0xb5] sm:$0xff]  ;;  %v1451_v30 = vadd.f32 %v9752_v59, %v9550_v28 }
 0x145   : > { %v9766_v46 = vmul.f32 0.00398434, %v1484_v13  ;;  %v9768_v52 = vld [vmem:[#allocation2 + $0xbb] sm:$0xff]  ;;  %v9770_v3 = vmul.f32 0.0016380112, %v801_v1  ;;  %v1537_v20 = vld [vmem:[#allocation2 + $0xb3] sm:$0xff] }
 0x146   : > { %v1316_v49 = vld [vmem:[#allocation2 + $0x5c] sm:$0xff]  ;;  %v9776_v24 = vmul.f32 0.0016380112, %v932_v27  ;;  %v9778_v0 = vmul.f32 0.0020456284, %v1171_v7  ;;  %12059 = vst [vmem:[#allocation28_spill] sm:$0xff] %v9783_v51  ;;  %v1802_v14 = vadd.f32 %v9768_v52, %v1615_v6  ;;  %v9805_v6 = vadd.f32 %v9716_v10, %v1245_v5 }
 0x147   : > { %v1726_v44 = vld [vmem:[#allocation2 + $0xb6] sm:$0xff]  ;;  %v9785_v36 = vpop.f32.mrb[30].mxu0  ;;  %v9787_v15 = vmul.f32 0.00398434, %v1226_v29  ;;  %v9789_v50 = vmul.f32 0.012103356, %v1281_v58 }
 0x148   : > { %v1781_v11 = vld [vmem:[#allocation2 + $0xbd] sm:$0xff]  ;;  %v1260_v13 = vld [vmem:[#allocation2 + $0x55] sm:$0xff]  ;;  %v1748_v1 = vadd.f32 %v1737_v16, %v1726_v44  ;;  %v9794_v9 = vmul.f32 0.0016380112, %v806_v37  ;;  %849 = vst [vmem:[#allocation2 + $0xd8] sm:$0xff] %v9785_v36  ;;  %v942_v48 = vpop.f32.mrb[30].mxu1  ;;  %v9802_v16 = vadd.f32 %v9665_v32, %v9710_v12 }
 0x149   : > { %v1835_v39 = vld [vmem:[#allocation2 + $0xbc] sm:$0xff]  ;;  %v9791_v27 = vld [vmem:[#allocation2 + $0x64] sm:$0xff]  ;;  %v1581_v7 = vld [vmem:[#allocation2 + $0xb4] sm:$0xff]  ;;  %v9798_v31 = vmul.f32 0.057342287, %v9686_v38  ;;  %v1880_v29 = vadd.f32 %v1781_v11, %v1537_v20  ;;  %980 = vst [vmem:[#allocation2 + $0x130] sm:$0xff] %v942_v48  ;;  %v9809_v38 = vadd.f32 %v9760_v41, %v9737_v25 }
 0x14a   : > { %12060 = vst [vmem:[#allocation29_spill] sm:$0xff] %v9791_v27  ;;  %12061 = vst [vmem:[#allocation30_spill] sm:$0xff] %v9802_v16  ;;  %v1672_v42 = vld [vmem:[#allocation2 + $0xbf] sm:$0xff]  ;;  %v1704_v8 = vmul.f32 0.0020456284, %v1693_v62  ;;  %v1936_v58 = vld [vmem:[#allocation2 + $0x117] sm:$0xff]  ;;  %v1846_v22 = vadd.f32 %v1835_v39, %v1581_v7  ;;  %v1247_v16 = vadd.f32 %v1236_v53, %v1192_v56  ;;  %v9825_v7 = vadd.f32 %v9741_v47, %v1246_v35 }
 0x14b   : > { %v1727_v17 = vld [vmem:[#allocation2 + $0xbe] sm:$0xff]  ;;  %v7174_v37 = vpop.f32.mrb[31].mxu0  ;;  %12062 = vst [vmem:[#allocation31_spill] sm:$0xff] %v9805_v6  ;;  %12063 = vst [vmem:[#allocation32_spill] sm:$0xff] %v9809_v38  ;;  %v9815_v12 = vmul.f32 0.0016380112, %v937_v23  ;;  %v9828_v23 = vadd.f32 %v9712_v55, %v1260_v13 }
 0x14c   : > { %v1683_v44 = vld [vmem:[#allocation2 + $0xc1] sm:$0xff]  ;;  %v7239_v62 = vpop.f32.mrb[31].mxu1  ;;  %v9817_v20 = vpop.f32.mrb[32].mxu0  ;;  %v9821_v37 = vadd.f32 %v9690_v60, %v9746_v34  ;;  %v1759_v10 = vmul.f32 0.00398434, %v1748_v1  ;;  %v1991_v5 = vld [vmem:[#allocation2 + $0x116] sm:$0xff]  ;;  %v1715_v47 = vadd.f32 %v1704_v8, %v9721_v40 }
 0x14d   : > { %v1738_v51 = vld [vmem:[#allocation2 + $0xc2] sm:$0xff]  ;;  %v1947_v25 = vld [vmem:[#allocation2 + $0x119] sm:$0xff]  ;;  %850 = vst [vmem:[#allocation2 + $0xe0] sm:$0xff] %v9817_v20  ;;  %12065 = vst [vmem:[#allocation34_spill] sm:$0xff] %v9825_v7  ;;  %v9831_v62 = vadd.f32 %v9791_v27, %v1316_v49  ;;  %v9833_v53 = vmul.f32 0.012103356, %v1802_v14  ;;  %v1694_v60 = vadd.f32 %v1683_v44, %v1672_v42 }
 0x14e   : > { %v9811_v19 = vld [vmem:[#allocation2 + $0xc3] sm:$0xff]  ;;  %12064 = vst [vmem:[#allocation33_spill] sm:$0xff] %v9821_v37  ;;  %12066 = vst [vmem:[#allocation35_spill] sm:$0xff] %v9828_v23  ;;  %v9835_v56 = vld [vmem:[#allocation2 + $0x113] sm:$0xff]  ;;  %v1749_v34 = vadd.f32 %v1738_v51, %v1727_v17  ;;  %v9842_v35 = vmul.f32 0.42370537, %v1880_v29  ;;  %v1958_v59 = vadd.f32 %v1947_v25, %v1936_v58 }
 0x14f   : > { %v9813_v32 = vld [vmem:[#allocation2 + $0xc4] sm:$0xff]  ;;  %12067 = vst [vmem:[#allocation36_spill] sm:$0xff] %v9831_v62  ;;  %12068 = vst [vmem:[#allocation37_spill] sm:$0xff] %v9835_v56  ;;  %v2002_v1 = vld [vmem:[#allocation2 + $0x11a] sm:$0xff]  ;;  %v1803_v49 = vadd.f32 %v9811_v19, %v1781_v11  ;;  %v9850_v42 = vpop.f32.mrb[32].mxu1  ;;  %v7177_v8 = vpop.f32.mrb[33].mxu0  ;;  %v9861_v11 = vadd.f32 %v9755_v43, %v1247_v16 }
 0x150   : > { %v1782_v26 = vld [vmem:[#allocation2 + $0xc5] sm:$0xff]  ;;  %v9837_v37 = vld [vmem:[#allocation2 + $0x11d] sm:$0xff]  ;;  %v9844_v55 = vld [vmem:[#allocation2 + $0x115] sm:$0xff]  ;;  %v1847_v14 = vadd.f32 %v9813_v32, %v1835_v39  ;;  %v9852_v51 = vmul.f32 0.057342287, %v1846_v22  ;;  %981 = vst [vmem:[#allocation2 + $0x138] sm:$0xff] %v9850_v42  ;;  %v2013_v44 = vadd.f32 %v2002_v1, %v1991_v5  ;;  %v1193_v1 = vadd.f32 %v9778_v0, %v9677_v33 }
 0x151   : > { %12069 = vst [vmem:[#allocation38_spill] sm:$0xff] %v9844_v55  ;;  %v9848_v13 = vld [vmem:[#allocation2 + $0x11b] sm:$0xff]  ;;  %v1881_v28 = vadd.f32 %v9768_v52, %v1782_v26  ;;  %12071 = vst [vmem:[#allocation40_spill] sm:$0xff] %v9861_v11  ;;  %v1673_v29 = vld [vmem:[#allocation2 + $0xc7] sm:$0xff]  ;;  %v2145_v22 = vadd.f32 %v9835_v56, %v9837_v37  ;;  %v9866_v62 = vmul.f32 0.0016380112, %v9785_v36  ;;  %v1770_v56 = vadd.f32 %v1759_v10, %v1715_v47 }
 0x152   : > { %v9854_v17 = vld [vmem:[#allocation2 + $0x114] sm:$0xff]  ;;  %v9857_v40 = vld [vmem:[#allocation2 + $0x11c] sm:$0xff]  ;;  %v1684_v27 = vld [vmem:[#allocation2 + $0xc9] sm:$0xff]  ;;  %v9868_v52 = vmul.f32 0.0016380112, %v942_v48  ;;  %v7242_v58 = vpop.f32.mrb[33].mxu1  ;;  %v2067_v43 = vadd.f32 %v9848_v13, %v9844_v55 }
 0x153   : > { %12070 = vst [vmem:[#allocation39_spill] sm:$0xff] %v9854_v17  ;;  %v1315_v39 = vld [vmem:[#allocation2 + $0x54] sm:$0xff]  ;;  %v1705_v25 = vmul.f32 0.0020456284, %v1694_v60  ;;  %v1728_v23 = vld [vmem:[#allocation2 + $0xc6] sm:$0xff]  ;;  %v2111_v48 = vadd.f32 %v9857_v40, %v9854_v17  ;;  %v1695_v6 = vadd.f32 %v1684_v27, %v1673_v29  ;;  %v9894_v17 = vpop.f32.mrb[34].mxu1  ;;  %v9905_v29 = vadd.f32 %v9766_v46, %v1451_v30 }
 0x154   : > { %12072 = vst [vmem:[#allocation41_spill] sm:$0xff] %v9868_v52  ;;  %v9870_v7 = vmul.f32 0.00398434, %v1749_v34  ;;  %v1937_v8 = vld [vmem:[#allocation2 + $0x11f] sm:$0xff]  ;;  %v1739_v16 = vld [vmem:[#allocation2 + $0xca] sm:$0xff]  ;;  %v9884_v34 = vpop.f32.mrb[34].mxu0  ;;  %v9890_v33 = vadd.f32 %v1315_v39, %v9760_v41  ;;  %v1248_v39 = vadd.f32 %v9787_v15, %v1193_v1 }
 0x155   : > { %v1793_v5 = vld [vmem:[#allocation2 + $0xcb] sm:$0xff]  ;;  %v9876_v11 = vmul.f32 0.012103356, %v1803_v49  ;;  %v9878_v36 = vmul.f32 0.057342287, %v1847_v14  ;;  %v1992_v52 = vld [vmem:[#allocation2 + $0x11e] sm:$0xff]  ;;  %v1750_v47 = vadd.f32 %v1739_v16, %v1728_v23 }
 0x156   : > { %v9882_v60 = vld [vmem:[#allocation2 + $0xcc] sm:$0xff]  ;;  %v9886_v58 = vmul.f32 0.42370537, %v1881_v28  ;;  %v1969_v55 = vmul.f32 0.0020456284, %v1958_v59  ;;  %v1948_v61 = vld [vmem:[#allocation2 + $0x121] sm:$0xff]  ;;  %v1804_v49 = vadd.f32 %v1793_v5, %v1782_v26  ;;  %v1824_v26 = vadd.f32 %v9833_v53, %v1770_v56 }
 0x157   : > { %851 = vst [vmem:[#allocation2 + $0xe8] sm:$0xff] %v9884_v34  ;;  %v2024_v0 = vmul.f32 0.00398434, %v2013_v44  ;;  %v9892_v10 = vmul.f32 0.42370537, %v2145_v22  ;;  %v2003_v14 = vld [vmem:[#allocation2 + $0x122] sm:$0xff]  ;;  %v1848_v28 = vadd.f32 %v9882_v60, %v9813_v32 }
 0x158   : > { %12073 = vst [vmem:[#allocation42_spill] sm:$0xff] %v9886_v58  ;;  %v9896_v38 = vmul.f32 0.012103356, %v2067_v43  ;;  %v2057_v27 = vld [vmem:[#allocation2 + $0x123] sm:$0xff]  ;;  %982 = vst [vmem:[#allocation2 + $0x140] sm:$0xff] %v9894_v17  ;;  %v7180_v41 = vpop.f32.mrb[35].mxu0  ;;  %v1959_v43 = vadd.f32 %v1948_v61, %v1937_v8  ;;  %v1980_v15 = vadd.f32 %v1969_v55, %v9743_v18  ;;  %v2014_v1 = vadd.f32 %v2003_v14, %v1992_v52 }
 0x159   : > { %12074 = vst [vmem:[#allocation43_spill] sm:$0xff] %v9892_v10  ;;  %v9900_v59 = vld [vmem:[#allocation2 + $0x124] sm:$0xff]  ;;  %12075 = vst [vmem:[#allocation44_spill] sm:$0xff] %v9905_v29  ;;  %v9908_v23 = vmul.f32 0.057342287, %v2111_v48  ;;  %v1674_v44 = vld [vmem:[#allocation2 + $0xcf] sm:$0xff]  ;;  %v9912_v10 = vadd.f32 %v9798_v31, %v9692_v21  ;;  %v1716_v41 = vadd.f32 %v1705_v25, %v9739_v2  ;;  %v2068_v61 = vadd.f32 %v2057_v27, %v9837_v37 }
 0x15a   : > { %v1938_v22 = vld [vmem:[#allocation2 + $0x127] sm:$0xff]  ;;  %v1685_v16 = vld [vmem:[#allocation2 + $0xd1] sm:$0xff]  ;;  %v7245_v5 = vpop.f32.mrb[35].mxu1  ;;  %v1706_v30 = vmul.f32 0.0020456284, %v1695_v6  ;;  %v2112_v8 = vadd.f32 %v9900_v59, %v9857_v40  ;;  %v1686_v21 = vld [vmem:[#allocation2 + $0xd9] sm:$0xff]  ;;  %v9924_v52 = vadd.f32 %v9789_v50, %v1248_v39  ;;  %v9927_v40 = vadd.f32 %v9852_v51, %v1824_v26 }
 0x15b   : > { %12076 = vst [vmem:[#allocation45_spill] sm:$0xff] %v9908_v23  ;;  %v1740_v32 = vld [vmem:[#allocation2 + $0xd2] sm:$0xff]  ;;  %12077 = vst [vmem:[#allocation46_spill] sm:$0xff] %v9912_v10  ;;  %v1993_v46 = vld [vmem:[#allocation2 + $0x126] sm:$0xff]  ;;  %v1761_v29 = vmul.f32 0.00398434, %v1750_v47  ;;  %v1696_v25 = vadd.f32 %v1685_v16, %v1674_v44 }
 0x15c   : > { %v1949_v53 = vld [vmem:[#allocation2 + $0x129] sm:$0xff]  ;;  %v9916_v23 = vmul.f32 0.012103356, %v1804_v49  ;;  %v9921_v31 = vmul.f32 0.057342287, %v1848_v28  ;;  %v1675_v2 = vld [vmem:[#allocation2 + $0xd7] sm:$0xff]  ;;  %v1771_v28 = vadd.f32 %v9870_v7, %v1716_v41  ;;  %v1717_v27 = vadd.f32 %v1706_v30, %v9770_v3 }
 0x15d   : > { %v2004_v56 = vld [vmem:[#allocation2 + $0x12a] sm:$0xff]  ;;  %v1741_v6 = vld [vmem:[#allocation2 + $0xda] sm:$0xff]  ;;  %v826_v55 = vpop.f32.mrb[36].mxu0  ;;  %v1970_v14 = vmul.f32 0.0020456284, %v1959_v43  ;;  %v1960_v5 = vadd.f32 %v1949_v53, %v1938_v22  ;;  %v1697_v50 = vadd.f32 %v1686_v21, %v1675_v2  ;;  %v2005_v39 = vld [vmem:[#allocation2 + $0x132] sm:$0xff] }
 0x15e   : > { %v1729_v48 = vld [vmem:[#allocation2 + $0xce] sm:$0xff]  ;;  %v1730_v47 = vld [vmem:[#allocation2 + $0xd6] sm:$0xff]  ;;  %v2015_v10 = vadd.f32 %v2004_v56, %v1993_v46  ;;  %852 = vst [vmem:[#allocation2 + $0xf0] sm:$0xff] %v826_v55  ;;  %v2025_v16 = vmul.f32 0.00398434, %v2014_v1  ;;  %v1687_v43 = vld [vmem:[#allocation2 + $0xe1] sm:$0xff] }
 0x15f   : > { %v1751_v18 = vadd.f32 %v1740_v32, %v1729_v48  ;;  %v1939_v49 = vld [vmem:[#allocation2 + $0x12f] sm:$0xff]  ;;  %v2035_v48 = vadd.f32 %v2024_v0, %v1980_v15  ;;  %v2047_v58 = vld [vmem:[#allocation2 + $0x125] sm:$0xff]  ;;  %v9933_v22 = vmul.f32 0.012103356, %v2068_v61  ;;  %v9935_v46 = vmul.f32 0.057342287, %v2112_v8 }
 0x160   : > { %v1950_v37 = vld [vmem:[#allocation2 + $0x131] sm:$0xff]  ;;  %v1676_v53 = vld [vmem:[#allocation2 + $0xdf] sm:$0xff]  ;;  %v1752_v51 = vadd.f32 %v1741_v6, %v1730_v47  ;;  %v1707_v26 = vmul.f32 0.0020456284, %v1696_v25  ;;  %v9938_v7 = vmul.f32 0.0016380112, %v9817_v20  ;;  %v1825_v61 = vadd.f32 %v9876_v11, %v1771_v28 }
 0x161   : > { %v9931_v44 = vld [vmem:[#allocation2 + $0xcd] sm:$0xff]  ;;  %v1762_v56 = vmul.f32 0.00398434, %v1751_v18  ;;  %v1961_v3 = vadd.f32 %v1950_v37, %v1939_v49  ;;  %v1971_v30 = vmul.f32 0.0020456284, %v1960_v5  ;;  %v1698_v0 = vadd.f32 %v1687_v43, %v1676_v53  ;;  %v957_v15 = vpop.f32.mrb[36].mxu1 }
 0x162   : > { %12078 = vst [vmem:[#allocation47_spill] sm:$0xff] %v9931_v44  ;;  %v1994_v32 = vld [vmem:[#allocation2 + $0x12e] sm:$0xff]  ;;  %v9942_v1 = vmul.f32 0.00398434, %v2015_v10  ;;  %v1772_v8 = vadd.f32 %v1761_v29, %v1717_v27  ;;  %v1981_v2 = vadd.f32 %v1970_v14, %v9776_v24  ;;  %v1708_v25 = vmul.f32 0.0020456284, %v1697_v50 }
 0x163   : > { %v9940_v41 = vld [vmem:[#allocation2 + $0xd4] sm:$0xff]  ;;  %v2016_v21 = vadd.f32 %v2005_v39, %v1994_v32  ;;  %v2102_v6 = vld [vmem:[#allocation2 + $0x12c] sm:$0xff]  ;;  %983 = vst [vmem:[#allocation2 + $0x148] sm:$0xff] %v957_v15  ;;  %v7183_v20 = vpop.f32.mrb[37].mxu0  ;;  %v7248_v47 = vpop.f32.mrb[37].mxu1  ;;  %v9947_v49 = vadd.f32 %v9896_v38, %v2035_v48  ;;  %v9951_v10 = vadd.f32 %v9811_v19, %v9931_v44  ;;  %v9959_v14 = vadd.f32 %v9848_v13, %v2047_v58  ;;  %v1742_v27 = vld [vmem:[#allocation2 + $0xe2] sm:$0xff] }
 0x164   : > { %12079 = vst [vmem:[#allocation48_spill] sm:$0xff] %v9940_v41  ;;  %v1940_v18 = vld [vmem:[#allocation2 + $0x137] sm:$0xff]  ;;  %v1763_v5 = vmul.f32 0.00398434, %v1752_v51  ;;  %v9954_v11 = vmul.f32 0.0016380112, %v9850_v42  ;;  %v1718_v37 = vadd.f32 %v1707_v26, %v9794_v9  ;;  %v9970_v42 = vadd.f32 %v9940_v41, %v9882_v60 }
 0x165   : > { %v1951_v55 = vld [vmem:[#allocation2 + $0x139] sm:$0xff]  ;;  %12080 = vst [vmem:[#allocation49_spill] sm:$0xff] %v9951_v10  ;;  %v9956_v29 = vpop.f32.mrb[38].mxu0  ;;  %v962_v24 = vpop.f32.mrb[38].mxu1  ;;  %12081 = vst [vmem:[#allocation50_spill] sm:$0xff] %v9959_v14  ;;  %v9976_v43 = vadd.f32 %v2025_v16, %v1981_v2  ;;  %v1719_v26 = vadd.f32 %v1708_v25, %v9866_v62  ;;  %v10007_v47 = vadd.f32 %v9842_v35, %v9927_v40  ;;  %v12093_v40 = vld [vmem:[#allocation32_spill] sm:$0xff] }
 0x166   : > { %v9962_v28 = vmul.f32 0.0020456284, %v1961_v3  ;;  %v9965_v38 = vmul.f32 0.0016380112, %v9884_v34  ;;  %853 = vst [vmem:[#allocation2 + $0xf8] sm:$0xff] %v9956_v29  ;;  %984 = vst [vmem:[#allocation2 + $0x150] sm:$0xff] %v962_v24  ;;  %v1962_v58 = vadd.f32 %v1951_v55, %v1940_v18  ;;  %v1826_v3 = vadd.f32 %v9916_v23, %v1772_v8 }
 0x167   : > { %v7186_v19 = vpop.f32.mrb[39].mxu0  ;;  %12083 = vst [vmem:[#allocation52_spill] sm:$0xff] %v9970_v42  ;;  %v1731_v32 = vld [vmem:[#allocation2 + $0xde] sm:$0xff]  ;;  %v9972_v50 = vmul.f32 0.00398434, %v2016_v21  ;;  %v7251_v9 = vpop.f32.mrb[39].mxu1  ;;  %v9985_v21 = vadd.f32 %v1971_v30, %v9815_v12  ;;  %v9995_v12 = vadd.f32 %v1762_v56, %v1718_v37 }
 0x168   : > { %12082 = vst [vmem:[#allocation51_spill] sm:$0xff] %v9965_v38  ;;  %v1709_v13 = vmul.f32 0.0020456284, %v1698_v0  ;;  %v9974_v39 = vpop.f32.mrb[40].mxu0  ;;  %v1995_v34 = vld [vmem:[#allocation2 + $0x136] sm:$0xff]  ;;  %v967_v51 = vpop.f32.mrb[40].mxu1  ;;  %v9988_v0 = vadd.f32 %v2102_v6, %v9900_v59  ;;  %v9992_v18 = vadd.f32 %v1742_v27, %v1731_v32  ;;  %v1869_v59 = vadd.f32 %v9878_v36, %v1825_v61 }
 0x169   : > { %v9979_v48 = vmul.f32 0.0016380112, %v9894_v17  ;;  %v2006_v53 = vld [vmem:[#allocation2 + $0x13a] sm:$0xff]  ;;  %854 = vst [vmem:[#allocation2 + $0x100] sm:$0xff] %v9974_v39  ;;  %v7189_v60 = vpop.f32.mrb[41].mxu0  ;;  %985 = vst [vmem:[#allocation2 + $0x158] sm:$0xff] %v967_v51  ;;  %v10011_v27 = vadd.f32 %v1763_v5, %v1719_v26  ;;  %v10014_v19 = vadd.f32 %v9921_v31, %v1826_v3 }
 0x16a   : > { %12085 = vst [vmem:[#allocation54_spill] sm:$0xff] %v9988_v0  ;;  %v7254_v16 = vpop.f32.mrb[41].mxu1  ;;  %v841_v15 = vpop.f32.mrb[42].mxu0  ;;  %v1332_v17 = vmul.f32 0.057342287, %v9699_v63  ;;  %12086 = vst [vmem:[#allocation55_spill] sm:$0xff] %v9992_v18  ;;  %v10000_v8 = vadd.f32 %v2006_v53, %v1995_v34  ;;  %v10003_v20 = vadd.f32 %v1709_v13, %v9938_v7 }
 0x16b   : > { %12084 = vst [vmem:[#allocation53_spill] sm:$0xff] %v9979_v48  ;;  %v1333_v2 = vmul.f32 0.057342287, %v9708_v54  ;;  %v1688_v55 = vld [vmem:[#allocation2 + $0xe9] sm:$0xff]  ;;  %855 = vst [vmem:[#allocation2 + $0x108] sm:$0xff] %v841_v15  ;;  %v972_v62 = vpop.f32.mrb[42].mxu1 }
 0x16c   : > { %v7192_v25 = vpop.f32.mrb[43].mxu0  ;;  %v1334_v23 = vmul.f32 0.057342287, %v9732_v4  ;;  %12087 = vst [vmem:[#allocation56_spill] sm:$0xff] %v9995_v12  ;;  %v9998_v30 = vmul.f32 0.0020456284, %v1962_v58  ;;  %v1343_v37 = vadd.f32 %v1332_v17, %v9723_v45 }
 0x16d   : > { %12088 = vst [vmem:[#allocation57_spill] sm:$0xff] %v10000_v8  ;;  %v1743_v6 = vld [vmem:[#allocation2 + $0xea] sm:$0xff]  ;;  %986 = vst [vmem:[#allocation2 + $0x160] sm:$0xff] %v972_v62  ;;  %v1053_v63 = vpop.f32.mrb[44].mxu0  ;;  %v7257_v54 = vpop.f32.mrb[43].mxu1  ;;  %v1941_v7 = vld [vmem:[#allocation2 + $0x13f] sm:$0xff] }
 0x16e   : > { %12089 = vst [vmem:[#allocation58_spill] sm:$0xff] %v10003_v20  ;;  %12090 = vst [vmem:[#allocation59_spill] sm:$0xff] %v10007_v47  ;;  %v1677_v4 = vld [vmem:[#allocation2 + $0xe7] sm:$0xff]  ;;  %v7292_v24 = vpop.f32.mrb[45].mxu0  ;;  %v1083_v36 = vpop.f32.mrb[44].mxu1  ;;  %v12097_v26 = vld [vmem:[#allocation12_spill] sm:$0xff] }
 0x16f   : > { %v1732_v56 = vld [vmem:[#allocation2 + $0xe6] sm:$0xff]  ;;  %1107 = vst [vmem:[#allocation2 + $0x168] sm:$0xff] %v1053_v63  ;;  %v1335_v61 = vmul.f32 0.057342287, %v9774_v57  ;;  %12091 = vst [vmem:[#allocation60_spill] sm:$0xff] %v10011_v27  ;;  %v10016_v32 = vadd.f32 %v1688_v55, %v1677_v4  ;;  %v1058_v13 = vpop.f32.mrb[46].mxu0 }
 0x170   : > { %12092 = vst [vmem:[#allocation61_spill] sm:$0xff] %v10014_v19  ;;  %1113 = vst [vmem:[#allocation2 + $0x198] sm:$0xff] %v1083_v36  ;;  %v7310_v35 = vpop.f32.mrb[45].mxu1  ;;  %v1336_v58 = vmul.f32 0.057342287, %v12093_v40  ;;  %v12094_v34 = vld [vmem:[#allocation26_spill] sm:$0xff]  ;;  %v10026_v16 = vadd.f32 %v1743_v6, %v1732_v56 }
 0x171   : > { %v1337_v9 = vmul.f32 0.057342287, %v9890_v33  ;;  %v1344_v53 = vadd.f32 %v1333_v2, %v12094_v34  ;;  %1108 = vst [vmem:[#allocation2 + $0x170] sm:$0xff] %v1058_v13  ;;  %v7295_v57 = vpop.f32.mrb[47].mxu0  ;;  %v1088_v45 = vpop.f32.mrb[46].mxu1  ;;  %v12095_v5 = vld [vmem:[#allocation31_spill] sm:$0xff] }
 0x172   : > { %v10022_v51 = vadd.f32 %v1334_v23, %v12095_v5  ;;  %v12096_v31 = vld [vmem:[#allocation11_spill] sm:$0xff]  ;;  %v1364_v3 = vmul.f32 0.42370537, %v12097_v26  ;;  %12098 = vst [vmem:[#allocation32_spill] sm:$0xff] %v10026_v16  ;;  %1114 = vst [vmem:[#allocation2 + $0x1a0] sm:$0xff] %v1088_v45  ;;  %v7313_v17 = vpop.f32.mrb[47].mxu1 }
 0x173   : > { %v1363_v60 = vmul.f32 0.42370537, %v12096_v31  ;;  %v1952_v15 = vld [vmem:[#allocation2 + $0x141] sm:$0xff]  ;;  %v12100_v33 = vld [vmem:[#allocation40_spill] sm:$0xff]  ;;  %v1063_v40 = vpop.f32.mrb[48].mxu0  ;;  %v1093_v34 = vpop.f32.mrb[48].mxu1  ;;  %v10037_v6 = vadd.f32 %v1337_v9, %v9924_v52 }
 0x174   : > { %v12099_v55 = vld [vmem:[#allocation34_spill] sm:$0xff]  ;;  %v10032_v2 = vadd.f32 %v1336_v58, %v12100_v33  ;;  %v1946_v24 = vld [vmem:[#allocation2 + $0x111] sm:$0xff]  ;;  %v12104_v45 = vld [vmem:[#allocation23_spill] sm:$0xff]  ;;  %v10046_v17 = vmul.f32 0.0016380112, %v1053_v63  ;;  %1109 = vst [vmem:[#allocation2 + $0x178] sm:$0xff] %v1063_v40 }
 0x175   : > { %v10029_v62 = vadd.f32 %v1335_v61, %v12099_v55  ;;  %v12101_v25 = vld [vmem:[#allocation14_spill] sm:$0xff]  ;;  %v12103_v56 = vld [vmem:[#allocation21_spill] sm:$0xff]  ;;  %v10041_v61 = vadd.f32 %v1363_v60, %v12104_v45  ;;  %v12106_v5 = vld [vmem:[#allocation27_spill] sm:$0xff]  ;;  %1115 = vst [vmem:[#allocation2 + $0x1a8] sm:$0xff] %v1093_v34  ;;  %v7298_v55 = vpop.f32.mrb[49].mxu0  ;;  %v10055_v45 = vadd.f32 %v1952_v15, %v1941_v7  ;;  %v7316_v14 = vpop.f32.mrb[49].mxu1 }
 0x176   : > { %v1365_v54 = vmul.f32 0.42370537, %v12101_v25  ;;  %v12102_v4 = vld [vmem:[#allocation18_spill] sm:$0xff]  ;;  %v1367_v57 = vmul.f32 0.42370537, %v12103_v56  ;;  %v10044_v58 = vadd.f32 %v1364_v3, %v12106_v5  ;;  %v1689_v26 = vld [vmem:[#allocation2 + $0xf1] sm:$0xff]  ;;  %v10069_v14 = vadd.f32 %v9998_v30, %v9954_v11 }
 0x177   : > { %v1366_v23 = vmul.f32 0.42370537, %v12102_v4  ;;  %v1996_v36 = vld [vmem:[#allocation2 + $0x13e] sm:$0xff]  ;;  %12105 = vst [vmem:[#allocation26_spill] sm:$0xff] %v10041_v61  ;;  %v12109_v4 = vld [vmem:[#allocation28_spill] sm:$0xff]  ;;  %v1390_v9 = vld [vmem:[#allocation2 + $0x88] sm:$0xff] }
 0x178   : > { %v2007_v35 = vld [vmem:[#allocation2 + $0x142] sm:$0xff]  ;;  %12107 = vst [vmem:[#allocation31_spill] sm:$0xff] %v10044_v58  ;;  %v10050_v52 = vadd.f32 %v1365_v54, %v12109_v4  ;;  %v1678_v60 = vld [vmem:[#allocation2 + $0xef] sm:$0xff]  ;;  %12113 = vst [vmem:[#allocation34_spill] sm:$0xff] %v10055_v45  ;;  %v10073_v19 = vmul.f32 0.0016380112, %v1058_v13 }
 0x179   : > { %v1389_v31 = vld [vmem:[#allocation2 + $0x80] sm:$0xff]  ;;  %v1879_v3 = vld [vmem:[#allocation2 + $0x10d] sm:$0xff]  ;;  %v12114_v63 = vld [vmem:[#allocation25_spill] sm:$0xff]  ;;  %12119 = vst [vmem:[#allocation18_spill] sm:$0xff] %v10069_v14  ;;  %v1068_v13 = vpop.f32.mrb[50].mxu0  ;;  %v1098_v27 = vpop.f32.mrb[50].mxu1 }
 0x17a   : > { %v12108_v33 = vld [vmem:[#allocation22_spill] sm:$0xff]  ;;  %12110 = vst [vmem:[#allocation11_spill] sm:$0xff] %v10050_v52  ;;  %v1935_v5 = vld [vmem:[#allocation2 + $0x10f] sm:$0xff]  ;;  %v1369_v0 = vmul.f32 0.42370537, %v12114_v63  ;;  %v12117_v55 = vld [vmem:[#allocation41_spill] sm:$0xff]  ;;  %v10071_v63 = vadd.f32 %v2007_v35, %v1996_v36 }
 0x17b   : > { %v1368_v25 = vmul.f32 0.42370537, %v12108_v33  ;;  %v12111_v56 = vld [vmem:[#allocation42_spill] sm:$0xff]  ;;  %v10063_v33 = vadd.f32 %v9962_v28, %v12117_v55  ;;  %v1953_v4 = vld [vmem:[#allocation2 + $0x149] sm:$0xff]  ;;  %v1392_v15 = vld [vmem:[#allocation2 + $0x98] sm:$0xff]  ;;  %1110 = vst [vmem:[#allocation2 + $0x180] sm:$0xff] %v1068_v13 }
 0x17c   : > { %v10053_v47 = vadd.f32 %v12111_v56, %v1869_v59  ;;  %v12115_v8 = vld [vmem:[#allocation46_spill] sm:$0xff]  ;;  %v1845_v48 = vld [vmem:[#allocation2 + $0x10c] sm:$0xff]  ;;  %v1957_v59 = vadd.f32 %v1946_v24, %v1935_v5  ;;  %v10065_v56 = vadd.f32 %v1367_v57, %v1343_v37  ;;  %12120 = vst [vmem:[#allocation21_spill] sm:$0xff] %v10071_v63  ;;  %v10078_v37 = vadd.f32 %v1689_v26, %v1678_v60  ;;  %v12123_v57 = vld [vmem:[#allocation37_spill] sm:$0xff] }
 0x17d   : > { %v10059_v34 = vadd.f32 %v1366_v23, %v12115_v8  ;;  %v1942_v54 = vld [vmem:[#allocation2 + $0x147] sm:$0xff]  ;;  %v1391_v7 = vld [vmem:[#allocation2 + $0x90] sm:$0xff]  ;;  %v10076_v45 = vadd.f32 %v1368_v25, %v1344_v53  ;;  %v2066_v5 = vadd.f32 %v12123_v57, %v1879_v3  ;;  %v12124_v10 = vld [vmem:[#allocation33_spill] sm:$0xff]  ;;  %v10083_v36 = vmul.f32 0.0016380112, %v1389_v31  ;;  %1116 = vst [vmem:[#allocation2 + $0x1b0] sm:$0xff] %v1098_v27 }
 0x17e   : > { %12112 = vst [vmem:[#allocation12_spill] sm:$0xff] %v10053_v47  ;;  %12118 = vst [vmem:[#allocation14_spill] sm:$0xff] %v10065_v56  ;;  %v2001_v8 = vld [vmem:[#allocation2 + $0x112] sm:$0xff]  ;;  %v12121_v28 = vld [vmem:[#allocation30_spill] sm:$0xff]  ;;  %v1371_v42 = vmul.f32 0.42370537, %v12124_v10 }
 0x17f   : > { %12116 = vst [vmem:[#allocation40_spill] sm:$0xff] %v10059_v34  ;;  %v1801_v23 = vld [vmem:[#allocation2 + $0x10b] sm:$0xff]  ;;  %v1370_v55 = vmul.f32 0.42370537, %v12121_v28  ;;  %12122 = vst [vmem:[#allocation23_spill] sm:$0xff] %v10076_v45  ;;  %v1393_v24 = vld [vmem:[#allocation2 + $0xa0] sm:$0xff]  ;;  %v10087_v28 = vadd.f32 %v1369_v0, %v10022_v51 }
 0x180   : > { %v1990_v47 = vld [vmem:[#allocation2 + $0x10e] sm:$0xff]  ;;  %v1968_v35 = vmul.f32 0.0020456284, %v1957_v59  ;;  %v10089_v53 = vmul.f32 0.0016380112, %v1390_v9  ;;  %v12128_v25 = vld [vmem:[#allocation38_spill] sm:$0xff] }
 0x181   : > { %v12125_v11 = vld [vmem:[#allocation35_spill] sm:$0xff]  ;;  %12127 = vst [vmem:[#allocation27_spill] sm:$0xff] %v10087_v28  ;;  %v2012_v26 = vadd.f32 %v2001_v8, %v1990_v47  ;;  %v2144_v60 = vadd.f32 %v12128_v25, %v1801_v23  ;;  %v10092_v57 = vmul.f32 0.0016380112, %v1063_v40  ;;  %v7301_v10 = vpop.f32.mrb[51].mxu0  ;;  %v7319_v31 = vpop.f32.mrb[51].mxu1  ;;  %v10097_v0 = vadd.f32 %v1370_v55, %v10029_v62 }
 0x182   : > { %v1372_v30 = vmul.f32 0.42370537, %v12125_v11  ;;  %v12126_v14 = vld [vmem:[#allocation39_spill] sm:$0xff]  ;;  %v10094_v11 = vadd.f32 %v1953_v4, %v1942_v54  ;;  %v10099_v51 = vmul.f32 0.0016380112, %v1391_v7  ;;  %v2090_v40 = vadd.f32 %v9933_v22, %v9976_v43  ;;  %v1103_v23 = vpop.f32.mrb[52].mxu1 }
 0x183   : > { %v2110_v63 = vadd.f32 %v12126_v14, %v1845_v48  ;;  %v2210_v3 = vld [vmem:[#allocation2 + $0x169] sm:$0xff]  ;;  %12129 = vst [vmem:[#allocation22_spill] sm:$0xff] %v10092_v57  ;;  %v1073_v14 = vpop.f32.mrb[52].mxu0  ;;  %12131 = vst [vmem:[#allocation42_spill] sm:$0xff] %v10097_v0  ;;  %v10101_v47 = vmul.f32 0.0016380112, %v1392_v15  ;;  %v10111_v62 = vadd.f32 %v9942_v1, %v9985_v21 }
 0x184   : > { %v1394_v59 = vld [vmem:[#allocation2 + $0xa8] sm:$0xff]  ;;  %12130 = vst [vmem:[#allocation28_spill] sm:$0xff] %v10094_v11  ;;  %v10105_v27 = vmul.f32 0.012103356, %v2066_v5  ;;  %1111 = vst [vmem:[#allocation2 + $0x188] sm:$0xff] %v1073_v14  ;;  %v7304_v54 = vpop.f32.mrb[53].mxu0  ;;  %v10124_v21 = vadd.f32 %v1372_v30, %v10037_v6  ;;  %v10141_v6 = vmul.f32 %v10044_v58, %v10044_v58 }
 0x185   : > { %v2199_v48 = vld [vmem:[#allocation2 + $0x167] sm:$0xff]  ;;  %v1413_v8 = vld [vmem:[#allocation2 + $0x8f] sm:$0xff]  ;;  %v10107_v4 = vmul.f32 0.0016380112, %v1393_v24  ;;  %v1414_v13 = vld [vmem:[#allocation2 + $0x97] sm:$0xff]  ;;  %12132 = vst [vmem:[#allocation25_spill] sm:$0xff] %v10111_v62  ;;  %v10119_v24 = vadd.f32 %v1371_v42, %v10032_v2 }
 0x186   : > { %v1412_v9 = vld [vmem:[#allocation2 + $0x87] sm:$0xff]  ;;  %v12133_v7 = vld [vmem:[#allocation45_spill] sm:$0xff]  ;;  %v12134_v55 = vld [vmem:[#allocation24_spill] sm:$0xff]  ;;  %v10116_v10 = vmul.f32 0.057342287, %v2110_v63  ;;  %v2221_v43 = vadd.f32 %v2210_v3, %v2199_v48  ;;  %1117 = vst [vmem:[#allocation2 + $0x1b8] sm:$0xff] %v1103_v23  ;;  %v10128_v63 = vadd.f32 %v9972_v50, %v10063_v33 }
 0x187   : > { %v2133_v15 = vadd.f32 %v12133_v7, %v9947_v49  ;;  %v1979_v25 = vadd.f32 %v1968_v35, %v12134_v55  ;;  %v2254_v22 = vld [vmem:[#allocation2 + $0x166] sm:$0xff]  ;;  %v7322_v31 = vpop.f32.mrb[53].mxu1  ;;  %12135 = vst [vmem:[#allocation46_spill] sm:$0xff] %v10119_v24  ;;  %v1424_v54 = vld [vmem:[#allocation2 + $0x91] sm:$0xff]  ;;  %v2023_v57 = vmul.f32 0.00398434, %v2012_v26  ;;  %v10133_v7 = vadd.f32 %v9935_v46, %v2090_v40 }
 0x188   : > { %v2265_v5 = vld [vmem:[#allocation2 + $0x16a] sm:$0xff]  ;;  %v10121_v1 = vmul.f32 0.42370537, %v2144_v60  ;;  %12136 = vst [vmem:[#allocation41_spill] sm:$0xff] %v10124_v21  ;;  %v1415_v49 = vld [vmem:[#allocation2 + $0x9f] sm:$0xff]  ;;  %12137 = vst [vmem:[#allocation30_spill] sm:$0xff] %v10128_v63  ;;  %v10137_v26 = vmul.f32 %v10041_v61, %v10041_v61  ;;  %v1435_v31 = vadd.f32 %v1424_v54, %v1413_v8 }
 0x189   : > { %v1423_v14 = vld [vmem:[#allocation2 + $0x89] sm:$0xff]  ;;  %v1425_v35 = vld [vmem:[#allocation2 + $0x99] sm:$0xff]  ;;  %v2211_v3 = vld [vmem:[#allocation2 + $0x171] sm:$0xff]  ;;  %v1078_v48 = vpop.f32.mrb[54].mxu0  ;;  %v10130_v23 = vmul.f32 0.0016380112, %v1394_v59  ;;  %v10143_v50 = vadd.f32 %v2265_v5, %v2254_v22  ;;  %v2034_v24 = vadd.f32 %v2023_v57, %v1979_v25  ;;  %v10150_v22 = vmul.f32 %v10050_v52, %v10050_v52 }
 0x18a   : > { %v1416_v42 = vld [vmem:[#allocation2 + $0xa7] sm:$0xff]  ;;  %12138 = vst [vmem:[#allocation37_spill] sm:$0xff] %v10133_v7  ;;  %12139 = vst [vmem:[#allocation33_spill] sm:$0xff] %v10137_v26  ;;  %v2200_v30 = vld [vmem:[#allocation2 + $0x16f] sm:$0xff]  ;;  %v7307_v60 = vpop.f32.mrb[55].mxu0  ;;  %v1434_v55 = vadd.f32 %v1423_v14, %v1412_v9  ;;  %v1436_v7 = vadd.f32 %v1425_v35, %v1414_v13  ;;  %v10159_v57 = vmul.f32 %v10065_v56, %v10065_v56 }
 0x18b   : > { %v1426_v2 = vld [vmem:[#allocation2 + $0xa1] sm:$0xff]  ;;  %12140 = vst [vmem:[#allocation35_spill] sm:$0xff] %v10141_v6  ;;  %12141 = vst [vmem:[#allocation39_spill] sm:$0xff] %v10143_v50  ;;  %v2266_v33 = vld [vmem:[#allocation2 + $0x172] sm:$0xff]  ;;  %v2232_v61 = vmul.f32 0.0020456284, %v2221_v43  ;;  %v2222_v13 = vadd.f32 %v2211_v3, %v2200_v30  ;;  %v10170_v56 = vmul.f32 %v10087_v28, %v10087_v28  ;;  %v2088_v3 = vadd.f32 %v10105_v27, %v2034_v24 }
 0x18c   : > { %1112 = vst [vmem:[#allocation2 + $0x190] sm:$0xff] %v1078_v48  ;;  %v1427_v59 = vld [vmem:[#allocation2 + $0xa9] sm:$0xff]  ;;  %v1466_v21 = vld [vmem:[#allocation2 + $0x7e] sm:$0xff]  ;;  %v1469_v6 = vld [vmem:[#allocation2 + $0x96] sm:$0xff]  ;;  %v1437_v5 = vadd.f32 %v1426_v2, %v1415_v49  ;;  %v10164_v2 = vmul.f32 %v10076_v45, %v10076_v45 }
 0x18d   : > { %v12142_v46 = vld [vmem:[#allocation43_spill] sm:$0xff]  ;;  %12144 = vst [vmem:[#allocation45_spill] sm:$0xff] %v10150_v22  ;;  %v12145_v48 = vld [vmem:[#allocation16_spill] sm:$0xff]  ;;  %v1470_v9 = vld [vmem:[#allocation2 + $0x9e] sm:$0xff]  ;;  %v1438_v25 = vadd.f32 %v1427_v59, %v1416_v42  ;;  %v1446_v22 = vmul.f32 0.0020456284, %v1435_v31 }
 0x18e   : > { %v10146_v40 = vadd.f32 %v12142_v46, %v2133_v15  ;;  %v2255_v26 = vld [vmem:[#allocation2 + $0x16e] sm:$0xff]  ;;  %v1467_v63 = vld [vmem:[#allocation2 + $0x86] sm:$0xff]  ;;  %v1443_v60 = vmul.f32 0.0020456284, %v12145_v48  ;;  %v10155_v15 = vmul.f32 %v10059_v34, %v10059_v34  ;;  %12147 = vst [vmem:[#allocation43_spill] sm:$0xff] %v10159_v57  ;;  %v1480_v46 = vld [vmem:[#allocation2 + $0x9a] sm:$0xff] }
 0x18f   : > { %v1468_v58 = vld [vmem:[#allocation2 + $0x8e] sm:$0xff]  ;;  %v1477_v8 = vld [vmem:[#allocation2 + $0x82] sm:$0xff]  ;;  %12149 = vst [vmem:[#allocation16_spill] sm:$0xff] %v10164_v2  ;;  %v10166_v48 = vadd.f32 %v2266_v33, %v2255_v26  ;;  %12151 = vst [vmem:[#allocation62_spill] sm:$0xff] %v10170_v56  ;;  %v1447_v42 = vmul.f32 0.0020456284, %v1436_v7  ;;  %v1491_v52 = vadd.f32 %v1480_v46, %v1469_v6  ;;  %v1457_v27 = vadd.f32 %v1446_v22, %v10099_v51 }
 0x190   : > { %12143 = vst [vmem:[#allocation38_spill] sm:$0xff] %v10146_v40  ;;  %v1478_v14 = vld [vmem:[#allocation2 + $0x8a] sm:$0xff]  ;;  %12146 = vst [vmem:[#allocation24_spill] sm:$0xff] %v10155_v15  ;;  %v1479_v35 = vld [vmem:[#allocation2 + $0x92] sm:$0xff]  ;;  %v1445_v40 = vmul.f32 0.0020456284, %v1434_v55  ;;  %v1488_v30 = vadd.f32 %v1477_v8, %v1466_v21  ;;  %v2132_v22 = vadd.f32 %v10116_v10, %v2088_v3  ;;  %v10202_v10 = vmul.f32 %v10097_v0, %v10097_v0 }
 0x191   : > { %v12148_v43 = vld [vmem:[#allocation20_spill] sm:$0xff]  ;;  %v1481_v49 = vld [vmem:[#allocation2 + $0xa2] sm:$0xff]  ;;  %v1489_v59 = vadd.f32 %v1478_v14, %v1467_v63  ;;  %v1490_v57 = vadd.f32 %v1479_v35, %v1468_v58  ;;  %v2233_v2 = vmul.f32 0.0020456284, %v2222_v13  ;;  %v1449_v26 = vmul.f32 0.0020456284, %v1438_v25 }
 0x192   : > { %v1444_v54 = vmul.f32 0.0020456284, %v12148_v43  ;;  %12150 = vst [vmem:[#allocation20_spill] sm:$0xff] %v10166_v48  ;;  %v1471_v15 = vld [vmem:[#allocation2 + $0xa6] sm:$0xff]  ;;  %v1448_v43 = vmul.f32 0.0020456284, %v1437_v5  ;;  %v1492_v45 = vadd.f32 %v1481_v49, %v1470_v9  ;;  %v1456_v28 = vadd.f32 %v1445_v40, %v10089_v53 }
 0x193   : > { %v1482_v34 = vld [vmem:[#allocation2 + $0xaa] sm:$0xff]  ;;  %v12152_v33 = vld [vmem:[#allocation9_spill] sm:$0xff]  ;;  %v1458_v63 = vadd.f32 %v1447_v42, %v10101_v47  ;;  %v1499_v6 = vmul.f32 0.00398434, %v1488_v30  ;;  %v1500_v5 = vmul.f32 0.00398434, %v1489_v59  ;;  %v10186_v47 = vadd.f32 %v2232_v61, %v10046_v17 }
 0x194   : > { %v1454_v55 = vadd.f32 %v1443_v60, %v12152_v33  ;;  %v1493_v31 = vadd.f32 %v1482_v34, %v1471_v15  ;;  %v1351_v48 = vld [vmem:[#allocation2 + $0x5d] sm:$0xff]  ;;  %v1455_v62 = vadd.f32 %v1444_v54, %v10083_v36  ;;  %v1459_v9 = vadd.f32 %v1448_v43, %v10107_v4  ;;  %v1517_v40 = vld [vmem:[#allocation2 + $0x65] sm:$0xff]  ;;  %v10210_v35 = vld [vmem:[#allocation2 + $0x75] sm:$0xff] }
 0x195   : > { %v2212_v50 = vld [vmem:[#allocation2 + $0x179] sm:$0xff]  ;;  %v1501_v60 = vmul.f32 0.00398434, %v1490_v57  ;;  %v1502_v34 = vmul.f32 0.00398434, %v1491_v52  ;;  %v1460_v36 = vadd.f32 %v1449_v26, %v10130_v23  ;;  %v10182_v51 = vld [vmem:[#allocation2 + $0x6b] sm:$0xff]  ;;  %v10198_v23 = vadd.f32 %v2233_v2, %v10073_v19 }
 0x196   : > { %v12153_v24 = vld [vmem:[#allocation13_spill] sm:$0xff]  ;;  %v1503_v8 = vmul.f32 0.00398434, %v1492_v45  ;;  %v1504_v53 = vmul.f32 0.00398434, %v1493_v31  ;;  %12155 = vst [vmem:[#allocation9_spill] sm:$0xff] %v10186_v47  ;;  %v10206_v17 = vadd.f32 %v1499_v6, %v1455_v62  ;;  %v1539_v43 = vadd.f32 %v10182_v51, %v1517_v40 }
 0x197   : > { %v1497_v21 = vmul.f32 0.00398434, %v12153_v24  ;;  %v12154_v58 = vld [vmem:[#allocation17_spill] sm:$0xff]  ;;  %v12157_v25 = vld [vmem:[#allocation19_spill] sm:$0xff]  ;;  %v10216_v19 = vadd.f32 %v1501_v60, %v1457_v27  ;;  %v10218_v2 = vadd.f32 %v1502_v34, %v1458_v63  ;;  %v12160_v24 = vld [vmem:[#allocation36_spill] sm:$0xff] }
 0x198   : > { %v1498_v7 = vmul.f32 0.00398434, %v12154_v58  ;;  %v2201_v14 = vld [vmem:[#allocation2 + $0x177] sm:$0xff]  ;;  %v1518_v52 = vld [vmem:[#allocation2 + $0x6d] sm:$0xff]  ;;  %v1527_v45 = vld [vmem:[#allocation2 + $0x63] sm:$0xff]  ;;  %12158 = vst [vmem:[#allocation17_spill] sm:$0xff] %v10198_v23  ;;  %v10220_v30 = vadd.f32 %v1503_v8, %v1459_v9  ;;  %v10229_v26 = vadd.f32 %v1504_v53, %v1460_v36 }
 0x199   : > { %v1271_v15 = vld [vmem:[#allocation2 + $0x5b] sm:$0xff]  ;;  %v10188_v13 = vadd.f32 %v2212_v50, %v2201_v14  ;;  %v10191_v4 = vadd.f32 %v1497_v21, %v12157_v25  ;;  %v10193_v57 = vld [vmem:[#allocation2 + $0x73] sm:$0xff]  ;;  %12159 = vst [vmem:[#allocation19_spill] sm:$0xff] %v10202_v10  ;;  %v10208_v50 = vadd.f32 %v1500_v5, %v1456_v28  ;;  %v10212_v46 = vld [vmem:[#allocation2 + $0x83] sm:$0xff]  ;;  %v1538_v3 = vadd.f32 %v1527_v45, %v1351_v48 }
 0x19a   : > { %v10195_v54 = vld [vmem:[#allocation2 + $0x7b] sm:$0xff]  ;;  %v10204_v61 = vadd.f32 %v1498_v7, %v1454_v55  ;;  %v10214_v49 = vld [vmem:[#allocation2 + $0x8b] sm:$0xff]  ;;  %v10226_v28 = vld [vmem:[#allocation2 + $0x93] sm:$0xff]  ;;  %v1540_v31 = vadd.f32 %v10193_v57, %v1518_v52  ;;  %v10241_v21 = vmul.f32 0.057342287, %v12160_v24  ;;  %v10251_v60 = vadd.f32 %v1517_v40, %v1271_v15 }
 0x19b   : > { %12156 = vst [vmem:[#allocation13_spill] sm:$0xff] %v10188_v13  ;;  %v2213_v42 = vld [vmem:[#allocation2 + $0x181] sm:$0xff]  ;;  %v10231_v33 = vld [vmem:[#allocation2 + $0x8d] sm:$0xff]  ;;  %v1541_v27 = vadd.f32 %v10195_v54, %v10210_v35  ;;  %v10243_v58 = vld [vmem:[#allocation2 + $0x95] sm:$0xff]  ;;  %v10254_v34 = vmul.f32 0.0016380112, %v9956_v29  ;;  %v10264_v24 = vadd.f32 %v10121_v1, %v2132_v22  ;;  %v10270_v23 = vadd.f32 %v1527_v45, %v1518_v52 }
 0x19c   : > { %v10222_v59 = vld [vmem:[#allocation2 + $0x7d] sm:$0xff]  ;;  %v10224_v62 = vld [vmem:[#allocation2 + $0x85] sm:$0xff]  ;;  %v1544_v14 = vadd.f32 %v10226_v28, %v10231_v33  ;;  %v1549_v36 = vmul.f32 0.012103356, %v1538_v3  ;;  %v10261_v25 = vmul.f32 0.0016380112, %v9974_v39 }
 0x19d   : > { %v10233_v48 = vld [vmem:[#allocation2 + $0x9b] sm:$0xff]  ;;  %v10235_v55 = vld [vmem:[#allocation2 + $0xa3] sm:$0xff]  ;;  %v1536_v6 = vld [vmem:[#allocation2 + $0xab] sm:$0xff]  ;;  %v1542_v5 = vadd.f32 %v10212_v46, %v10222_v59  ;;  %v1543_v9 = vadd.f32 %v10214_v49, %v10224_v62  ;;  %12161 = vst [vmem:[#allocation36_spill] sm:$0xff] %v10254_v34  ;;  %v1550_v40 = vmul.f32 0.012103356, %v1539_v43 }
 0x19e   : > { %v2202_v63 = vld [vmem:[#allocation2 + $0x17f] sm:$0xff]  ;;  %v1572_v53 = vld [vmem:[#allocation2 + $0x6c] sm:$0xff]  ;;  %12162 = vst [vmem:[#allocation63_spill] sm:$0xff] %v10261_v25  ;;  %12163 = vst [vmem:[#allocation64_spill] sm:$0xff] %v10264_v24  ;;  %v1545_v15 = vadd.f32 %v10233_v48, %v10243_v58  ;;  %v1551_v47 = vmul.f32 0.012103356, %v1540_v31 }
 0x19f   : > { %v10245_v7 = vld [vmem:[#allocation2 + $0x9d] sm:$0xff]  ;;  %v10256_v8 = vld [vmem:[#allocation2 + $0xa5] sm:$0xff]  ;;  %v1573_v10 = vld [vmem:[#allocation2 + $0x74] sm:$0xff]  ;;  %v1552_v39 = vmul.f32 0.012103356, %v1541_v27  ;;  %v10273_v11 = vadd.f32 %v2213_v42, %v2202_v63 }
 0x1a0   : > { %v1546_v29 = vadd.f32 %v10235_v55, %v10245_v7  ;;  %v1574_v0 = vld [vmem:[#allocation2 + $0x7c] sm:$0xff]  ;;  %v1575_v56 = vld [vmem:[#allocation2 + $0x84] sm:$0xff]  ;;  %v1547_v3 = vadd.f32 %v1536_v6, %v10256_v8  ;;  %v1576_v13 = vld [vmem:[#allocation2 + $0x8c] sm:$0xff]  ;;  %v1553_v1 = vmul.f32 0.012103356, %v1542_v5  ;;  %v1584_v34 = vadd.f32 %v1573_v10, %v1572_v53 }
 0x1a1   : > { %12164 = vst [vmem:[#allocation65_spill] sm:$0xff] %v10273_v11  ;;  %v1554_v22 = vmul.f32 0.012103356, %v1543_v9  ;;  %v12165_v24 = vld [vmem:[#allocation44_spill] sm:$0xff]  ;;  %v12166_v20 = vld [vmem:[#allocation29_spill] sm:$0xff]  ;;  %v1579_v25 = vld [vmem:[#allocation2 + $0xa4] sm:$0xff]  ;;  %v1585_v52 = vadd.f32 %v1574_v0, %v1573_v10  ;;  %v1586_v45 = vadd.f32 %v1575_v56, %v1574_v0  ;;  %v1587_v42 = vadd.f32 %v1576_v13, %v1575_v56 }
 0x1a2   : > { %v1560_v12 = vadd.f32 %v1549_v36, %v12165_v24  ;;  %v1577_v41 = vld [vmem:[#allocation2 + $0x94] sm:$0xff]  ;;  %v1583_v44 = vadd.f32 %v1572_v53, %v12166_v20  ;;  %v1555_v43 = vmul.f32 0.012103356, %v1544_v14  ;;  %v1578_v16 = vld [vmem:[#allocation2 + $0x9c] sm:$0xff]  ;;  %v1556_v18 = vmul.f32 0.012103356, %v1545_v15 }
 0x1a3   : > { %v1557_v6 = vmul.f32 0.012103356, %v1546_v29  ;;  %v12167_v31 = vld [vmem:[#allocation15_spill] sm:$0xff]  ;;  %v1558_v63 = vmul.f32 0.012103356, %v1547_v3  ;;  %v1562_v5 = vadd.f32 %v1551_v47, %v10191_v4  ;;  %v1563_v9 = vadd.f32 %v1552_v39, %v10204_v61 }
 0x1a4   : > { %v1561_v27 = vadd.f32 %v1550_v40, %v12167_v31  ;;  %v1580_v38 = vld [vmem:[#allocation2 + $0xac] sm:$0xff]  ;;  %v1588_v36 = vadd.f32 %v1577_v41, %v1576_v13  ;;  %v1564_v20 = vadd.f32 %v1553_v1, %v10206_v17  ;;  %v1589_v14 = vadd.f32 %v1578_v16, %v1577_v41 }
 0x1a5   : > { %v1590_v24 = vadd.f32 %v1579_v25, %v1578_v16  ;;  %v1594_v11 = vmul.f32 0.057342287, %v1583_v44  ;;  %v1591_v53 = vadd.f32 %v1580_v38, %v1579_v25  ;;  %v1595_v10 = vmul.f32 0.057342287, %v1584_v34  ;;  %v1526_v34 = vld [vmem:[#allocation2 + $0xad] sm:$0xff] }
 0x1a6   : > { %v1596_v0 = vmul.f32 0.057342287, %v1585_v52  ;;  %v1597_v15 = vmul.f32 0.057342287, %v1586_v45  ;;  %v1565_v29 = vadd.f32 %v1554_v22, %v10208_v50  ;;  %v1566_v40 = vadd.f32 %v1555_v43, %v10216_v19  ;;  %v1656_v43 = vld [vmem:[#allocation2 + $0xf0] sm:$0xff] }
 0x1a7   : > { %v1598_v56 = vmul.f32 0.057342287, %v1587_v42  ;;  %v1618_v47 = vadd.f32 %v10182_v51, %v10210_v35  ;;  %v1567_v4 = vadd.f32 %v1556_v18, %v10218_v2  ;;  %v1568_v13 = vadd.f32 %v1557_v6, %v10220_v30  ;;  %v1690_v2 = vld [vmem:[#allocation2 + $0xf9] sm:$0xff]  ;;  %v1691_v30 = vld [vmem:[#allocation2 + $0x101] sm:$0xff] }
 0x1a8   : > { %v1569_v41 = vadd.f32 %v1558_v63, %v10229_v26  ;;  %v1599_v16 = vmul.f32 0.057342287, %v1588_v36  ;;  %v1600_v44 = vmul.f32 0.057342287, %v1589_v14  ;;  %v1601_v38 = vmul.f32 0.057342287, %v1590_v24 }
 0x1a9   : > { %v1604_v61 = vadd.f32 %v10241_v21, %v1560_v12  ;;  %v1605_v17 = vadd.f32 %v1594_v11, %v1561_v27  ;;  %v1602_v50 = vmul.f32 0.057342287, %v1591_v53  ;;  %v1606_v25 = vadd.f32 %v1595_v10, %v1562_v5  ;;  %v1733_v24 = vld [vmem:[#allocation2 + $0xee] sm:$0xff] }
 0x1aa   : > { %v1607_v19 = vadd.f32 %v1596_v0, %v1563_v9  ;;  %v1608_v3 = vadd.f32 %v1597_v15, %v1564_v20  ;;  %v1609_v39 = vadd.f32 %v1598_v56, %v1565_v29  ;;  %v1619_v51 = vadd.f32 %v10193_v57, %v10222_v59  ;;  %v1734_v15 = vld [vmem:[#allocation2 + $0xf6] sm:$0xff]  ;;  %v1735_v29 = vld [vmem:[#allocation2 + $0xfe] sm:$0xff] }
 0x1ab   : > { %v1620_v18 = vadd.f32 %v10195_v54, %v10224_v62  ;;  %v1621_v35 = vadd.f32 %v10212_v46, %v10231_v33  ;;  %v1610_v26 = vadd.f32 %v1599_v16, %v1566_v40  ;;  %v1622_v12 = vadd.f32 %v10214_v49, %v10243_v58  ;;  %v1679_v62 = vld [vmem:[#allocation2 + $0xf7] sm:$0xff]  ;;  %v1680_v46 = vld [vmem:[#allocation2 + $0xff] sm:$0xff]  ;;  %v10328_v16 = vld [vmem:[#allocation2 + $0xeb] sm:$0xff] }
 0x1ac   : > { %v1623_v11 = vadd.f32 %v10226_v28, %v10245_v7  ;;  %v1624_v21 = vadd.f32 %v10233_v48, %v10256_v8  ;;  %v1611_v1 = vadd.f32 %v1600_v44, %v1567_v4  ;;  %v1612_v57 = vadd.f32 %v1601_v38, %v1568_v13  ;;  %v1744_v58 = vld [vmem:[#allocation2 + $0xf2] sm:$0xff]  ;;  %v1745_v48 = vld [vmem:[#allocation2 + $0xfa] sm:$0xff]  ;;  %v1746_v8 = vld [vmem:[#allocation2 + $0x102] sm:$0xff] }
 0x1ad   : > { %v1625_v59 = vadd.f32 %v10235_v55, %v1526_v34  ;;  %v1627_v54 = vmul.f32 0.42370537, %v10251_v60  ;;  %v1628_v33 = vmul.f32 0.42370537, %v10270_v23  ;;  %v1629_v22 = vmul.f32 0.42370537, %v1618_v47 }
 0x1ae   : > { %v1701_v52 = vadd.f32 %v1690_v2, %v1679_v62  ;;  %v1702_v49 = vadd.f32 %v1691_v30, %v1680_v46  ;;  %v1613_v45 = vadd.f32 %v1602_v50, %v1569_v41  ;;  %v1630_v28 = vmul.f32 0.42370537, %v1619_v51  ;;  %v10318_v56 = vld [vmem:[#allocation2 + $0xd3] sm:$0xff]  ;;  %v10324_v13 = vld [vmem:[#allocation2 + $0xdb] sm:$0xff]  ;;  %v10326_v41 = vld [vmem:[#allocation2 + $0xe3] sm:$0xff] }
 0x1af   : > { %v1631_v7 = vmul.f32 0.42370537, %v1620_v18  ;;  %v1632_v6 = vmul.f32 0.42370537, %v1621_v35  ;;  %v1633_v31 = vmul.f32 0.42370537, %v1622_v12  ;;  %v10304_v42 = vadd.f32 %v1627_v54, %v1604_v61 }
 0x1b0   : > { %v1634_v27 = vmul.f32 0.42370537, %v1623_v11  ;;  %v1635_v55 = vmul.f32 0.42370537, %v1624_v21  ;;  %v1636_v60 = vmul.f32 0.42370537, %v1625_v59  ;;  %v10306_v63 = vadd.f32 %v1628_v33, %v1605_v17 }
 0x1b1   : > { %12168 = vst [vmem:[#allocation44_spill] sm:$0xff] %v10304_v42  ;;  %v1710_v23 = vmul.f32 0.0020456284, %v10016_v32  ;;  %v1711_v5 = vmul.f32 0.0020456284, %v10078_v37  ;;  %v10310_v9 = vadd.f32 %v1629_v22, %v1606_v25  ;;  %v10312_v36 = vadd.f32 %v1630_v28, %v1607_v19  ;;  %v12177_v38 = vld [vmem:[#allocation51_spill] sm:$0xff] }
 0x1b2   : > { %12169 = vst [vmem:[#allocation29_spill] sm:$0xff] %v10306_v63  ;;  %v1712_v20 = vmul.f32 0.0020456284, %v1701_v52  ;;  %v1713_v14 = vmul.f32 0.0020456284, %v1702_v49  ;;  %v10314_v53 = vadd.f32 %v1631_v7, %v1608_v3  ;;  %v10316_v10 = vadd.f32 %v1632_v6, %v1609_v39  ;;  %v12178_v34 = vld [vmem:[#allocation55_spill] sm:$0xff] }
 0x1b3   : > { %12170 = vst [vmem:[#allocation15_spill] sm:$0xff] %v10310_v9  ;;  %12171 = vst [vmem:[#allocation66_spill] sm:$0xff] %v10312_v36  ;;  %v1667_v0 = vmul.f32 0.0016380112, %v1656_v43  ;;  %v1755_v40 = vadd.f32 %v1744_v58, %v1733_v24  ;;  %v10320_v32 = vadd.f32 %v1633_v31, %v1610_v26  ;;  %v10322_v37 = vadd.f32 %v1634_v27, %v1611_v1  ;;  %v1784_v25 = vld [vmem:[#allocation2 + $0xd5] sm:$0xff]  ;;  %v12180_v18 = vld [vmem:[#allocation63_spill] sm:$0xff] }
 0x1b4   : > { %12172 = vst [vmem:[#allocation67_spill] sm:$0xff] %v10314_v53  ;;  %12173 = vst [vmem:[#allocation68_spill] sm:$0xff] %v10316_v10  ;;  %v1756_v47 = vadd.f32 %v1745_v48, %v1734_v15  ;;  %v1757_v4 = vadd.f32 %v1746_v8, %v1735_v29  ;;  %v10330_v44 = vadd.f32 %v1635_v55, %v1612_v57  ;;  %v1764_v50 = vmul.f32 0.00398434, %v12178_v34  ;;  %v10334_v19 = vld [vmem:[#allocation2 + $0xf3] sm:$0xff]  ;;  %v10336_v3 = vld [vmem:[#allocation2 + $0xfb] sm:$0xff] }
 0x1b5   : > { %12174 = vst [vmem:[#allocation69_spill] sm:$0xff] %v10320_v32  ;;  %12175 = vst [vmem:[#allocation70_spill] sm:$0xff] %v10322_v37  ;;  %v1721_v61 = vadd.f32 %v1710_v23, %v12177_v38  ;;  %v1722_v17 = vadd.f32 %v1711_v5, %v1667_v0  ;;  %v12179_v39 = vld [vmem:[#allocation36_spill] sm:$0xff]  ;;  %v1724_v35 = vadd.f32 %v1713_v14, %v12180_v18  ;;  %v1785_v26 = vld [vmem:[#allocation2 + $0xdd] sm:$0xff]  ;;  %v1766_v57 = vmul.f32 0.00398434, %v1755_v40 }
 0x1b6   : > { %12176 = vst [vmem:[#allocation71_spill] sm:$0xff] %v10330_v44  ;;  %v1723_v51 = vadd.f32 %v1712_v20, %v12179_v39  ;;  %v12181_v2 = vld [vmem:[#allocation32_spill] sm:$0xff]  ;;  %v1786_v12 = vld [vmem:[#allocation2 + $0xe5] sm:$0xff]  ;;  %v1806_v62 = vadd.f32 %v10324_v13, %v1784_v25  ;;  %v1807_v46 = vadd.f32 %v10326_v41, %v1785_v26  ;;  %v1767_v22 = vmul.f32 0.00398434, %v1756_v47  ;;  %v1789_v52 = vld [vmem:[#allocation2 + $0xfd] sm:$0xff] }
 0x1b7   : > { %v1765_v30 = vmul.f32 0.00398434, %v12181_v2  ;;  %v1800_v11 = vld [vmem:[#allocation2 + $0x103] sm:$0xff]  ;;  %v1787_v59 = vld [vmem:[#allocation2 + $0xed] sm:$0xff]  ;;  %v1788_v54 = vld [vmem:[#allocation2 + $0xf5] sm:$0xff]  ;;  %v1808_v33 = vadd.f32 %v10328_v16, %v1786_v12  ;;  %v10348_v7 = vadd.f32 %v1636_v60, %v1613_v45  ;;  %v1777_v23 = vadd.f32 %v1766_v57, %v1722_v17 }
 0x1b8   : > { %v12182_v21 = vld [vmem:[#allocation47_spill] sm:$0xff]  ;;  %v1768_v43 = vmul.f32 0.00398434, %v1757_v4  ;;  %v1809_v49 = vadd.f32 %v10334_v19, %v1787_v59  ;;  %v1810_v58 = vadd.f32 %v10336_v3, %v1788_v54  ;;  %v1839_v28 = vld [vmem:[#allocation2 + $0xdc] sm:$0xff]  ;;  %v1811_v31 = vadd.f32 %v1800_v11, %v1789_v52  ;;  %v1842_v24 = vld [vmem:[#allocation2 + $0xf4] sm:$0xff] }
 0x1b9   : > { %v1805_v1 = vadd.f32 %v10318_v56, %v12182_v21  ;;  %12183 = vst [vmem:[#allocation51_spill] sm:$0xff] %v10348_v7  ;;  %v12184_v6 = vld [vmem:[#allocation58_spill] sm:$0xff]  ;;  %v1776_v8 = vadd.f32 %v1765_v30, %v1721_v61  ;;  %v1841_v55 = vld [vmem:[#allocation2 + $0xec] sm:$0xff]  ;;  %v1778_v5 = vadd.f32 %v1767_v22, %v1723_v51  ;;  %v1817_v29 = vmul.f32 0.012103356, %v1806_v62 }
 0x1ba   : > { %v1775_v48 = vadd.f32 %v1764_v50, %v12184_v6  ;;  %v1840_v27 = vld [vmem:[#allocation2 + $0xe4] sm:$0xff]  ;;  %v1779_v20 = vadd.f32 %v1768_v43, %v1724_v35  ;;  %v1843_v0 = vld [vmem:[#allocation2 + $0xfc] sm:$0xff]  ;;  %v1818_v40 = vmul.f32 0.012103356, %v1807_v46  ;;  %v1819_v47 = vmul.f32 0.012103356, %v1808_v33 }
 0x1bb   : > { %v1816_v14 = vmul.f32 0.012103356, %v1805_v1  ;;  %v1844_v15 = vld [vmem:[#allocation2 + $0x104] sm:$0xff]  ;;  %v12185_v4 = vld [vmem:[#allocation48_spill] sm:$0xff]  ;;  %v1820_v45 = vmul.f32 0.012103356, %v1809_v49  ;;  %v1851_v34 = vadd.f32 %v1840_v27, %v1839_v28  ;;  %v1852_v50 = vadd.f32 %v1841_v55, %v1840_v27 }
 0x1bc   : > { %v1850_v38 = vadd.f32 %v1839_v28, %v12185_v4  ;;  %v1821_v60 = vmul.f32 0.012103356, %v1810_v58  ;;  %v1822_v61 = vmul.f32 0.012103356, %v1811_v31  ;;  %v12186_v39 = vld [vmem:[#allocation56_spill] sm:$0xff]  ;;  %v1853_v2 = vadd.f32 %v1842_v24, %v1841_v55  ;;  %v1790_v6 = vld [vmem:[#allocation2 + $0x105] sm:$0xff] }
 0x1bd   : > { %v1827_v18 = vadd.f32 %v1816_v14, %v12186_v39  ;;  %v1854_v17 = vadd.f32 %v1843_v0, %v1842_v24  ;;  %v12187_v51 = vld [vmem:[#allocation60_spill] sm:$0xff]  ;;  %v1829_v30 = vadd.f32 %v1818_v40, %v1775_v48  ;;  %v1830_v11 = vadd.f32 %v1819_v47, %v1776_v8  ;;  %v1955_v4 = vld [vmem:[#allocation2 + $0x159] sm:$0xff] }
 0x1be   : > { %v1828_v35 = vadd.f32 %v1817_v29, %v12187_v51  ;;  %v1855_v21 = vadd.f32 %v1844_v15, %v1843_v0  ;;  %v1831_v1 = vadd.f32 %v1820_v45, %v1777_v23  ;;  %v1832_v57 = vadd.f32 %v1821_v60, %v1778_v5  ;;  %v12188_v46 = vld [vmem:[#allocation52_spill] sm:$0xff]  ;;  %v2010_v39 = vld [vmem:[#allocation2 + $0x15a] sm:$0xff] }
 0x1bf   : > { %v1833_v62 = vadd.f32 %v1822_v61, %v1779_v20  ;;  %v1860_v33 = vmul.f32 0.057342287, %v12188_v46  ;;  %v1861_v22 = vmul.f32 0.057342287, %v1850_v38  ;;  %v1862_v43 = vmul.f32 0.057342287, %v1851_v34 }
 0x1c0   : > { %v1863_v49 = vmul.f32 0.057342287, %v1852_v50  ;;  %v8931_v58 = vld [vmem:[#allocation2 + $0xcb] sm:$0xff]  ;;  %v1864_v31 = vmul.f32 0.057342287, %v1853_v2  ;;  %v1884_v55 = vadd.f32 %v10318_v56, %v1785_v26  ;;  %v1885_v14 = vadd.f32 %v10324_v13, %v1786_v12  ;;  %v1944_v47 = vld [vmem:[#allocation2 + $0x157] sm:$0xff] }
 0x1c1   : > { %v1883_v28 = vadd.f32 %v8931_v58, %v1784_v25  ;;  %v1865_v27 = vmul.f32 0.057342287, %v1854_v17  ;;  %v1866_v48 = vmul.f32 0.057342287, %v1855_v21  ;;  %v1886_v8 = vadd.f32 %v10326_v41, %v1787_v59  ;;  %v1920_v20 = vld [vmem:[#allocation2 + $0x148] sm:$0xff]  ;;  %v1954_v0 = vld [vmem:[#allocation2 + $0x151] sm:$0xff] }
 0x1c2   : > { %v1887_v23 = vadd.f32 %v10328_v16, %v1788_v54  ;;  %v1888_v5 = vadd.f32 %v10334_v19, %v1789_v52  ;;  %v1943_v24 = vld [vmem:[#allocation2 + $0x14f] sm:$0xff]  ;;  %v1871_v15 = vadd.f32 %v1860_v33, %v1827_v18  ;;  %v1872_v29 = vadd.f32 %v1861_v22, %v1828_v35  ;;  %v1997_v56 = vld [vmem:[#allocation2 + $0x146] sm:$0xff]  ;;  %v12189_v12 = vld [vmem:[#allocation49_spill] sm:$0xff] }
 0x1c3   : > { %v1873_v25 = vadd.f32 %v1862_v43, %v1829_v30  ;;  %v10360_v40 = vadd.f32 %v1863_v49, %v1830_v11  ;;  %v1875_v26 = vadd.f32 %v1864_v31, %v1831_v1  ;;  %v10362_v13 = vadd.f32 %v1865_v27, %v1832_v57  ;;  %v1921_v59 = vld [vmem:[#allocation2 + $0x150] sm:$0xff]  ;;  %v1922_v34 = vld [vmem:[#allocation2 + $0x158] sm:$0xff]  ;;  %v12190_v30 = vld [vmem:[#allocation34_spill] sm:$0xff] }
 0x1c4   : > { %v1889_v41 = vadd.f32 %v10336_v3, %v1790_v6  ;;  %v1893_v16 = vmul.f32 0.42370537, %v12189_v12  ;;  %v1998_v19 = vld [vmem:[#allocation2 + $0x14e] sm:$0xff]  ;;  %v1894_v38 = vmul.f32 0.42370537, %v1883_v28  ;;  %v1965_v50 = vadd.f32 %v1954_v0, %v1943_v24  ;;  %v1999_v61 = vld [vmem:[#allocation2 + $0x156] sm:$0xff] }
 0x1c5   : > { %v2008_v54 = vld [vmem:[#allocation2 + $0x14a] sm:$0xff]  ;;  %v2009_v52 = vld [vmem:[#allocation2 + $0x152] sm:$0xff]  ;;  %v1895_v45 = vmul.f32 0.42370537, %v1884_v55  ;;  %v1896_v60 = vmul.f32 0.42370537, %v1885_v14  ;;  %v1966_v51 = vadd.f32 %v1955_v4, %v1944_v47  ;;  %v10368_v35 = vadd.f32 %v1866_v48, %v1833_v62 }
 0x1c6   : > { %v1897_v18 = vmul.f32 0.42370537, %v1886_v8  ;;  %v1898_v2 = vmul.f32 0.42370537, %v1887_v23  ;;  %v10366_v17 = vmul.f32 0.42370537, %v1888_v5  ;;  %v10377_v22 = vadd.f32 %v1894_v38, %v1871_v15 }
 0x1c7   : > { %v1931_v3 = vmul.f32 0.0016380112, %v1920_v20  ;;  %v1974_v11 = vmul.f32 0.0020456284, %v12190_v30  ;;  %v12191_v21 = vld [vmem:[#allocation28_spill] sm:$0xff]  ;;  %v12192_v46 = vld [vmem:[#allocation61_spill] sm:$0xff]  ;;  %v2019_v43 = vadd.f32 %v2008_v54, %v1997_v56  ;;  %v10381_v58 = vadd.f32 %v1895_v45, %v1872_v29 }
 0x1c8   : > { %v1975_v1 = vmul.f32 0.0020456284, %v12191_v21  ;;  %v10372_v57 = vmul.f32 0.42370537, %v1889_v41  ;;  %v10375_v33 = vadd.f32 %v1893_v16, %v12192_v46  ;;  %12194 = vst [vmem:[#allocation36_spill] sm:$0xff] %v10377_v22  ;;  %v10379_v49 = vld [vmem:[#allocation2 + $0x12b] sm:$0xff]  ;;  %v2020_v6 = vadd.f32 %v2009_v52, %v1998_v19 }
 0x1c9   : > { %12195 = vst [vmem:[#allocation63_spill] sm:$0xff] %v10381_v58  ;;  %v1932_v28 = vmul.f32 0.0016380112, %v1921_v59  ;;  %v1976_v62 = vmul.f32 0.0020456284, %v1965_v50  ;;  %v10383_v31 = vld [vmem:[#allocation2 + $0x12d] sm:$0xff]  ;;  %v10389_v14 = vadd.f32 %v1896_v60, %v1873_v25  ;;  %v2021_v23 = vadd.f32 %v2010_v39, %v1999_v61 }
 0x1ca   : > { %12193 = vst [vmem:[#allocation55_spill] sm:$0xff] %v10375_v33  ;;  %v10385_v27 = vld [vmem:[#allocation2 + $0x133] sm:$0xff]  ;;  %v10387_v55 = vld [vmem:[#allocation2 + $0x13b] sm:$0xff]  ;;  %v1933_v48 = vmul.f32 0.0016380112, %v1922_v34  ;;  %v10391_v5 = vld [vmem:[#allocation2 + $0x143] sm:$0xff]  ;;  %v1986_v15 = vadd.f32 %v1975_v1, %v1931_v3  ;;  %v10416_v3 = vadd.f32 %v1897_v18, %v10360_v40  ;;  %v10418_v30 = vadd.f32 %v1898_v2, %v1875_v26 }
 0x1cb   : > { %12196 = vst [vmem:[#allocation32_spill] sm:$0xff] %v10389_v14  ;;  %v1977_v8 = vmul.f32 0.0020456284, %v1966_v51  ;;  %v10393_v20 = vld [vmem:[#allocation2 + $0x14b] sm:$0xff]  ;;  %v12197_v24 = vld [vmem:[#allocation53_spill] sm:$0xff]  ;;  %v2070_v38 = vadd.f32 %v10385_v27, %v10383_v31  ;;  %v1987_v60 = vadd.f32 %v1976_v62, %v1932_v28  ;;  %v12202_v62 = vld [vmem:[#allocation18_spill] sm:$0xff] }
 0x1cc   : > { %v1985_v0 = vadd.f32 %v1974_v11, %v12197_v24  ;;  %v12198_v29 = vld [vmem:[#allocation57_spill] sm:$0xff]  ;;  %v2030_v25 = vmul.f32 0.00398434, %v2019_v43  ;;  %v10404_v59 = vld [vmem:[#allocation2 + $0x145] sm:$0xff]  ;;  %v2031_v34 = vmul.f32 0.00398434, %v2020_v6 }
 0x1cd   : > { %v2028_v47 = vmul.f32 0.00398434, %v12198_v29  ;;  %v12199_v4 = vld [vmem:[#allocation21_spill] sm:$0xff]  ;;  %v8932_v54 = vld [vmem:[#allocation2 + $0x125] sm:$0xff]  ;;  %v2052_v50 = vld [vmem:[#allocation2 + $0x14d] sm:$0xff]  ;;  %v2073_v51 = vadd.f32 %v10393_v20, %v10404_v59  ;;  %12200 = vst [vmem:[#allocation47_spill] sm:$0xff] %v10416_v3  ;;  %v1988_v11 = vadd.f32 %v1977_v8, %v1933_v48 }
 0x1ce   : > { %v2029_v56 = vmul.f32 0.00398434, %v12199_v4  ;;  %v10398_v41 = vld [vmem:[#allocation2 + $0x135] sm:$0xff]  ;;  %v10402_v16 = vld [vmem:[#allocation2 + $0x13d] sm:$0xff]  ;;  %v2069_v52 = vadd.f32 %v8932_v54, %v10379_v49  ;;  %12201 = vst [vmem:[#allocation58_spill] sm:$0xff] %v10418_v30  ;;  %v2106_v4 = vld [vmem:[#allocation2 + $0x14c] sm:$0xff]  ;;  %v2041_v44 = vadd.f32 %v2030_v25, %v1986_v15  ;;  %v2042_v26 = vadd.f32 %v2031_v34, %v1987_v60 }
 0x1cf   : > { %v10400_v12 = vld [vmem:[#allocation2 + $0x153] sm:$0xff]  ;;  %v2064_v19 = vld [vmem:[#allocation2 + $0x15b] sm:$0xff]  ;;  %v2071_v45 = vadd.f32 %v10387_v55, %v10398_v41  ;;  %v2072_v39 = vadd.f32 %v10391_v5, %v10402_v16  ;;  %v2105_v43 = vld [vmem:[#allocation2 + $0x144] sm:$0xff]  ;;  %v2032_v28 = vmul.f32 0.00398434, %v2021_v23  ;;  %v2039_v6 = vadd.f32 %v2028_v47, %v12202_v62 }
 0x1d0   : > { %v2053_v61 = vld [vmem:[#allocation2 + $0x155] sm:$0xff]  ;;  %v2074_v21 = vadd.f32 %v10400_v12, %v2052_v50  ;;  %v2040_v24 = vadd.f32 %v2029_v56, %v1985_v0  ;;  %v2080_v37 = vmul.f32 0.012103356, %v2069_v52  ;;  %v2081_v40 = vmul.f32 0.012103356, %v2070_v38  ;;  %v8933_v8 = vld [vmem:[#allocation2 + $0x12c] sm:$0xff] }
 0x1d1   : > { %v2103_v1 = vld [vmem:[#allocation2 + $0x134] sm:$0xff]  ;;  %v2104_v46 = vld [vmem:[#allocation2 + $0x13c] sm:$0xff]  ;;  %v2075_v29 = vadd.f32 %v2064_v19, %v2053_v61  ;;  %v2082_v18 = vmul.f32 0.012103356, %v2071_v45  ;;  %v2083_v2 = vmul.f32 0.012103356, %v2072_v39  ;;  %v2117_v23 = vadd.f32 %v2106_v4, %v2105_v43 }
 0x1d2   : > { %v2107_v54 = vld [vmem:[#allocation2 + $0x154] sm:$0xff]  ;;  %v2108_v7 = vld [vmem:[#allocation2 + $0x15c] sm:$0xff]  ;;  %v2084_v48 = vmul.f32 0.012103356, %v2073_v51  ;;  %v2114_v30 = vadd.f32 %v8933_v8, %v2103_v1  ;;  %v2085_v32 = vmul.f32 0.012103356, %v2074_v21  ;;  %v2115_v10 = vadd.f32 %v2104_v46, %v2103_v1 }
 0x1d3   : > { %v2116_v53 = vadd.f32 %v2105_v43, %v2104_v46  ;;  %v2043_v3 = vadd.f32 %v2032_v28, %v1988_v11  ;;  %v2086_v47 = vmul.f32 0.012103356, %v2075_v29  ;;  %v2118_v0 = vadd.f32 %v2107_v54, %v2106_v4  ;;  %v12204_v15 = vld [vmem:[#allocation25_spill] sm:$0xff]  ;;  %v12205_v52 = vld [vmem:[#allocation30_spill] sm:$0xff] }
 0x1d4   : > { %v2119_v56 = vadd.f32 %v2108_v7, %v2107_v54  ;;  %v10424_v19 = vadd.f32 %v10366_v17, %v10362_v13  ;;  %v2091_v25 = vadd.f32 %v2080_v37, %v12204_v15  ;;  %v2092_v38 = vadd.f32 %v2081_v40, %v12205_v52  ;;  %v2054_v60 = vld [vmem:[#allocation2 + $0x15d] sm:$0xff]  ;;  %v2204_v40 = vld [vmem:[#allocation2 + $0x18f] sm:$0xff] }
 0x1d5   : > { %v2093_v45 = vadd.f32 %v2082_v18, %v2039_v6  ;;  %v2094_v34 = vadd.f32 %v2083_v2, %v2040_v24  ;;  %v2095_v39 = vadd.f32 %v2084_v48, %v2041_v44  ;;  %v12206_v51 = vld [vmem:[#allocation54_spill] sm:$0xff]  ;;  %v2125_v1 = vmul.f32 0.057342287, %v2114_v30  ;;  %v2214_v24 = vld [vmem:[#allocation2 + $0x189] sm:$0xff]  ;;  %v2219_v8 = vld [vmem:[#allocation2 + $0x1b1] sm:$0xff] }
 0x1d6   : > { %12203 = vst [vmem:[#allocation48_spill] sm:$0xff] %v10424_v19  ;;  %v2124_v21 = vmul.f32 0.057342287, %v12206_v51  ;;  %v2096_v46 = vadd.f32 %v2085_v32, %v2042_v26  ;;  %v2126_v11 = vmul.f32 0.057342287, %v2115_v10  ;;  %v2097_v7 = vadd.f32 %v2086_v47, %v2043_v3  ;;  %v8934_v13 = vld [vmem:[#allocation2 + $0x123] sm:$0xff] }
 0x1d7   : > { %v2127_v43 = vmul.f32 0.057342287, %v2116_v53  ;;  %v2128_v28 = vmul.f32 0.057342287, %v2117_v23  ;;  %v2129_v62 = vmul.f32 0.057342287, %v2118_v0  ;;  %v2147_v17 = vadd.f32 %v8934_v13, %v10383_v31 }
 0x1d8   : > { %v2130_v29 = vmul.f32 0.057342287, %v2119_v56  ;;  %v10432_v37 = vadd.f32 %v10372_v57, %v10368_v35  ;;  %v2148_v44 = vadd.f32 %v10379_v49, %v10398_v41  ;;  %v2149_v30 = vadd.f32 %v10385_v27, %v10402_v16  ;;  %v2203_v6 = vld [vmem:[#allocation2 + $0x187] sm:$0xff]  ;;  %v2205_v27 = vld [vmem:[#allocation2 + $0x197] sm:$0xff] }
 0x1d9   : > { %v2150_v53 = vadd.f32 %v10387_v55, %v10404_v59  ;;  %v2135_v10 = vadd.f32 %v2124_v21, %v2091_v25  ;;  %v2151_v32 = vadd.f32 %v10391_v5, %v2052_v50  ;;  %v2152_v3 = vadd.f32 %v10393_v20, %v2053_v61  ;;  %v2180_v49 = vld [vmem:[#allocation2 + $0x180] sm:$0xff]  ;;  %v2181_v41 = vld [vmem:[#allocation2 + $0x188] sm:$0xff]  ;;  %v2215_v16 = vld [vmem:[#allocation2 + $0x191] sm:$0xff] }
 0x1da   : > { %12207 = vst [vmem:[#allocation56_spill] sm:$0xff] %v10432_v37  ;;  %v2153_v31 = vadd.f32 %v10400_v12, %v2054_v60  ;;  %v2136_v35 = vadd.f32 %v2125_v1, %v2092_v38  ;;  %v2137_v57 = vadd.f32 %v2126_v11, %v2093_v45  ;;  %v2138_v4 = vadd.f32 %v2127_v43, %v2094_v34  ;;  %v12208_v59 = vld [vmem:[#allocation50_spill] sm:$0xff]  ;;  %v2182_v50 = vld [vmem:[#allocation2 + $0x190] sm:$0xff]  ;;  %v12209_v38 = vld [vmem:[#allocation37_spill] sm:$0xff] }
 0x1db   : > { %v2139_v54 = vadd.f32 %v2128_v28, %v2095_v39  ;;  %v2140_v18 = vadd.f32 %v2129_v62, %v2096_v46  ;;  %v2141_v55 = vadd.f32 %v2130_v29, %v2097_v7  ;;  %v2157_v26 = vmul.f32 0.42370537, %v12208_v59  ;;  %v2206_v20 = vld [vmem:[#allocation2 + $0x19f] sm:$0xff]  ;;  %v2207_v61 = vld [vmem:[#allocation2 + $0x1a7] sm:$0xff]  ;;  %v2208_v12 = vld [vmem:[#allocation2 + $0x1af] sm:$0xff] }
 0x1dc   : > { %v2158_v5 = vmul.f32 0.42370537, %v2147_v17  ;;  %v2217_v2 = vld [vmem:[#allocation2 + $0x1a1] sm:$0xff]  ;;  %v2218_v48 = vld [vmem:[#allocation2 + $0x1a9] sm:$0xff]  ;;  %v2159_v23 = vmul.f32 0.42370537, %v2148_v44  ;;  %v2225_v56 = vadd.f32 %v2214_v24, %v2203_v6  ;;  %v2226_v21 = vadd.f32 %v2215_v16, %v2204_v40 }
 0x1dd   : > { %v2160_v47 = vmul.f32 0.42370537, %v2149_v30  ;;  %v2161_v0 = vmul.f32 0.42370537, %v2150_v53  ;;  %v2162_v15 = vmul.f32 0.42370537, %v2151_v32  ;;  %v10445_v45 = vadd.f32 %v2157_v26, %v12209_v38 }
 0x1de   : > { %v2163_v25 = vmul.f32 0.42370537, %v2152_v3  ;;  %v2164_v52 = vmul.f32 0.42370537, %v2153_v31  ;;  %v10447_v60 = vadd.f32 %v2158_v5, %v2135_v10  ;;  %v10449_v34 = vadd.f32 %v2159_v23, %v2136_v35  ;;  %v2216_v51 = vld [vmem:[#allocation2 + $0x199] sm:$0xff]  ;;  %v2185_v29 = vld [vmem:[#allocation2 + $0x1a8] sm:$0xff] }
 0x1df   : > { %12210 = vst [vmem:[#allocation60_spill] sm:$0xff] %v10445_v45  ;;  %v10451_v39 = vadd.f32 %v2160_v47, %v2137_v57  ;;  %v2267_v1 = vld [vmem:[#allocation2 + $0x17a] sm:$0xff]  ;;  %v10453_v46 = vadd.f32 %v2161_v0, %v2138_v4  ;;  %v2191_v28 = vmul.f32 0.0016380112, %v2180_v49  ;;  %v2192_v7 = vmul.f32 0.0016380112, %v2181_v41 }
 0x1e0   : > { %12211 = vst [vmem:[#allocation52_spill] sm:$0xff] %v10447_v60  ;;  %12212 = vst [vmem:[#allocation49_spill] sm:$0xff] %v10449_v34  ;;  %v2183_v11 = vld [vmem:[#allocation2 + $0x198] sm:$0xff]  ;;  %v2184_v43 = vld [vmem:[#allocation2 + $0x1a0] sm:$0xff]  ;;  %v2227_v62 = vadd.f32 %v2216_v51, %v2205_v27  ;;  %v2193_v17 = vmul.f32 0.0016380112, %v2182_v50  ;;  %v2228_v44 = vadd.f32 %v2217_v2, %v2206_v20  ;;  %v2229_v30 = vadd.f32 %v2218_v48, %v2207_v61 }
 0x1e1   : > { %12213 = vst [vmem:[#allocation34_spill] sm:$0xff] %v10451_v39  ;;  %12214 = vst [vmem:[#allocation28_spill] sm:$0xff] %v10453_v46  ;;  %v2186_v13 = vld [vmem:[#allocation2 + $0x1b0] sm:$0xff]  ;;  %v2230_v53 = vadd.f32 %v2219_v8, %v2208_v12  ;;  %v2268_v10 = vld [vmem:[#allocation2 + $0x182] sm:$0xff]  ;;  %v10455_v3 = vadd.f32 %v2162_v15, %v2139_v54  ;;  %v2236_v57 = vmul.f32 0.0020456284, %v2225_v56  ;;  %v10459_v27 = vadd.f32 %v2163_v25, %v2140_v18 }
 0x1e2   : > { %v2256_v32 = vld [vmem:[#allocation2 + $0x176] sm:$0xff]  ;;  %v2259_v4 = vld [vmem:[#allocation2 + $0x18e] sm:$0xff]  ;;  %v2194_v16 = vmul.f32 0.0016380112, %v2183_v11  ;;  %v2195_v59 = vmul.f32 0.0016380112, %v2184_v43  ;;  %v10461_v48 = vadd.f32 %v2164_v52, %v2141_v55 }
 0x1e3   : > { %12215 = vst [vmem:[#allocation61_spill] sm:$0xff] %v10455_v3  ;;  %v12216_v31 = vld [vmem:[#allocation13_spill] sm:$0xff]  ;;  %v2269_v49 = vld [vmem:[#allocation2 + $0x18a] sm:$0xff]  ;;  %12218 = vst [vmem:[#allocation53_spill] sm:$0xff] %v10459_v27  ;;  %v2237_v26 = vmul.f32 0.0020456284, %v2226_v21  ;;  %v2278_v18 = vadd.f32 %v2267_v1, %v2256_v32  ;;  %v2247_v21 = vadd.f32 %v2236_v57, %v2192_v7 }
 0x1e4   : > { %v2234_v6 = vmul.f32 0.0020456284, %v12216_v31  ;;  %v12217_v24 = vld [vmem:[#allocation65_spill] sm:$0xff]  ;;  %v2262_v20 = vld [vmem:[#allocation2 + $0x1a6] sm:$0xff]  ;;  %v2263_v61 = vld [vmem:[#allocation2 + $0x1ae] sm:$0xff]  ;;  %12219 = vst [vmem:[#allocation57_spill] sm:$0xff] %v10461_v48 }
 0x1e5   : > { %v2235_v35 = vmul.f32 0.0020456284, %v12217_v24  ;;  %v2260_v40 = vld [vmem:[#allocation2 + $0x196] sm:$0xff]  ;;  %v2257_v5 = vld [vmem:[#allocation2 + $0x17e] sm:$0xff]  ;;  %v2273_v12 = vld [vmem:[#allocation2 + $0x1aa] sm:$0xff]  ;;  %v2248_v27 = vadd.f32 %v2237_v26, %v2193_v17 }
 0x1e6   : > { %v2270_v41 = vld [vmem:[#allocation2 + $0x192] sm:$0xff]  ;;  %v2261_v50 = vld [vmem:[#allocation2 + $0x19e] sm:$0xff]  ;;  %v2196_v8 = vmul.f32 0.0016380112, %v2185_v29  ;;  %v2197_v23 = vmul.f32 0.0016380112, %v2186_v13  ;;  %v2279_v31 = vadd.f32 %v2268_v10, %v2257_v5  ;;  %v2284_v13 = vadd.f32 %v2273_v12, %v2262_v20 }
 0x1e7   : > { %v2272_v54 = vld [vmem:[#allocation2 + $0x1a2] sm:$0xff]  ;;  %v2274_v2 = vld [vmem:[#allocation2 + $0x1b2] sm:$0xff]  ;;  %v2238_v47 = vmul.f32 0.0020456284, %v2227_v62  ;;  %v2239_v0 = vmul.f32 0.0020456284, %v2228_v44  ;;  %v2246_v51 = vadd.f32 %v2235_v35, %v2191_v28  ;;  %v2281_v46 = vadd.f32 %v2270_v41, %v2259_v4 }
 0x1e8   : > { %v2240_v56 = vmul.f32 0.0020456284, %v2229_v30  ;;  %v2241_v15 = vmul.f32 0.0020456284, %v2230_v53  ;;  %v12220_v25 = vld [vmem:[#allocation22_spill] sm:$0xff]  ;;  %v10464_v52 = vld [vmem:[#allocation2 + $0x16b] sm:$0xff]  ;;  %v2283_v62 = vadd.f32 %v2272_v54, %v2261_v50  ;;  %v2285_v44 = vadd.f32 %v2274_v2, %v2263_v61 }
 0x1e9   : > { %v2245_v38 = vadd.f32 %v2234_v6, %v12220_v25  ;;  %v2258_v11 = vld [vmem:[#allocation2 + $0x186] sm:$0xff]  ;;  %v2271_v43 = vld [vmem:[#allocation2 + $0x19a] sm:$0xff]  ;;  %v2249_v29 = vadd.f32 %v2238_v47, %v2194_v16  ;;  %v2250_v7 = vadd.f32 %v2239_v0, %v2195_v59  ;;  %v2289_v41 = vmul.f32 0.00398434, %v2278_v18 }
 0x1ea   : > { %v2143_v24 = vld [vmem:[#allocation2 + $0x165] sm:$0xff]  ;;  %v2280_v3 = vadd.f32 %v2269_v49, %v2258_v11  ;;  %v2282_v55 = vadd.f32 %v2271_v43, %v2260_v40  ;;  %v10466_v30 = vld [vmem:[#allocation2 + $0x16d] sm:$0xff]  ;;  %v10470_v28 = vld [vmem:[#allocation2 + $0x17b] sm:$0xff]  ;;  %v2251_v53 = vadd.f32 %v2240_v56, %v2196_v8  ;;  %v2252_v10 = vadd.f32 %v2241_v15, %v2197_v23 }
 0x1eb   : > { %v10468_v1 = vld [vmem:[#allocation2 + $0x173] sm:$0xff]  ;;  %v12221_v32 = vld [vmem:[#allocation39_spill] sm:$0xff]  ;;  %v2290_v16 = vmul.f32 0.00398434, %v2279_v31  ;;  %v10486_v59 = vld [vmem:[#allocation2 + $0x19d] sm:$0xff]  ;;  %v2330_v61 = vadd.f32 %v10464_v52, %v2143_v24  ;;  %v2300_v11 = vadd.f32 %v2289_v41, %v2245_v38 }
 0x1ec   : > { %v2287_v17 = vmul.f32 0.00398434, %v12221_v32  ;;  %v10473_v6 = vld [vmem:[#allocation2 + $0x18d] sm:$0xff]  ;;  %v10475_v35 = vld [vmem:[#allocation2 + $0x183] sm:$0xff]  ;;  %v10482_v26 = vld [vmem:[#allocation2 + $0x175] sm:$0xff]  ;;  %v2331_v8 = vadd.f32 %v10468_v1, %v10466_v30 }
 0x1ed   : > { %v10477_v57 = vld [vmem:[#allocation2 + $0x18b] sm:$0xff]  ;;  %v10479_v4 = vld [vmem:[#allocation2 + $0x193] sm:$0xff]  ;;  %v10488_v50 = vld [vmem:[#allocation2 + $0x1a3] sm:$0xff]  ;;  %v2291_v54 = vmul.f32 0.00398434, %v2280_v3  ;;  %v2301_v43 = vadd.f32 %v2290_v16, %v2246_v51 }
 0x1ee   : > { %v12222_v40 = vld [vmem:[#allocation20_spill] sm:$0xff]  ;;  %12223 = vst [vmem:[#allocation21_spill] sm:$0xff] %v10488_v50  ;;  %v2292_v12 = vmul.f32 0.00398434, %v2281_v46  ;;  %v2293_v2 = vmul.f32 0.00398434, %v2282_v55  ;;  %v2332_v46 = vadd.f32 %v10470_v28, %v10482_v26  ;;  %v2335_v51 = vadd.f32 %v10479_v4, %v10473_v6 }
 0x1ef   : > { %v2288_v49 = vmul.f32 0.00398434, %v12222_v40  ;;  %v10484_v5 = vld [vmem:[#allocation2 + $0x195] sm:$0xff]  ;;  %v10490_v20 = vld [vmem:[#allocation2 + $0x1ab] sm:$0xff]  ;;  %v2294_v23 = vmul.f32 0.00398434, %v2283_v62  ;;  %v2302_v3 = vadd.f32 %v2291_v54, %v2247_v21 }
 0x1f0   : > { %12224 = vst [vmem:[#allocation18_spill] sm:$0xff] %v10490_v20  ;;  %v2295_v47 = vmul.f32 0.00398434, %v2284_v13  ;;  %v2296_v0 = vmul.f32 0.00398434, %v2285_v44  ;;  %v12225_v56 = vld [vmem:[#allocation9_spill] sm:$0xff]  ;;  %v2304_v54 = vadd.f32 %v2293_v2, %v2249_v29 }
 0x1f1   : > { %v2298_v15 = vadd.f32 %v2287_v17, %v12225_v56  ;;  %v12226_v18 = vld [vmem:[#allocation17_spill] sm:$0xff]  ;;  %v10499_v32 = vld [vmem:[#allocation2 + $0x185] sm:$0xff]  ;;  %v2303_v17 = vadd.f32 %v2292_v12, %v2248_v27  ;;  %v10513_v40 = vld [vmem:[#allocation2 + $0x1ad] sm:$0xff]  ;;  %v2305_v56 = vadd.f32 %v2294_v23, %v2250_v7  ;;  %v2341_v60 = vmul.f32 0.012103356, %v2330_v61 }
 0x1f2   : > { %v2299_v25 = vadd.f32 %v2288_v49, %v12226_v18  ;;  %v10497_v31 = vld [vmem:[#allocation2 + $0x17d] sm:$0xff]  ;;  %v2328_v24 = vld [vmem:[#allocation2 + $0x1b3] sm:$0xff]  ;;  %v10503_v55 = vld [vmem:[#allocation2 + $0x1a5] sm:$0xff]  ;;  %v2334_v38 = vadd.f32 %v10477_v57, %v10499_v32  ;;  %12227 = vst [vmem:[#allocation25_spill] sm:$0xff] %v10513_v40  ;;  %v2337_v49 = vadd.f32 %v10488_v50, %v10486_v59  ;;  %v2306_v18 = vadd.f32 %v2295_v47, %v2251_v53 }
 0x1f3   : > { %v10505_v62 = vld [vmem:[#allocation2 + $0x19b] sm:$0xff]  ;;  %v2333_v13 = vadd.f32 %v10475_v35, %v10497_v31  ;;  %v2109_v44 = vld [vmem:[#allocation2 + $0x164] sm:$0xff]  ;;  %v2338_v41 = vadd.f32 %v10490_v20, %v10503_v55  ;;  %v2363_v16 = vld [vmem:[#allocation2 + $0x16c] sm:$0xff]  ;;  %v2339_v48 = vadd.f32 %v2328_v24, %v10513_v40  ;;  %v2307_v12 = vadd.f32 %v2296_v0, %v2252_v10 }
 0x1f4   : > { %v2336_v21 = vadd.f32 %v10505_v62, %v10484_v5  ;;  %v2364_v39 = vld [vmem:[#allocation2 + $0x174] sm:$0xff]  ;;  %v2365_v34 = vld [vmem:[#allocation2 + $0x17c] sm:$0xff]  ;;  %v2366_v27 = vld [vmem:[#allocation2 + $0x184] sm:$0xff]  ;;  %v2342_v45 = vmul.f32 0.012103356, %v2331_v8  ;;  %v2374_v63 = vadd.f32 %v2363_v16, %v2109_v44  ;;  %v2352_v2 = vadd.f32 %v2341_v60, %v2298_v15 }
 0x1f5   : > { %v2343_v37 = vmul.f32 0.012103356, %v2332_v46  ;;  %v2367_v19 = vld [vmem:[#allocation2 + $0x18c] sm:$0xff]  ;;  %v2368_v14 = vld [vmem:[#allocation2 + $0x194] sm:$0xff]  ;;  %v2369_v58 = vld [vmem:[#allocation2 + $0x19c] sm:$0xff]  ;;  %v2375_v0 = vadd.f32 %v2364_v39, %v2363_v16  ;;  %v2376_v46 = vadd.f32 %v2365_v34, %v2364_v39  ;;  %v2377_v20 = vadd.f32 %v2366_v27, %v2365_v34 }
 0x1f6   : > { %v2370_v22 = vld [vmem:[#allocation2 + $0x1a4] sm:$0xff]  ;;  %v2344_v33 = vmul.f32 0.012103356, %v2333_v13  ;;  %v2345_v36 = vmul.f32 0.012103356, %v2334_v38  ;;  %v2353_v47 = vadd.f32 %v2342_v45, %v2299_v25  ;;  %v2371_v10 = vld [vmem:[#allocation2 + $0x1ac] sm:$0xff]  ;;  %v2378_v40 = vadd.f32 %v2367_v19, %v2366_v27 }
 0x1f7   : > { %v2346_v9 = vmul.f32 0.012103356, %v2335_v51  ;;  %v2347_v29 = vmul.f32 0.012103356, %v2336_v21  ;;  %v2348_v7 = vmul.f32 0.012103356, %v2337_v49  ;;  %v2354_v24 = vadd.f32 %v2343_v37, %v2300_v11 }
 0x1f8   : > { %v2349_v53 = vmul.f32 0.012103356, %v2338_v41  ;;  %v2350_v23 = vmul.f32 0.012103356, %v2339_v48  ;;  %v2355_v42 = vadd.f32 %v2344_v33, %v2301_v43  ;;  %v2372_v61 = vld [vmem:[#allocation2 + $0x1b4] sm:$0xff]  ;;  %v2356_v8 = vadd.f32 %v2345_v36, %v2302_v3  ;;  %v2065_v41 = vld [vmem:[#allocation2 + $0x163] sm:$0xff] }
 0x1f9   : > { %v2357_v50 = vadd.f32 %v2346_v9, %v2303_v17  ;;  %v2379_v13 = vadd.f32 %v2368_v14, %v2367_v19  ;;  %v2381_v38 = vadd.f32 %v2370_v22, %v2369_v58  ;;  %v2358_v51 = vadd.f32 %v2347_v29, %v2304_v54  ;;  %v2318_v16 = vld [vmem:[#allocation2 + $0x1b5] sm:$0xff] }
 0x1fa   : > { %v2380_v44 = vadd.f32 %v2369_v58, %v2368_v14  ;;  %v2382_v21 = vadd.f32 %v2371_v10, %v2370_v22  ;;  %v2383_v49 = vadd.f32 %v2372_v61, %v2371_v10  ;;  %v2359_v60 = vadd.f32 %v2348_v7, %v2305_v56 }
 0x1fb   : > { %v2360_v48 = vadd.f32 %v2349_v53, %v2306_v18  ;;  %v2361_v45 = vadd.f32 %v2350_v23, %v2307_v12  ;;  %v2385_v37 = vmul.f32 0.057342287, %v2374_v63  ;;  %v2386_v33 = vmul.f32 0.057342287, %v2375_v0  ;;  %v12229_v12 = vld [vmem:[#allocation21_spill] sm:$0xff]  ;;  %v12231_v53 = vld [vmem:[#allocation46_spill] sm:$0xff] }
 0x1fc   : > { %v2387_v15 = vmul.f32 0.057342287, %v2376_v46  ;;  %v2388_v25 = vmul.f32 0.057342287, %v2377_v20  ;;  %v2408_v36 = vadd.f32 %v10466_v30, %v2065_v41  ;;  %v2389_v39 = vmul.f32 0.057342287, %v2378_v40 }
 0x1fd   : > { %v2390_v34 = vmul.f32 0.057342287, %v2379_v13  ;;  %v2392_v9 = vmul.f32 0.057342287, %v2381_v38  ;;  %v2409_v19 = vadd.f32 %v10464_v52, %v10482_v26  ;;  %v2391_v11 = vmul.f32 0.057342287, %v2380_v44 }
 0x1fe   : > { %v2393_v58 = vmul.f32 0.057342287, %v2382_v21  ;;  %v2394_v22 = vmul.f32 0.057342287, %v2383_v49  ;;  %v2396_v14 = vadd.f32 %v2385_v37, %v2352_v2  ;;  %v2397_v43 = vadd.f32 %v2386_v33, %v2353_v47  ;;  %v12233_v23 = vld [vmem:[#allocation26_spill] sm:$0xff]  ;;  %v12236_v47 = vld [vmem:[#allocation31_spill] sm:$0xff] }
 0x1ff   : > { %v2398_v3 = vadd.f32 %v2387_v15, %v2354_v24  ;;  %v2399_v17 = vadd.f32 %v2388_v25, %v2355_v42  ;;  %v2410_v63 = vadd.f32 %v10468_v1, %v10497_v31  ;;  %v2400_v20 = vadd.f32 %v2389_v39, %v2356_v8  ;;  %v12228_v31 = vld [vmem:[#allocation25_spill] sm:$0xff]  ;;  %v12239_v0 = vld [vmem:[#allocation11_spill] sm:$0xff]  ;;  %v12242_v38 = vld [vmem:[#allocation40_spill] sm:$0xff] }
 0x200   : > { %v2411_v30 = vadd.f32 %v10470_v28, %v10499_v32  ;;  %v2412_v40 = vadd.f32 %v10475_v35, %v10473_v6  ;;  %v2413_v52 = vadd.f32 %v10477_v57, %v10484_v5  ;;  %v2401_v26 = vadd.f32 %v2390_v34, %v2357_v50  ;;  %v12230_v32 = vld [vmem:[#allocation18_spill] sm:$0xff]  ;;  %v12237_v24 = vld [vmem:[#allocation29_spill] sm:$0xff]  ;;  %v12240_v46 = vld [vmem:[#allocation15_spill] sm:$0xff] }
 0x201   : > { %v2402_v54 = vadd.f32 %v2391_v11, %v2358_v51  ;;  %v2403_v56 = vadd.f32 %v2392_v9, %v2359_v60  ;;  %v2414_v42 = vadd.f32 %v10479_v4, %v10486_v59  ;;  %v2404_v18 = vadd.f32 %v2393_v58, %v2360_v48  ;;  %v12243_v51 = vld [vmem:[#allocation66_spill] sm:$0xff]  ;;  %v12244_v21 = vld [vmem:[#allocation41_spill] sm:$0xff]  ;;  %v12247_v37 = vld [vmem:[#allocation59_spill] sm:$0xff] }
 0x202   : > { %v2405_v27 = vadd.f32 %v2394_v22, %v2361_v45  ;;  %v2415_v1 = vadd.f32 %v10505_v62, %v10503_v55  ;;  %v2416_v28 = vadd.f32 %v12229_v12, %v12228_v31  ;;  %v2417_v29 = vadd.f32 %v12230_v32, %v2318_v16  ;;  %v12234_v55 = vld [vmem:[#allocation44_spill] sm:$0xff]  ;;  %v12246_v45 = vld [vmem:[#allocation33_spill] sm:$0xff]  ;;  %v12248_v15 = vld [vmem:[#allocation35_spill] sm:$0xff] }
 0x203   : > { %v2419_v6 = vmul.f32 0.42370537, %v2408_v36  ;;  %v2420_v35 = vmul.f32 0.42370537, %v2409_v19  ;;  %v2421_v7 = vmul.f32 0.42370537, %v2410_v63  ;;  %v10542_v2 = vmul.f32 %v12231_v53, %v12231_v53 }
 0x204   : > { %v2422_v57 = vmul.f32 0.42370537, %v2411_v30  ;;  %v2423_v5 = vmul.f32 0.42370537, %v2412_v40  ;;  %v2424_v50 = vmul.f32 0.42370537, %v2413_v52  ;;  %v10548_v62 = vmul.f32 %v12234_v55, %v12233_v23 }
 0x205   : > { %12232 = vst [vmem:[#allocation30_spill] sm:$0xff] %v10542_v2  ;;  %v2425_v4 = vmul.f32 0.42370537, %v2414_v42  ;;  %v10544_v59 = vadd.f32 %v2419_v6, %v2396_v14  ;;  %v10552_v10 = vmul.f32 %v12237_v24, %v12236_v47  ;;  %v10554_v61 = vadd.f32 %v2420_v35, %v2397_v43  ;;  %v12249_v25 = vld [vmem:[#allocation12_spill] sm:$0xff]  ;;  %v12250_v39 = vld [vmem:[#allocation45_spill] sm:$0xff]  ;;  %v12251_v34 = vld [vmem:[#allocation55_spill] sm:$0xff] }
 0x206   : > { %12235 = vst [vmem:[#allocation54_spill] sm:$0xff] %v10548_v62  ;;  %v10556_v8 = vadd.f32 %v2421_v7, %v2398_v3  ;;  %v10560_v13 = vmul.f32 %v12240_v46, %v12239_v0  ;;  %v10564_v44 = vmul.f32 %v12243_v51, %v12242_v38  ;;  %v10568_v49 = vmul.f32 %v12244_v21, %v12244_v21  ;;  %v12252_v19 = vld [vmem:[#allocation24_spill] sm:$0xff]  ;;  %v12254_v14 = vld [vmem:[#allocation43_spill] sm:$0xff]  ;;  %v12258_v40 = vld [vmem:[#allocation62_spill] sm:$0xff] }
 0x207   : > { %12238 = vst [vmem:[#allocation50_spill] sm:$0xff] %v10552_v10  ;;  %v10572_v41 = vmul.f32 %v12234_v55, %v12234_v55  ;;  %v10576_v60 = vmul.f32 %v12237_v24, %v12237_v24  ;;  %v10580_v48 = vmul.f32 %v12240_v46, %v12240_v46  ;;  %v2474_v33 = vsub.f32 %v12247_v37, %v12246_v45  ;;  %v12253_v11 = vld [vmem:[#allocation36_spill] sm:$0xff]  ;;  %v12255_v43 = vld [vmem:[#allocation63_spill] sm:$0xff]  ;;  %v12263_v23 = vld [vmem:[#allocation38_spill] sm:$0xff] }
 0x208   : > { %12241 = vst [vmem:[#allocation37_spill] sm:$0xff] %v10560_v13  ;;  %12245 = vst [vmem:[#allocation13_spill] sm:$0xff] %v10568_v49  ;;  %v2475_v36 = vsub.f32 %v12249_v25, %v12248_v15  ;;  %v2476_v9 = vsub.f32 %v12251_v34, %v12250_v39  ;;  %v2477_v58 = vsub.f32 %v12253_v11, %v12252_v19  ;;  %v12256_v63 = vld [vmem:[#allocation16_spill] sm:$0xff]  ;;  %v12259_v52 = vld [vmem:[#allocation47_spill] sm:$0xff]  ;;  %v2426_v47 = vmul.f32 0.42370537, %v2415_v1 }
 0x209   : > { %v10592_v22 = vmul.f32 %v12243_v51, %v12243_v51  ;;  %v2478_v3 = vsub.f32 %v12255_v43, %v12254_v14  ;;  %v12257_v16 = vld [vmem:[#allocation32_spill] sm:$0xff]  ;;  %v2480_v42 = vsub.f32 %v12259_v52, %v12258_v40  ;;  %v2486_v55 = vsub.f32 %v12263_v23, %v10576_v60  ;;  %v12277_v23 = vld [vmem:[#allocation27_spill] sm:$0xff] }
 0x20a   : > { %v2479_v30 = vsub.f32 %v12257_v16, %v12256_v63  ;;  %v12260_v31 = vld [vmem:[#allocation48_spill] sm:$0xff]  ;;  %v2427_v24 = vmul.f32 0.42370537, %v2416_v28  ;;  %v2428_v37 = vmul.f32 0.42370537, %v2417_v29  ;;  %v2433_v25 = vadd.f32 %v2422_v57, %v2399_v17  ;;  %v12268_v57 = vld [vmem:[#allocation69_spill] sm:$0xff] }
 0x20b   : > { %v2482_v12 = vsub.f32 %v12260_v31, %v10542_v2  ;;  %v12261_v32 = vld [vmem:[#allocation56_spill] sm:$0xff]  ;;  %v10612_v34 = vadd.f32 %v2423_v5, %v2400_v20  ;;  %v10614_v11 = vadd.f32 %v2424_v50, %v2401_v26  ;;  %v10616_v43 = vadd.f32 %v2425_v4, %v2402_v54  ;;  %v12266_v20 = vld [vmem:[#allocation67_spill] sm:$0xff]  ;;  %v12269_v50 = vld [vmem:[#allocation70_spill] sm:$0xff] }
 0x20c   : > { %v2483_v6 = vsub.f32 %v12261_v32, %v10568_v49  ;;  %v12262_v35 = vld [vmem:[#allocation64_spill] sm:$0xff]  ;;  %v2496_v16 = vsub.f32 %v10544_v59, %v10548_v62  ;;  %v2497_v1 = vsub.f32 %v10554_v61, %v10552_v10  ;;  %v2498_v28 = vsub.f32 %v10556_v8, %v10560_v13  ;;  %v12272_v4 = vld [vmem:[#allocation51_spill] sm:$0xff]  ;;  %v12273_v61 = vld [vmem:[#allocation14_spill] sm:$0xff] }
 0x20d   : > { %v2485_v7 = vsub.f32 %v12262_v35, %v10572_v41  ;;  %v12264_v0 = vld [vmem:[#allocation60_spill] sm:$0xff]  ;;  %v10624_v52 = vadd.f32 %v2426_v47, %v2403_v56  ;;  %v10626_v31 = vadd.f32 %v2427_v24, %v2404_v18  ;;  %v10628_v17 = vadd.f32 %v2428_v37, %v2405_v27  ;;  %v12271_v18 = vld [vmem:[#allocation71_spill] sm:$0xff]  ;;  %v12278_v24 = vld [vmem:[#allocation42_spill] sm:$0xff] }
 0x20e   : > { %v2487_v46 = vsub.f32 %v12264_v0, %v10580_v48  ;;  %v12265_v38 = vld [vmem:[#allocation52_spill] sm:$0xff]  ;;  %v10632_v26 = vmul.f32 %v12266_v20, %v12266_v20  ;;  %v10640_v5 = vmul.f32 %v12268_v57, %v12268_v57  ;;  %v10644_v56 = vmul.f32 %v12269_v50, %v12269_v50  ;;  %v12275_v32 = vld [vmem:[#allocation23_spill] sm:$0xff]  ;;  %v12279_v37 = vld [vmem:[#allocation49_spill] sm:$0xff] }
 0x20f   : > { %v2488_v51 = vsub.f32 %v12265_v38, %v10592_v22  ;;  %v12267_v54 = vld [vmem:[#allocation68_spill] sm:$0xff]  ;;  %v10648_v27 = vmul.f32 %v12271_v18, %v12271_v18  ;;  %v10652_v59 = vmul.f32 %v12272_v4, %v12272_v4  ;;  %v10656_v8 = vmul.f32 %v12266_v20, %v12273_v61  ;;  %v12280_v61 = vld [vmem:[#allocation34_spill] sm:$0xff]  ;;  %v12285_v10 = vld [vmem:[#allocation53_spill] sm:$0xff] }
 0x210   : > { %v10636_v29 = vmul.f32 %v12267_v54, %v12267_v54  ;;  %12270 = vst [vmem:[#allocation65_spill] sm:$0xff] %v10644_v56  ;;  %v10660_v35 = vmul.f32 %v12267_v54, %v12275_v32  ;;  %v10664_v47 = vmul.f32 %v12268_v57, %v12277_v23  ;;  %v10668_v0 = vmul.f32 %v12269_v50, %v12278_v24  ;;  %v12281_v57 = vld [vmem:[#allocation19_spill] sm:$0xff]  ;;  %v12282_v32 = vld [vmem:[#allocation58_spill] sm:$0xff]  ;;  %v12283_v50 = vld [vmem:[#allocation28_spill] sm:$0xff] }
 0x211   : > { %12274 = vst [vmem:[#allocation22_spill] sm:$0xff] %v10656_v8  ;;  %v10672_v38 = vmul.f32 %v12271_v18, %v12231_v53  ;;  %v2489_v20 = vsub.f32 %v12279_v37, %v10632_v26  ;;  %v10680_v54 = vmul.f32 %v12272_v4, %v12244_v21  ;;  %v2481_v23 = vsub.f32 %v12282_v32, %v12281_v57  ;;  %v12284_v53 = vld [vmem:[#allocation61_spill] sm:$0xff] }
 0x212   : > { %12276 = vst [vmem:[#allocation39_spill] sm:$0xff] %v10660_v35  ;;  %v2490_v13 = vsub.f32 %v12280_v61, %v10636_v29  ;;  %v2491_v24 = vsub.f32 %v12283_v50, %v10640_v5  ;;  %v2492_v18 = vsub.f32 %v12284_v53, %v10644_v56  ;;  %v2493_v37 = vsub.f32 %v12285_v10, %v10648_v27  ;;  %v12286_v62 = vld [vmem:[#allocation57_spill] sm:$0xff] }
 0x213   : > { %v2494_v61 = vsub.f32 %v12286_v62, %v10652_v59  ;;  %v2499_v49 = vsub.f32 %v2433_v25, %v10564_v44  ;;  %v2500_v21 = vsub.f32 %v10612_v34, %v10656_v8  ;;  %v2501_v4 = vsub.f32 %v10614_v11, %v10660_v35  ;;  %v12287_v8 = vld [vmem:[#allocation10_spill] sm:$0xff] }
 0x214   : > { %v2502_v32 = vsub.f32 %v10616_v43, %v10664_v47  ;;  %v2530_v50 = vadd.f32 %v2485_v7, %v2474_v33  ;;  %v2531_v2 = vadd.f32 %v2486_v55, %v2475_v36  ;;  %v2532_v53 = vadd.f32 %v2487_v46, %v2476_v9 }
 0x215   : > { %v2533_v56 = vadd.f32 %v2488_v51, %v2477_v58  ;;  %v2534_v57 = vadd.f32 %v2489_v20, %v2478_v3  ;;  %v2535_v10 = vadd.f32 %v2490_v13, %v2479_v30  ;;  %v2503_v62 = vsub.f32 %v10624_v52, %v10668_v0 }
 0x216   : > { %v2504_v25 = vsub.f32 %v10626_v31, %v10672_v38  ;;  %v2505_v34 = vsub.f32 %v10628_v17, %v10680_v54  ;;  %v2536_v11 = vadd.f32 %v2491_v24, %v2480_v42  ;;  %v2507_v35 = vmul.f32 2.0, %v2496_v16 }
 0x217   : > { %v2541_v43 = vadd.f32 %v2530_v50, %v12287_v8  ;;  %v2542_v33 = vadd.f32 %v2531_v2, %v12287_v8  ;;  %v2543_v36 = vadd.f32 %v2532_v53, %v12287_v8  ;;  %v2508_v9 = vmul.f32 2.0, %v2497_v1 }
 0x218   : > { %v2538_v13 = vadd.f32 %v2493_v37, %v2482_v12  ;;  %v2539_v58 = vadd.f32 %v2494_v61, %v2483_v6  ;;  %v2544_v3 = vadd.f32 %v2533_v56, %v12287_v8  ;;  %v2545_v30 = vadd.f32 %v2534_v57, %v12287_v8 }
 0x219   : > { %v2546_v7 = vadd.f32 %v2535_v10, %v12287_v8  ;;  %8891 = vrcp.f32 %v2541_v43  ;;  %v2597_v42 = vadd.f32 %v10572_v41, %v12246_v45  ;;  %v2598_v2 = vadd.f32 %v10576_v60, %v12248_v15 }
 0x21a   : > { %8893 = vrcp.f32 %v2542_v33  ;;  %v2599_v55 = vadd.f32 %v10580_v48, %v12250_v39  ;;  %v2600_v12 = vadd.f32 %v10592_v22, %v12252_v19  ;;  %v2509_v6 = vmul.f32 2.0, %v2498_v28 }
 0x21b   : > { %v2510_v46 = vmul.f32 2.0, %v2499_v49  ;;  %v2547_v51 = vadd.f32 %v2536_v11, %v12287_v8  ;;  %8895 = vrcp.f32 %v2543_v36  ;;  %v2511_v16 = vmul.f32 2.0, %v2500_v21 }
 0x21c   : > { %v2512_v1 = vmul.f32 2.0, %v2501_v4  ;;  %v2537_v52 = vadd.f32 %v2492_v18, %v2481_v23  ;;  %8897 = vrcp.f32 %v2544_v3  ;;  %v2513_v41 = vmul.f32 2.0, %v2502_v32  ;;  %v12288_v4 = vld [vmem:[#allocation19_spill] sm:$0xff]  ;;  %v12289_v32 = vld [vmem:[#allocation65_spill] sm:$0xff]  ;;  %v12293_v3 = vld [vmem:[#allocation4_spill] sm:$0xff] }
 0x21d   : > { %v2514_v45 = vmul.f32 2.0, %v2503_v62  ;;  %v2549_v31 = vadd.f32 %v2538_v13, %v12287_v8  ;;  %8899 = vrcp.f32 %v2545_v30  ;;  %v10722_v60 = vstv %s427_s9 }
 0x21e   : > { %v2515_v48 = vmul.f32 2.0, %v2504_v25  ;;  %v2550_v15 = vadd.f32 %v2539_v58, %v12287_v8  ;;  %8901 = vrcp.f32 %v2546_v7  ;;  %v2516_v39 = vmul.f32 2.0, %v2505_v34  ;;  %v12290_v25 = vld [vmem:[#allocation30_spill] sm:$0xff] }
 0x21f   : > { %v2519_v49 = vadd.f32 %v12287_v8, %v2507_v35  ;;  %v2520_v19 = vadd.f32 %v12287_v8, %v2508_v9  ;;  %8903 = vrcp.f32 %v2547_v51  ;;  %v2521_v22 = vadd.f32 %v12287_v8, %v2509_v6 }
 0x220   : > { %v2522_v28 = vadd.f32 %v12287_v8, %v2510_v46  ;;  %v2523_v17 = vadd.f32 %v12287_v8, %v2511_v16  ;;  %v2548_v56 = vadd.f32 %v2537_v52, %v12287_v8  ;;  %v2524_v20 = vadd.f32 %v12287_v8, %v2512_v1 }
 0x221   : > { %v2525_v57 = vadd.f32 %v12287_v8, %v2513_v41  ;;  %v10734_v23 = vadd.f32 %v12287_v8, %v2514_v45  ;;  %8905 = vrcp.f32 %v2549_v31  ;;  %v2527_v35 = vadd.f32 %v12287_v8, %v2515_v48 }
 0x222   : > { %8907 = vrcp.f32 %v2550_v15  ;;  %v2601_v24 = vadd.f32 %v10632_v26, %v12254_v14  ;;  %v2602_v18 = vadd.f32 %v10636_v29, %v12256_v63  ;;  %v2528_v61 = vadd.f32 %v12287_v8, %v2516_v39  ;;  %v12291_v8 = vld [vmem:[#allocation13_spill] sm:$0xff]  ;;  %v12295_v15 = vld [vmem:[#allocation54_spill] sm:$0xff] }
 0x223   : > { %v8892_v37 = vpop.eup %8891  ;;  %v2603_v21 = vadd.f32 %v10640_v5, %v12258_v40  ;;  %v2604_v50 = vadd.f32 %v12289_v32, %v12288_v4  ;;  %v2608_v53 = vadd.f32 %v2597_v42, %v10722_v60  ;;  %8909 = vrcp.f32 %v2548_v56  ;;  %v12299_v32 = vld [vmem:[#allocation39_spill] sm:$0xff] }
 0x224   : > { %v8894_v10 = vpop.eup %8893  ;;  %v10747_v62 = vmul.f32 %v8892_v37, %v2519_v49  ;;  %v2605_v14 = vadd.f32 %v10648_v27, %v12290_v25  ;;  %v2609_v63 = vadd.f32 %v2598_v2, %v10722_v60  ;;  %v2606_v40 = vadd.f32 %v10652_v59, %v12291_v8 }
 0x225   : > { %v8896_v26 = vpop.eup %8895  ;;  %v10752_v29 = vmul.f32 %v8894_v10, %v2520_v19  ;;  %v2610_v5 = vadd.f32 %v2599_v55, %v10722_v60  ;;  %v2611_v34 = vadd.f32 %v2600_v12, %v10722_v60  ;;  %v2612_v33 = vadd.f32 %v2601_v24, %v10722_v60 }
 0x226   : > { %v8898_v11 = vpop.eup %8897  ;;  %v10758_v43 = vmul.f32 %v8896_v26, %v2521_v22  ;;  %v2613_v36 = vadd.f32 %v2602_v18, %v10722_v60  ;;  %v2652_v9 = vsel %vm9126_vm6, %v10747_v62, 0.0  ;;  %v2614_v59 = vadd.f32 %v2603_v21, %v10722_v60  ;;  %v12298_v21 = vld [vmem:[#allocation22_spill] sm:$0xff] }
 0x227   : > { %v8900_v13 = vpop.eup %8899  ;;  %v10765_v58 = vmul.f32 %v8898_v11, %v2522_v28  ;;  %v2653_v30 = vsel %vm298_vm1, %v10752_v29, 0.0  ;;  %8911 = vrcp.f32 %v2608_v53  ;;  %v2615_v46 = vadd.f32 %v2604_v50, %v10722_v60  ;;  %v12296_v28 = vld [vmem:[#allocation50_spill] sm:$0xff] }
 0x228   : > { %v8902_v7 = vpop.eup %8901  ;;  %v10771_v42 = vmul.f32 %v8900_v13, %v2523_v17  ;;  %v2654_v2 = vsel %vm298_vm1, %v10758_v43, 0.0  ;;  %v2663_v55 = vadd.f32 %v2653_v30, %v2652_v9  ;;  %8913 = vrcp.f32 %v2609_v63 }
 0x229   : > { %v8904_v12 = vpop.eup %8903  ;;  %v10776_v6 = vmul.f32 %v8902_v7, %v2524_v20  ;;  %v2655_v51 = vsel %vm298_vm1, %v10765_v58, 0.0  ;;  %8915 = vrcp.f32 %v2610_v5  ;;  %v2616_v1 = vadd.f32 %v2605_v14, %v10722_v60  ;;  %v12297_v20 = vld [vmem:[#allocation37_spill] sm:$0xff] }
 0x22a   : > { %v10782_v16 = vmul.f32 %v8904_v12, %v2525_v57  ;;  %v2664_v52 = vadd.f32 %v2663_v55, %v2654_v2  ;;  %8917 = vrcp.f32 %v2611_v34  ;;  %v2617_v45 = vadd.f32 %v2606_v40, %v10722_v60 }
 0x22b   : > { %v8906_v41 = vpop.eup %8905  ;;  %v2656_v48 = vsel %vm9153_vm7, %v10771_v42, 0.0  ;;  %v2574_v39 = vmul.f32 2.0, %v12295_v15  ;;  %8919 = vrcp.f32 %v2612_v33  ;;  %v2575_v17 = vmul.f32 2.0, %v12296_v28 }
 0x22c   : > { %v8908_v49 = vpop.eup %8907  ;;  %v10790_v19 = vmul.f32 %v8906_v41, %v2527_v35  ;;  %v2665_v22 = vadd.f32 %v2664_v52, %v2655_v51  ;;  %8921 = vrcp.f32 %v2613_v36  ;;  %v2576_v57 = vmul.f32 2.0, %v12297_v20 }
 0x22d   : > { %v10793_v56 = vmul.f32 %v8908_v49, %v2528_v61  ;;  %v2577_v24 = vmul.f32 2.0, %v10564_v44  ;;  %8923 = vrcp.f32 %v2614_v59  ;;  %v8910_v18 = vpop.eup %8909  ;;  %v2578_v4 = vmul.f32 2.0, %v12298_v21 }
 0x22e   : > { %v2666_v37 = vadd.f32 %v2665_v22, %v2656_v48  ;;  %v2579_v50 = vmul.f32 2.0, %v12299_v32  ;;  %v2580_v35 = vmul.f32 2.0, %v10664_v47  ;;  %v10801_v53 = vmul.f32 %v8910_v18, %v10734_v23 }
 0x22f   : > { %v2657_v61 = vsel %vm9172_vm8, %v10776_v6, 0.0  ;;  %v2581_v25 = vmul.f32 2.0, %v10668_v0  ;;  %8925 = vrcp.f32 %v2616_v1  ;;  %v2582_v14 = vmul.f32 2.0, %v10672_v38 }
 0x230   : > { %v2667_v44 = vadd.f32 %v2666_v37, %v2657_v61  ;;  %v2586_v63 = vadd.f32 %v10722_v60, %v2574_v39  ;;  %8927 = vrcp.f32 %v2617_v45  ;;  %v2658_v47 = vsel %vm298_vm1, %v10782_v16, 0.0 }
 0x231   : > { %v8912_v26 = vpop.eup %8911  ;;  %v2583_v23 = vmul.f32 2.0, %v10680_v54  ;;  %v2587_v8 = vadd.f32 %v10722_v60, %v2575_v17  ;;  %8929 = vrcp.f32 %v2615_v46  ;;  %v2588_v0 = vadd.f32 %v10722_v60, %v2576_v57 }
 0x232   : > { %v8914_v40 = vpop.eup %8913  ;;  %v2668_v5 = vadd.f32 %v2667_v44, %v2658_v47  ;;  %v2589_v34 = vadd.f32 %v10722_v60, %v2577_v24  ;;  %v2620_v38 = vmul.f32 %v8912_v26, %v2586_v63  ;;  %v2659_v33 = vsel %vm298_vm1, %v10801_v53, 0.0 }
 0x233   : > { %v8916_v11 = vpop.eup %8915  ;;  %v2590_v36 = vadd.f32 %v10722_v60, %v2578_v4  ;;  %v2591_v9 = vadd.f32 %v10722_v60, %v2579_v50  ;;  %v2622_v54 = vmul.f32 %v8914_v40, %v2587_v8  ;;  %v2592_v30 = vadd.f32 %v10722_v60, %v2580_v35 }
 0x234   : > { %v8918_v13 = vpop.eup %8917  ;;  %v2669_v59 = vadd.f32 %v2668_v5, %v2659_v33  ;;  %v2624_v7 = vmul.f32 %v8916_v11, %v2588_v0  ;;  %v2641_v2 = vmul.f32 %v2620_v38, %v10747_v62  ;;  %v2660_v12 = vsel %vm298_vm1, %v10790_v19, 0.0 }
 0x235   : > { %v8920_v55 = vpop.eup %8919  ;;  %v2594_v46 = vadd.f32 %v10722_v60, %v2582_v14  ;;  %v2626_v51 = vmul.f32 %v8918_v13, %v2589_v34  ;;  %v2642_v1 = vmul.f32 %v2622_v54, %v10752_v29  ;;  %v2661_v49 = vsel %vm9188_vm9, %v10793_v56, 0.0 }
 0x236   : > { %v8922_v52 = vpop.eup %8921  ;;  %v2670_v41 = vadd.f32 %v2669_v59, %v2660_v12  ;;  %v2628_v45 = vmul.f32 %v8920_v55, %v2590_v36  ;;  %v2643_v48 = vmul.f32 %v2624_v7, %v10758_v43  ;;  %v2683_v15 = vsel %vm9126_vm6, %v2641_v2, 0.0  ;;  %v12302_v55 = vld [vmem:[#allocation3_spill] sm:$0xff] }
 0x237   : > { %v8924_v39 = vpop.eup %8923  ;;  %v2630_v22 = vmul.f32 %v8922_v52, %v2591_v9  ;;  %v2644_v28 = vmul.f32 %v2626_v51, %v10765_v58  ;;  %v2684_v17 = vsel %vm298_vm1, %v2642_v1, 0.0  ;;  %v2595_v24 = vadd.f32 %v10722_v60, %v2583_v23 }
 0x238   : > { %v2671_v29 = vadd.f32 %v2670_v41, %v2661_v49  ;;  %v2632_v20 = vmul.f32 %v8924_v39, %v2592_v30  ;;  %v2645_v57 = vmul.f32 %v2628_v45, %v10771_v42  ;;  %v2685_v43 = vsel %vm298_vm1, %v2643_v48, 0.0 }
 0x239   : > { %v8926_v27 = vpop.eup %8925  ;;  %v2646_v18 = vmul.f32 %v2630_v22, %v10776_v6  ;;  %v2694_v37 = vadd.f32 %v2684_v17, %v2683_v15  ;;  %v2686_v32 = vsel %vm298_vm1, %v2644_v28, 0.0  ;;  %v2593_v61 = vadd.f32 %v10722_v60, %v2581_v25 }
 0x23a   : > { %v8928_v21 = vpop.eup %8927  ;;  %2673 = vadd.xlane.f32.xlu1 %v2671_v29  ;;  %v2636_v4 = vmul.f32 %v8926_v27, %v2594_v46  ;;  %v2647_v58 = vmul.f32 %v2632_v20, %v10782_v16  ;;  %v2687_v14 = vsel %vm9153_vm7, %v2645_v57, 0.0  ;;  %vm2714_vm10 = vcmp.eq.s32.totalorder %v12302_v55, 0 }
 0x23b   : > { %v8930_v50 = vpop.eup %8929  ;;  %v2638_v35 = vmul.f32 %v8928_v21, %v2595_v24  ;;  %v2695_v42 = vadd.f32 %v2694_v37, %v2685_v43  ;;  %v2688_v23 = vsel %vm9172_vm8, %v2646_v18, 0.0  ;;  %vm2717_vm11 = vcmp.eq.s32.totalorder %v12293_v3, 1 }
 0x23c   : > { %v2649_v44 = vmul.f32 %v2636_v4, %v10790_v19  ;;  %v2634_v26 = vmul.f32 %v8930_v50, %v2593_v61  ;;  %v2689_v40 = vsel %vm298_vm1, %v2647_v58, 0.0  ;;  %vm2715_vm12 = vcmp.eq.s32.totalorder %v12293_v3, 0  ;;  %vm2718_vm13 = vmand %vm2714_vm10, %vm2717_vm11 }
 0x23d   : > { %v2650_v6 = vmul.f32 %v2638_v35, %v10793_v56  ;;  %v2696_v63 = vadd.f32 %v2695_v42, %v2686_v32  ;;  %vm2716_vm14 = vmand %vm2714_vm10, %vm2715_vm12 }
 0x23e   : > { %v2648_v16 = vmul.f32 %v2634_v26, %v10801_v53  ;;  %v2691_v56 = vsel %vm298_vm1, %v2649_v44, 0.0 }
 0x23f   : > { %v2697_v47 = vadd.f32 %v2696_v63, %v2687_v14  ;;  %v2692_v5 = vsel %vm9188_vm9, %v2650_v6, 0.0 }
 0x240   : > { %v2690_v19 = vsel %vm298_vm1, %v2648_v16, 0.0 }
 0x241   : > { %v2698_v8 = vadd.f32 %v2697_v47, %v2688_v23 }
 0x243   : > { %v2699_v60 = vadd.f32 %v2698_v8, %v2689_v40 }
 0x245   : > { %v2700_v31 = vadd.f32 %v2699_v60, %v2690_v19 }
 0x247   : > { %v2701_v25 = vadd.f32 %v2700_v31, %v2691_v56 }
 0x249   : > { %v2702_v53 = vadd.f32 %v2701_v25, %v2692_v5 }
 0x24b   : > { %2704 = vadd.xlane.f32.xlu1 %v2702_v53 }
 0x2c7   : > { %v2674_v10 = vpop.xlane.xlu1 %2673 }
 0x2c8   : > { %v2675_v0 = vrot.slane %v2674_v10, 4 }
 0x2ca   : > { %v2676_v34 = vadd.f32 %v2675_v0, %v2674_v10 }
 0x2cc   : > { %v2677_v38 = vrot.slane %v2676_v34, 2 }
 0x2ce   : > { %v2678_v11 = vadd.f32 %v2677_v38, %v2676_v34 }
 0x2d0   : > { %v2679_v33 = vrot.slane %v2678_v11, 1 }
 0x2d2   : > { %v2680_v36 = vadd.f32 %v2679_v33, %v2678_v11 }
 0x2d4   : > { %8841 = vpush %v2680_v36 }
 0x2d8   : > { %v2705_v9 = vpop.xlane.xlu1 %2704 }
 0x2d9   : > { %v2706_v54 = vrot.slane %v2705_v9, 4 }
 0x2db   : > { %v2707_v13 = vadd.f32 %v2706_v54, %v2705_v9 }
 0x2dd   : > { %v2708_v59 = vrot.slane %v2707_v13, 2 }
 0x2df   : > { %v2709_v30 = vadd.f32 %v2708_v59, %v2707_v13 }
 0x2e1   : > { %v2710_v7 = vrot.slane %v2709_v30, 1 }
 0x2e3   : > { %v2711_v2 = vadd.f32 %v2710_v7, %v2709_v30 }
 0x2e5   : > { %8843 = vpush %v2711_v2 }
 0x305   : > { %s8842_s10 = spop %8841 }
 0x306   : > { %s2682_s11 = smul.f32 0.00016276042, %s8842_s10 }
 0x308   : > { %v2719_v12 = vstv %s2682_s11 }
 0x309   : > { %v2720_v46 = vsel %vm2718_vm13, %v2719_v12, 0.0 }
 0x316   : > { %s8844_s14 = spop %8843 }
 0x317   : > { %s2713_s15 = smul.f32 0.00016276042, %s8844_s14 }
 0x319   : > { %v2721_v51 = vstv %s2713_s15 }
 0x31a   : > { %v2722_v1 = vsel %vm2716_vm14, %v2721_v51, %v2720_v46 }
 0x31b   : > { %2723 = vst [vmem:[%s9031_s29] sm:$0xff] %v2722_v1 }
 0x31c PF: > { %p6481_p5 = scmp.ne.s32.totalorder %s9007_s13, 1 }
 0x31d   : > { %v2728_v3 = vld [vmem:[%s9016_s19] sm:$0xff] (!%p6481_p5)  ;;  %v2729_v52 = vld [vmem:[%s9016_s19 + $0x8] sm:$0xff] (!%p6481_p5)  ;;  %v2730_v41 = vld [vmem:[%s9016_s19 + $0x10] sm:$0xff] (!%p6481_p5)  ;;  %v2752_v45 = vlaneseq (!%p6481_p5) }
 0x31e   : > { %2727 = sbr.rel (%p6481_p5) target bundleno = 1361 (0x551), region = 40  ;;  %v10869_v48 = vpack.c.bf16 (!%p6481_p5), %v2729_v52, %v2728_v3  ;;  %v2731_v15 = vld [vmem:[%s9016_s19 + $0x18] sm:$0xff] (!%p6481_p5)  ;;  %v2732_v62 = vld [vmem:[%s9016_s19 + $0x20] sm:$0xff] (!%p6481_p5)  ;;  %v2733_v49 = vld [vmem:[%s9016_s19 + $0x28] sm:$0xff] (!%p6481_p5) }
 0x31f   : > { %v10872_v39 = vpack.c.bf16 (!%p6481_p5), %v2731_v15, %v2730_v41  ;;  %v10876_v22 = vshrl.u32 (!%p6481_p5), %v2752_v45, 7  ;;  %v10878_v28 = vand.u32 (!%p6481_p5), 127, %v2752_v45  ;;  %v10887_v29 = vpack.c.bf16 (!%p6481_p5), %v2733_v49, %v2732_v62  ;;  %v10890_v20 = vld [vmem:[%s9021_s23] sm:$0xff] (!%p6481_p5)  ;;  %v2734_v43 = vld [vmem:[%s9016_s19 + $0x30] sm:$0xff] (!%p6481_p5)  ;;  %v2735_v27 = vld [vmem:[%s9016_s19 + $0x38] sm:$0xff] (!%p6481_p5) }
 0x320   : > { %8189 = vmatprep.subr.bf16.mxu0 (!%p6481_p5), %v10869_v48  ;;  %8221 = vmatprep.subr.bf16.mxu1 (!%p6481_p5), %v10869_v48  ;;  %v10893_v57 = vld [vmem:[%s9026_s26] sm:$0xff] (!%p6481_p5)  ;;  %v10902_v24 = vld [vmem:[%s9021_s23 + $0x8] sm:$0xff] (!%p6481_p5)  ;;  %v10920_v4 = vpack.c.bf16 (!%p6481_p5), %v2735_v27, %v2734_v43  ;;  %v10923_v58 = vld [vmem:[%s9021_s23 + $0x10] sm:$0xff] (!%p6481_p5)  ;;  %v2813_v11 = vmul.f32 (!%p6481_p5), %v10890_v20, %v10890_v20 }
 0x321   : > { %8191 = vmatpush3.bf16.msra.mxu0 (!%p6481_p5), %v10869_v48  ;;  %8223 = vmatpush3.bf16.msra.mxu1 (!%p6481_p5), %v10869_v48  ;;  %v2755_v17 = vadd.s32 (!%p6481_p5), 16, %v10876_v22  ;;  %vm2759_vm15 = vcmp.ge.s32.totalorder (!%p6481_p5), %v10876_v22, 5  ;;  %vm2771_vm0 = vcmp.lt.s32.totalorder (!%p6481_p5), %v10878_v28, 96  ;;  %v2736_v42 = vld [vmem:[%s9016_s19 + $0x40] sm:$0xff] (!%p6481_p5)  ;;  %v2737_v61 = vld [vmem:[%s9016_s19 + $0x48] sm:$0xff] (!%p6481_p5)  ;;  %v10947_v26 = vmul.f32 (!%p6481_p5), %v10893_v57, %v10890_v20  ;;  %v2738_v23 = vld [vmem:[%s9016_s19 + $0x50] sm:$0xff] (!%p6481_p5) }
 0x322   : > { %8193 = vmatprep.subr.bf16.mxu0 (!%p6481_p5), %v10872_v39  ;;  %8225 = vmatprep.subr.bf16.mxu1 (!%p6481_p5), %v10872_v39  ;;  %v2777_v18 = vsel (!%p6481_p5), %vm2771_vm0, %v10902_v24, -inf  ;;  %v2793_v37 = vsel (!%p6481_p5), %vm2771_vm0, %v10902_v24, inf  ;;  %vm10914_vm2 = vmand (!%p6481_p5), %vm2759_vm15, %vm2771_vm0  ;;  %v10953_v16 = vpack.c.bf16 (!%p6481_p5), %v2737_v61, %v2736_v42  ;;  %v2739_v8 = vld [vmem:[%s9016_s19 + $0x58] sm:$0xff] (!%p6481_p5)  ;;  %v2740_v19 = vld [vmem:[%s9016_s19 + $0x60] sm:$0xff] (!%p6481_p5)  ;;  %v2817_v33 = vmul.f32 (!%p6481_p5), %v10893_v57, %v10893_v57 }
 0x323   : > { %7355 = vmatprep.mubr.f32.mxu0 (!%p6481_p5), %v10890_v20  ;;  %7393 = vmatprep.mubr.f32.mxu1 (!%p6481_p5), %v10893_v57  ;;  %vm2765_vm1 = vcmp.lt.s32.totalorder (!%p6481_p5), %v2755_v17, 21  ;;  %v2776_v50 = vsel (!%p6481_p5), %vm10914_vm2, %v10890_v20, -inf  ;;  %v2792_v35 = vsel (!%p6481_p5), %vm10914_vm2, %v10890_v20, inf  ;;  %v10961_v60 = vpack.c.bf16 (!%p6481_p5), %v2739_v8, %v2738_v23  ;;  %v2741_v31 = vld [vmem:[%s9016_s19 + $0x68] sm:$0xff] (!%p6481_p5)  ;;  %v2742_v25 = vld [vmem:[%s9016_s19 + $0x70] sm:$0xff] (!%p6481_p5)  ;;  %v2743_v5 = vld [vmem:[%s9016_s19 + $0x78] sm:$0xff] (!%p6481_p5) }
 0x324   : > { %vm10927_vm3 = vmand (!%p6481_p5), %vm2765_vm1, %vm2771_vm0  ;;  %v2780_v14 = vmax.f32 (!%p6481_p5), %v2776_v50, %v2777_v18  ;;  %v2796_v6 = vmin.f32 (!%p6481_p5), %v2792_v35, %v2793_v37  ;;  %v10969_v56 = vpack.c.bf16 (!%p6481_p5), %v2741_v31, %v2740_v19  ;;  %v10977_v53 = vpack.c.bf16 (!%p6481_p5), %v2743_v5, %v2742_v25  ;;  %v10986_v10 = vld [vmem:[%s9026_s26 + $0x8] sm:$0xff] (!%p6481_p5)  ;;  %v2750_v0 = vld [vmem:[%s9026_s26 + $0x10] sm:$0xff] (!%p6481_p5) }
 0x325   : > { %8195 = vmatpush3.bf16.msra.mxu0 %v10872_v39  ;;  %8227 = vmatpush3.bf16.msra.mxu1 %v10872_v39  ;;  %v2778_v44 = vsel %vm10927_vm3, %v10923_v58, -inf  ;;  %v2794_v63 = vsel %vm10927_vm3, %v10923_v58, inf  ;;  %v10996_v34 = vld [vmem:[%s9021_s23 + $0x18] sm:$0xff]  ;;  %v2818_v36 = vmul.f32 %v10986_v10, %v10986_v10  ;;  %v2814_v9 = vmul.f32 %v10902_v24, %v10902_v24 }
 0x326   : > { %8197 = vmatprep.subr.bf16.mxu0 %v10887_v29  ;;  %8229 = vmatprep.subr.bf16.mxu1 %v10887_v29  ;;  %v2782_v47 = vmax.f32 %v2780_v14, %v2778_v44  ;;  %v2798_v40 = vmin.f32 %v2796_v6, %v2794_v63  ;;  %v10999_v38 = vld [vmem:[%s9026_s26 + $0x18] sm:$0xff]  ;;  %v2815_v54 = vmul.f32 %v10923_v58, %v10923_v58  ;;  %vm3865_vm4 = vcmp.eq.s32.totalorder %v10876_v22, 0 }
 0x327   : > { %v2819_v13 = vmul.f32 %v2750_v0, %v2750_v0  ;;  %v2816_v59 = vmul.f32 %v10996_v34, %v10996_v34  ;;  %v2820_v30 = vmul.f32 %v10999_v38, %v10999_v38  ;;  %v2823_v7 = vmul.f32 %v2750_v0, %v10923_v58 }
 0x328   : > { %2783 = vmax.xlane.f32.xlu0 %v2782_v47  ;;  %v2822_v2 = vmul.f32 %v10986_v10, %v10902_v24  ;;  %v2824_v55 = vmul.f32 %v10999_v38, %v10996_v34  ;;  %vm3868_vm5 = vcmp.eq.s32.totalorder %v10878_v28, 1  ;;  %vm3866_vm6 = vcmp.eq.s32.totalorder %v10878_v28, 0 }
 0x329   : > { %8199 = vmatpush3.bf16.msra.mxu0 %v10887_v29  ;;  %8231 = vmatpush3.bf16.msra.mxu1 %v10887_v29  ;;  %vm3869_vm7 = vmand %vm3865_vm4, %vm3868_vm5 }
 0x32a   : > { %8201 = vmatprep.subr.bf16.mxu0 %v10920_v4  ;;  %8233 = vmatprep.subr.bf16.mxu1 %v10920_v4  ;;  %vm3867_vm8 = vmand %vm3865_vm4, %vm3866_vm6 }
 0x32c   : > { %2799 = vmin.xlane.f32.xlu0 %v2798_v40 }
 0x32d   : > { %8203 = vmatpush3.bf16.msra.mxu0 %v10920_v4  ;;  %8235 = vmatpush3.bf16.msra.mxu1 %v10920_v4 }
 0x32e   : > { %8205 = vmatprep.subr.bf16.mxu0 %v10953_v16  ;;  %8237 = vmatprep.subr.bf16.mxu1 %v10953_v16 }
 0x331   : > { %8207 = vmatpush3.bf16.msra.mxu0 %v10953_v16  ;;  %8239 = vmatpush3.bf16.msra.mxu1 %v10953_v16 }
 0x332   : > { %8209 = vmatprep.subr.bf16.mxu0 %v10961_v60  ;;  %8241 = vmatprep.subr.bf16.mxu1 %v10961_v60 }
 0x335   : > { %8211 = vmatpush3.bf16.msra.mxu0 %v10961_v60  ;;  %8243 = vmatpush3.bf16.msra.mxu1 %v10961_v60 }
 0x336   : > { %8213 = vmatprep.subr.bf16.mxu0 %v10969_v56  ;;  %8245 = vmatprep.subr.bf16.mxu1 %v10969_v56 }
 0x339   : > { %8215 = vmatpush3.bf16.msra.mxu0 %v10969_v56  ;;  %8247 = vmatpush3.bf16.msra.mxu1 %v10969_v56 }
 0x33a   : > { %8217 = vmatprep.subr.bf16.mxu0 %v10977_v53  ;;  %8249 = vmatprep.subr.bf16.mxu1 %v10977_v53 }
 0x33d   : > { %8219 = vmatpush3.bf16.msra.mxu0 %v10977_v53  ;;  %8251 = vmatpush3.bf16.msra.mxu1 %v10977_v53 }
 0x33e   : > { %8253 = vmatprep.subr.bf16.mxu0 %v10869_v48  ;;  %8285 = vmatprep.subr.bf16.mxu1 %v10869_v48 }
 0x340   : > { %7356 = vmatmul.mubr.f32.vlgmr.msra.gmra.mrb[0].mxu0 %v10902_v24  ;;  %7394 = vmatmul.mubr.f32.vlgmr.msra.gmra.mrb[0].mxu1 %v10986_v10 }
 0x341   : > { %8255 = vmatpush3.bf16.msra.mxu0 %v10869_v48  ;;  %8287 = vmatpush3.bf16.msra.mxu1 %v10869_v48 }
 0x342   : > { %7358 = vmatprep.mubr.f32.mxu0 %v10923_v58  ;;  %7396 = vmatprep.mubr.f32.mxu1 %v2750_v0 }
 0x343   : > { %8257 = vmatprep.subr.bf16.mxu0 %v10872_v39  ;;  %8289 = vmatprep.subr.bf16.mxu1 %v10872_v39 }
 0x344   : > { %7359 = vmatmul.mubr.f32.gmra.mrb[2].mxu0 %v10996_v34  ;;  %7397 = vmatmul.mubr.f32.gmra.mrb[2].mxu1 %v10999_v38 }
 0x345   : > { %8259 = vmatpush3.bf16.msra.mxu0 %v10872_v39  ;;  %8291 = vmatpush3.bf16.msra.mxu1 %v10872_v39 }
 0x346   : > { %8261 = vmatprep.subr.bf16.mxu0 %v10887_v29  ;;  %8293 = vmatprep.subr.bf16.mxu1 %v10887_v29 }
 0x347   : > { %7431 = vmatprep.mubr.f32.mxu0 %v2813_v11  ;;  %7469 = vmatprep.mubr.f32.mxu1 %v2817_v33 }
 0x349   : > { %8263 = vmatpush3.bf16.msra.mxu0 %v10887_v29  ;;  %8295 = vmatpush3.bf16.msra.mxu1 %v10887_v29 }
 0x34a   : > { %8265 = vmatprep.subr.bf16.mxu0 %v10920_v4  ;;  %8297 = vmatprep.subr.bf16.mxu1 %v10920_v4 }
 0x34d   : > { %8267 = vmatpush3.bf16.msra.mxu0 %v10920_v4  ;;  %8299 = vmatpush3.bf16.msra.mxu1 %v10920_v4 }
 0x34e   : > { %8269 = vmatprep.subr.bf16.mxu0 %v10953_v16  ;;  %8301 = vmatprep.subr.bf16.mxu1 %v10953_v16 }
 0x351   : > { %8271 = vmatpush3.bf16.msra.mxu0 %v10953_v16  ;;  %8303 = vmatpush3.bf16.msra.mxu1 %v10953_v16 }
 0x352   : > { %8273 = vmatprep.subr.bf16.mxu0 %v10961_v60  ;;  %8305 = vmatprep.subr.bf16.mxu1 %v10961_v60 }
 0x355   : > { %8275 = vmatpush3.bf16.msra.mxu0 %v10961_v60  ;;  %8307 = vmatpush3.bf16.msra.mxu1 %v10961_v60 }
 0x356   : > { %8277 = vmatprep.subr.bf16.mxu0 %v10969_v56  ;;  %8309 = vmatprep.subr.bf16.mxu1 %v10969_v56 }
 0x359   : > { %8279 = vmatpush3.bf16.msra.mxu0 %v10969_v56  ;;  %8311 = vmatpush3.bf16.msra.mxu1 %v10969_v56 }
 0x35a   : > { %8281 = vmatprep.subr.bf16.mxu0 %v10977_v53  ;;  %8313 = vmatprep.subr.bf16.mxu1 %v10977_v53 }
 0x35d   : > { %8283 = vmatpush3.bf16.msra.mxu0 %v10977_v53  ;;  %8315 = vmatpush3.bf16.msra.mxu1 %v10977_v53 }
 0x35e   : > { %8317 = vmatprep.subr.bf16.mxu0 %v10869_v48  ;;  %8804 = vmatprep.subr.bf16.mxu1 %v10869_v48 }
 0x360   : > { %7432 = vmatmul.mubr.f32.vlgmr.msra.gmra.mrb[4].mxu0 %v2814_v9  ;;  %7470 = vmatmul.mubr.f32.vlgmr.msra.gmra.mrb[4].mxu1 %v2818_v36 }
 0x361   : > { %8319 = vmatpush3.bf16.msra.mxu0 %v10869_v48  ;;  %8812 = vmatpush3.bf16.msra.mxu1 %v10869_v48 }
 0x362   : > { %7434 = vmatprep.mubr.f32.mxu0 %v2815_v54  ;;  %7472 = vmatprep.mubr.f32.mxu1 %v2819_v13 }
 0x363   : > { %8321 = vmatprep.subr.bf16.mxu0 %v10872_v39  ;;  %8805 = vmatprep.subr.bf16.mxu1 %v10872_v39 }
 0x364   : > { %7435 = vmatmul.mubr.f32.gmra.mrb[6].mxu0 %v2816_v59  ;;  %7473 = vmatmul.mubr.f32.gmra.mrb[6].mxu1 %v2820_v30 }
 0x365   : > { %8323 = vmatpush3.bf16.msra.mxu0 %v10872_v39  ;;  %8813 = vmatpush3.bf16.msra.mxu1 %v10872_v39 }
 0x366   : > { %8325 = vmatprep.subr.bf16.mxu0 %v10887_v29  ;;  %8806 = vmatprep.subr.bf16.mxu1 %v10887_v29 }
 0x367   : > { %7507 = vmatprep.mubr.f32.mxu0 %v10947_v26  ;;  %7510 = vmatprep.mubr.f32.mxu1 %v2823_v7 }
 0x369   : > { %8327 = vmatpush3.bf16.msra.mxu0 %v10887_v29  ;;  %8814 = vmatpush3.bf16.msra.mxu1 %v10887_v29 }
 0x36a   : > { %8329 = vmatprep.subr.bf16.mxu0 %v10920_v4  ;;  %8807 = vmatprep.subr.bf16.mxu1 %v10920_v4 }
 0x36d   : > { %8331 = vmatpush3.bf16.msra.mxu0 %v10920_v4  ;;  %8815 = vmatpush3.bf16.msra.mxu1 %v10920_v4 }
 0x36e   : > { %8333 = vmatprep.subr.bf16.mxu0 %v10953_v16  ;;  %8808 = vmatprep.subr.bf16.mxu1 %v10953_v16 }
 0x371   : > { %8335 = vmatpush3.bf16.msra.mxu0 %v10953_v16  ;;  %8816 = vmatpush3.bf16.msra.mxu1 %v10953_v16 }
 0x372   : > { %8337 = vmatprep.subr.bf16.mxu0 %v10961_v60  ;;  %8809 = vmatprep.subr.bf16.mxu1 %v10961_v60 }
 0x375   : > { %8339 = vmatpush3.bf16.msra.mxu0 %v10961_v60  ;;  %8817 = vmatpush3.bf16.msra.mxu1 %v10961_v60 }
 0x376   : > { %8341 = vmatprep.subr.bf16.mxu0 %v10969_v56  ;;  %8810 = vmatprep.subr.bf16.mxu1 %v10969_v56 }
 0x379   : > { %8343 = vmatpush3.bf16.msra.mxu0 %v10969_v56  ;;  %8818 = vmatpush3.bf16.msra.mxu1 %v10969_v56 }
 0x37a   : > { %8345 = vmatprep.subr.bf16.mxu0 %v10977_v53  ;;  %8811 = vmatprep.subr.bf16.mxu1 %v10977_v53 }
 0x37d   : > { %8347 = vmatpush3.bf16.msra.mxu0 %v10977_v53  ;;  %8819 = vmatpush3.bf16.msra.mxu1 %v10977_v53 }
 0x380   : > { %7508 = vmatmul.mubr.f32.vlgmr.msra.gmra.mrb[8].mxu0 %v2822_v2  ;;  %7511 = vmatmul.mubr.f32.vlgmr.msra.gmra.mrb[8].mxu1 %v2824_v55 }
 0x3b5   : > { %v2784_v12 = vpop.xlane.xlu0 %2783 }
 0x3b6   : > { %v2785_v46 = vrot.slane %v2784_v12, 4 }
 0x3b8   : > { %v2786_v51 = vmax.f32 %v2784_v12, %v2785_v46 }
 0x3b9   : > { %v2800_v1 = vpop.xlane.xlu0 %2799 }
 0x3ba   : > { %v2787_v3 = vrot.slane %v2786_v51, 2  ;;  %v2801_v52 = vrot.slane %v2800_v1, 4 }
 0x3bc   : > { %v2802_v41 = vmin.f32 %v2800_v1, %v2801_v52  ;;  %v2788_v45 = vmax.f32 %v2786_v51, %v2787_v3 }
 0x3be   : > { %v2803_v48 = vrot.slane %v2802_v41, 2  ;;  %v2789_v15 = vrot.slane %v2788_v45, 1 }
 0x3c0   : > { %v2804_v39 = vmin.f32 %v2802_v41, %v2803_v48  ;;  %v2790_v62 = vmax.f32 %v2788_v45, %v2789_v15 }
 0x3c2   : > { %8845 = vpush %v2790_v62  ;;  %v2805_v49 = vrot.slane %v2804_v39, 1 }
 0x3c4   : > { %v2806_v17 = vmin.f32 %v2804_v39, %v2805_v49 }
 0x3c6   : > { %8847 = vpush %v2806_v17 }
 0x3f3   : > { %s11097_s16 = spop %8845 }
 0x3f7   : > { %s8848_s17 = spop %8847 }
 0x3f8   : > { %s11104_s18 = ssub.f32 %s11097_s16, %s8848_s17 }
 0x3fa   : > { %s2809_s20 = smul.f32 0.01, %s11104_s18 }
 0x3fb   : > { %s2811_s22 = smul.f32 0.03, %s11104_s18 }
 0x3fc   : > { %s2810_s21 = smul.f32 %s2809_s20, %s2809_s20 }
 0x3fd   : > { %s2812_s24 = smul.f32 %s2811_s22, %s2811_s22 }
 0x413   : > { %v7357_v29 = vpop.f32.mrb[0].mxu0  ;;  %v7395_v20 = vpop.f32.mrb[0].mxu1 }
 0x414   : > { %2911 = vst [vmem:[#allocation2 + $0x10] sm:$0xff] %v7357_v29  ;;  %3000 = vst [vmem:[#allocation2 + $0x30] sm:$0xff] %v7395_v20  ;;  %v2891_v57 = vpop.f32.mrb[1].mxu0  ;;  %v2980_v43 = vpop.f32.mrb[1].mxu1  ;;  %v3275_v8 = vmul.f32 0.0016380112, %v7357_v29 }
 0x415   : > { %2910 = vst [vmem:[#allocation2 + $0x8] sm:$0xff] %v2891_v57  ;;  %2999 = vst [vmem:[#allocation2 + $0x28] sm:$0xff] %v2980_v43  ;;  %v3274_v61 = vmul.f32 0.0016380112, %v2891_v57  ;;  %v3373_v33 = vmul.f32 0.0016380112, %v2980_v43 }
 0x416   : > { %v3374_v36 = vmul.f32 0.0016380112, %v7395_v20 }
 0x417   : > { %v7360_v27 = vpop.f32.mrb[2].mxu0  ;;  %v7398_v24 = vpop.f32.mrb[2].mxu1 }
 0x418   : > { %2913 = vst [vmem:[#allocation2 + $0x20] sm:$0xff] %v7360_v27  ;;  %3002 = vst [vmem:[#allocation2 + $0x40] sm:$0xff] %v7398_v24  ;;  %v11084_v18 = vpop.f32.mrb[3].mxu0  ;;  %v11086_v37 = vpop.f32.mrb[3].mxu1 }
 0x419   : > { %2912 = vst [vmem:[#allocation2 + $0x18] sm:$0xff] %v11084_v18  ;;  %3001 = vst [vmem:[#allocation2 + $0x38] sm:$0xff] %v11086_v37 }
 0x41c   : > { %v3278_v4 = vld [vmem:[#allocation2 + $0x7] sm:$0xff]  ;;  %v3279_v63 = vld [vmem:[#allocation2 + $0xf] sm:$0xff] }
 0x41d   : > { %v3282_v58 = vld [vmem:[#allocation2 + $0x9] sm:$0xff] }
 0x41e   : > { %v3286_v50 = vadd.f32 %v3282_v58, %v3278_v4  ;;  %v3298_v35 = vld [vmem:[#allocation2 + $0x6] sm:$0xff]  ;;  %v3299_v60 = vld [vmem:[#allocation2 + $0xe] sm:$0xff] }
 0x41f   : > { %v3302_v42 = vld [vmem:[#allocation2 + $0xa] sm:$0xff] }
 0x420   : > { %v3306_v44 = vadd.f32 %v3302_v42, %v3298_v35  ;;  %v3318_v14 = vld [vmem:[#allocation2 + $0x5] sm:$0xff]  ;;  %v3290_v26 = vmul.f32 0.0020456284, %v3286_v50  ;;  %v3283_v40 = vld [vmem:[#allocation2 + $0x11] sm:$0xff] }
 0x421   : > { %v3322_v6 = vld [vmem:[#allocation2 + $0xb] sm:$0xff]  ;;  %v3287_v56 = vadd.f32 %v3283_v40, %v3279_v63  ;;  %v11090_v0 = vld [vmem:[#allocation2 + $0x13] sm:$0xff]  ;;  %v3355_v7 = vld [vmem:[#allocation2 + $0x3] sm:$0xff] }
 0x422   : > { %v3326_v47 = vadd.f32 %v3322_v6, %v3318_v14  ;;  %v3338_v16 = vld [vmem:[#allocation2 + $0x4] sm:$0xff]  ;;  %v3339_v23 = vld [vmem:[#allocation2 + $0xc] sm:$0xff]  ;;  %v3294_v25 = vadd.f32 %v3290_v26, %v3274_v61  ;;  %v3310_v53 = vmul.f32 0.00398434, %v3306_v44  ;;  %v11092_v34 = vld [vmem:[#allocation2 + $0x14] sm:$0xff] }
 0x423   : > { %v3303_v19 = vld [vmem:[#allocation2 + $0x12] sm:$0xff]  ;;  %v3343_v31 = vadd.f32 %v3339_v23, %v3338_v16  ;;  %v3377_v9 = vld [vmem:[#allocation2 + $0x27] sm:$0xff]  ;;  %v3291_v54 = vmul.f32 0.0020456284, %v3287_v56  ;;  %v3344_v30 = vadd.f32 %v11092_v34, %v3339_v23 }
 0x424   : > { %v3307_v5 = vadd.f32 %v3303_v19, %v3299_v60  ;;  %v3319_v10 = vld [vmem:[#allocation2 + $0xd] sm:$0xff]  ;;  %v11094_v38 = vld [vmem:[#allocation2 + $0x15] sm:$0xff]  ;;  %v3314_v13 = vadd.f32 %v3310_v53, %v3294_v25  ;;  %v3330_v59 = vmul.f32 0.012103356, %v3326_v47  ;;  %v3356_v46 = vld [vmem:[#allocation2 + $0x25] sm:$0xff] }
 0x425   : > { %v3327_v11 = vadd.f32 %v11090_v0, %v3319_v10  ;;  %v3381_v2 = vld [vmem:[#allocation2 + $0x29] sm:$0xff]  ;;  %v3347_v12 = vmul.f32 0.057342287, %v3343_v31  ;;  %v3295_v1 = vadd.f32 %v3291_v54, %v3275_v8  ;;  %v3358_v45 = vadd.f32 %v3322_v6, %v11094_v38  ;;  %v3382_v15 = vld [vmem:[#allocation2 + $0x31] sm:$0xff]  ;;  %v3304_v54 = vld [vmem:[#allocation2 + $0x1a] sm:$0xff] }
 0x426   : > { %v3311_v55 = vmul.f32 0.00398434, %v3307_v5  ;;  %v3385_v51 = vadd.f32 %v3381_v2, %v3377_v9  ;;  %v3334_v52 = vadd.f32 %v3330_v59, %v3314_v13  ;;  %v3342_v41 = vld [vmem:[#allocation2 + $0x24] sm:$0xff]  ;;  %v3378_v48 = vld [vmem:[#allocation2 + $0x2f] sm:$0xff]  ;;  %v3357_v62 = vadd.f32 %v3355_v7, %v3319_v10  ;;  %v3280_v25 = vld [vmem:[#allocation2 + $0x17] sm:$0xff] }
 0x427   : > { %v3331_v3 = vmul.f32 0.012103356, %v3327_v11  ;;  %v3397_v39 = vld [vmem:[#allocation2 + $0x26] sm:$0xff]  ;;  %v3386_v49 = vadd.f32 %v3382_v15, %v3378_v48  ;;  %v3398_v29 = vld [vmem:[#allocation2 + $0x2e] sm:$0xff]  ;;  %v3348_v27 = vmul.f32 0.057342287, %v3344_v30 }
 0x428   : > { %v3389_v17 = vmul.f32 0.0020456284, %v3385_v51  ;;  %v3401_v20 = vld [vmem:[#allocation2 + $0x2a] sm:$0xff]  ;;  %v3402_v57 = vld [vmem:[#allocation2 + $0x32] sm:$0xff]  ;;  %v3315_v43 = vadd.f32 %v3311_v55, %v3295_v1  ;;  %v3351_v47 = vadd.f32 %v3347_v12, %v3334_v52  ;;  %v3362_v16 = vmul.f32 0.42370537, %v3358_v45 }
 0x429   : > { %v3405_v24 = vadd.f32 %v3401_v20, %v3397_v39  ;;  %v3406_v4 = vadd.f32 %v3402_v57, %v3398_v29  ;;  %v3417_v58 = vld [vmem:[#allocation2 + $0x2d] sm:$0xff]  ;;  %v3325_v42 = vld [vmem:[#allocation2 + $0x23] sm:$0xff]  ;;  %v3390_v61 = vmul.f32 0.0020456284, %v3386_v49  ;;  %v3418_v8 = vld [vmem:[#allocation2 + $0x35] sm:$0xff] }
 0x42a   : > { %v3420_v50 = vld [vmem:[#allocation2 + $0x2b] sm:$0xff]  ;;  %v11101_v35 = vld [vmem:[#allocation2 + $0x33] sm:$0xff]  ;;  %v3393_v44 = vadd.f32 %v3389_v17, %v3373_v33  ;;  %v3335_v26 = vadd.f32 %v3331_v3, %v3315_v43  ;;  %v3453_v11 = vadd.f32 %v3417_v58, %v3325_v42  ;;  %v3276_v7 = vmul.f32 0.0016380112, %v11084_v18 }
 0x42b   : > { %v3424_v14 = vadd.f32 %v3420_v50, %v3356_v46  ;;  %v3425_v6 = vadd.f32 %v11101_v35, %v3417_v58  ;;  %v11107_v63 = vld [vmem:[#allocation2 + $0x34] sm:$0xff]  ;;  %v3409_v23 = vmul.f32 0.00398434, %v3405_v24  ;;  %v3436_v40 = vld [vmem:[#allocation2 + $0x2c] sm:$0xff]  ;;  %v3394_v60 = vadd.f32 %v3390_v61, %v3374_v36  ;;  %v3321_v58 = vld [vmem:[#allocation2 + $0x1d] sm:$0xff] }
 0x42c   : > { %v3410_v19 = vmul.f32 0.00398434, %v3406_v4  ;;  %v3440_v56 = vadd.f32 %v3436_v40, %v3342_v41  ;;  %v3352_v5 = vadd.f32 %v3348_v27, %v3335_v26  ;;  %v3441_v10 = vadd.f32 %v11107_v63, %v3436_v40  ;;  %v3284_v33 = vld [vmem:[#allocation2 + $0x19] sm:$0xff] }
 0x42d   : > { %v3428_v31 = vmul.f32 0.012103356, %v3424_v14  ;;  %v3413_v53 = vadd.f32 %v3409_v23, %v3393_v44  ;;  %v3300_v9 = vld [vmem:[#allocation2 + $0x16] sm:$0xff]  ;;  %v3429_v59 = vmul.f32 0.012103356, %v3425_v6  ;;  %v3454_v30 = vadd.f32 %v3420_v50, %v3418_v8 }
 0x42e   : > { %v3414_v13 = vadd.f32 %v3410_v19, %v3394_v60  ;;  %v3361_v2 = vmul.f32 0.42370537, %v3357_v62  ;;  %v11112_v36 = vadd.f32 %v3362_v16, %v3352_v5  ;;  %v3444_v12 = vmul.f32 0.057342287, %v3440_v56  ;;  %v3324_v46 = vld [vmem:[#allocation2 + $0x1b] sm:$0xff] }
 0x42f   : > { %v3432_v55 = vadd.f32 %v3428_v31, %v3413_v53  ;;  %v3445_v1 = vmul.f32 0.057342287, %v3441_v10  ;;  %v3288_v3 = vadd.f32 %v3284_v33, %v3280_v25  ;;  %v3308_v52 = vadd.f32 %v3304_v54, %v3300_v9  ;;  %v3341_v41 = vld [vmem:[#allocation2 + $0x1c] sm:$0xff] }
 0x430   : > { %v3433_v51 = vadd.f32 %v3429_v59, %v3414_v13  ;;  %v3379_v45 = vld [vmem:[#allocation2 + $0x37] sm:$0xff]  ;;  %v3365_v15 = vadd.f32 %v3361_v2, %v3351_v47  ;;  %v3457_v49 = vmul.f32 0.42370537, %v3453_v11  ;;  %v3375_v17 = vmul.f32 0.0016380112, %v11086_v37 }
 0x431   : > { %v3383_v48 = vld [vmem:[#allocation2 + $0x39] sm:$0xff]  ;;  %v3448_v39 = vadd.f32 %v3444_v12, %v3432_v55  ;;  %v3458_v20 = vmul.f32 0.42370537, %v3454_v30  ;;  %v3292_v57 = vmul.f32 0.0020456284, %v3288_v3  ;;  %v3328_v43 = vadd.f32 %v3324_v46, %v11094_v38 }
 0x432   : > { %v3399_v29 = vld [vmem:[#allocation2 + $0x36] sm:$0xff]  ;;  %v3449_v62 = vadd.f32 %v3445_v1, %v3433_v51  ;;  %v11118_v4 = vmul.f32 %v11112_v36, %v11112_v36  ;;  %v3345_v50 = vadd.f32 %v3341_v41, %v11092_v34  ;;  %v3387_v42 = vadd.f32 %v3383_v48, %v3379_v45 }
 0x433   : > { %v3403_v18 = vld [vmem:[#allocation2 + $0x3a] sm:$0xff]  ;;  %v3461_v24 = vadd.f32 %v3457_v49, %v3448_v39  ;;  %v3296_v37 = vadd.f32 %v3292_v57, %v3276_v7  ;;  %v3312_v44 = vmul.f32 0.00398434, %v3308_v52  ;;  %v11124_v26 = vmul.f32 %v3365_v15, %v3365_v15  ;;  %v7433_v47 = vpop.f32.mrb[4].mxu0  ;;  %v7471_v16 = vpop.f32.mrb[4].mxu1 }
 0x434   : > { %v3422_v27 = vld [vmem:[#allocation2 + $0x3b] sm:$0xff]  ;;  %v3462_v61 = vadd.f32 %v3458_v20, %v3449_v62  ;;  %v3407_v14 = vadd.f32 %v3403_v18, %v3399_v29  ;;  %v3391_v23 = vmul.f32 0.0020456284, %v3387_v42  ;;  %3089 = vst [vmem:[#allocation2 + $0x50] sm:$0xff] %v7433_v47  ;;  %3178 = vst [vmem:[#allocation2 + $0x70] sm:$0xff] %v7471_v16  ;;  %v3069_v34 = vpop.f32.mrb[5].mxu0  ;;  %v3359_v5 = vadd.f32 %v11090_v0, %v3321_v58 }
 0x435   : > { %v3438_v6 = vld [vmem:[#allocation2 + $0x3c] sm:$0xff]  ;;  %v11126_v38 = vmul.f32 %v3461_v24, %v3461_v24  ;;  %v3426_v60 = vadd.f32 %v3422_v27, %v3418_v8  ;;  %v3158_v31 = vpop.f32.mrb[5].mxu1  ;;  %v3316_v56 = vadd.f32 %v3312_v44, %v3296_v37  ;;  %v3332_v25 = vmul.f32 0.012103356, %v3328_v43  ;;  %3088 = vst [vmem:[#allocation2 + $0x48] sm:$0xff] %v3069_v34 }
 0x436   : > { %v3419_v40 = vld [vmem:[#allocation2 + $0x3d] sm:$0xff]  ;;  %v11128_v19 = vmul.f32 %v3462_v61, %v3462_v61  ;;  %3177 = vst [vmem:[#allocation2 + $0x68] sm:$0xff] %v3158_v31  ;;  %v3395_v10 = vadd.f32 %v3391_v23, %v3375_v17  ;;  %v3411_v11 = vmul.f32 0.00398434, %v3407_v14  ;;  %v3442_v33 = vadd.f32 %v3438_v6, %v11107_v63 }
 0x437   : > { %v3811_v53 = vadd.f32 %v11126_v38, %v11124_v26  ;;  %v3336_v9 = vadd.f32 %v3332_v25, %v3316_v56  ;;  %v3349_v54 = vmul.f32 0.057342287, %v3345_v50  ;;  %v3455_v13 = vadd.f32 %v11101_v35, %v3419_v40  ;;  %v7436_v30 = vpop.f32.mrb[6].mxu0  ;;  %v7474_v0 = vpop.f32.mrb[6].mxu1 }
 0x438   : > { %v3812_v8 = vadd.f32 %v11128_v19, %v11118_v4  ;;  %v11137_v59 = vstv %s2810_s21  ;;  %v3415_v7 = vadd.f32 %v3411_v11, %v3395_v10  ;;  %v3430_v2 = vmul.f32 0.012103356, %v3426_v60  ;;  %3091 = vst [vmem:[#allocation2 + $0x60] sm:$0xff] %v7436_v30  ;;  %3180 = vst [vmem:[#allocation2 + $0x80] sm:$0xff] %v7474_v0  ;;  %v3079_v55 = vpop.f32.mrb[7].mxu0  ;;  %v3168_v12 = vpop.f32.mrb[7].mxu1 }
 0x439   : > { %v3353_v46 = vadd.f32 %v3349_v54, %v3336_v9  ;;  %v3363_v51 = vmul.f32 0.42370537, %v3359_v5  ;;  %v11139_v63 = vmul.f32 %v3461_v24, %v3365_v15  ;;  %3090 = vst [vmem:[#allocation2 + $0x58] sm:$0xff] %v3079_v55  ;;  %3179 = vst [vmem:[#allocation2 + $0x78] sm:$0xff] %v3168_v12  ;;  %v3446_v3 = vmul.f32 0.057342287, %v3442_v33 }
 0x43a   : > { %v3434_v1 = vadd.f32 %v3430_v2, %v3415_v7  ;;  %v3815_v35 = vadd.f32 %v3811_v53, %v11137_v59  ;;  %v3459_v41 = vmul.f32 0.42370537, %v3455_v13  ;;  %v11143_v45 = vmul.f32 %v3462_v61, %v11112_v36 }
 0x43b   : > { %v3367_v52 = vadd.f32 %v3363_v51, %v3353_v46  ;;  %v3816_v48 = vadd.f32 %v3812_v8, %v11137_v59  ;;  %v3469_v49 = vmul.f32 0.0016380112, %v3069_v34  ;;  %v3470_v17 = vmul.f32 0.0016380112, %v7433_v47 }
 0x43c   : > { %v3450_v39 = vadd.f32 %v3446_v3, %v3434_v1  ;;  %v3473_v29 = vld [vmem:[#allocation2 + $0x47] sm:$0xff]  ;;  %v11146_v15 = vmul.f32 0.0016380112, %v3158_v31  ;;  %v11148_v62 = vmul.f32 0.0016380112, %v7471_v16  ;;  %8935 = vrcp.f32 %v3815_v35  ;;  %v3474_v58 = vld [vmem:[#allocation2 + $0x4f] sm:$0xff] }
 0x43d   : > { %v3477_v18 = vld [vmem:[#allocation2 + $0x49] sm:$0xff]  ;;  %v3471_v43 = vmul.f32 0.0016380112, %v3079_v55  ;;  %v11150_v24 = vmul.f32 %v3367_v52, %v3367_v52  ;;  %v11152_v42 = vmul.f32 0.0016380112, %v3168_v12  ;;  %8937 = vrcp.f32 %v3816_v48 }
 0x43e   : > { %v3423_v20 = vld [vmem:[#allocation2 + $0x43] sm:$0xff]  ;;  %v3463_v57 = vadd.f32 %v3459_v41, %v3450_v39  ;;  %v3481_v27 = vadd.f32 %v3477_v18, %v3473_v29  ;;  %v3494_v14 = vld [vmem:[#allocation2 + $0x4e] sm:$0xff]  ;;  %v11159_v25 = vmul.f32 2.0, %v11139_v63  ;;  %v11162_v5 = vmul.f32 2.0, %v11143_v45 }
 0x43f   : > { %v3452_v36 = vld [vmem:[#allocation2 + $0x45] sm:$0xff]  ;;  %v3513_v47 = vld [vmem:[#allocation2 + $0x4d] sm:$0xff] }
 0x440   : > { %v3493_v50 = vld [vmem:[#allocation2 + $0x46] sm:$0xff]  ;;  %v3485_v44 = vmul.f32 0.0020456284, %v3481_v27  ;;  %v11154_v16 = vmul.f32 %v3463_v57, %v3463_v57  ;;  %v11156_v23 = vmul.f32 %v3463_v57, %v3367_v52  ;;  %v3475_v40 = vld [vmem:[#allocation2 + $0x57] sm:$0xff]  ;;  %v3549_v56 = vadd.f32 %v3513_v47, %v3423_v20 }
 0x441   : > { %v3573_v61 = vld [vmem:[#allocation2 + $0x69] sm:$0xff]  ;;  %v3478_v60 = vld [vmem:[#allocation2 + $0x51] sm:$0xff]  ;;  %v3479_v34 = vld [vmem:[#allocation2 + $0x59] sm:$0xff] }
 0x442   : > { %v3569_v37 = vld [vmem:[#allocation2 + $0x67] sm:$0xff]  ;;  %v3482_v53 = vadd.f32 %v3478_v60, %v3474_v58  ;;  %v3483_v10 = vadd.f32 %v3479_v34, %v3475_v40  ;;  %v3489_v11 = vadd.f32 %v3485_v44, %v3469_v49  ;;  %v3495_v33 = vld [vmem:[#allocation2 + $0x56] sm:$0xff]  ;;  %v11166_v54 = vadd.f32 %v11154_v16, %v11150_v24 }
 0x443   : > { %v3497_v6 = vld [vmem:[#allocation2 + $0x4a] sm:$0xff]  ;;  %v3498_v8 = vld [vmem:[#allocation2 + $0x52] sm:$0xff]  ;;  %v3499_v9 = vld [vmem:[#allocation2 + $0x5a] sm:$0xff]  ;;  %v3577_v12 = vadd.f32 %v3573_v61, %v3569_v37 }
 0x444   : > { %v3501_v31 = vadd.f32 %v3497_v6, %v3493_v50  ;;  %v3439_v13 = vld [vmem:[#allocation2 + $0x44] sm:$0xff]  ;;  %v3502_v30 = vadd.f32 %v3498_v8, %v3494_v14  ;;  %v3503_v0 = vadd.f32 %v3499_v9, %v3495_v33  ;;  %v3514_v2 = vld [vmem:[#allocation2 + $0x55] sm:$0xff]  ;;  %v3486_v46 = vmul.f32 0.0020456284, %v3482_v53  ;;  %v3532_v29 = vld [vmem:[#allocation2 + $0x4c] sm:$0xff] }
 0x445   : > { %v3516_v55 = vld [vmem:[#allocation2 + $0x4b] sm:$0xff]  ;;  %v3487_v51 = vmul.f32 0.0020456284, %v3483_v10  ;;  %v3517_v1 = vld [vmem:[#allocation2 + $0x53] sm:$0xff]  ;;  %v3518_v3 = vld [vmem:[#allocation2 + $0x5b] sm:$0xff]  ;;  %v3536_v61 = vadd.f32 %v3532_v29, %v3439_v13 }
 0x446   : > { %v3505_v7 = vmul.f32 0.00398434, %v3501_v31  ;;  %v3520_v35 = vadd.f32 %v3516_v55, %v3452_v36  ;;  %v3550_v52 = vadd.f32 %v3516_v55, %v3514_v2  ;;  %v3506_v41 = vmul.f32 0.00398434, %v3502_v30  ;;  %v3515_v57 = vld [vmem:[#allocation2 + $0x5d] sm:$0xff]  ;;  %v3533_v50 = vld [vmem:[#allocation2 + $0x54] sm:$0xff] }
 0x447   : > { %v3507_v48 = vmul.f32 0.00398434, %v3503_v0  ;;  %v3521_v49 = vadd.f32 %v3517_v1, %v3513_v47  ;;  %v3490_v18 = vadd.f32 %v3486_v46, %v3470_v17  ;;  %v3491_v20 = vadd.f32 %v3487_v51, %v3471_v43  ;;  %v3534_v44 = vld [vmem:[#allocation2 + $0x5c] sm:$0xff]  ;;  %v3574_v53 = vld [vmem:[#allocation2 + $0x71] sm:$0xff]  ;;  %v3589_v47 = vld [vmem:[#allocation2 + $0x66] sm:$0xff] }
 0x448   : > { %v3509_v39 = vadd.f32 %v3505_v7, %v3489_v11  ;;  %v3522_v27 = vadd.f32 %v3518_v3, %v3514_v2  ;;  %v3524_v58 = vmul.f32 0.012103356, %v3520_v35  ;;  %v3537_v37 = vadd.f32 %v3533_v50, %v3532_v29  ;;  %v3571_v40 = vld [vmem:[#allocation2 + $0x77] sm:$0xff]  ;;  %v11168_v11 = vpop.eup %8935  ;;  %v3570_v2 = vld [vmem:[#allocation2 + $0x6f] sm:$0xff] }
 0x449   : > { %v3525_v14 = vmul.f32 0.012103356, %v3521_v49  ;;  %v3538_v6 = vadd.f32 %v3534_v44, %v3533_v50  ;;  %v3510_v60 = vadd.f32 %v3506_v41, %v3490_v18  ;;  %v3511_v36 = vadd.f32 %v3507_v48, %v3491_v20  ;;  %v3575_v10 = vld [vmem:[#allocation2 + $0x79] sm:$0xff]  ;;  %v11170_v9 = vpop.eup %8937  ;;  %v3593_v41 = vld [vmem:[#allocation2 + $0x6a] sm:$0xff] }
 0x44a   : > { %v3526_v34 = vmul.f32 0.012103356, %v3522_v27  ;;  %v3528_v31 = vadd.f32 %v3524_v58, %v3509_v39  ;;  %v3540_v17 = vmul.f32 0.057342287, %v3536_v61  ;;  %v3541_v43 = vmul.f32 0.057342287, %v3537_v37 }
 0x44b   : > { %v3542_v33 = vmul.f32 0.057342287, %v3538_v6  ;;  %v3551_v8 = vadd.f32 %v3517_v1, %v3515_v57  ;;  %v3529_v30 = vadd.f32 %v3525_v14, %v3510_v60  ;;  %v3553_v0 = vmul.f32 0.42370537, %v3549_v56  ;;  %v3591_v55 = vld [vmem:[#allocation2 + $0x76] sm:$0xff]  ;;  %v3548_v18 = vld [vmem:[#allocation2 + $0x65] sm:$0xff] }
 0x44c   : > { %v3530_v13 = vadd.f32 %v3526_v34, %v3511_v36  ;;  %v3554_v7 = vmul.f32 0.42370537, %v3550_v52  ;;  %v3544_v46 = vadd.f32 %v3540_v17, %v3528_v31  ;;  %v3578_v3 = vadd.f32 %v3574_v53, %v3570_v2  ;;  %v3594_v48 = vld [vmem:[#allocation2 + $0x72] sm:$0xff]  ;;  %v3595_v39 = vld [vmem:[#allocation2 + $0x7a] sm:$0xff]  ;;  %v3535_v14 = vld [vmem:[#allocation2 + $0x64] sm:$0xff] }
 0x44d   : > { %v3555_v51 = vmul.f32 0.42370537, %v3551_v8  ;;  %v3579_v35 = vadd.f32 %v3575_v10, %v3571_v40  ;;  %v3545_v49 = vadd.f32 %v3541_v43, %v3529_v30  ;;  %v3581_v20 = vmul.f32 0.0020456284, %v3577_v12  ;;  %v3590_v1 = vld [vmem:[#allocation2 + $0x6e] sm:$0xff]  ;;  %v3614_v60 = vld [vmem:[#allocation2 + $0x7b] sm:$0xff] }
 0x44e   : > { %v3546_v29 = vadd.f32 %v3542_v33, %v3530_v13  ;;  %v3597_v57 = vadd.f32 %v3593_v41, %v3589_v47  ;;  %v11172_v27 = vadd.f32 %v3553_v0, %v3544_v46  ;;  %v3582_v58 = vmul.f32 0.0020456284, %v3578_v3  ;;  %v3610_v50 = vld [vmem:[#allocation2 + $0x75] sm:$0xff]  ;;  %v3609_v10 = vld [vmem:[#allocation2 + $0x6d] sm:$0xff]  ;;  %v3519_v17 = vld [vmem:[#allocation2 + $0x63] sm:$0xff] }
 0x44f   : > { %v3583_v56 = vmul.f32 0.0020456284, %v3579_v35  ;;  %v3598_v52 = vadd.f32 %v3594_v48, %v3590_v1  ;;  %v3613_v44 = vld [vmem:[#allocation2 + $0x73] sm:$0xff]  ;;  %v11174_v61 = vadd.f32 %v3554_v7, %v3545_v49  ;;  %v3585_v6 = vadd.f32 %v3581_v20, %v11146_v15  ;;  %v3612_v47 = vld [vmem:[#allocation2 + $0x6b] sm:$0xff]  ;;  %v3630_v0 = vld [vmem:[#allocation2 + $0x7c] sm:$0xff] }
 0x450   : > { %v11176_v37 = vadd.f32 %v3555_v51, %v3546_v29  ;;  %v3599_v40 = vadd.f32 %v3595_v39, %v3591_v55  ;;  %v3629_v36 = vld [vmem:[#allocation2 + $0x74] sm:$0xff]  ;;  %v3586_v12 = vadd.f32 %v3582_v58, %v11148_v62  ;;  %v3601_v31 = vmul.f32 0.00398434, %v3597_v57  ;;  %v3628_v13 = vld [vmem:[#allocation2 + $0x6c] sm:$0xff]  ;;  %v3611_v2 = vld [vmem:[#allocation2 + $0x7d] sm:$0xff] }
 0x451   : > { %v3587_v34 = vadd.f32 %v3583_v56, %v11152_v42  ;;  %v3602_v53 = vmul.f32 0.00398434, %v3598_v52  ;;  %v3616_v33 = vadd.f32 %v3612_v47, %v3548_v18  ;;  %v3617_v8 = vadd.f32 %v3613_v44, %v3609_v10 }
 0x452   : > { %v3603_v43 = vmul.f32 0.00398434, %v3599_v40  ;;  %v3618_v30 = vadd.f32 %v3614_v60, %v3610_v50  ;;  %v3605_v15 = vadd.f32 %v3601_v31, %v3585_v6  ;;  %v3632_v55 = vadd.f32 %v3628_v13, %v3535_v14 }
 0x453   : > { %v3606_v7 = vadd.f32 %v3602_v53, %v3586_v12  ;;  %v3633_v46 = vadd.f32 %v3629_v36, %v3628_v13  ;;  %v3620_v51 = vmul.f32 0.012103356, %v3616_v33  ;;  %v3621_v42 = vmul.f32 0.012103356, %v3617_v8  ;;  %v7509_v49 = vpop.f32.mrb[8].mxu0  ;;  %v7512_v29 = vpop.f32.mrb[8].mxu1 }
 0x454   : > { %v3607_v62 = vadd.f32 %v3603_v43, %v3587_v34  ;;  %v3622_v3 = vmul.f32 0.012103356, %v3618_v30  ;;  %v3634_v35 = vadd.f32 %v3630_v0, %v3629_v36  ;;  %v3636_v41 = vmul.f32 0.057342287, %v3632_v55  ;;  %3267 = vst [vmem:[#allocation2 + $0x90] sm:$0xff] %v7509_v49  ;;  %3269 = vst [vmem:[#allocation2 + $0xa0] sm:$0xff] %v7512_v29 }
 0x455   : > { %v3637_v48 = vmul.f32 0.057342287, %v3633_v46  ;;  %v3645_v39 = vadd.f32 %v3609_v10, %v3519_v17  ;;  %v3624_v18 = vadd.f32 %v3620_v51, %v3605_v15  ;;  %v3625_v20 = vadd.f32 %v3621_v42, %v3606_v7  ;;  %v3247_v58 = vpop.f32.mrb[9].mxu0  ;;  %v3257_v56 = vpop.f32.mrb[9].mxu1 }
 0x456   : > { %v3626_v1 = vadd.f32 %v3622_v3, %v3607_v62  ;;  %v3646_v57 = vadd.f32 %v3612_v47, %v3610_v50  ;;  %v3638_v52 = vmul.f32 0.057342287, %v3634_v35  ;;  %v3647_v14 = vadd.f32 %v3613_v44, %v3611_v2  ;;  %3266 = vst [vmem:[#allocation2 + $0x88] sm:$0xff] %v3247_v58  ;;  %3268 = vst [vmem:[#allocation2 + $0x98] sm:$0xff] %v3257_v56 }
 0x457   : > { %v3765_v6 = vsub.f32 %v11172_v27, %v11124_v26  ;;  %v3640_v40 = vadd.f32 %v3636_v41, %v3624_v18  ;;  %v3641_v60 = vadd.f32 %v3637_v48, %v3625_v20  ;;  %v3649_v36 = vmul.f32 0.42370537, %v3645_v39 }
 0x458   : > { %v3650_v12 = vmul.f32 0.42370537, %v3646_v57  ;;  %v3642_v34 = vadd.f32 %v3638_v52, %v3626_v1  ;;  %v3651_v31 = vmul.f32 0.42370537, %v3647_v14  ;;  %v3807_v50 = vadd.f32 %v11137_v59, %v11159_v25 }
 0x459   : > { %v3808_v53 = vadd.f32 %v11137_v59, %v11162_v5  ;;  %v3653_v10 = vadd.f32 %v3649_v36, %v3640_v40  ;;  %v3766_v26 = vsub.f32 %v11174_v61, %v11118_v4  ;;  %v3767_v27 = vsub.f32 %v11176_v37, %v11150_v24 }
 0x45a   : > { %v3654_v44 = vadd.f32 %v3650_v12, %v3641_v60  ;;  %v3655_v47 = vadd.f32 %v3651_v31, %v3642_v34  ;;  %v3817_v17 = vadd.f32 %v11166_v54, %v11137_v59  ;;  %v11195_v43 = vmul.f32 %v11168_v11, %v3807_v50 }
 0x45b   : > { %v3769_v25 = vsub.f32 %v3653_v10, %v11126_v38  ;;  %v11200_v5 = vmul.f32 %v11170_v9, %v3808_v53  ;;  %v11202_v8 = vstv %s2812_s24  ;;  %v3661_v30 = vmul.f32 0.0016380112, %v3247_v58 }
 0x45c   : > { %v3770_v33 = vsub.f32 %v3654_v44, %v11128_v19  ;;  %v3771_v4 = vsub.f32 %v3655_v47, %v11154_v16  ;;  %8939 = vrcp.f32 %v3817_v17  ;;  %v3662_v19 = vmul.f32 0.0016380112, %v7509_v49 }
 0x45d   : > { %v3786_v61 = vadd.f32 %v3769_v25, %v3765_v6  ;;  %v3665_v54 = vld [vmem:[#allocation2 + $0x87] sm:$0xff]  ;;  %v3666_v13 = vld [vmem:[#allocation2 + $0x8f] sm:$0xff]  ;;  %v3667_v11 = vld [vmem:[#allocation2 + $0x97] sm:$0xff]  ;;  %v3804_v16 = vmul.f32 2.0, %v11156_v23  ;;  %v3663_v41 = vmul.f32 0.0016380112, %v3257_v56 }
 0x45e   : > { %v3787_v24 = vadd.f32 %v3770_v33, %v3766_v26  ;;  %v3788_v37 = vadd.f32 %v3771_v4, %v3767_v27  ;;  %v3669_v15 = vld [vmem:[#allocation2 + $0x89] sm:$0xff]  ;;  %v3670_v9 = vld [vmem:[#allocation2 + $0x91] sm:$0xff]  ;;  %v3671_v7 = vld [vmem:[#allocation2 + $0x99] sm:$0xff] }
 0x45f   : > { %v3790_v0 = vadd.f32 %v3786_v61, %v11202_v8  ;;  %v3644_v55 = vld [vmem:[#allocation2 + $0x85] sm:$0xff]  ;;  %v3673_v46 = vadd.f32 %v3669_v15, %v3665_v54  ;;  %v3674_v62 = vadd.f32 %v3670_v9, %v3666_v13  ;;  %v3675_v51 = vadd.f32 %v3671_v7, %v3667_v11  ;;  %v3686_v3 = vld [vmem:[#allocation2 + $0x8e] sm:$0xff]  ;;  %v3687_v35 = vld [vmem:[#allocation2 + $0x96] sm:$0xff] }
 0x460   : > { %v3791_v38 = vadd.f32 %v3787_v24, %v11202_v8  ;;  %v3792_v2 = vadd.f32 %v3788_v37, %v11202_v8  ;;  %v3685_v42 = vld [vmem:[#allocation2 + $0x86] sm:$0xff]  ;;  %v3690_v39 = vld [vmem:[#allocation2 + $0x92] sm:$0xff]  ;;  %v3691_v29 = vld [vmem:[#allocation2 + $0x9a] sm:$0xff]  ;;  %v3809_v40 = vadd.f32 %v11137_v59, %v3804_v16 }
 0x461   : > { %8941 = vrcp.f32 %v3790_v0  ;;  %v3689_v48 = vld [vmem:[#allocation2 + $0x8a] sm:$0xff]  ;;  %v3677_v49 = vmul.f32 0.0020456284, %v3673_v46  ;;  %v3678_v18 = vmul.f32 0.0020456284, %v3674_v62  ;;  %v3694_v58 = vadd.f32 %v3690_v39, %v3686_v3  ;;  %v3706_v6 = vld [vmem:[#allocation2 + $0x95] sm:$0xff] }
 0x462   : > { %8943 = vrcp.f32 %v3791_v38  ;;  %v3679_v20 = vmul.f32 0.0020456284, %v3675_v51  ;;  %v3693_v1 = vadd.f32 %v3689_v48, %v3685_v42  ;;  %v3631_v57 = vld [vmem:[#allocation2 + $0x84] sm:$0xff]  ;;  %v3695_v52 = vadd.f32 %v3691_v29, %v3687_v35  ;;  %v3705_v14 = vld [vmem:[#allocation2 + $0x8d] sm:$0xff]  ;;  %v3710_v50 = vld [vmem:[#allocation2 + $0x9b] sm:$0xff] }
 0x463   : > { %8945 = vrcp.f32 %v3792_v2  ;;  %v3681_v60 = vadd.f32 %v3677_v49, %v3661_v30  ;;  %v3682_v36 = vadd.f32 %v3678_v18, %v3662_v19  ;;  %v3708_v34 = vld [vmem:[#allocation2 + $0x8b] sm:$0xff]  ;;  %v3709_v31 = vld [vmem:[#allocation2 + $0x93] sm:$0xff]  ;;  %v3698_v53 = vmul.f32 0.00398434, %v3694_v58  ;;  %v3615_v17 = vld [vmem:[#allocation2 + $0x83] sm:$0xff] }
 0x464   : > { %v3683_v12 = vadd.f32 %v3679_v20, %v3663_v41  ;;  %v3697_v56 = vmul.f32 0.00398434, %v3693_v1  ;;  %v3699_v10 = vmul.f32 0.00398434, %v3695_v52  ;;  %v3712_v44 = vadd.f32 %v3708_v34, %v3644_v55  ;;  %v3724_v27 = vld [vmem:[#allocation2 + $0x8c] sm:$0xff]  ;;  %v3725_v47 = vld [vmem:[#allocation2 + $0x94] sm:$0xff] }
 0x465   : > { %v3713_v26 = vadd.f32 %v3709_v31, %v3705_v14  ;;  %v3714_v33 = vadd.f32 %v3710_v50, %v3706_v6  ;;  %v3726_v4 = vld [vmem:[#allocation2 + $0x9c] sm:$0xff]  ;;  %v3728_v61 = vadd.f32 %v3724_v27, %v3631_v57  ;;  %v3729_v24 = vadd.f32 %v3725_v47, %v3724_v27 }
 0x466   : > { %v3701_v25 = vadd.f32 %v3697_v56, %v3681_v60  ;;  %v8940_v59 = vpop.eup %8939  ;;  %v3702_v37 = vadd.f32 %v3698_v53, %v3682_v36  ;;  %v3703_v30 = vadd.f32 %v3699_v10, %v3683_v12  ;;  %v3707_v54 = vld [vmem:[#allocation2 + $0x9d] sm:$0xff]  ;;  %v3716_v13 = vmul.f32 0.012103356, %v3712_v44 }
 0x467   : > { %v3717_v11 = vmul.f32 0.012103356, %v3713_v26  ;;  %v3718_v0 = vmul.f32 0.012103356, %v3714_v33  ;;  %v3730_v38 = vadd.f32 %v3726_v4, %v3725_v47  ;;  %v3732_v19 = vmul.f32 0.057342287, %v3728_v61 }
 0x468   : > { %v3733_v15 = vmul.f32 0.057342287, %v3729_v24  ;;  %v3720_v9 = vadd.f32 %v3716_v13, %v3701_v25  ;;  %v3741_v2 = vadd.f32 %v3705_v14, %v3615_v17  ;;  %v3742_v16 = vadd.f32 %v3708_v34, %v3706_v6 }
 0x469   : > { %v3721_v7 = vadd.f32 %v3717_v11, %v3702_v37  ;;  %v3722_v46 = vadd.f32 %v3718_v0, %v3703_v30  ;;  %v3734_v62 = vmul.f32 0.057342287, %v3730_v38  ;;  %v3743_v51 = vadd.f32 %v3709_v31, %v3707_v54 }
 0x46a   : > { %v3824_v42 = vmul.f32 %v8940_v59, %v3809_v40  ;;  %v3736_v35 = vadd.f32 %v3732_v19, %v3720_v9  ;;  %v3745_v48 = vmul.f32 0.42370537, %v3741_v2  ;;  %v3746_v39 = vmul.f32 0.42370537, %v3742_v16 }
 0x46b   : > { %v8942_v55 = vpop.eup %8941  ;;  %v3737_v41 = vadd.f32 %v3733_v15, %v3721_v7  ;;  %v3738_v29 = vadd.f32 %v3734_v62, %v3722_v46  ;;  %v3747_v49 = vmul.f32 0.42370537, %v3743_v51 }
 0x46c   : > { %v8944_v3 = vpop.eup %8943  ;;  %v3749_v20 = vadd.f32 %v3745_v48, %v3736_v35 }
 0x46d   : > { %v8946_v18 = vpop.eup %8945  ;;  %v3750_v1 = vadd.f32 %v3746_v39, %v3737_v41  ;;  %v3751_v57 = vadd.f32 %v3747_v49, %v3738_v29 }
 0x46e   : > { %v3773_v58 = vsub.f32 %v3749_v20, %v11139_v63 }
 0x46f   : > { %v3774_v52 = vsub.f32 %v3750_v1, %v11143_v45  ;;  %v3775_v14 = vsub.f32 %v3751_v57, %v11156_v23 }
 0x470   : > { %v3777_v6 = vmul.f32 2.0, %v3773_v58 }
 0x471   : > { %v3778_v60 = vmul.f32 2.0, %v3774_v52  ;;  %v3779_v40 = vmul.f32 2.0, %v3775_v14 }
 0x472   : > { %v3782_v36 = vadd.f32 %v11202_v8, %v3777_v6 }
 0x473   : > { %v3783_v12 = vadd.f32 %v11202_v8, %v3778_v60  ;;  %v3784_v56 = vadd.f32 %v11202_v8, %v3779_v40 }
 0x474   : > { %v3795_v34 = vmul.f32 %v8942_v55, %v3782_v36 }
 0x475   : > { %v3797_v31 = vmul.f32 %v8944_v3, %v3783_v12  ;;  %v3799_v50 = vmul.f32 %v8946_v18, %v3784_v56 }
 0x476   : > { %v3831_v53 = vsel %vm10914_vm2, %v3795_v34, 0.0  ;;  %v3827_v45 = vmul.f32 %v11195_v43, %v3795_v34 }
 0x477   : > { %v3832_v63 = vsel %vm2771_vm0, %v3797_v31, 0.0  ;;  %v3828_v23 = vmul.f32 %v11200_v5, %v3797_v31  ;;  %v3829_v44 = vmul.f32 %v3824_v42, %v3799_v50  ;;  %v3833_v26 = vsel %vm10927_vm3, %v3799_v50, 0.0 }
 0x478   : > { %v3835_v10 = vadd.f32 %v3832_v63, %v3831_v53  ;;  %v3848_v8 = vsel %vm10914_vm2, %v3827_v45, 0.0 }
 0x479   : > { %v3849_v27 = vsel %vm2771_vm0, %v3828_v23, 0.0  ;;  %v3850_v25 = vsel %vm10927_vm3, %v3829_v44, 0.0 }
 0x47a   : > { %v3836_v47 = vadd.f32 %v3835_v10, %v3833_v26  ;;  %v3852_v17 = vadd.f32 %v3849_v27, %v3848_v8 }
 0x47c   : > { %3838 = vadd.xlane.f32.xlu1 %v3836_v47  ;;  %v3853_v43 = vadd.f32 %v3852_v17, %v3850_v25 }
 0x480   : > { %3855 = vadd.xlane.f32.xlu1 %v3853_v43 }
 0x509   : > { %v3839_v5 = vpop.xlane.xlu1 %3838 }
 0x50a   : > { %v3840_v33 = vrot.slane %v3839_v5, 4 }
 0x50c   : > { %v3841_v4 = vadd.f32 %v3840_v33, %v3839_v5 }
 0x50d   : > { %v3856_v61 = vpop.xlane.xlu1 %3855 }
 0x50e   : > { %v3842_v24 = vrot.slane %v3841_v4, 2  ;;  %v3857_v59 = vrot.slane %v3856_v61, 4 }
 0x510   : > { %v3858_v37 = vadd.f32 %v3857_v59, %v3856_v61  ;;  %v3843_v21 = vadd.f32 %v3842_v24, %v3841_v4 }
 0x512   : > { %v3859_v30 = vrot.slane %v3858_v37, 2  ;;  %v3844_v54 = vrot.slane %v3843_v21, 1 }
 0x514   : > { %v3860_v13 = vadd.f32 %v3859_v30, %v3858_v37  ;;  %v3845_v11 = vadd.f32 %v3844_v54, %v3843_v21 }
 0x516   : > { %8849 = vpush %v3845_v11  ;;  %v3861_v0 = vrot.slane %v3860_v13, 1 }
 0x518   : > { %v3862_v32 = vadd.f32 %v3861_v0, %v3860_v13 }
 0x51a   : > { %8851 = vpush %v3862_v32 }
 0x547   : > { %s8850_s25 = spop %8849 }
 0x548   : > { %s3847_s27 = smul.f32 0.0006510417, %s8850_s25 }
 0x54a   : > { %v3870_v38 = vstv %s3847_s27 }
 0x54b   : > { %s8852_s28 = spop %8851  ;;  %v3871_v19 = vsel %vm3869_vm7, %v3870_v38, 0.0 }
 0x54c   : > { %s3864_s30 = smul.f32 0.0006510417, %s8852_s28 }
 0x54e   : > { %v3872_v15 = vstv %s3864_s30 }
 0x54f   : > { %v3873_v9 = vsel %vm3867_vm8, %v3872_v15, %v3871_v19 }
 0x550   : > { %3874 = vst [vmem:[%s9031_s29] sm:$0xff] %v3873_v9 }
 0x551 PF: > { %p6482_p6 = scmp.ne.s32.totalorder %s9007_s13, 2 }
 0x552   : > { %v3879_v22 = vld [vmem:[%s9016_s19] sm:$0xff] (!%p6482_p6)  ;;  %v3880_v7 = vld [vmem:[%s9016_s19 + $0x8] sm:$0xff] (!%p6482_p6)  ;;  %v3881_v28 = vld [vmem:[%s9016_s19 + $0x10] sm:$0xff] (!%p6482_p6)  ;;  %v3901_v2 = vlaneseq (!%p6482_p6)  ;;  %v8978_v16 = vmov (!%p6482_p6), 0.0|0.0   ;;  %vm8979_vm9 = vmmov (!%p6482_p6), 0   ;;  %v8980_v62 = vmov (!%p6482_p6), 0.0  }
 0x553   : > { %3878 = sbr.rel (%p6482_p6) target bundleno = 1923 (0x783), region = 44  ;;  %8348 = vmatprep.subr.bf16.mxu0 (!%p6482_p6), %v8978_v16  ;;  %8372 = vmatprep.subr.bf16.mxu1 (!%p6482_p6), %v8978_v16  ;;  %v11240_v55 = vpack.c.bf16 (!%p6482_p6), %v3880_v7, %v3879_v22  ;;  %v3882_v46 = vld [vmem:[%s9016_s19 + $0x18] sm:$0xff] (!%p6482_p6)  ;;  %v3883_v35 = vld [vmem:[%s9016_s19 + $0x20] sm:$0xff] (!%p6482_p6)  ;;  %v3884_v41 = vld [vmem:[%s9016_s19 + $0x28] sm:$0xff] (!%p6482_p6) }
 0x554   : > { %7545 = vmatprep.mubr.msk.f32.mxu0 (!%p6482_p6), %vm8979_vm9, %v8980_v62  ;;  %7586 = vmatprep.mubr.msk.f32.mxu1 (!%p6482_p6), %vm8979_vm9, %v8980_v62  ;;  %v11247_v51 = vshrl.u32 (!%p6482_p6), %v3901_v2, 7  ;;  %v11249_v42 = vand.u32 (!%p6482_p6), 127, %v3901_v2  ;;  %v11253_v3 = vpack.c.bf16 (!%p6482_p6), %v3882_v46, %v3881_v28  ;;  %v11264_v39 = vpack.c.bf16 (!%p6482_p6), %v3884_v41, %v3883_v35  ;;  %v3885_v29 = vld [vmem:[%s9016_s19 + $0x30] sm:$0xff] (!%p6482_p6)  ;;  %v11268_v49 = vld [vmem:[%s9021_s23] sm:$0xff] (!%p6482_p6)  ;;  %v3886_v20 = vld [vmem:[%s9016_s19 + $0x38] sm:$0xff] (!%p6482_p6) }
 0x555   : > { %8350 = vmatpush3.bf16.msra.mxu0 (!%p6482_p6), %v11240_v55  ;;  %8374 = vmatpush3.bf16.msra.mxu1 (!%p6482_p6), %v11240_v55  ;;  %v11278_v1 = vld [vmem:[%s9021_s23 + $0x8] sm:$0xff] (!%p6482_p6)  ;;  %v11298_v40 = vpack.c.bf16 (!%p6482_p6), %v3886_v20, %v3885_v29  ;;  %v3887_v36 = vld [vmem:[%s9016_s19 + $0x40] sm:$0xff] (!%p6482_p6)  ;;  %v3889_v31 = vld [vmem:[%s9016_s19 + $0x50] sm:$0xff] (!%p6482_p6)  ;;  %v3953_v43 = vmul.f32 (!%p6482_p6), %v11268_v49, %v11268_v49 }
 0x556   : > { %8351 = vmatprep.subr.bf16.mxu0 (!%p6482_p6), %v8978_v16  ;;  %8375 = vmatprep.subr.bf16.mxu1 (!%p6482_p6), %v8978_v16  ;;  %v3903_v48 = vadd.s32 (!%p6482_p6), 8, %v11247_v51  ;;  %vm3907_vm10 = vcmp.ge.s32.totalorder (!%p6482_p6), %v11247_v51, 5  ;;  %vm3916_vm11 = vcmp.lt.s32.totalorder (!%p6482_p6), %v11249_v42, 48  ;;  %v3888_v12 = vld [vmem:[%s9016_s19 + $0x48] sm:$0xff] (!%p6482_p6)  ;;  %v3890_v50 = vld [vmem:[%s9016_s19 + $0x58] sm:$0xff] (!%p6482_p6)  ;;  %v3891_v63 = vld [vmem:[%s9016_s19 + $0x60] sm:$0xff] (!%p6482_p6)  ;;  %v3954_v5 = vmul.f32 (!%p6482_p6), %v11278_v1, %v11278_v1 }
 0x557   : > { %vm11270_vm13 = vmand (!%p6482_p6), %vm3907_vm10, %vm3916_vm11  ;;  %v11306_v34 = vpack.c.bf16 (!%p6482_p6), %v3888_v12, %v3887_v36  ;;  %v11314_v53 = vpack.c.bf16 (!%p6482_p6), %v3890_v50, %v3889_v31  ;;  %v3892_v45 = vld [vmem:[%s9016_s19 + $0x68] sm:$0xff] (!%p6482_p6)  ;;  %v3893_v10 = vld [vmem:[%s9016_s19 + $0x70] sm:$0xff] (!%p6482_p6)  ;;  %vm4829_vm15 = vcmp.eq.s32.totalorder (!%p6482_p6), %v11247_v51, 0  ;;  %vm4832_vm0 = vcmp.eq.s32.totalorder (!%p6482_p6), %v11249_v42, 1 }
 0x558   : > { %vm3911_vm12 = vcmp.lt.s32.totalorder (!%p6482_p6), %v3903_v48, 13  ;;  %v3920_v58 = vsel (!%p6482_p6), %vm11270_vm13, %v11268_v49, -inf  ;;  %v3934_v6 = vsel (!%p6482_p6), %vm11270_vm13, %v11268_v49, inf  ;;  %v11322_v23 = vpack.c.bf16 (!%p6482_p6), %v3892_v45, %v3891_v63  ;;  %v3894_v44 = vld [vmem:[%s9016_s19 + $0x78] sm:$0xff] (!%p6482_p6)  ;;  %v11337_v8 = vld [vmem:[%s9026_s26] sm:$0xff] (!%p6482_p6)  ;;  %v11346_v27 = vld [vmem:[%s9026_s26 + $0x8] sm:$0xff] (!%p6482_p6) }
 0x559   : > { %8353 = vmatpush3.bf16.msra.mxu0 (!%p6482_p6), %v11253_v3  ;;  %8377 = vmatpush3.bf16.msra.mxu1 (!%p6482_p6), %v11253_v3  ;;  %vm11280_vm14 = vmand (!%p6482_p6), %vm3911_vm12, %vm3916_vm11  ;;  %v11330_v26 = vpack.c.bf16 (!%p6482_p6), %v3894_v44, %v3893_v10  ;;  %v11359_v47 = vld [vmem:[%s9021_s23 + $0x10] sm:$0xff] (!%p6482_p6)  ;;  %v3956_v25 = vmul.f32 (!%p6482_p6), %v11337_v8, %v11337_v8  ;;  %v3957_v33 = vmul.f32 (!%p6482_p6), %v11346_v27, %v11346_v27  ;;  %vm4830_vm1 = vcmp.eq.s32.totalorder (!%p6482_p6), %v11249_v42, 0 }
 0x55a   : > { %8354 = vmatprep.subr.bf16.mxu0 %v8978_v16  ;;  %8378 = vmatprep.subr.bf16.mxu1 %v8978_v16  ;;  %v3921_v52 = vsel %vm11280_vm14, %v11278_v1, -inf  ;;  %v3935_v60 = vsel %vm11280_vm14, %v11278_v1, inf  ;;  %v11362_v17 = vld [vmem:[%s9026_s26 + $0x10] sm:$0xff]  ;;  %v3955_v4 = vmul.f32 %v11359_v47, %v11359_v47  ;;  %v3959_v24 = vmul.f32 %v11337_v8, %v11268_v49  ;;  %vm4833_vm2 = vmand %vm4829_vm15, %vm4832_vm0 }
 0x55b   : > { %v3923_v14 = vmax.f32 %v3920_v58, %v3921_v52  ;;  %v3937_v56 = vmin.f32 %v3934_v6, %v3935_v60  ;;  %v3958_v61 = vmul.f32 %v11362_v17, %v11362_v17  ;;  %v3960_v59 = vmul.f32 %v11346_v27, %v11278_v1  ;;  %vm4831_vm3 = vmand %vm4829_vm15, %vm4830_vm1 }
 0x55c   : > { %v3961_v37 = vmul.f32 %v11362_v17, %v11359_v47 }
 0x55d   : > { %8356 = vmatpush3.bf16.msra.mxu0 %v11264_v39  ;;  %8380 = vmatpush3.bf16.msra.mxu1 %v11264_v39 }
 0x55e   : > { %8357 = vmatprep.subr.bf16.mxu0 %v8978_v16  ;;  %8381 = vmatprep.subr.bf16.mxu1 %v8978_v16 }
 0x55f   : > { %3925 = vmax.xlane.f32.xlu0 %v3923_v14 }
 0x561   : > { %8359 = vmatpush3.bf16.msra.mxu0 %v11298_v40  ;;  %8383 = vmatpush3.bf16.msra.mxu1 %v11298_v40 }
 0x562   : > { %8360 = vmatprep.subr.bf16.mxu0 %v8978_v16  ;;  %8384 = vmatprep.subr.bf16.mxu1 %v8978_v16 }
 0x563   : > { %3939 = vmin.xlane.f32.xlu0 %v3937_v56 }
 0x565   : > { %8362 = vmatpush3.bf16.msra.mxu0 %v11306_v34  ;;  %8386 = vmatpush3.bf16.msra.mxu1 %v11306_v34 }
 0x566   : > { %8363 = vmatprep.subr.bf16.mxu0 %v8978_v16  ;;  %8387 = vmatprep.subr.bf16.mxu1 %v8978_v16 }
 0x569   : > { %8365 = vmatpush3.bf16.msra.mxu0 %v11314_v53  ;;  %8389 = vmatpush3.bf16.msra.mxu1 %v11314_v53 }
 0x56a   : > { %8366 = vmatprep.subr.bf16.mxu0 %v8978_v16  ;;  %8390 = vmatprep.subr.bf16.mxu1 %v8978_v16 }
 0x56d   : > { %8368 = vmatpush3.bf16.msra.mxu0 %v11322_v23  ;;  %8392 = vmatpush3.bf16.msra.mxu1 %v11322_v23 }
 0x56e   : > { %8369 = vmatprep.subr.bf16.mxu0 %v8978_v16  ;;  %8393 = vmatprep.subr.bf16.mxu1 %v8978_v16 }
 0x571   : > { %8371 = vmatpush3.bf16.msra.mxu0 %v11330_v26  ;;  %8395 = vmatpush3.bf16.msra.mxu1 %v11330_v26 }
 0x572   : > { %8396 = vmatprep.subr.bf16.mxu0 %v8978_v16  ;;  %8420 = vmatprep.subr.bf16.mxu1 %v8978_v16 }
 0x574   : > { %7546 = vmatmul.mubr.f32.vlgmr.msra.gmra.mrb[0].mxu0 %v11268_v49  ;;  %7587 = vmatmul.mubr.f32.vlgmr.msra.gmra.mrb[0].mxu1 %v11337_v8 }
 0x575   : > { %8398 = vmatpush3.bf16.msra.mxu0 %v11240_v55  ;;  %8422 = vmatpush3.bf16.msra.mxu1 %v11240_v55 }
 0x576   : > { %7548 = vmatprep.mubr.msk.f32.mxu0 %vm8979_vm9, %v8980_v62  ;;  %7589 = vmatprep.mubr.msk.f32.mxu1 %vm8979_vm9, %v8980_v62 }
 0x577   : > { %8399 = vmatprep.subr.bf16.mxu0 %v8978_v16  ;;  %8423 = vmatprep.subr.bf16.mxu1 %v8978_v16 }
 0x578   : > { %7549 = vmatmul.mubr.f32.gmra.mrb[2].mxu0 %v11278_v1  ;;  %7590 = vmatmul.mubr.f32.gmra.mrb[2].mxu1 %v11346_v27 }
 0x579   : > { %8401 = vmatpush3.bf16.msra.mxu0 %v11253_v3  ;;  %8425 = vmatpush3.bf16.msra.mxu1 %v11253_v3 }
 0x57a   : > { %7551 = vmatprep.mubr.msk.f32.mxu0 %vm8979_vm9, %v8980_v62  ;;  %7592 = vmatprep.mubr.msk.f32.mxu1 %vm8979_vm9, %v8980_v62 }
 0x57b   : > { %8402 = vmatprep.subr.bf16.mxu0 %v8978_v16  ;;  %8426 = vmatprep.subr.bf16.mxu1 %v8978_v16 }
 0x57c   : > { %7552 = vmatmul.mubr.f32.gmra.mrb[4].mxu0 %v11359_v47  ;;  %7593 = vmatmul.mubr.f32.gmra.mrb[4].mxu1 %v11362_v17 }
 0x57d   : > { %8404 = vmatpush3.bf16.msra.mxu0 %v11264_v39  ;;  %8428 = vmatpush3.bf16.msra.mxu1 %v11264_v39 }
 0x57e   : > { %8405 = vmatprep.subr.bf16.mxu0 %v8978_v16  ;;  %8429 = vmatprep.subr.bf16.mxu1 %v8978_v16 }
 0x57f   : > { %7627 = vmatprep.mubr.msk.f32.mxu0 %vm8979_vm9, %v8980_v62  ;;  %7668 = vmatprep.mubr.msk.f32.mxu1 %vm8979_vm9, %v8980_v62 }
 0x581   : > { %8407 = vmatpush3.bf16.msra.mxu0 %v11298_v40  ;;  %8431 = vmatpush3.bf16.msra.mxu1 %v11298_v40 }
 0x582   : > { %8408 = vmatprep.subr.bf16.mxu0 %v8978_v16  ;;  %8432 = vmatprep.subr.bf16.mxu1 %v8978_v16 }
 0x585   : > { %8410 = vmatpush3.bf16.msra.mxu0 %v11306_v34  ;;  %8434 = vmatpush3.bf16.msra.mxu1 %v11306_v34 }
 0x586   : > { %8411 = vmatprep.subr.bf16.mxu0 %v8978_v16  ;;  %8435 = vmatprep.subr.bf16.mxu1 %v8978_v16 }
 0x589   : > { %8413 = vmatpush3.bf16.msra.mxu0 %v11314_v53  ;;  %8437 = vmatpush3.bf16.msra.mxu1 %v11314_v53 }
 0x58a   : > { %8414 = vmatprep.subr.bf16.mxu0 %v8978_v16  ;;  %8438 = vmatprep.subr.bf16.mxu1 %v8978_v16 }
 0x58d   : > { %8416 = vmatpush3.bf16.msra.mxu0 %v11322_v23  ;;  %8440 = vmatpush3.bf16.msra.mxu1 %v11322_v23 }
 0x58e   : > { %8417 = vmatprep.subr.bf16.mxu0 %v8978_v16  ;;  %8441 = vmatprep.subr.bf16.mxu1 %v8978_v16 }
 0x591   : > { %8419 = vmatpush3.bf16.msra.mxu0 %v11330_v26  ;;  %8443 = vmatpush3.bf16.msra.mxu1 %v11330_v26 }
 0x592   : > { %8444 = vmatprep.subr.bf16.mxu0 %v8978_v16  ;;  %8820 = vmatprep.subr.bf16.mxu1 %v8978_v16 }
 0x594   : > { %7628 = vmatmul.mubr.f32.vlgmr.msra.gmra.mrb[6].mxu0 %v3953_v43  ;;  %7669 = vmatmul.mubr.f32.vlgmr.msra.gmra.mrb[6].mxu1 %v3956_v25 }
 0x595   : > { %8446 = vmatpush3.bf16.msra.mxu0 %v11240_v55  ;;  %8828 = vmatpush3.bf16.msra.mxu1 %v11240_v55 }
 0x596   : > { %7630 = vmatprep.mubr.msk.f32.mxu0 %vm8979_vm9, %v8980_v62  ;;  %7671 = vmatprep.mubr.msk.f32.mxu1 %vm8979_vm9, %v8980_v62 }
 0x597   : > { %8447 = vmatprep.subr.bf16.mxu0 %v8978_v16  ;;  %8821 = vmatprep.subr.bf16.mxu1 %v8978_v16 }
 0x598   : > { %7631 = vmatmul.mubr.f32.gmra.mrb[8].mxu0 %v3954_v5  ;;  %7672 = vmatmul.mubr.f32.gmra.mrb[8].mxu1 %v3957_v33 }
 0x599   : > { %8449 = vmatpush3.bf16.msra.mxu0 %v11253_v3  ;;  %8829 = vmatpush3.bf16.msra.mxu1 %v11253_v3 }
 0x59a   : > { %7633 = vmatprep.mubr.msk.f32.mxu0 %vm8979_vm9, %v8980_v62  ;;  %7674 = vmatprep.mubr.msk.f32.mxu1 %vm8979_vm9, %v8980_v62 }
 0x59b   : > { %8450 = vmatprep.subr.bf16.mxu0 %v8978_v16  ;;  %8822 = vmatprep.subr.bf16.mxu1 %v8978_v16 }
 0x59c   : > { %7634 = vmatmul.mubr.f32.gmra.mrb[10].mxu0 %v3955_v4  ;;  %7675 = vmatmul.mubr.f32.gmra.mrb[10].mxu1 %v3958_v61 }
 0x59d   : > { %8452 = vmatpush3.bf16.msra.mxu0 %v11264_v39  ;;  %8830 = vmatpush3.bf16.msra.mxu1 %v11264_v39 }
 0x59e   : > { %8453 = vmatprep.subr.bf16.mxu0 %v8978_v16  ;;  %8823 = vmatprep.subr.bf16.mxu1 %v8978_v16 }
 0x59f   : > { %7709 = vmatprep.mubr.msk.f32.mxu0 %vm8979_vm9, %v8980_v62  ;;  %7712 = vmatprep.mubr.msk.f32.mxu1 %vm8979_vm9, %v8980_v62 }
 0x5a1   : > { %8455 = vmatpush3.bf16.msra.mxu0 %v11298_v40  ;;  %8831 = vmatpush3.bf16.msra.mxu1 %v11298_v40 }
 0x5a2   : > { %8456 = vmatprep.subr.bf16.mxu0 %v8978_v16  ;;  %8824 = vmatprep.subr.bf16.mxu1 %v8978_v16 }
 0x5a5   : > { %8458 = vmatpush3.bf16.msra.mxu0 %v11306_v34  ;;  %8832 = vmatpush3.bf16.msra.mxu1 %v11306_v34 }
 0x5a6   : > { %8459 = vmatprep.subr.bf16.mxu0 %v8978_v16  ;;  %8825 = vmatprep.subr.bf16.mxu1 %v8978_v16 }
 0x5a9   : > { %8461 = vmatpush3.bf16.msra.mxu0 %v11314_v53  ;;  %8833 = vmatpush3.bf16.msra.mxu1 %v11314_v53 }
 0x5aa   : > { %8462 = vmatprep.subr.bf16.mxu0 %v8978_v16  ;;  %8826 = vmatprep.subr.bf16.mxu1 %v8978_v16 }
 0x5ad   : > { %8464 = vmatpush3.bf16.msra.mxu0 %v11322_v23  ;;  %8834 = vmatpush3.bf16.msra.mxu1 %v11322_v23 }
 0x5ae   : > { %8465 = vmatprep.subr.bf16.mxu0 %v8978_v16  ;;  %8827 = vmatprep.subr.bf16.mxu1 %v8978_v16 }
 0x5b1   : > { %8467 = vmatpush3.bf16.msra.mxu0 %v11330_v26  ;;  %8835 = vmatpush3.bf16.msra.mxu1 %v11330_v26 }
 0x5b4   : > { %7710 = vmatmul.mubr.f32.vlgmr.msra.gmra.mrb[12].mxu0 %v3959_v24  ;;  %7713 = vmatmul.mubr.f32.vlgmr.msra.gmra.mrb[12].mxu1 %v3960_v59 }
 0x5b5   : > { %7715 = vmatprep.mubr.msk.f32.mxu1 %vm8979_vm9, %v8980_v62 }
 0x5b8   : > { %7716 = vmatmul.mubr.f32.gmra.mrb[14].mxu1 %v3961_v37 }
 0x5ec   : > { %v3926_v21 = vpop.xlane.xlu0 %3925 }
 0x5ed   : > { %v3927_v30 = vrot.slane %v3926_v21, 4 }
 0x5ef   : > { %v3928_v54 = vmax.f32 %v3926_v21, %v3927_v30 }
 0x5f0   : > { %v3940_v13 = vpop.xlane.xlu0 %3939 }
 0x5f1   : > { %v3929_v11 = vrot.slane %v3928_v54, 2  ;;  %v3941_v0 = vrot.slane %v3940_v13, 4 }
 0x5f3   : > { %v3942_v32 = vmin.f32 %v3940_v13, %v3941_v0  ;;  %v3930_v38 = vmax.f32 %v3928_v54, %v3929_v11 }
 0x5f5   : > { %v3943_v19 = vrot.slane %v3942_v32, 2  ;;  %v3931_v15 = vrot.slane %v3930_v38, 1 }
 0x5f7   : > { %v3944_v9 = vmin.f32 %v3942_v32, %v3943_v19  ;;  %v3932_v22 = vmax.f32 %v3930_v38, %v3931_v15 }
 0x5f9   : > { %8853 = vpush %v3932_v22  ;;  %v3945_v7 = vrot.slane %v3944_v9, 1 }
 0x5fb   : > { %v3946_v28 = vmin.f32 %v3944_v9, %v3945_v7 }
 0x5fd   : > { %8855 = vpush %v3946_v28 }
 0x62a   : > { %s11462_s4 = spop %8853 }
 0x62e   : > { %s8856_s5 = spop %8855 }
 0x62f   : > { %s11465_s6 = ssub.f32 %s11462_s4, %s8856_s5 }
 0x631   : > { %s3949_s7 = smul.f32 0.01, %s11465_s6 }
 0x632   : > { %s3951_s9 = smul.f32 0.03, %s11465_s6 }
 0x633   : > { %s3950_s8 = smul.f32 %s3949_s7, %s3949_s7 }
 0x634   : > { %s3952_s10 = smul.f32 %s3951_s9, %s3951_s9 }
 0x647   : > { %v4111_v2 = vpop.f32.mrb[0].mxu1  ;;  %v4028_v16 = vpop.f32.mrb[0].mxu0 }
 0x648   : > { %4125 = vst [vmem:[#allocation2 + $0x20] sm:$0xff] %v4111_v2  ;;  %v7588_v55 = vpop.f32.mrb[1].mxu1  ;;  %4042 = vst [vmem:[#allocation2 + $0x8] sm:$0xff] %v4028_v16  ;;  %v7547_v46 = vpop.f32.mrb[1].mxu0  ;;  %v4380_v36 = vmul.f32 0.0016380112, %v4028_v16 }
 0x649   : > { %v4455_v63 = vmul.f32 0.0016380112, %v4111_v2 }
 0x64b   : > { %v4033_v62 = vpop.f32.mrb[2].mxu0  ;;  %v4116_v3 = vpop.f32.mrb[2].mxu1 }
 0x64c   : > { %4043 = vst [vmem:[#allocation2 + $0x10] sm:$0xff] %v4033_v62  ;;  %4126 = vst [vmem:[#allocation2 + $0x28] sm:$0xff] %v4116_v3  ;;  %v7550_v35 = vpop.f32.mrb[3].mxu0  ;;  %v7591_v41 = vpop.f32.mrb[3].mxu1  ;;  %v4381_v8 = vmul.f32 0.0016380112, %v4033_v62 }
 0x64d   : > { %v4456_v61 = vmul.f32 0.0016380112, %v4116_v3 }
 0x64f   : > { %v4038_v48 = vpop.f32.mrb[4].mxu0  ;;  %v4121_v39 = vpop.f32.mrb[4].mxu1  ;;  %v4383_v20 = vld [vmem:[#allocation2 + $0x7] sm:$0xff] }
 0x650   : > { %4044 = vst [vmem:[#allocation2 + $0x18] sm:$0xff] %v4038_v48  ;;  %4127 = vst [vmem:[#allocation2 + $0x30] sm:$0xff] %v4121_v39  ;;  %v7594_v29 = vpop.f32.mrb[5].mxu1  ;;  %v7553_v49 = vpop.f32.mrb[5].mxu0  ;;  %v4398_v1 = vld [vmem:[#allocation2 + $0x6] sm:$0xff] }
 0x651   : > { %v4413_v52 = vld [vmem:[#allocation2 + $0x5] sm:$0xff] }
 0x652   : > { %v4428_v40 = vld [vmem:[#allocation2 + $0x4] sm:$0xff] }
 0x653   : > { %v4386_v58 = vld [vmem:[#allocation2 + $0x9] sm:$0xff]  ;;  %v4461_v59 = vld [vmem:[#allocation2 + $0x21] sm:$0xff] }
 0x654   : > { %v4389_v14 = vadd.f32 %v4386_v58, %v4383_v20  ;;  %v4401_v6 = vld [vmem:[#allocation2 + $0xa] sm:$0xff]  ;;  %v4476_v0 = vld [vmem:[#allocation2 + $0x22] sm:$0xff] }
 0x655   : > { %v4416_v60 = vld [vmem:[#allocation2 + $0xb] sm:$0xff]  ;;  %v4404_v12 = vadd.f32 %v4401_v6, %v4398_v1  ;;  %v4441_v53 = vld [vmem:[#allocation2 + $0x3] sm:$0xff] }
 0x656   : > { %v4429_v56 = vld [vmem:[#allocation2 + $0xc] sm:$0xff]  ;;  %v4392_v31 = vmul.f32 0.0020456284, %v4389_v14  ;;  %v4419_v50 = vadd.f32 %v4416_v60, %v4413_v52  ;;  %v4490_v29 = vld [vmem:[#allocation2 + $0x23] sm:$0xff] }
 0x657   : > { %v4384_v34 = vld [vmem:[#allocation2 + $0xf] sm:$0xff]  ;;  %v4407_v44 = vmul.f32 0.00398434, %v4404_v12  ;;  %v4432_v26 = vadd.f32 %v4429_v56, %v4428_v40  ;;  %v4458_v24 = vld [vmem:[#allocation2 + $0x1f] sm:$0xff]  ;;  %v4459_v13 = vld [vmem:[#allocation2 + $0x27] sm:$0xff] }
 0x658   : > { %v4387_v45 = vld [vmem:[#allocation2 + $0x11] sm:$0xff]  ;;  %v4395_v47 = vadd.f32 %v4392_v31, %v4380_v36  ;;  %v4422_v30 = vmul.f32 0.012103356, %v4419_v50  ;;  %v4474_v11 = vld [vmem:[#allocation2 + $0x26] sm:$0xff]  ;;  %v4418_v38 = vld [vmem:[#allocation2 + $0x1b] sm:$0xff]  ;;  %v4464_v22 = vadd.f32 %v4461_v59, %v4458_v24 }
 0x659   : > { %v4399_v23 = vld [vmem:[#allocation2 + $0xe] sm:$0xff]  ;;  %v4390_v27 = vadd.f32 %v4387_v45, %v4384_v34  ;;  %v4435_v19 = vmul.f32 0.057342287, %v4432_v26  ;;  %v4442_v15 = vld [vmem:[#allocation2 + $0x1d] sm:$0xff]  ;;  %v4488_v39 = vld [vmem:[#allocation2 + $0x25] sm:$0xff] }
 0x65a   : > { %v4402_v10 = vld [vmem:[#allocation2 + $0x12] sm:$0xff]  ;;  %v4410_v21 = vadd.f32 %v4407_v44, %v4395_v47  ;;  %v4462_v55 = vld [vmem:[#allocation2 + $0x29] sm:$0xff]  ;;  %v4473_v46 = vld [vmem:[#allocation2 + $0x1e] sm:$0xff]  ;;  %v4467_v35 = vmul.f32 0.0020456284, %v4464_v22  ;;  %v4493_v52 = vadd.f32 %v4490_v29, %v4442_v15  ;;  %v4515_v12 = vadd.f32 %v4488_v39, %v4418_v38 }
 0x65b   : > { %v4405_v17 = vadd.f32 %v4402_v10, %v4399_v23  ;;  %v4414_v25 = vld [vmem:[#allocation2 + $0xd] sm:$0xff]  ;;  %v4415_v33 = vld [vmem:[#allocation2 + $0x15] sm:$0xff]  ;;  %v4393_v37 = vmul.f32 0.0020456284, %v4390_v27  ;;  %v4465_v3 = vadd.f32 %v4462_v55, %v4459_v13  ;;  %v4479_v41 = vadd.f32 %v4476_v0, %v4473_v46  ;;  %v4502_v45 = vld [vmem:[#allocation2 + $0x24] sm:$0xff] }
 0x65c   : > { %v4417_v43 = vld [vmem:[#allocation2 + $0x13] sm:$0xff]  ;;  %v4443_v9 = vadd.f32 %v4441_v53, %v4414_v25  ;;  %v4425_v2 = vadd.f32 %v4422_v30, %v4410_v21  ;;  %v4444_v16 = vadd.f32 %v4416_v60, %v4415_v33  ;;  %v4477_v62 = vld [vmem:[#allocation2 + $0x2a] sm:$0xff]  ;;  %v4431_v1 = vld [vmem:[#allocation2 + $0x1c] sm:$0xff]  ;;  %v4470_v40 = vadd.f32 %v4467_v35, %v4455_v63 }
 0x65d   : > { %v4430_v5 = vld [vmem:[#allocation2 + $0x14] sm:$0xff]  ;;  %v4420_v4 = vadd.f32 %v4417_v43, %v4414_v25  ;;  %v4408_v32 = vmul.f32 0.00398434, %v4405_v17  ;;  %v4396_v7 = vadd.f32 %v4393_v37, %v4381_v8  ;;  %v4480_v48 = vadd.f32 %v4477_v62, %v4474_v11  ;;  %v4491_v49 = vld [vmem:[#allocation2 + $0x2b] sm:$0xff] }
 0x65e   : > { %v4433_v54 = vadd.f32 %v4430_v5, %v4429_v56  ;;  %v4494_v14 = vadd.f32 %v4491_v49, %v4488_v39  ;;  %v4503_v6 = vld [vmem:[#allocation2 + $0x2c] sm:$0xff]  ;;  %v4468_v60 = vmul.f32 0.0020456284, %v4465_v3  ;;  %v4482_v36 = vmul.f32 0.00398434, %v4479_v41 }
 0x65f   : > { %v4423_v28 = vmul.f32 0.012103356, %v4420_v4  ;;  %v4411_v20 = vadd.f32 %v4408_v32, %v4396_v7  ;;  %v4438_v34 = vadd.f32 %v4435_v19, %v4425_v2  ;;  %v4483_v31 = vmul.f32 0.00398434, %v4480_v48  ;;  %v4489_v50 = vld [vmem:[#allocation2 + $0x2d] sm:$0xff] }
 0x660   : > { %v4436_v58 = vmul.f32 0.057342287, %v4433_v54  ;;  %v4496_v53 = vmul.f32 0.012103356, %v4493_v52  ;;  %v4471_v23 = vadd.f32 %v4468_v60, %v4456_v61  ;;  %v4485_v10 = vadd.f32 %v4482_v36, %v4470_v40 }
 0x661   : > { %v4426_v56 = vadd.f32 %v4423_v28, %v4411_v20  ;;  %v4505_v44 = vadd.f32 %v4502_v45, %v4431_v1  ;;  %v4506_v26 = vadd.f32 %v4503_v6, %v4502_v45  ;;  %v4446_v27 = vmul.f32 0.42370537, %v4443_v9 }
 0x662   : > { %v4447_v47 = vmul.f32 0.42370537, %v4444_v16  ;;  %v4497_v17 = vmul.f32 0.012103356, %v4494_v14  ;;  %v4486_v25 = vadd.f32 %v4483_v31, %v4471_v23  ;;  %v4499_v43 = vadd.f32 %v4496_v53, %v4485_v10 }
 0x663   : > { %v4439_v8 = vadd.f32 %v4436_v58, %v4426_v56  ;;  %v4508_v63 = vmul.f32 0.057342287, %v4505_v44  ;;  %v4516_v5 = vadd.f32 %v4490_v29, %v4489_v50  ;;  %v4449_v33 = vadd.f32 %v4446_v27, %v4438_v34 }
 0x664   : > { %v4518_v4 = vmul.f32 0.42370537, %v4515_v12  ;;  %v4500_v59 = vadd.f32 %v4497_v17, %v4486_v25  ;;  %v4509_v37 = vmul.f32 0.057342287, %v4506_v26  ;;  %v4780_v7 = vstv %s3950_s8 }
 0x665   : > { %v4450_v24 = vadd.f32 %v4447_v47, %v4439_v8  ;;  %v4511_v21 = vadd.f32 %v4508_v63, %v4499_v43  ;;  %v4519_v61 = vmul.f32 0.42370537, %v4516_v5  ;;  %v11468_v0 = vmul.f32 %v4449_v33, %v4449_v33 }
 0x666   : > { %v4512_v30 = vadd.f32 %v4509_v37, %v4500_v59 }
 0x667   : > { %v4521_v54 = vadd.f32 %v4518_v4, %v4511_v21  ;;  %v4194_v13 = vpop.f32.mrb[6].mxu0  ;;  %v4277_v11 = vpop.f32.mrb[6].mxu1  ;;  %v11470_v15 = vmul.f32 %v4450_v24, %v4450_v24 }
 0x668   : > { %4208 = vst [vmem:[#allocation2 + $0x38] sm:$0xff] %v4194_v13  ;;  %4291 = vst [vmem:[#allocation2 + $0x50] sm:$0xff] %v4277_v11  ;;  %v7670_v32 = vpop.f32.mrb[7].mxu1  ;;  %v7629_v38 = vpop.f32.mrb[7].mxu0  ;;  %v4522_v19 = vadd.f32 %v4519_v61, %v4512_v30  ;;  %v4527_v52 = vmul.f32 0.0016380112, %v4194_v13 }
 0x669   : > { %v11472_v9 = vmul.f32 %v4521_v54, %v4521_v54  ;;  %v11474_v22 = vmul.f32 %v4521_v54, %v4449_v33  ;;  %v11485_v34 = vmul.f32 0.0016380112, %v4277_v11 }
 0x66a   : > { %v11476_v28 = vmul.f32 %v4522_v19, %v4522_v19  ;;  %v11478_v2 = vmul.f32 %v4522_v19, %v4450_v24 }
 0x66b   : > { %v4784_v16 = vadd.f32 %v11472_v9, %v11468_v0  ;;  %v4199_v55 = vpop.f32.mrb[8].mxu0  ;;  %v4282_v46 = vpop.f32.mrb[8].mxu1  ;;  %v4777_v1 = vmul.f32 2.0, %v11474_v22 }
 0x66c   : > { %4209 = vst [vmem:[#allocation2 + $0x40] sm:$0xff] %v4199_v55  ;;  %4292 = vst [vmem:[#allocation2 + $0x58] sm:$0xff] %v4282_v46  ;;  %v7632_v62 = vpop.f32.mrb[9].mxu0  ;;  %v7673_v3 = vpop.f32.mrb[9].mxu1  ;;  %v4785_v35 = vadd.f32 %v11476_v28, %v11470_v15  ;;  %v4778_v31 = vmul.f32 2.0, %v11478_v2 }
 0x66d   : > { %v4787_v41 = vadd.f32 %v4784_v16, %v4780_v7  ;;  %v4528_v53 = vmul.f32 0.0016380112, %v4199_v55  ;;  %v4781_v17 = vadd.f32 %v4780_v7, %v4777_v1  ;;  %v4600_v33 = vmul.f32 0.0016380112, %v4282_v46 }
 0x66e   : > { %v4788_v58 = vadd.f32 %v4785_v35, %v4780_v7  ;;  %v11488_v54 = vadd.f32 %v4780_v7, %v4778_v31 }
 0x66f   : > { %8947 = vrcp.f32 %v4787_v41  ;;  %v4204_v48 = vpop.f32.mrb[10].mxu0  ;;  %v4287_v39 = vpop.f32.mrb[10].mxu1  ;;  %v4514_v20 = vld [vmem:[#allocation2 + $0x35] sm:$0xff] }
 0x670   : > { %4210 = vst [vmem:[#allocation2 + $0x48] sm:$0xff] %v4204_v48  ;;  %4293 = vst [vmem:[#allocation2 + $0x60] sm:$0xff] %v4287_v39  ;;  %v7635_v29 = vpop.f32.mrb[11].mxu0  ;;  %v7676_v49 = vpop.f32.mrb[11].mxu1  ;;  %v4530_v14 = vld [vmem:[#allocation2 + $0x37] sm:$0xff]  ;;  %8949 = vrcp.f32 %v4788_v58 }
 0x671   : > { %v4545_v60 = vld [vmem:[#allocation2 + $0x36] sm:$0xff] }
 0x672   : > { %v4504_v50 = vld [vmem:[#allocation2 + $0x34] sm:$0xff] }
 0x673   : > { %v4533_v6 = vld [vmem:[#allocation2 + $0x39] sm:$0xff]  ;;  %v4605_v19 = vld [vmem:[#allocation2 + $0x51] sm:$0xff] }
 0x674   : > { %v4536_v40 = vadd.f32 %v4533_v6, %v4530_v14  ;;  %v4548_v36 = vld [vmem:[#allocation2 + $0x3a] sm:$0xff]  ;;  %v4620_v39 = vld [vmem:[#allocation2 + $0x52] sm:$0xff] }
 0x675   : > { %v4560_v12 = vld [vmem:[#allocation2 + $0x3d] sm:$0xff]  ;;  %v4551_v45 = vadd.f32 %v4548_v36, %v4545_v60  ;;  %v4492_v44 = vld [vmem:[#allocation2 + $0x33] sm:$0xff] }
 0x676   : > { %v4562_v56 = vld [vmem:[#allocation2 + $0x3b] sm:$0xff]  ;;  %v4539_v8 = vmul.f32 0.0020456284, %v4536_v40  ;;  %v4587_v5 = vadd.f32 %v4560_v12, %v4492_v44 }
 0x677   : > { %v4565_v23 = vadd.f32 %v4562_v56, %v4514_v20  ;;  %v4574_v10 = vld [vmem:[#allocation2 + $0x3c] sm:$0xff]  ;;  %v4561_v63 = vld [vmem:[#allocation2 + $0x45] sm:$0xff]  ;;  %v4554_v37 = vmul.f32 0.00398434, %v4551_v45  ;;  %v4602_v38 = vld [vmem:[#allocation2 + $0x4f] sm:$0xff] }
 0x678   : > { %v4531_v26 = vld [vmem:[#allocation2 + $0x3f] sm:$0xff]  ;;  %v4577_v47 = vadd.f32 %v4574_v10, %v4504_v50  ;;  %v4542_v24 = vadd.f32 %v4539_v8, %v4527_v52  ;;  %v4564_v62 = vld [vmem:[#allocation2 + $0x4b] sm:$0xff]  ;;  %v4588_v46 = vadd.f32 %v4562_v56, %v4561_v63  ;;  %v4603_v41 = vld [vmem:[#allocation2 + $0x57] sm:$0xff]  ;;  %v4590_v20 = vmul.f32 0.42370537, %v4587_v5 }
 0x679   : > { %v4546_v27 = vld [vmem:[#allocation2 + $0x3e] sm:$0xff]  ;;  %v8948_v61 = vpop.eup %8947  ;;  %v4568_v11 = vmul.f32 0.012103356, %v4565_v23  ;;  %v4586_v35 = vld [vmem:[#allocation2 + $0x4d] sm:$0xff]  ;;  %v4618_v48 = vld [vmem:[#allocation2 + $0x56] sm:$0xff]  ;;  %v4608_v1 = vadd.f32 %v4605_v19, %v4602_v38 }
 0x67a   : > { %v4534_v25 = vld [vmem:[#allocation2 + $0x41] sm:$0xff]  ;;  %v4557_v55 = vadd.f32 %v4554_v37, %v4542_v24  ;;  %v4580_v3 = vmul.f32 0.057342287, %v4577_v47  ;;  %v4606_v14 = vld [vmem:[#allocation2 + $0x59] sm:$0xff]  ;;  %v4617_v6 = vld [vmem:[#allocation2 + $0x4e] sm:$0xff]  ;;  %v11490_v40 = vmul.f32 %v8948_v61, %v4781_v17 }
 0x67b   : > { %v4549_v43 = vld [vmem:[#allocation2 + $0x42] sm:$0xff]  ;;  %v4537_v4 = vadd.f32 %v4534_v25, %v4531_v26  ;;  %v4621_v60 = vld [vmem:[#allocation2 + $0x5a] sm:$0xff]  ;;  %v4609_v36 = vadd.f32 %v4606_v14, %v4603_v41  ;;  %v4623_v31 = vadd.f32 %v4620_v39, %v4617_v6  ;;  %v4576_v44 = vld [vmem:[#allocation2 + $0x4c] sm:$0xff]  ;;  %v4591_v38 = vmul.f32 0.42370537, %v4588_v46 }
 0x67c   : > { %v4552_v59 = vadd.f32 %v4549_v43, %v4546_v27  ;;  %v4563_v21 = vld [vmem:[#allocation2 + $0x43] sm:$0xff]  ;;  %v4571_v58 = vadd.f32 %v4568_v11, %v4557_v55  ;;  %v4624_v50 = vadd.f32 %v4621_v60, %v4618_v48  ;;  %v4632_v56 = vld [vmem:[#allocation2 + $0x55] sm:$0xff] }
 0x67d   : > { %v4575_v30 = vld [vmem:[#allocation2 + $0x44] sm:$0xff]  ;;  %v4566_v13 = vadd.f32 %v4563_v21, %v4560_v12  ;;  %v4540_v16 = vmul.f32 0.0020456284, %v4537_v4  ;;  %v4611_v12 = vmul.f32 0.0020456284, %v4608_v1  ;;  %v4634_v45 = vld [vmem:[#allocation2 + $0x53] sm:$0xff]  ;;  %v4659_v63 = vadd.f32 %v4632_v56, %v4564_v62  ;;  %v8950_v21 = vpop.eup %8949 }
 0x67e   : > { %v4578_v32 = vadd.f32 %v4575_v30, %v4574_v10  ;;  %v4555_v29 = vmul.f32 0.00398434, %v4552_v59  ;;  %v4635_v23 = vld [vmem:[#allocation2 + $0x5b] sm:$0xff]  ;;  %v4583_v26 = vadd.f32 %v4580_v3, %v4571_v58  ;;  %v4637_v8 = vadd.f32 %v4634_v45, %v4586_v35 }
 0x67f   : > { %v4569_v49 = vmul.f32 0.012103356, %v4566_v13  ;;  %v4543_v7 = vadd.f32 %v4540_v16, %v4528_v53  ;;  %v4638_v27 = vadd.f32 %v4635_v23, %v4632_v56  ;;  %v4647_v53 = vld [vmem:[#allocation2 + $0x5c] sm:$0xff]  ;;  %v4612_v47 = vmul.f32 0.0020456284, %v4609_v36  ;;  %v4646_v37 = vld [vmem:[#allocation2 + $0x54] sm:$0xff] }
 0x680   : > { %v4581_v52 = vmul.f32 0.057342287, %v4578_v32  ;;  %v4614_v25 = vadd.f32 %v4611_v12, %v11485_v34  ;;  %v4626_v43 = vmul.f32 0.00398434, %v4623_v31  ;;  %v4593_v5 = vadd.f32 %v4590_v20, %v4583_v26  ;;  %v4633_v24 = vld [vmem:[#allocation2 + $0x5d] sm:$0xff] }
 0x681   : > { %v4558_v10 = vadd.f32 %v4555_v29, %v4543_v7  ;;  %v4627_v4 = vmul.f32 0.00398434, %v4624_v50  ;;  %v4640_v59 = vmul.f32 0.012103356, %v4637_v8  ;;  %v4615_v30 = vadd.f32 %v4612_v47, %v4600_v33 }
 0x682   : > { %v4629_v61 = vadd.f32 %v4626_v43, %v4614_v25  ;;  %v4649_v13 = vadd.f32 %v4646_v37, %v4576_v44  ;;  %v4650_v11 = vadd.f32 %v4647_v53, %v4646_v37  ;;  %v4641_v19 = vmul.f32 0.012103356, %v4638_v27 }
 0x683   : > { %v4572_v17 = vadd.f32 %v4569_v49, %v4558_v10  ;;  %v4749_v16 = vsub.f32 %v4593_v5, %v11468_v0  ;;  %v4630_v55 = vadd.f32 %v4627_v4, %v4615_v30  ;;  %v4660_v62 = vadd.f32 %v4634_v45, %v4633_v24 }
 0x684   : > { %v4643_v34 = vadd.f32 %v4640_v59, %v4629_v61  ;;  %v4652_v3 = vmul.f32 0.057342287, %v4649_v13  ;;  %v11495_v41 = vmul.f32 %v8950_v21, %v11488_v54  ;;  %v4653_v39 = vmul.f32 0.057342287, %v4650_v11 }
 0x685   : > { %v4584_v32 = vadd.f32 %v4581_v52, %v4572_v17  ;;  %v4644_v48 = vadd.f32 %v4641_v19, %v4630_v55  ;;  %v4662_v29 = vmul.f32 0.42370537, %v4659_v63  ;;  %v4663_v7 = vmul.f32 0.42370537, %v4660_v62 }
 0x686   : > { %v4655_v33 = vadd.f32 %v4652_v3, %v4643_v34  ;;  %v4761_v47 = vstv %s3952_s10 }
 0x687   : > { %v4594_v35 = vadd.f32 %v4591_v38, %v4584_v32  ;;  %v4360_v20 = vpop.f32.mrb[12].mxu0  ;;  %v4365_v46 = vpop.f32.mrb[12].mxu1  ;;  %v4656_v1 = vadd.f32 %v4653_v39, %v4644_v48 }
 0x688   : > { %v4665_v0 = vadd.f32 %v4662_v29, %v4655_v33  ;;  %4374 = vst [vmem:[#allocation2 + $0x68] sm:$0xff] %v4360_v20  ;;  %4375 = vst [vmem:[#allocation2 + $0x70] sm:$0xff] %v4365_v46  ;;  %v7714_v58 = vpop.f32.mrb[13].mxu1  ;;  %v7711_v52 = vpop.f32.mrb[13].mxu0  ;;  %v4671_v26 = vmul.f32 0.0016380112, %v4360_v20 }
 0x689   : > { %v4750_v49 = vsub.f32 %v4594_v35, %v11470_v15  ;;  %v4666_v14 = vadd.f32 %v4663_v7, %v4656_v1  ;;  %v4672_v11 = vmul.f32 0.0016380112, %v4365_v46 }
 0x68a   : > { %v4752_v54 = vsub.f32 %v4665_v0, %v11472_v9 }
 0x68b   : > { %v4370_v6 = vpop.f32.mrb[14].mxu1  ;;  %v4753_v60 = vsub.f32 %v4666_v14, %v11476_v28 }
 0x68c   : > { %v4765_v36 = vadd.f32 %v4752_v54, %v4749_v16  ;;  %4376 = vst [vmem:[#allocation2 + $0x78] sm:$0xff] %v4370_v6  ;;  %v7717_v12 = vpop.f32.mrb[15].mxu1 }
 0x68d   : > { %v4766_v15 = vadd.f32 %v4753_v60, %v4750_v49 }
 0x68e   : > { %v4768_v19 = vadd.f32 %v4765_v36, %v4761_v47 }
 0x68f   : > { %v4658_v31 = vld [vmem:[#allocation2 + $0x65] sm:$0xff]  ;;  %v4675_v8 = vld [vmem:[#allocation2 + $0x6f] sm:$0xff]  ;;  %v4769_v29 = vadd.f32 %v4766_v15, %v4761_v47 }
 0x690   : > { %v4674_v50 = vld [vmem:[#allocation2 + $0x67] sm:$0xff]  ;;  %8951 = vrcp.f32 %v4768_v19 }
 0x691   : > { %v4677_v56 = vld [vmem:[#allocation2 + $0x69] sm:$0xff]  ;;  %8953 = vrcp.f32 %v4769_v29 }
 0x692   : > { %v4648_v45 = vld [vmem:[#allocation2 + $0x64] sm:$0xff]  ;;  %v4680_v23 = vadd.f32 %v4677_v56, %v4674_v50  ;;  %v4718_v53 = vld [vmem:[#allocation2 + $0x6c] sm:$0xff] }
 0x693   : > { %v4689_v10 = vld [vmem:[#allocation2 + $0x66] sm:$0xff]  ;;  %v4678_v25 = vld [vmem:[#allocation2 + $0x71] sm:$0xff]  ;;  %v4721_v13 = vadd.f32 %v4718_v53, %v4648_v45 }
 0x694   : > { %v4692_v44 = vld [vmem:[#allocation2 + $0x6a] sm:$0xff]  ;;  %v4683_v28 = vmul.f32 0.0020456284, %v4680_v23  ;;  %v4693_v63 = vld [vmem:[#allocation2 + $0x72] sm:$0xff]  ;;  %v4681_v4 = vadd.f32 %v4678_v25, %v4675_v8 }
 0x695   : > { %v4695_v27 = vadd.f32 %v4692_v44, %v4689_v10  ;;  %v4706_v9 = vld [vmem:[#allocation2 + $0x6b] sm:$0xff]  ;;  %v4636_v5 = vld [vmem:[#allocation2 + $0x63] sm:$0xff]  ;;  %v4707_v37 = vld [vmem:[#allocation2 + $0x73] sm:$0xff]  ;;  %v4724_v33 = vmul.f32 0.057342287, %v4721_v13 }
 0x696   : > { %v4690_v43 = vld [vmem:[#allocation2 + $0x6e] sm:$0xff]  ;;  %v4709_v17 = vadd.f32 %v4706_v9, %v4658_v31  ;;  %v4686_v21 = vadd.f32 %v4683_v28, %v4671_v26  ;;  %v4684_v32 = vmul.f32 0.0020456284, %v4681_v4 }
 0x697   : > { %v4696_v24 = vadd.f32 %v4693_v63, %v4690_v43  ;;  %v4704_v59 = vld [vmem:[#allocation2 + $0x6d] sm:$0xff]  ;;  %v4698_v30 = vmul.f32 0.00398434, %v4695_v27  ;;  %v4705_v55 = vld [vmem:[#allocation2 + $0x75] sm:$0xff] }
 0x698   : > { %v4719_v61 = vld [vmem:[#allocation2 + $0x74] sm:$0xff]  ;;  %v4710_v38 = vadd.f32 %v4707_v37, %v4704_v59  ;;  %v4712_v34 = vmul.f32 0.012103356, %v4709_v17  ;;  %v4731_v3 = vadd.f32 %v4704_v59, %v4636_v5  ;;  %v4687_v62 = vadd.f32 %v4684_v32, %v4672_v11 }
 0x699   : > { %v4701_v16 = vadd.f32 %v4698_v30, %v4686_v21  ;;  %v4699_v35 = vmul.f32 0.00398434, %v4696_v24  ;;  %v4722_v48 = vadd.f32 %v4719_v61, %v4718_v53  ;;  %v4732_v1 = vadd.f32 %v4706_v9, %v4705_v55 }
 0x69a   : > { %v4713_v20 = vmul.f32 0.012103356, %v4710_v38  ;;  %v4734_v0 = vmul.f32 0.42370537, %v4731_v3  ;;  %v8952_v15 = vpop.eup %8951 }
 0x69b   : > { %v4715_v39 = vadd.f32 %v4712_v34, %v4701_v16  ;;  %v4702_v49 = vadd.f32 %v4699_v35, %v4687_v62  ;;  %v4725_v58 = vmul.f32 0.057342287, %v4722_v48  ;;  %v4735_v54 = vmul.f32 0.42370537, %v4732_v1  ;;  %v8954_v23 = vpop.eup %8953 }
 0x69d   : > { %v4727_v7 = vadd.f32 %v4724_v33, %v4715_v39  ;;  %v4716_v46 = vadd.f32 %v4713_v20, %v4702_v49 }
 0x69f   : > { %v4737_v52 = vadd.f32 %v4734_v0, %v4727_v7  ;;  %v4728_v14 = vadd.f32 %v4725_v58, %v4716_v46 }
 0x6a1   : > { %v4755_v6 = vsub.f32 %v4737_v52, %v11474_v22  ;;  %v4738_v60 = vadd.f32 %v4735_v54, %v4728_v14 }
 0x6a3   : > { %v4758_v36 = vmul.f32 2.0, %v4755_v6  ;;  %v4756_v12 = vsub.f32 %v4738_v60, %v11478_v2 }
 0x6a5   : > { %v4762_v31 = vadd.f32 %v4761_v47, %v4758_v36  ;;  %v4759_v50 = vmul.f32 2.0, %v4756_v12 }
 0x6a7   : > { %v4772_v56 = vmul.f32 %v8952_v15, %v4762_v31  ;;  %v4763_v45 = vadd.f32 %v4761_v47, %v4759_v50 }
 0x6a9   : > { %v4796_v10 = vmul.f32 %v11490_v40, %v4772_v56  ;;  %v4774_v44 = vmul.f32 %v8954_v23, %v4763_v45  ;;  %v4799_v26 = vsel %vm11270_vm13, %v4772_v56, 0.0 }
 0x6ab   : > { %v4800_v8 = vsel %vm11280_vm14, %v4774_v44, 0.0  ;;  %v4797_v22 = vmul.f32 %v11495_v41, %v4774_v44  ;;  %v4814_v2 = vsel %vm11270_vm13, %v4796_v10, 0.0 }
 0x6ac   : > { %v4802_v27 = vadd.f32 %v4800_v8, %v4799_v26 }
 0x6ad   : > { %v4815_v9 = vsel %vm11280_vm14, %v4797_v22, 0.0 }
 0x6ae   : > { %4804 = vadd.xlane.f32.xlu1 %v4802_v27  ;;  %v4817_v53 = vadd.f32 %v4815_v9, %v4814_v2 }
 0x6b2   : > { %4819 = vadd.xlane.f32.xlu1 %v4817_v53 }
 0x73b   : > { %v4805_v40 = vpop.xlane.xlu1 %4804 }
 0x73c   : > { %v4806_v47 = vrot.slane %v4805_v40, 4 }
 0x73e   : > { %v4807_v25 = vadd.f32 %v4806_v47, %v4805_v40 }
 0x73f   : > { %v4820_v28 = vpop.xlane.xlu1 %4819 }
 0x740   : > { %v4808_v43 = vrot.slane %v4807_v25, 2  ;;  %v4821_v63 = vrot.slane %v4820_v28, 4 }
 0x742   : > { %v4822_v17 = vadd.f32 %v4821_v63, %v4820_v28  ;;  %v4809_v5 = vadd.f32 %v4808_v43, %v4807_v25 }
 0x744   : > { %v4823_v4 = vrot.slane %v4822_v17, 2  ;;  %v4810_v41 = vrot.slane %v4809_v5, 1 }
 0x746   : > { %v4824_v24 = vadd.f32 %v4823_v4, %v4822_v17  ;;  %v4811_v59 = vadd.f32 %v4810_v41, %v4809_v5 }
 0x748   : > { %8857 = vpush %v4811_v59  ;;  %v4825_v18 = vrot.slane %v4824_v24, 1 }
 0x74a   : > { %v4826_v57 = vadd.f32 %v4825_v18, %v4824_v24 }
 0x74c   : > { %8859 = vpush %v4826_v57 }
 0x779   : > { %s8858_s11 = spop %8857 }
 0x77a   : > { %s4813_s14 = smul.f32 0.0026041667, %s8858_s11 }
 0x77c   : > { %v4834_v37 = vstv %s4813_s14 }
 0x77d   : > { %s8860_s15 = spop %8859  ;;  %v4835_v21 = vsel %vm4833_vm2, %v4834_v37, 0.0 }
 0x77e   : > { %s4828_s16 = smul.f32 0.0026041667, %s8860_s15 }
 0x780   : > { %v4836_v30 = vstv %s4828_s16 }
 0x781   : > { %v4837_v61 = vsel %vm4831_vm3, %v4836_v30, %v4835_v21 }
 0x782   : > { %4838 = vst [vmem:[%s9031_s29] sm:$0xff] %v4837_v61 }
 0x783 PF: > { %p6483_p7 = scmp.ne.s32.totalorder %s9007_s13, 3 }
 0x784   : > { %v4843_v51 = vld [vmem:[%s9016_s19] sm:$0xff] (!%p6483_p7)  ;;  %v4844_v42 = vld [vmem:[%s9016_s19 + $0x8] sm:$0xff] (!%p6483_p7)  ;;  %v4845_v13 = vld [vmem:[%s9016_s19 + $0x10] sm:$0xff] (!%p6483_p7)  ;;  %v4863_v11 = vlaneseq (!%p6483_p7) }
 0x785   : > { %4842 = sbr.rel (%p6483_p7) target bundleno = 2493 (0x9bd), region = 48  ;;  %v11521_v32 = vpack.c.bf16 (!%p6483_p7), %v4844_v42, %v4843_v51  ;;  %v4846_v38 = vld [vmem:[%s9016_s19 + $0x18] sm:$0xff] (!%p6483_p7)  ;;  %v4847_v16 = vld [vmem:[%s9016_s19 + $0x20] sm:$0xff] (!%p6483_p7)  ;;  %v4848_v55 = vld [vmem:[%s9016_s19 + $0x28] sm:$0xff] (!%p6483_p7) }
 0x786   : > { %v11524_v19 = vpack.c.bf16 (!%p6483_p7), %v4846_v38, %v4845_v13  ;;  %v11528_v34 = vshrl.u32 (!%p6483_p7), %v4863_v11, 7  ;;  %v11530_v3 = vand.u32 (!%p6483_p7), 127, %v4863_v11  ;;  %v11540_v35 = vpack.c.bf16 (!%p6483_p7), %v4848_v55, %v4847_v16  ;;  %v11543_v48 = vld [vmem:[%s9021_s23] sm:$0xff] (!%p6483_p7)  ;;  %v4849_v33 = vld [vmem:[%s9016_s19 + $0x30] sm:$0xff] (!%p6483_p7)  ;;  %v4850_v29 = vld [vmem:[%s9016_s19 + $0x38] sm:$0xff] (!%p6483_p7) }
 0x787   : > { %8469 = vmatprep.subr.bf16.mxu0 (!%p6483_p7), %v11521_v32  ;;  %8501 = vmatprep.subr.bf16.mxu1 (!%p6483_p7), %v11521_v32  ;;  %v11546_v39 = vld [vmem:[%s9026_s26] sm:$0xff] (!%p6483_p7)  ;;  %v11558_v20 = vld [vmem:[%s9021_s23 + $0x8] sm:$0xff] (!%p6483_p7)  ;;  %v11580_v52 = vpack.c.bf16 (!%p6483_p7), %v4850_v29, %v4849_v33  ;;  %v4853_v12 = vld [vmem:[%s9016_s19 + $0x50] sm:$0xff] (!%p6483_p7)  ;;  %v4906_v8 = vmul.f32 (!%p6483_p7), %v11543_v48, %v11543_v48 }
 0x788   : > { %8471 = vmatpush3.bf16.msra.mxu0 (!%p6483_p7), %v11521_v32  ;;  %8503 = vmatpush3.bf16.msra.mxu1 (!%p6483_p7), %v11521_v32  ;;  %v4865_v62 = vadd.s32 (!%p6483_p7), 8, %v11528_v34  ;;  %vm4868_vm4 = vcmp.ge.s32.totalorder (!%p6483_p7), %v11528_v34, 5  ;;  %vm4874_vm5 = vcmp.lt.s32.totalorder (!%p6483_p7), %v11530_v3, 24  ;;  %v4851_v54 = vld [vmem:[%s9016_s19 + $0x40] sm:$0xff] (!%p6483_p7)  ;;  %v4852_v6 = vld [vmem:[%s9016_s19 + $0x48] sm:$0xff] (!%p6483_p7)  ;;  %v4854_v31 = vld [vmem:[%s9016_s19 + $0x58] sm:$0xff] (!%p6483_p7)  ;;  %v4908_v22 = vmul.f32 (!%p6483_p7), %v11546_v39, %v11546_v39 }
 0x789   : > { %8473 = vmatprep.subr.bf16.mxu0 (!%p6483_p7), %v11524_v19  ;;  %8505 = vmatprep.subr.bf16.mxu1 (!%p6483_p7), %v11524_v19  ;;  %vm11553_vm7 = vmand (!%p6483_p7), %vm4868_vm4, %vm4874_vm5  ;;  %v11588_v36 = vpack.c.bf16 (!%p6483_p7), %v4852_v6, %v4851_v54  ;;  %v11596_v15 = vpack.c.bf16 (!%p6483_p7), %v4854_v31, %v4853_v12  ;;  %v4855_v50 = vld [vmem:[%s9016_s19 + $0x60] sm:$0xff] (!%p6483_p7)  ;;  %v4856_v56 = vld [vmem:[%s9016_s19 + $0x68] sm:$0xff] (!%p6483_p7)  ;;  %v4907_v2 = vmul.f32 (!%p6483_p7), %v11558_v20, %v11558_v20  ;;  %vm5606_vm9 = vcmp.eq.s32.totalorder (!%p6483_p7), %v11528_v34, 0 }
 0x78a   : > { %7750 = vmatprep.mubr.f32.mxu0 (!%p6483_p7), %v11543_v48  ;;  %7785 = vmatprep.mubr.f32.mxu1 (!%p6483_p7), %v11546_v39  ;;  %vm4871_vm6 = vcmp.lt.s32.totalorder (!%p6483_p7), %v4865_v62, 9  ;;  %v4877_v7 = vsel (!%p6483_p7), %vm11553_vm7, %v11543_v48, -inf  ;;  %v4889_v46 = vsel (!%p6483_p7), %vm11553_vm7, %v11543_v48, inf  ;;  %v11604_v45 = vpack.c.bf16 (!%p6483_p7), %v4856_v56, %v4855_v50  ;;  %v4857_v23 = vld [vmem:[%s9016_s19 + $0x70] sm:$0xff] (!%p6483_p7)  ;;  %v4858_v10 = vld [vmem:[%s9016_s19 + $0x78] sm:$0xff] (!%p6483_p7)  ;;  %v4862_v26 = vld [vmem:[%s9026_s26 + $0x8] sm:$0xff] (!%p6483_p7) }
 0x78b   : > { %vm11560_vm8 = vmand (!%p6483_p7), %vm4871_vm6, %vm4874_vm5  ;;  %v11612_v44 = vpack.c.bf16 (!%p6483_p7), %v4858_v10, %v4857_v23  ;;  %v4909_v27 = vmul.f32 (!%p6483_p7), %v4862_v26, %v4862_v26  ;;  %v4910_v9 = vmul.f32 (!%p6483_p7), %v11546_v39, %v11543_v48  ;;  %v4911_v53 = vmul.f32 (!%p6483_p7), %v4862_v26, %v11558_v20 }
 0x78c   : > { %8475 = vmatpush3.bf16.msra.mxu0 %v11524_v19  ;;  %8507 = vmatpush3.bf16.msra.mxu1 %v11524_v19  ;;  %v4878_v0 = vsel %vm11560_vm8, %v11558_v20, -inf  ;;  %v4890_v58 = vsel %vm11560_vm8, %v11558_v20, inf  ;;  %vm5609_vm10 = vcmp.eq.s32.totalorder %v11530_v3, 1  ;;  %vm5607_vm11 = vcmp.eq.s32.totalorder %v11530_v3, 0 }
 0x78d   : > { %8477 = vmatprep.subr.bf16.mxu0 %v11540_v35  ;;  %8509 = vmatprep.subr.bf16.mxu1 %v11540_v35  ;;  %v4879_v14 = vmax.f32 %v4877_v7, %v4878_v0  ;;  %v4891_v60 = vmin.f32 %v4889_v46, %v4890_v58  ;;  %vm5610_vm12 = vmand %vm5606_vm9, %vm5609_vm10 }
 0x78e   : > { %vm5608_vm13 = vmand %vm5606_vm9, %vm5607_vm11 }
 0x78f   : > { %4880 = vmax.xlane.f32.xlu0 %v4879_v14 }
 0x790   : > { %8479 = vmatpush3.bf16.msra.mxu0 %v11540_v35  ;;  %8511 = vmatpush3.bf16.msra.mxu1 %v11540_v35 }
 0x791   : > { %8481 = vmatprep.subr.bf16.mxu0 %v11580_v52  ;;  %8513 = vmatprep.subr.bf16.mxu1 %v11580_v52 }
 0x793   : > { %4892 = vmin.xlane.f32.xlu0 %v4891_v60 }
 0x794   : > { %8483 = vmatpush3.bf16.msra.mxu0 %v11580_v52  ;;  %8515 = vmatpush3.bf16.msra.mxu1 %v11580_v52 }
 0x795   : > { %8485 = vmatprep.subr.bf16.mxu0 %v11588_v36  ;;  %8517 = vmatprep.subr.bf16.mxu1 %v11588_v36 }
 0x798   : > { %8487 = vmatpush3.bf16.msra.mxu0 %v11588_v36  ;;  %8519 = vmatpush3.bf16.msra.mxu1 %v11588_v36 }
 0x799   : > { %8489 = vmatprep.subr.bf16.mxu0 %v11596_v15  ;;  %8521 = vmatprep.subr.bf16.mxu1 %v11596_v15 }
 0x79c   : > { %8491 = vmatpush3.bf16.msra.mxu0 %v11596_v15  ;;  %8523 = vmatpush3.bf16.msra.mxu1 %v11596_v15 }
 0x79d   : > { %8493 = vmatprep.subr.bf16.mxu0 %v11604_v45  ;;  %8525 = vmatprep.subr.bf16.mxu1 %v11604_v45 }
 0x7a0   : > { %8495 = vmatpush3.bf16.msra.mxu0 %v11604_v45  ;;  %8527 = vmatpush3.bf16.msra.mxu1 %v11604_v45 }
 0x7a1   : > { %8497 = vmatprep.subr.bf16.mxu0 %v11612_v44  ;;  %8529 = vmatprep.subr.bf16.mxu1 %v11612_v44 }
 0x7a4   : > { %8499 = vmatpush3.bf16.msra.mxu0 %v11612_v44  ;;  %8531 = vmatpush3.bf16.msra.mxu1 %v11612_v44 }
 0x7a5   : > { %8533 = vmatprep.subr.bf16.mxu0 %v11521_v32  ;;  %8565 = vmatprep.subr.bf16.mxu1 %v11521_v32 }
 0x7a7   : > { %7751 = vmatmul.mubr.f32.vlgmr.msra.gmra.mrb[0].mxu0 %v11558_v20  ;;  %7786 = vmatmul.mubr.f32.vlgmr.msra.gmra.mrb[0].mxu1 %v4862_v26 }
 0x7a8   : > { %8535 = vmatpush3.bf16.msra.mxu0 %v11521_v32  ;;  %8567 = vmatpush3.bf16.msra.mxu1 %v11521_v32 }
 0x7a9   : > { %8537 = vmatprep.subr.bf16.mxu0 %v11524_v19  ;;  %8569 = vmatprep.subr.bf16.mxu1 %v11524_v19 }
 0x7aa   : > { %7820 = vmatprep.mubr.f32.mxu0 %v4906_v8  ;;  %7855 = vmatprep.mubr.f32.mxu1 %v4908_v22 }
 0x7ac   : > { %8539 = vmatpush3.bf16.msra.mxu0 %v11524_v19  ;;  %8571 = vmatpush3.bf16.msra.mxu1 %v11524_v19 }
 0x7ad   : > { %8541 = vmatprep.subr.bf16.mxu0 %v11540_v35  ;;  %8573 = vmatprep.subr.bf16.mxu1 %v11540_v35 }
 0x7b0   : > { %8543 = vmatpush3.bf16.msra.mxu0 %v11540_v35  ;;  %8575 = vmatpush3.bf16.msra.mxu1 %v11540_v35 }
 0x7b1   : > { %8545 = vmatprep.subr.bf16.mxu0 %v11580_v52  ;;  %8577 = vmatprep.subr.bf16.mxu1 %v11580_v52 }
 0x7b4   : > { %8547 = vmatpush3.bf16.msra.mxu0 %v11580_v52  ;;  %8579 = vmatpush3.bf16.msra.mxu1 %v11580_v52 }
 0x7b5   : > { %8549 = vmatprep.subr.bf16.mxu0 %v11588_v36  ;;  %8581 = vmatprep.subr.bf16.mxu1 %v11588_v36 }
 0x7b8   : > { %8551 = vmatpush3.bf16.msra.mxu0 %v11588_v36  ;;  %8583 = vmatpush3.bf16.msra.mxu1 %v11588_v36 }
 0x7b9   : > { %8553 = vmatprep.subr.bf16.mxu0 %v11596_v15  ;;  %8585 = vmatprep.subr.bf16.mxu1 %v11596_v15 }
 0x7bc   : > { %8555 = vmatpush3.bf16.msra.mxu0 %v11596_v15  ;;  %8587 = vmatpush3.bf16.msra.mxu1 %v11596_v15 }
 0x7bd   : > { %8557 = vmatprep.subr.bf16.mxu0 %v11604_v45  ;;  %8589 = vmatprep.subr.bf16.mxu1 %v11604_v45 }
 0x7c0   : > { %8559 = vmatpush3.bf16.msra.mxu0 %v11604_v45  ;;  %8591 = vmatpush3.bf16.msra.mxu1 %v11604_v45 }
 0x7c1   : > { %8561 = vmatprep.subr.bf16.mxu0 %v11612_v44  ;;  %8593 = vmatprep.subr.bf16.mxu1 %v11612_v44 }
 0x7c4   : > { %8563 = vmatpush3.bf16.msra.mxu0 %v11612_v44  ;;  %8595 = vmatpush3.bf16.msra.mxu1 %v11612_v44 }
 0x7c5   : > { %8597 = vmatprep.subr.bf16.mxu0 %v11521_v32 }
 0x7c7   : > { %7821 = vmatmul.mubr.f32.vlgmr.msra.gmra.mrb[2].mxu0 %v4907_v2  ;;  %7856 = vmatmul.mubr.f32.vlgmr.msra.gmra.mrb[2].mxu1 %v4909_v27 }
 0x7c8   : > { %8599 = vmatpush3.bf16.msra.mxu0 %v11521_v32  ;;  %7890 = vmatprep.mubr.f32.mxu0 %v4910_v9 }
 0x7c9   : > { %8601 = vmatprep.subr.bf16.mxu0 %v11524_v19 }
 0x7cc   : > { %8603 = vmatpush3.bf16.msra.mxu0 %v11524_v19 }
 0x7cd   : > { %8605 = vmatprep.subr.bf16.mxu0 %v11540_v35 }
 0x7d0   : > { %8607 = vmatpush3.bf16.msra.mxu0 %v11540_v35 }
 0x7d1   : > { %8609 = vmatprep.subr.bf16.mxu0 %v11580_v52 }
 0x7d4   : > { %8611 = vmatpush3.bf16.msra.mxu0 %v11580_v52 }
 0x7d5   : > { %8613 = vmatprep.subr.bf16.mxu0 %v11588_v36 }
 0x7d8   : > { %8615 = vmatpush3.bf16.msra.mxu0 %v11588_v36 }
 0x7d9   : > { %8617 = vmatprep.subr.bf16.mxu0 %v11596_v15 }
 0x7dc   : > { %8619 = vmatpush3.bf16.msra.mxu0 %v11596_v15 }
 0x7dd   : > { %8621 = vmatprep.subr.bf16.mxu0 %v11604_v45 }
 0x7e0   : > { %8623 = vmatpush3.bf16.msra.mxu0 %v11604_v45 }
 0x7e1   : > { %8625 = vmatprep.subr.bf16.mxu0 %v11612_v44 }
 0x7e4   : > { %8627 = vmatpush3.bf16.msra.mxu0 %v11612_v44 }
 0x7e7   : > { %7891 = vmatmul.mubr.f32.vlgmr.msra.gmra.mrb[4].mxu0 %v4911_v53 }
 0x81c   : > { %v4881_v40 = vpop.xlane.xlu0 %4880 }
 0x81d   : > { %v4882_v47 = vrot.slane %v4881_v40, 4 }
 0x81f   : > { %v4883_v25 = vmax.f32 %v4881_v40, %v4882_v47 }
 0x820   : > { %v4893_v28 = vpop.xlane.xlu0 %4892 }
 0x821   : > { %v4884_v43 = vrot.slane %v4883_v25, 2  ;;  %v4894_v63 = vrot.slane %v4893_v28, 4 }
 0x823   : > { %v4895_v17 = vmin.f32 %v4893_v28, %v4894_v63  ;;  %v4885_v5 = vmax.f32 %v4883_v25, %v4884_v43 }
 0x825   : > { %v4896_v4 = vrot.slane %v4895_v17, 2  ;;  %v4886_v41 = vrot.slane %v4885_v5, 1 }
 0x827   : > { %v4897_v24 = vmin.f32 %v4895_v17, %v4896_v4  ;;  %v4887_v59 = vmax.f32 %v4885_v5, %v4886_v41 }
 0x829   : > { %8861 = vpush %v4887_v59  ;;  %v4898_v18 = vrot.slane %v4897_v24, 1 }
 0x82b   : > { %v4899_v57 = vmin.f32 %v4897_v24, %v4898_v18 }
 0x82d   : > { %8863 = vpush %v4899_v57 }
 0x85a   : > { %s8862_s17 = spop %8861 }
 0x85e   : > { %s8864_s18 = spop %8863 }
 0x85f   : > { %s11699_s20 = ssub.f32 %s8862_s17, %s8864_s18 }
 0x861   : > { %s4902_s21 = smul.f32 0.01, %s11699_s20 }
 0x862   : > { %s4904_s24 = smul.f32 0.03, %s11699_s20 }
 0x863   : > { %s4903_s22 = smul.f32 %s4902_s21, %s4902_s21 }
 0x864   : > { %s4905_s25 = smul.f32 %s4904_s24, %s4904_s24 }
 0x87a   : > { %v11679_v37 = vpop.f32.mrb[0].mxu0  ;;  %v11681_v21 = vpop.f32.mrb[0].mxu1 }
 0x87b   : > { %4988 = vst [vmem:[#allocation2 + $0x10] sm:$0xff] %v11679_v37  ;;  %5065 = vst [vmem:[#allocation2 + $0x20] sm:$0xff] %v11681_v21  ;;  %v4978_v30 = vpop.f32.mrb[1].mxu0  ;;  %v5055_v61 = vpop.f32.mrb[1].mxu1 }
 0x87c   : > { %4987 = vst [vmem:[#allocation2 + $0x8] sm:$0xff] %v4978_v30  ;;  %5064 = vst [vmem:[#allocation2 + $0x18] sm:$0xff] %v5055_v61  ;;  %v5299_v19 = vmul.f32 0.0016380112, %v4978_v30  ;;  %v5350_v14 = vmul.f32 0.0016380112, %v5055_v61 }
 0x883   : > { %v5301_v51 = vld [vmem:[#allocation2 + $0x7] sm:$0xff]  ;;  %v11691_v7 = vld [vmem:[#allocation2 + $0x15] sm:$0xff]  ;;  %v5372_v8 = vld [vmem:[#allocation2 + $0x1d] sm:$0xff] }
 0x884   : > { %v5303_v42 = vld [vmem:[#allocation2 + $0x9] sm:$0xff]  ;;  %v5352_v0 = vld [vmem:[#allocation2 + $0x17] sm:$0xff] }
 0x885   : > { %v5311_v13 = vld [vmem:[#allocation2 + $0x6] sm:$0xff]  ;;  %v5305_v11 = vadd.f32 %v5303_v42, %v5301_v51  ;;  %v5354_v46 = vld [vmem:[#allocation2 + $0x19] sm:$0xff]  ;;  %v5302_v53 = vld [vmem:[#allocation2 + $0xf] sm:$0xff]  ;;  %v5300_v42 = vmul.f32 0.0016380112, %v11679_v37 }
 0x886   : > { %v5313_v32 = vld [vmem:[#allocation2 + $0xa] sm:$0xff]  ;;  %v5356_v54 = vadd.f32 %v5354_v46, %v5352_v0  ;;  %v5362_v6 = vld [vmem:[#allocation2 + $0x16] sm:$0xff] }
 0x887   : > { %v5321_v38 = vld [vmem:[#allocation2 + $0x5] sm:$0xff]  ;;  %v5315_v16 = vadd.f32 %v5313_v32, %v5311_v13  ;;  %v5307_v35 = vmul.f32 0.0020456284, %v5305_v11  ;;  %v5322_v48 = vld [vmem:[#allocation2 + $0xd] sm:$0xff]  ;;  %v5364_v60 = vld [vmem:[#allocation2 + $0x1a] sm:$0xff] }
 0x888   : > { %v11685_v55 = vld [vmem:[#allocation2 + $0xb] sm:$0xff]  ;;  %v5340_v29 = vld [vmem:[#allocation2 + $0x3] sm:$0xff]  ;;  %v5333_v36 = vld [vmem:[#allocation2 + $0x14] sm:$0xff]  ;;  %v5366_v31 = vadd.f32 %v5364_v60, %v5362_v6  ;;  %v5358_v23 = vmul.f32 0.0020456284, %v5356_v54 }
 0x889   : > { %v5331_v62 = vld [vmem:[#allocation2 + $0x4] sm:$0xff]  ;;  %v5325_v39 = vadd.f32 %v11685_v55, %v5321_v38  ;;  %v11688_v33 = vld [vmem:[#allocation2 + $0xc] sm:$0xff]  ;;  %v5309_v58 = vadd.f32 %v5307_v35, %v5299_v19  ;;  %v5317_v52 = vmul.f32 0.00398434, %v5315_v16  ;;  %v5342_v12 = vadd.f32 %v5340_v29, %v5322_v48  ;;  %v11693_v15 = vld [vmem:[#allocation2 + $0x1b] sm:$0xff] }
 0x88a   : > { %v5334_v20 = vadd.f32 %v11688_v33, %v5331_v62  ;;  %v11695_v50 = vld [vmem:[#allocation2 + $0x1c] sm:$0xff]  ;;  %v5375_v10 = vadd.f32 %v11693_v15, %v11691_v7  ;;  %v5324_v44 = vld [vmem:[#allocation2 + $0x13] sm:$0xff]  ;;  %v5360_v27 = vadd.f32 %v5358_v23, %v5350_v14  ;;  %v5368_v2 = vmul.f32 0.00398434, %v5366_v31 }
 0x88b   : > { %v5319_v56 = vadd.f32 %v5317_v52, %v5309_v58  ;;  %v5327_v45 = vmul.f32 0.012103356, %v5325_v39  ;;  %v5383_v9 = vadd.f32 %v11695_v50, %v5333_v36  ;;  %v5304_v40 = vld [vmem:[#allocation2 + $0x11] sm:$0xff]  ;;  %v5344_v47 = vmul.f32 0.42370537, %v5342_v12  ;;  %v5353_v60 = vld [vmem:[#allocation2 + $0x1f] sm:$0xff] }
 0x88c   : > { %v5336_v26 = vmul.f32 0.057342287, %v5334_v20  ;;  %v5370_v28 = vadd.f32 %v5368_v2, %v5360_v27  ;;  %v5377_v43 = vmul.f32 0.012103356, %v5375_v10  ;;  %v5390_v63 = vadd.f32 %v5372_v8, %v5324_v44  ;;  %v5312_v18 = vld [vmem:[#allocation2 + $0xe] sm:$0xff]  ;;  %v5363_v12 = vld [vmem:[#allocation2 + $0x1e] sm:$0xff] }
 0x88d   : > { %v5329_v22 = vadd.f32 %v5327_v45, %v5319_v56  ;;  %v5306_v17 = vadd.f32 %v5304_v40, %v5302_v53  ;;  %v5385_v41 = vmul.f32 0.057342287, %v5383_v9  ;;  %v5314_v57 = vld [vmem:[#allocation2 + $0x12] sm:$0xff]  ;;  %v11710_v38 = vstv %s4903_s22 }
 0x88e   : > { %v5379_v4 = vadd.f32 %v5377_v43, %v5370_v28  ;;  %v5392_v59 = vmul.f32 0.42370537, %v5390_v63  ;;  %v5316_v13 = vadd.f32 %v5314_v57, %v5312_v18  ;;  %v5326_v35 = vadd.f32 %v5324_v44, %v5322_v48 }
 0x88f   : > { %v5338_v25 = vadd.f32 %v5336_v26, %v5329_v22  ;;  %v5308_v30 = vmul.f32 0.0020456284, %v5306_v17  ;;  %v5335_v52 = vadd.f32 %v5333_v36, %v11688_v33  ;;  %v5343_v48 = vadd.f32 %v11691_v7, %v11685_v55 }
 0x890   : > { %v5387_v24 = vadd.f32 %v5385_v41, %v5379_v4  ;;  %v5318_v62 = vmul.f32 0.00398434, %v5316_v13  ;;  %v5328_v58 = vmul.f32 0.012103356, %v5326_v35  ;;  %v5351_v56 = vmul.f32 0.0016380112, %v11681_v21 }
 0x891   : > { %v5346_v5 = vadd.f32 %v5344_v47, %v5338_v25  ;;  %v5310_v19 = vadd.f32 %v5308_v30, %v5300_v42  ;;  %v5337_v6 = vmul.f32 0.057342287, %v5335_v52  ;;  %v5345_v31 = vmul.f32 0.42370537, %v5343_v48 }
 0x892   : > { %v5394_v61 = vadd.f32 %v5392_v59, %v5387_v24 }
 0x893   : > { %v11703_v51 = vmul.f32 %v5346_v5, %v5346_v5  ;;  %v5320_v46 = vadd.f32 %v5318_v62, %v5310_v19 }
 0x894   : > { %v11706_v11 = vmul.f32 %v5394_v61, %v5394_v61  ;;  %v11708_v32 = vmul.f32 %v5394_v61, %v5346_v5 }
 0x895   : > { %v5330_v14 = vadd.f32 %v5328_v58, %v5320_v46 }
 0x896   : > { %v5570_v16 = vadd.f32 %v11706_v11, %v11703_v51  ;;  %v5565_v54 = vmul.f32 2.0, %v11708_v32 }
 0x897   : > { %v5339_v45 = vadd.f32 %v5337_v6, %v5330_v14 }
 0x898   : > { %v5572_v39 = vadd.f32 %v5570_v16, %v11710_v38  ;;  %v5568_v7 = vadd.f32 %v11710_v38, %v5565_v54 }
 0x899   : > { %v5347_v18 = vadd.f32 %v5345_v31, %v5339_v45 }
 0x89a   : > { %v7822_v29 = vpop.f32.mrb[2].mxu0  ;;  %v11715_v20 = vpop.f32.mrb[2].mxu1  ;;  %8955 = vrcp.f32 %v5572_v39 }
 0x89b   : > { %5142 = vst [vmem:[#allocation2 + $0x30] sm:$0xff] %v7822_v29  ;;  %5219 = vst [vmem:[#allocation2 + $0x40] sm:$0xff] %v11715_v20  ;;  %v5132_v37 = vpop.f32.mrb[3].mxu0  ;;  %v5209_v0 = vpop.f32.mrb[3].mxu1  ;;  %v5399_v26 = vmul.f32 0.0016380112, %v7822_v29 }
 0x89c   : > { %5141 = vst [vmem:[#allocation2 + $0x28] sm:$0xff] %v5132_v37  ;;  %5218 = vst [vmem:[#allocation2 + $0x38] sm:$0xff] %v5209_v0  ;;  %v5398_v2 = vmul.f32 0.0016380112, %v5132_v37  ;;  %v11725_v25 = vmul.f32 0.0016380112, %v5209_v0 }
 0x8a3   : > { %v5355_v23 = vld [vmem:[#allocation2 + $0x21] sm:$0xff]  ;;  %v5401_v53 = vld [vmem:[#allocation2 + $0x2f] sm:$0xff]  ;;  %v5450_v31 = vld [vmem:[#allocation2 + $0x39] sm:$0xff] }
 0x8a4   : > { %v5365_v10 = vld [vmem:[#allocation2 + $0x22] sm:$0xff]  ;;  %v5357_v22 = vadd.f32 %v5355_v23, %v5353_v60  ;;  %v5403_v47 = vld [vmem:[#allocation2 + $0x31] sm:$0xff]  ;;  %v8956_v21 = vpop.eup %8955 }
 0x8a5   : > { %v5374_v44 = vld [vmem:[#allocation2 + $0x23] sm:$0xff]  ;;  %v5367_v27 = vadd.f32 %v5365_v10, %v5363_v12  ;;  %v5411_v24 = vld [vmem:[#allocation2 + $0x2e] sm:$0xff]  ;;  %v11727_v59 = vmul.f32 %v8956_v21, %v5568_v7  ;;  %v5448_v12 = vld [vmem:[#allocation2 + $0x37] sm:$0xff] }
 0x8a6   : > { %v5376_v33 = vadd.f32 %v5374_v44, %v5372_v8  ;;  %v5382_v36 = vld [vmem:[#allocation2 + $0x24] sm:$0xff]  ;;  %v5359_v28 = vmul.f32 0.0020456284, %v5357_v22  ;;  %v5405_v8 = vadd.f32 %v5403_v47, %v5401_v53  ;;  %v5413_v61 = vld [vmem:[#allocation2 + $0x32] sm:$0xff]  ;;  %v11730_v7 = vld [vmem:[#allocation2 + $0x3b] sm:$0xff] }
 0x8a7   : > { %v5400_v55 = vld [vmem:[#allocation2 + $0x27] sm:$0xff]  ;;  %v5384_v9 = vadd.f32 %v5382_v36, %v11695_v50  ;;  %v5369_v43 = vmul.f32 0.00398434, %v5367_v27  ;;  %v5415_v62 = vadd.f32 %v5413_v61, %v5411_v24  ;;  %v5422_v39 = vld [vmem:[#allocation2 + $0x33] sm:$0xff] }
 0x8a8   : > { %v5402_v40 = vld [vmem:[#allocation2 + $0x29] sm:$0xff]  ;;  %v5378_v5 = vmul.f32 0.012103356, %v5376_v33  ;;  %v5361_v57 = vadd.f32 %v5359_v28, %v5351_v56  ;;  %v5407_v19 = vmul.f32 0.0020456284, %v5405_v8  ;;  %v5430_v52 = vld [vmem:[#allocation2 + $0x34] sm:$0xff] }
 0x8a9   : > { %v5389_v63 = vld [vmem:[#allocation2 + $0x25] sm:$0xff]  ;;  %v5404_v17 = vadd.f32 %v5402_v40, %v5400_v55  ;;  %v5386_v4 = vmul.f32 0.057342287, %v5384_v9  ;;  %v5420_v42 = vld [vmem:[#allocation2 + $0x2d] sm:$0xff]  ;;  %v5437_v48 = vld [vmem:[#allocation2 + $0x35] sm:$0xff]  ;;  %v5452_v40 = vadd.f32 %v5450_v31, %v5448_v12 }
 0x8aa   : > { %v5410_v41 = vld [vmem:[#allocation2 + $0x26] sm:$0xff]  ;;  %v5391_v13 = vadd.f32 %v5389_v63, %v11693_v15  ;;  %v5371_v37 = vadd.f32 %v5369_v43, %v5361_v57  ;;  %v5424_v58 = vadd.f32 %v5422_v39, %v5420_v42  ;;  %v5409_v14 = vadd.f32 %v5407_v19, %v5399_v26  ;;  %v5458_v10 = vld [vmem:[#allocation2 + $0x36] sm:$0xff]  ;;  %v5459_v31 = vld [vmem:[#allocation2 + $0x3e] sm:$0xff] }
 0x8ab   : > { %v5406_v50 = vmul.f32 0.0020456284, %v5404_v17  ;;  %v5412_v30 = vld [vmem:[#allocation2 + $0x2a] sm:$0xff]  ;;  %v5417_v6 = vmul.f32 0.00398434, %v5415_v62  ;;  %v5438_v23 = vadd.f32 %v5420_v42, %v5374_v44  ;;  %v11732_v43 = vld [vmem:[#allocation2 + $0x3c] sm:$0xff]  ;;  %v5471_v17 = vadd.f32 %v11730_v7, %v5437_v48 }
 0x8ac   : > { %v5414_v16 = vadd.f32 %v5412_v30, %v5410_v41  ;;  %v5421_v35 = vld [vmem:[#allocation2 + $0x2b] sm:$0xff]  ;;  %v5380_v56 = vadd.f32 %v5378_v5, %v5371_v37  ;;  %v5426_v33 = vmul.f32 0.012103356, %v5424_v58  ;;  %v5393_v53 = vmul.f32 0.42370537, %v5391_v13  ;;  %v5449_v12 = vld [vmem:[#allocation2 + $0x3f] sm:$0xff] }
 0x8ad   : > { %v5429_v29 = vld [vmem:[#allocation2 + $0x2c] sm:$0xff]  ;;  %v5408_v0 = vadd.f32 %v5406_v50, %v5398_v2  ;;  %v5423_v46 = vadd.f32 %v5421_v35, %v5389_v63  ;;  %v5419_v27 = vadd.f32 %v5417_v6, %v5409_v14  ;;  %v5439_v55 = vadd.f32 %v5437_v48, %v5421_v35  ;;  %v5460_v2 = vld [vmem:[#allocation2 + $0x3a] sm:$0xff] }
 0x8ae   : > { %v5416_v54 = vmul.f32 0.00398434, %v5414_v16  ;;  %v5431_v60 = vadd.f32 %v5429_v29, %v5382_v36  ;;  %v5432_v45 = vadd.f32 %v5430_v52, %v5429_v29  ;;  %v5388_v9 = vadd.f32 %v5386_v4, %v5380_v56  ;;  %v5468_v4 = vld [vmem:[#allocation2 + $0x3d] sm:$0xff] }
 0x8af   : > { %v5425_v15 = vmul.f32 0.012103356, %v5423_v46  ;;  %v5428_v36 = vadd.f32 %v5426_v33, %v5419_v27  ;;  %v5462_v28 = vadd.f32 %v5460_v2, %v5458_v10  ;;  %v5454_v44 = vmul.f32 0.0020456284, %v5452_v40 }
 0x8b0   : > { %v5418_v22 = vadd.f32 %v5416_v54, %v5408_v0  ;;  %v5433_v26 = vmul.f32 0.057342287, %v5431_v60  ;;  %v5434_v21 = vmul.f32 0.057342287, %v5432_v45  ;;  %v5395_v63 = vadd.f32 %v5393_v53, %v5388_v9 }
 0x8b1   : > { %v11735_v5 = vmul.f32 %v5347_v18, %v5347_v18  ;;  %v5440_v24 = vmul.f32 0.42370537, %v5438_v23  ;;  %v5441_v57 = vmul.f32 0.42370537, %v5439_v55  ;;  %v5456_v50 = vadd.f32 %v5454_v44, %v11725_v25 }
 0x8b2   : > { %v5427_v47 = vadd.f32 %v5425_v15, %v5418_v22  ;;  %v5436_v41 = vadd.f32 %v5434_v21, %v5428_v36  ;;  %v5464_v30 = vmul.f32 0.00398434, %v5462_v28  ;;  %v5479_v61 = vadd.f32 %v11732_v43, %v5430_v52 }
 0x8b3   : > { %v11739_v42 = vmul.f32 %v5395_v63, %v5395_v63  ;;  %v11743_v16 = vmul.f32 %v5395_v63, %v5347_v18  ;;  %v5473_v35 = vmul.f32 0.012103356, %v5471_v17  ;;  %v5486_v29 = vadd.f32 %v5468_v4, %v5422_v39 }
 0x8b4   : > { %v5435_v8 = vadd.f32 %v5433_v26, %v5427_v47  ;;  %v11741_v19 = vadd.f32 %v5441_v57, %v5436_v41  ;;  %v5466_v62 = vadd.f32 %v5464_v30, %v5456_v50  ;;  %v5481_v58 = vmul.f32 0.057342287, %v5479_v61 }
 0x8b5   : > { %v5571_v37 = vadd.f32 %v11739_v42, %v11735_v5  ;;  %v5488_v14 = vmul.f32 0.42370537, %v5486_v29  ;;  %v11755_v23 = vstv %s4905_s25 }
 0x8b6   : > { %v5442_v13 = vadd.f32 %v5440_v24, %v5435_v8  ;;  %v5547_v25 = vsub.f32 %v11741_v19, %v11735_v5  ;;  %v5475_v46 = vadd.f32 %v5473_v35, %v5466_v62 }
 0x8b7   : > { %v5573_v52 = vadd.f32 %v5571_v37, %v11710_v38 }
 0x8b8   : > { %v5546_v0 = vsub.f32 %v5442_v13, %v11703_v51  ;;  %v5483_v48 = vadd.f32 %v5481_v58, %v5475_v46  ;;  %v5566_v51 = vmul.f32 2.0, %v11743_v16 }
 0x8b9   : > { %8957 = vrcp.f32 %v5573_v52 }
 0x8ba   : > { %v7892_v18 = vpop.f32.mrb[4].mxu0  ;;  %v5490_v54 = vadd.f32 %v5488_v14, %v5483_v48  ;;  %v5569_v56 = vadd.f32 %v11710_v38, %v5566_v51 }
 0x8bb   : > { %5296 = vst [vmem:[#allocation2 + $0x50] sm:$0xff] %v7892_v18  ;;  %v5286_v39 = vpop.f32.mrb[5].mxu0  ;;  %v5495_v36 = vmul.f32 0.0016380112, %v7892_v18 }
 0x8bc   : > { %5295 = vst [vmem:[#allocation2 + $0x48] sm:$0xff] %v5286_v39  ;;  %v5548_v6 = vsub.f32 %v5490_v54, %v11706_v11  ;;  %v5447_v11 = vmul.f32 0.0016380112, %v11715_v20  ;;  %v5494_v44 = vmul.f32 0.0016380112, %v5286_v39 }
 0x8be   : > { %v5557_v60 = vadd.f32 %v5548_v6, %v5546_v0 }
 0x8c0   : > { %v5559_v41 = vadd.f32 %v5557_v60, %v11755_v23 }
 0x8c2   : > { %v5499_v45 = vld [vmem:[#allocation2 + $0x51] sm:$0xff]  ;;  %8959 = vrcp.f32 %v5559_v41 }
 0x8c3   : > { %v8958_v15 = vpop.eup %8957  ;;  %v5451_v10 = vld [vmem:[#allocation2 + $0x41] sm:$0xff]  ;;  %v5509_v33 = vld [vmem:[#allocation2 + $0x52] sm:$0xff]  ;;  %v5498_v21 = vld [vmem:[#allocation2 + $0x49] sm:$0xff] }
 0x8c4   : > { %v5461_v22 = vld [vmem:[#allocation2 + $0x42] sm:$0xff]  ;;  %v11757_v55 = vmul.f32 %v8958_v15, %v5569_v56  ;;  %v5453_v2 = vadd.f32 %v5451_v10, %v5449_v12  ;;  %v5497_v38 = vld [vmem:[#allocation2 + $0x4f] sm:$0xff] }
 0x8c5   : > { %v5470_v27 = vld [vmem:[#allocation2 + $0x43] sm:$0xff]  ;;  %v5463_v9 = vadd.f32 %v5461_v22, %v5459_v31  ;;  %v5518_v8 = vld [vmem:[#allocation2 + $0x53] sm:$0xff]  ;;  %v5501_v50 = vadd.f32 %v5499_v45, %v5497_v38  ;;  %v5517_v37 = vld [vmem:[#allocation2 + $0x4b] sm:$0xff] }
 0x8c6   : > { %v5478_v53 = vld [vmem:[#allocation2 + $0x44] sm:$0xff]  ;;  %v5472_v47 = vadd.f32 %v5470_v27, %v5468_v4  ;;  %v5455_v63 = vmul.f32 0.0020456284, %v5453_v2  ;;  %v5507_v30 = vld [vmem:[#allocation2 + $0x4e] sm:$0xff] }
 0x8c7   : > { %v5485_v26 = vld [vmem:[#allocation2 + $0x45] sm:$0xff]  ;;  %v5465_v24 = vmul.f32 0.00398434, %v5463_v9  ;;  %v5480_v57 = vadd.f32 %v5478_v53, %v11732_v43  ;;  %v5511_v35 = vadd.f32 %v5509_v33, %v5507_v30  ;;  %v5516_v29 = vld [vmem:[#allocation2 + $0x4d] sm:$0xff]  ;;  %v5503_v58 = vmul.f32 0.0020456284, %v5501_v50 }
 0x8c8   : > { %v5496_v40 = vld [vmem:[#allocation2 + $0x47] sm:$0xff]  ;;  %v5487_v20 = vadd.f32 %v5485_v26, %v11730_v7  ;;  %v5457_v13 = vadd.f32 %v5455_v63, %v5447_v11  ;;  %v5474_v46 = vmul.f32 0.012103356, %v5472_v47  ;;  %v5519_v52 = vadd.f32 %v5517_v37, %v5485_v26  ;;  %v5526_v14 = vld [vmem:[#allocation2 + $0x54] sm:$0xff] }
 0x8c9   : > { %v5506_v28 = vld [vmem:[#allocation2 + $0x46] sm:$0xff]  ;;  %v5500_v17 = vadd.f32 %v5498_v21, %v5496_v40  ;;  %v5520_v48 = vadd.f32 %v5518_v8, %v5516_v29  ;;  %v5533_v7 = vld [vmem:[#allocation2 + $0x55] sm:$0xff]  ;;  %v5482_v6 = vmul.f32 0.057342287, %v5480_v57  ;;  %v5505_v51 = vadd.f32 %v5503_v58, %v5495_v36 }
 0x8ca   : > { %v5508_v61 = vld [vmem:[#allocation2 + $0x4a] sm:$0xff]  ;;  %v5467_v18 = vadd.f32 %v5465_v24, %v5457_v13  ;;  %v5513_v60 = vmul.f32 0.00398434, %v5511_v35  ;;  %v5521_v15 = vmul.f32 0.012103356, %v5519_v52  ;;  %v5534_v45 = vadd.f32 %v5516_v29, %v5470_v27 }
 0x8cb   : > { %v5502_v4 = vmul.f32 0.0020456284, %v5500_v17  ;;  %v5510_v62 = vadd.f32 %v5508_v61, %v5506_v28  ;;  %v5525_v0 = vld [vmem:[#allocation2 + $0x4c] sm:$0xff]  ;;  %v5522_v22 = vmul.f32 0.012103356, %v5520_v48  ;;  %v5535_v33 = vadd.f32 %v5533_v7, %v5517_v37 }
 0x8cc   : > { %v5527_v39 = vadd.f32 %v5525_v0, %v5478_v53  ;;  %v5528_v12 = vadd.f32 %v5526_v14, %v5525_v0  ;;  %v5476_v31 = vadd.f32 %v5474_v46, %v5467_v18  ;;  %v5515_v10 = vadd.f32 %v5513_v60, %v5505_v51  ;;  %v8960_v50 = vpop.eup %8959 }
 0x8cd   : > { %v5504_v54 = vadd.f32 %v5502_v4, %v5494_v44  ;;  %v5512_v43 = vmul.f32 0.00398434, %v5510_v62  ;;  %v5489_v2 = vmul.f32 0.42370537, %v5487_v20  ;;  %v5536_v21 = vmul.f32 0.42370537, %v5534_v45 }
 0x8ce   : > { %v5484_v11 = vadd.f32 %v5482_v6, %v5476_v31  ;;  %v5529_v26 = vmul.f32 0.057342287, %v5527_v39  ;;  %v5524_v40 = vadd.f32 %v5522_v22, %v5515_v10  ;;  %v5530_v47 = vmul.f32 0.057342287, %v5528_v12 }
 0x8cf   : > { %v5514_v56 = vadd.f32 %v5512_v43, %v5504_v54  ;;  %v5537_v28 = vmul.f32 0.42370537, %v5535_v33 }
 0x8d0   : > { %v5491_v53 = vadd.f32 %v5489_v2, %v5484_v11  ;;  %v5532_v36 = vadd.f32 %v5530_v47, %v5524_v40 }
 0x8d1   : > { %v5523_v9 = vadd.f32 %v5521_v15, %v5514_v56 }
 0x8d2   : > { %v5549_v44 = vsub.f32 %v5491_v53, %v11739_v42  ;;  %v5539_v17 = vadd.f32 %v5537_v28, %v5532_v36 }
 0x8d3   : > { %v5531_v38 = vadd.f32 %v5529_v26, %v5523_v9 }
 0x8d4   : > { %v5558_v8 = vadd.f32 %v5549_v44, %v5547_v25  ;;  %v5551_v24 = vsub.f32 %v5539_v17, %v11743_v16 }
 0x8d5   : > { %v5538_v63 = vadd.f32 %v5536_v21, %v5531_v38 }
 0x8d6   : > { %v5560_v41 = vadd.f32 %v5558_v8, %v11755_v23  ;;  %v5553_v42 = vmul.f32 2.0, %v5551_v24 }
 0x8d7   : > { %v5550_v27 = vsub.f32 %v5538_v63, %v11708_v32 }
 0x8d8   : > { %8961 = vrcp.f32 %v5560_v41  ;;  %v5556_v13 = vadd.f32 %v11755_v23, %v5553_v42 }
 0x8d9   : > { %v5552_v57 = vmul.f32 2.0, %v5550_v27 }
 0x8db   : > { %v5555_v20 = vadd.f32 %v11755_v23, %v5552_v57 }
 0x8dd   : > { %v5562_v30 = vmul.f32 %v8960_v50, %v5555_v20 }
 0x8df   : > { %v5578_v61 = vmul.f32 %v11727_v59, %v5562_v30  ;;  %v5580_v5 = vsel %vm11553_vm7, %v5562_v30, 0.0 }
 0x8e1   : > { %v5593_v62 = vsel %vm11553_vm7, %v5578_v61, 0.0 }
 0x8e2   : > { %v8962_v32 = vpop.eup %8961 }
 0x8e3   : > { %v5564_v4 = vmul.f32 %v8962_v32, %v5556_v13 }
 0x8e5   : > { %v5581_v19 = vsel %vm11560_vm8, %v5564_v4, 0.0  ;;  %v5579_v16 = vmul.f32 %v11757_v55, %v5564_v4 }
 0x8e6   : > { %v5582_v25 = vadd.f32 %v5581_v19, %v5580_v5 }
 0x8e7   : > { %v5594_v59 = vsel %vm11560_vm8, %v5579_v16, 0.0 }
 0x8e8   : > { %5583 = vadd.xlane.f32.xlu1 %v5582_v25  ;;  %v5595_v35 = vadd.f32 %v5594_v59, %v5593_v62 }
 0x8ec   : > { %5596 = vadd.xlane.f32.xlu1 %v5595_v35 }
 0x975   : > { %v5584_v23 = vpop.xlane.xlu1 %5583 }
 0x976   : > { %v5585_v29 = vrot.slane %v5584_v23, 4 }
 0x978   : > { %v5586_v37 = vadd.f32 %v5585_v29, %v5584_v23 }
 0x979   : > { %v5597_v0 = vpop.xlane.xlu1 %5596 }
 0x97a   : > { %v5587_v46 = vrot.slane %v5586_v37, 2  ;;  %v5598_v58 = vrot.slane %v5597_v0, 4 }
 0x97c   : > { %v5599_v52 = vadd.f32 %v5598_v58, %v5597_v0  ;;  %v5588_v48 = vadd.f32 %v5587_v46, %v5586_v37 }
 0x97e   : > { %v5600_v14 = vrot.slane %v5599_v52, 2  ;;  %v5589_v55 = vrot.slane %v5588_v48, 1 }
 0x980   : > { %v5601_v18 = vadd.f32 %v5600_v14, %v5599_v52  ;;  %v5590_v54 = vadd.f32 %v5589_v55, %v5588_v48 }
 0x982   : > { %8865 = vpush %v5590_v54  ;;  %v5602_v49 = vrot.slane %v5601_v18, 1 }
 0x984   : > { %v5603_v1 = vadd.f32 %v5602_v49, %v5601_v18 }
 0x986   : > { %8867 = vpush %v5603_v1 }
 0x9b3   : > { %s8866_s27 = spop %8865 }
 0x9b4   : > { %s5592_s28 = smul.f32 0.010416667, %s8866_s27 }
 0x9b6   : > { %v5611_v43 = vstv %s5592_s28 }
 0x9b7   : > { %s8868_s30 = spop %8867  ;;  %v5612_v39 = vsel %vm5610_vm12, %v5611_v43, 0.0 }
 0x9b8   : > { %s5605_s4 = smul.f32 0.010416667, %s8868_s30 }
 0x9ba   : > { %v5613_v7 = vstv %s5605_s4 }
 0x9bb   : > { %v5614_v6 = vsel %vm5608_vm13, %v5613_v7, %v5612_v39 }
 0x9bc   : > { %5615 = vst [vmem:[%s9031_s29] sm:$0xff] %v5614_v6 }
 0x9bd PF: > { %p6484_p8 = scmp.ne.s32.totalorder %s9007_s13, 4 }
 0x9be   : > { %v5620_v34 = vld [vmem:[%s9016_s19] sm:$0xff] (!%p6484_p8)  ;;  %v5621_v3 = vld [vmem:[%s9016_s19 + $0x8] sm:$0xff] (!%p6484_p8)  ;;  %v5622_v51 = vld [vmem:[%s9016_s19 + $0x10] sm:$0xff] (!%p6484_p8)  ;;  %v5640_v60 = vlaneseq (!%p6484_p8) }
 0x9bf   : > { %5619 = sbr.rel (%p6484_p8) target bundleno = 3052 (0xbec), region = 52  ;;  %v11790_v12 = vpack.c.bf16 (!%p6484_p8), %v5621_v3, %v5620_v34  ;;  %v5623_v31 = vld [vmem:[%s9016_s19 + $0x18] sm:$0xff] (!%p6484_p8)  ;;  %v5624_v15 = vld [vmem:[%s9016_s19 + $0x20] sm:$0xff] (!%p6484_p8)  ;;  %v5625_v45 = vld [vmem:[%s9016_s19 + $0x28] sm:$0xff] (!%p6484_p8) }
 0x9c0   : > { %v11793_v56 = vpack.c.bf16 (!%p6484_p8), %v5623_v31, %v5622_v51  ;;  %v11797_v10 = vshrl.u32 (!%p6484_p8), %v5640_v60, 7  ;;  %v11799_v22 = vand.u32 (!%p6484_p8), 127, %v5640_v60  ;;  %v11809_v33 = vpack.c.bf16 (!%p6484_p8), %v5625_v45, %v5624_v15  ;;  %v11812_v11 = vld [vmem:[%s9021_s23] sm:$0xff] (!%p6484_p8)  ;;  %v5626_v9 = vld [vmem:[%s9016_s19 + $0x30] sm:$0xff] (!%p6484_p8)  ;;  %v5627_v26 = vld [vmem:[%s9016_s19 + $0x38] sm:$0xff] (!%p6484_p8) }
 0x9c1   : > { %8629 = vmatprep.subr.bf16.mxu0 (!%p6484_p8), %v11790_v12  ;;  %8661 = vmatprep.subr.bf16.mxu1 (!%p6484_p8), %v11790_v12  ;;  %v11815_v2 = vld [vmem:[%s9026_s26] sm:$0xff] (!%p6484_p8)  ;;  %v11833_v53 = vpack.c.bf16 (!%p6484_p8), %v5627_v26, %v5626_v9  ;;  %v5629_v21 = vld [vmem:[%s9016_s19 + $0x48] sm:$0xff] (!%p6484_p8)  ;;  %v5630_v63 = vld [vmem:[%s9016_s19 + $0x50] sm:$0xff] (!%p6484_p8)  ;;  %v5683_v61 = vmul.f32 (!%p6484_p8), %v11812_v11, %v11812_v11 }
 0x9c2   : > { %8631 = vmatpush3.bf16.msra.mxu0 (!%p6484_p8), %v11790_v12  ;;  %8663 = vmatpush3.bf16.msra.mxu1 (!%p6484_p8), %v11790_v12  ;;  %vm5645_vm14 = vcmp.ge.s32.totalorder (!%p6484_p8), %v11797_v10, 5  ;;  %vm5647_vm15 = vcmp.lt.s32.totalorder (!%p6484_p8), %v11797_v10, 7  ;;  %vm5651_vm0 = vcmp.lt.s32.totalorder (!%p6484_p8), %v11799_v22, 12  ;;  %v5628_v38 = vld [vmem:[%s9016_s19 + $0x40] sm:$0xff] (!%p6484_p8)  ;;  %v5631_v44 = vld [vmem:[%s9016_s19 + $0x58] sm:$0xff] (!%p6484_p8)  ;;  %v5633_v8 = vld [vmem:[%s9016_s19 + $0x68] sm:$0xff] (!%p6484_p8)  ;;  %v5685_v42 = vmul.f32 (!%p6484_p8), %v11815_v2, %v11815_v2 }
 0x9c3   : > { %8633 = vmatprep.subr.bf16.mxu0 (!%p6484_p8), %v11793_v56  ;;  %8665 = vmatprep.subr.bf16.mxu1 (!%p6484_p8), %v11793_v56  ;;  %vm5649_vm1 = vmand (!%p6484_p8), %vm5645_vm14, %vm5647_vm15  ;;  %v11844_v28 = vpack.c.bf16 (!%p6484_p8), %v5629_v21, %v5628_v38  ;;  %v11852_v17 = vpack.c.bf16 (!%p6484_p8), %v5631_v44, %v5630_v63  ;;  %v5632_v27 = vld [vmem:[%s9016_s19 + $0x60] sm:$0xff] (!%p6484_p8)  ;;  %v5634_v57 = vld [vmem:[%s9016_s19 + $0x70] sm:$0xff] (!%p6484_p8)  ;;  %v5687_v4 = vmul.f32 (!%p6484_p8), %v11815_v2, %v11812_v11  ;;  %vm6383_vm3 = vcmp.eq.s32.totalorder (!%p6484_p8), %v11797_v10, 0 }
 0x9c4   : > { %7925 = vmatprep.mubr.f32.mxu0 (!%p6484_p8), %v11812_v11  ;;  %7960 = vmatprep.mubr.f32.mxu1 (!%p6484_p8), %v11815_v2  ;;  %vm11822_vm2 = vmand (!%p6484_p8), %vm5649_vm1, %vm5651_vm0  ;;  %v11860_v24 = vpack.c.bf16 (!%p6484_p8), %v5633_v8, %v5632_v27  ;;  %v5635_v41 = vld [vmem:[%s9016_s19 + $0x78] sm:$0xff] (!%p6484_p8)  ;;  %v5637_v50 = vld [vmem:[%s9021_s23 + $0x8] sm:$0xff] (!%p6484_p8)  ;;  %vm6386_vm4 = vcmp.eq.s32.totalorder (!%p6484_p8), %v11799_v22, 1  ;;  %vm6384_vm5 = vcmp.eq.s32.totalorder (!%p6484_p8), %v11799_v22, 0 }
 0x9c5   : > { %v5654_v47 = vsel (!%p6484_p8), %vm11822_vm2, %v11812_v11, -inf  ;;  %v5666_v36 = vsel (!%p6484_p8), %vm11822_vm2, %v11812_v11, inf  ;;  %v11868_v20 = vpack.c.bf16 (!%p6484_p8), %v5635_v41, %v5634_v57  ;;  %v5639_v30 = vld [vmem:[%s9026_s26 + $0x8] sm:$0xff] (!%p6484_p8)  ;;  %v5684_v13 = vmul.f32 (!%p6484_p8), %v5637_v50, %v5637_v50  ;;  %vm6387_vm6 = vmand (!%p6484_p8), %vm6383_vm3, %vm6386_vm4 }
 0x9c6   : > { %8635 = vmatpush3.bf16.msra.mxu0 %v11793_v56  ;;  %8667 = vmatpush3.bf16.msra.mxu1 %v11793_v56  ;;  %v5686_v32 = vmul.f32 %v5639_v30, %v5639_v30  ;;  %v5688_v5 = vmul.f32 %v5639_v30, %v5637_v50  ;;  %vm6385_vm7 = vmand %vm6383_vm3, %vm6384_vm5 }
 0x9c7   : > { %8637 = vmatprep.subr.bf16.mxu0 %v11809_v33  ;;  %8669 = vmatprep.subr.bf16.mxu1 %v11809_v33 }
 0x9c8   : > { %5657 = vmax.xlane.f32.xlu0 %v5654_v47 }
 0x9ca   : > { %8639 = vmatpush3.bf16.msra.mxu0 %v11809_v33  ;;  %8671 = vmatpush3.bf16.msra.mxu1 %v11809_v33 }
 0x9cb   : > { %8641 = vmatprep.subr.bf16.mxu0 %v11833_v53  ;;  %8673 = vmatprep.subr.bf16.mxu1 %v11833_v53 }
 0x9cc   : > { %5669 = vmin.xlane.f32.xlu0 %v5666_v36 }
 0x9ce   : > { %8643 = vmatpush3.bf16.msra.mxu0 %v11833_v53  ;;  %8675 = vmatpush3.bf16.msra.mxu1 %v11833_v53 }
 0x9cf   : > { %8645 = vmatprep.subr.bf16.mxu0 %v11844_v28  ;;  %8677 = vmatprep.subr.bf16.mxu1 %v11844_v28 }
 0x9d2   : > { %8647 = vmatpush3.bf16.msra.mxu0 %v11844_v28  ;;  %8679 = vmatpush3.bf16.msra.mxu1 %v11844_v28 }
 0x9d3   : > { %8649 = vmatprep.subr.bf16.mxu0 %v11852_v17  ;;  %8681 = vmatprep.subr.bf16.mxu1 %v11852_v17 }
 0x9d6   : > { %8651 = vmatpush3.bf16.msra.mxu0 %v11852_v17  ;;  %8683 = vmatpush3.bf16.msra.mxu1 %v11852_v17 }
 0x9d7   : > { %8653 = vmatprep.subr.bf16.mxu0 %v11860_v24  ;;  %8685 = vmatprep.subr.bf16.mxu1 %v11860_v24 }
 0x9da   : > { %8655 = vmatpush3.bf16.msra.mxu0 %v11860_v24  ;;  %8687 = vmatpush3.bf16.msra.mxu1 %v11860_v24 }
 0x9db   : > { %8657 = vmatprep.subr.bf16.mxu0 %v11868_v20  ;;  %8689 = vmatprep.subr.bf16.mxu1 %v11868_v20 }
 0x9de   : > { %8659 = vmatpush3.bf16.msra.mxu0 %v11868_v20  ;;  %8691 = vmatpush3.bf16.msra.mxu1 %v11868_v20 }
 0x9df   : > { %8693 = vmatprep.subr.bf16.mxu0 %v11790_v12  ;;  %8725 = vmatprep.subr.bf16.mxu1 %v11790_v12 }
 0x9e1   : > { %7926 = vmatmul.mubr.f32.vlgmr.msra.gmra.mrb[0].mxu0 %v5637_v50  ;;  %7961 = vmatmul.mubr.f32.vlgmr.msra.gmra.mrb[0].mxu1 %v5639_v30 }
 0x9e2   : > { %8695 = vmatpush3.bf16.msra.mxu0 %v11790_v12  ;;  %8727 = vmatpush3.bf16.msra.mxu1 %v11790_v12 }
 0x9e3   : > { %8697 = vmatprep.subr.bf16.mxu0 %v11793_v56  ;;  %8729 = vmatprep.subr.bf16.mxu1 %v11793_v56 }
 0x9e4   : > { %7995 = vmatprep.mubr.f32.mxu0 %v5683_v61  ;;  %8030 = vmatprep.mubr.f32.mxu1 %v5685_v42 }
 0x9e6   : > { %8699 = vmatpush3.bf16.msra.mxu0 %v11793_v56  ;;  %8731 = vmatpush3.bf16.msra.mxu1 %v11793_v56 }
 0x9e7   : > { %8701 = vmatprep.subr.bf16.mxu0 %v11809_v33  ;;  %8733 = vmatprep.subr.bf16.mxu1 %v11809_v33 }
 0x9ea   : > { %8703 = vmatpush3.bf16.msra.mxu0 %v11809_v33  ;;  %8735 = vmatpush3.bf16.msra.mxu1 %v11809_v33 }
 0x9eb   : > { %8705 = vmatprep.subr.bf16.mxu0 %v11833_v53  ;;  %8737 = vmatprep.subr.bf16.mxu1 %v11833_v53 }
 0x9ee   : > { %8707 = vmatpush3.bf16.msra.mxu0 %v11833_v53  ;;  %8739 = vmatpush3.bf16.msra.mxu1 %v11833_v53 }
 0x9ef   : > { %8709 = vmatprep.subr.bf16.mxu0 %v11844_v28  ;;  %8741 = vmatprep.subr.bf16.mxu1 %v11844_v28 }
 0x9f2   : > { %8711 = vmatpush3.bf16.msra.mxu0 %v11844_v28  ;;  %8743 = vmatpush3.bf16.msra.mxu1 %v11844_v28 }
 0x9f3   : > { %8713 = vmatprep.subr.bf16.mxu0 %v11852_v17  ;;  %8745 = vmatprep.subr.bf16.mxu1 %v11852_v17 }
 0x9f6   : > { %8715 = vmatpush3.bf16.msra.mxu0 %v11852_v17  ;;  %8747 = vmatpush3.bf16.msra.mxu1 %v11852_v17 }
 0x9f7   : > { %8717 = vmatprep.subr.bf16.mxu0 %v11860_v24  ;;  %8749 = vmatprep.subr.bf16.mxu1 %v11860_v24 }
 0x9fa   : > { %8719 = vmatpush3.bf16.msra.mxu0 %v11860_v24  ;;  %8751 = vmatpush3.bf16.msra.mxu1 %v11860_v24 }
 0x9fb   : > { %8721 = vmatprep.subr.bf16.mxu0 %v11868_v20  ;;  %8753 = vmatprep.subr.bf16.mxu1 %v11868_v20 }
 0x9fe   : > { %8723 = vmatpush3.bf16.msra.mxu0 %v11868_v20  ;;  %8755 = vmatpush3.bf16.msra.mxu1 %v11868_v20 }
 0x9ff   : > { %8757 = vmatprep.subr.bf16.mxu0 %v11790_v12 }
 0xa01   : > { %7996 = vmatmul.mubr.f32.vlgmr.msra.gmra.mrb[2].mxu0 %v5684_v13  ;;  %8031 = vmatmul.mubr.f32.vlgmr.msra.gmra.mrb[2].mxu1 %v5686_v32 }
 0xa02   : > { %8759 = vmatpush3.bf16.msra.mxu0 %v11790_v12  ;;  %8065 = vmatprep.mubr.f32.mxu0 %v5687_v4 }
 0xa03   : > { %8761 = vmatprep.subr.bf16.mxu0 %v11793_v56 }
 0xa06   : > { %8763 = vmatpush3.bf16.msra.mxu0 %v11793_v56 }
 0xa07   : > { %8765 = vmatprep.subr.bf16.mxu0 %v11809_v33 }
 0xa0a   : > { %8767 = vmatpush3.bf16.msra.mxu0 %v11809_v33 }
 0xa0b   : > { %8769 = vmatprep.subr.bf16.mxu0 %v11833_v53 }
 0xa0e   : > { %8771 = vmatpush3.bf16.msra.mxu0 %v11833_v53 }
 0xa0f   : > { %8773 = vmatprep.subr.bf16.mxu0 %v11844_v28 }
 0xa12   : > { %8775 = vmatpush3.bf16.msra.mxu0 %v11844_v28 }
 0xa13   : > { %8777 = vmatprep.subr.bf16.mxu0 %v11852_v17 }
 0xa16   : > { %8779 = vmatpush3.bf16.msra.mxu0 %v11852_v17 }
 0xa17   : > { %8781 = vmatprep.subr.bf16.mxu0 %v11860_v24 }
 0xa1a   : > { %8783 = vmatpush3.bf16.msra.mxu0 %v11860_v24 }
 0xa1b   : > { %8785 = vmatprep.subr.bf16.mxu0 %v11868_v20 }
 0xa1e   : > { %8787 = vmatpush3.bf16.msra.mxu0 %v11868_v20 }
 0xa21   : > { %8066 = vmatmul.mubr.f32.vlgmr.msra.gmra.mrb[4].mxu0 %v5688_v5 }
 0xa55   : > { %v5658_v19 = vpop.xlane.xlu0 %5657 }
 0xa56   : > { %v5659_v16 = vrot.slane %v5658_v19, 4 }
 0xa58   : > { %v5660_v25 = vmax.f32 %v5658_v19, %v5659_v16 }
 0xa59   : > { %v5670_v62 = vpop.xlane.xlu0 %5669 }
 0xa5a   : > { %v5661_v59 = vrot.slane %v5660_v25, 2  ;;  %v5671_v35 = vrot.slane %v5670_v62, 4 }
 0xa5c   : > { %v5672_v23 = vmin.f32 %v5670_v62, %v5671_v35  ;;  %v5662_v29 = vmax.f32 %v5660_v25, %v5661_v59 }
 0xa5e   : > { %v5673_v37 = vrot.slane %v5672_v23, 2  ;;  %v5663_v0 = vrot.slane %v5662_v29, 1 }
 0xa60   : > { %v5674_v46 = vmin.f32 %v5672_v23, %v5673_v37  ;;  %v5664_v58 = vmax.f32 %v5662_v29, %v5663_v0 }
 0xa62   : > { %8869 = vpush %v5664_v58  ;;  %v5675_v52 = vrot.slane %v5674_v46, 1 }
 0xa64   : > { %v5676_v48 = vmin.f32 %v5674_v46, %v5675_v52 }
 0xa66   : > { %8871 = vpush %v5676_v48 }
 0xa93   : > { %s8870_s13 = spop %8869 }
 0xa97   : > { %s8872_s19 = spop %8871 }
 0xa98   : > { %s11932_s23 = ssub.f32 %s8870_s13, %s8872_s19 }
 0xa9a   : > { %s5679_s26 = smul.f32 0.01, %s11932_s23 }
 0xa9b   : > { %s5681_s6 = smul.f32 0.03, %s11932_s23 }
 0xa9c   : > { %s5680_s5 = smul.f32 %s5679_s26, %s5679_s26 }
 0xa9d   : > { %s11949_s7 = smul.f32 %s5681_s6, %s5681_s6 }
 0xa9e   : > { %v6344_v52 = vstv %s5680_s5 }
 0xab4   : > { %v7927_v14 = vpop.f32.mrb[0].mxu0  ;;  %v7962_v55 = vpop.f32.mrb[0].mxu1 }
 0xab5   : > { %5765 = vst [vmem:[#allocation2 + $0x10] sm:$0xff] %v7927_v14  ;;  %5842 = vst [vmem:[#allocation2 + $0x20] sm:$0xff] %v7962_v55  ;;  %v5755_v18 = vpop.f32.mrb[1].mxu0  ;;  %v5832_v54 = vpop.f32.mrb[1].mxu1 }
 0xab6   : > { %5764 = vst [vmem:[#allocation2 + $0x8] sm:$0xff] %v5755_v18  ;;  %5841 = vst [vmem:[#allocation2 + $0x18] sm:$0xff] %v5832_v54  ;;  %v6076_v34 = vmul.f32 0.0016380112, %v5755_v18  ;;  %v6127_v53 = vmul.f32 0.0016380112, %v5832_v54 }
 0xabd   : > { %v6078_v49 = vld [vmem:[#allocation2 + $0x7] sm:$0xff]  ;;  %v6118_v11 = vld [vmem:[#allocation2 + $0x15] sm:$0xff]  ;;  %v6149_v30 = vld [vmem:[#allocation2 + $0x1d] sm:$0xff] }
 0xabe   : > { %v6080_v1 = vld [vmem:[#allocation2 + $0x9] sm:$0xff]  ;;  %v6129_v2 = vld [vmem:[#allocation2 + $0x17] sm:$0xff] }
 0xabf   : > { %v6088_v43 = vld [vmem:[#allocation2 + $0x6] sm:$0xff]  ;;  %v6082_v39 = vadd.f32 %v6080_v1, %v6078_v49  ;;  %v6131_v9 = vld [vmem:[#allocation2 + $0x19] sm:$0xff] }
 0xac0   : > { %v6090_v7 = vld [vmem:[#allocation2 + $0xa] sm:$0xff]  ;;  %v6133_v38 = vadd.f32 %v6131_v9, %v6129_v2  ;;  %v6139_v21 = vld [vmem:[#allocation2 + $0x16] sm:$0xff] }
 0xac1   : > { %v6098_v6 = vld [vmem:[#allocation2 + $0x5] sm:$0xff]  ;;  %v6092_v3 = vadd.f32 %v6090_v7, %v6088_v43  ;;  %v6084_v12 = vmul.f32 0.0020456284, %v6082_v39  ;;  %v6099_v31 = vld [vmem:[#allocation2 + $0xd] sm:$0xff]  ;;  %v6141_v36 = vld [vmem:[#allocation2 + $0x1a] sm:$0xff] }
 0xac2   : > { %v6100_v51 = vld [vmem:[#allocation2 + $0xb] sm:$0xff]  ;;  %v6117_v45 = vld [vmem:[#allocation2 + $0x3] sm:$0xff]  ;;  %v6110_v28 = vld [vmem:[#allocation2 + $0x14] sm:$0xff]  ;;  %v6143_v44 = vadd.f32 %v6141_v36, %v6139_v21  ;;  %v6135_v57 = vmul.f32 0.0020456284, %v6133_v38 }
 0xac3   : > { %v6108_v60 = vld [vmem:[#allocation2 + $0x4] sm:$0xff]  ;;  %v6102_v56 = vadd.f32 %v6100_v51, %v6098_v6  ;;  %v6109_v15 = vld [vmem:[#allocation2 + $0xc] sm:$0xff]  ;;  %v6086_v26 = vadd.f32 %v6084_v12, %v6076_v34  ;;  %v6094_v47 = vmul.f32 0.00398434, %v6092_v3  ;;  %v6119_v63 = vadd.f32 %v6117_v45, %v6099_v31  ;;  %v6150_v17 = vld [vmem:[#allocation2 + $0x1b] sm:$0xff] }
 0xac4   : > { %v6111_v33 = vadd.f32 %v6109_v15, %v6108_v60  ;;  %v6158_v27 = vld [vmem:[#allocation2 + $0x1c] sm:$0xff]  ;;  %v6152_v41 = vadd.f32 %v6150_v17, %v6118_v11  ;;  %v6101_v20 = vld [vmem:[#allocation2 + $0x13] sm:$0xff]  ;;  %v6137_v42 = vadd.f32 %v6135_v57, %v6127_v53  ;;  %v6145_v13 = vmul.f32 0.00398434, %v6143_v44 }
 0xac5   : > { %v6096_v8 = vadd.f32 %v6094_v47, %v6086_v26  ;;  %v6104_v24 = vmul.f32 0.012103356, %v6102_v56  ;;  %v6160_v32 = vadd.f32 %v6158_v27, %v6110_v28  ;;  %v6121_v4 = vmul.f32 0.42370537, %v6119_v63 }
 0xac6   : > { %v6113_v50 = vmul.f32 0.057342287, %v6111_v33  ;;  %v6147_v19 = vadd.f32 %v6145_v13, %v6137_v42  ;;  %v6154_v16 = vmul.f32 0.012103356, %v6152_v41  ;;  %v6167_v25 = vadd.f32 %v6149_v30, %v6101_v20 }
 0xac7   : > { %v6106_v61 = vadd.f32 %v6104_v24, %v6096_v8  ;;  %v6162_v35 = vmul.f32 0.057342287, %v6160_v32 }
 0xac8   : > { %v6156_v59 = vadd.f32 %v6154_v16, %v6147_v19  ;;  %v6169_v29 = vmul.f32 0.42370537, %v6167_v25 }
 0xac9   : > { %v6115_v5 = vadd.f32 %v6113_v50, %v6106_v61 }
 0xaca   : > { %v6164_v23 = vadd.f32 %v6162_v35, %v6156_v59 }
 0xacb   : > { %v6123_v62 = vadd.f32 %v6121_v4, %v6115_v5 }
 0xacc   : > { %v6171_v37 = vadd.f32 %v6169_v29, %v6164_v23 }
 0xacd   : > { %v11935_v0 = vmul.f32 %v6123_v62, %v6123_v62 }
 0xace   : > { %v11937_v46 = vmul.f32 %v6171_v37, %v6171_v37  ;;  %v11939_v58 = vmul.f32 %v6171_v37, %v6123_v62 }
 0xad0   : > { %v6347_v48 = vadd.f32 %v11937_v46, %v11935_v0  ;;  %v6342_v1 = vmul.f32 2.0, %v11939_v58 }
 0xad2   : > { %v6349_v14 = vadd.f32 %v6347_v48, %v6344_v52  ;;  %v6345_v34 = vadd.f32 %v6344_v52, %v6342_v1 }
 0xad4   : > { %v7997_v55 = vpop.f32.mrb[2].mxu0  ;;  %v8032_v18 = vpop.f32.mrb[2].mxu1  ;;  %8963 = vrcp.f32 %v6349_v14 }
 0xad5   : > { %5919 = vst [vmem:[#allocation2 + $0x30] sm:$0xff] %v7997_v55  ;;  %5996 = vst [vmem:[#allocation2 + $0x40] sm:$0xff] %v8032_v18  ;;  %v5909_v54 = vpop.f32.mrb[3].mxu0  ;;  %v5986_v49 = vpop.f32.mrb[3].mxu1 }
 0xad6   : > { %5918 = vst [vmem:[#allocation2 + $0x28] sm:$0xff] %v5909_v54  ;;  %5995 = vst [vmem:[#allocation2 + $0x38] sm:$0xff] %v5986_v49  ;;  %v6175_v45 = vmul.f32 0.0016380112, %v5909_v54  ;;  %v6223_v21 = vmul.f32 0.0016380112, %v5986_v49 }
 0xadd   : > { %v6166_v43 = vld [vmem:[#allocation2 + $0x25] sm:$0xff]  ;;  %v6225_v2 = vld [vmem:[#allocation2 + $0x37] sm:$0xff]  ;;  %v6197_v53 = vld [vmem:[#allocation2 + $0x2d] sm:$0xff] }
 0xade   : > { %v6177_v39 = vld [vmem:[#allocation2 + $0x27] sm:$0xff]  ;;  %v8964_v12 = vpop.eup %8963  ;;  %v6227_v9 = vld [vmem:[#allocation2 + $0x39] sm:$0xff] }
 0xadf   : > { %v6179_v7 = vld [vmem:[#allocation2 + $0x29] sm:$0xff]  ;;  %v11944_v26 = vmul.f32 %v8964_v12, %v6345_v34  ;;  %v6214_v38 = vld [vmem:[#allocation2 + $0x35] sm:$0xff]  ;;  %v6229_v36 = vadd.f32 %v6227_v9, %v6225_v2  ;;  %v6245_v13 = vld [vmem:[#allocation2 + $0x3d] sm:$0xff] }
 0xae0   : > { %v6187_v6 = vld [vmem:[#allocation2 + $0x26] sm:$0xff]  ;;  %v6181_v3 = vadd.f32 %v6179_v7, %v6177_v39  ;;  %v6207_v44 = vld [vmem:[#allocation2 + $0x34] sm:$0xff]  ;;  %v6254_v20 = vld [vmem:[#allocation2 + $0x3c] sm:$0xff] }
 0xae1   : > { %v6189_v51 = vld [vmem:[#allocation2 + $0x2a] sm:$0xff]  ;;  %v6235_v27 = vld [vmem:[#allocation2 + $0x36] sm:$0xff]  ;;  %v6231_v24 = vmul.f32 0.0020456284, %v6229_v36  ;;  %v6256_v19 = vadd.f32 %v6254_v20, %v6207_v44 }
 0xae2   : > { %v6198_v60 = vld [vmem:[#allocation2 + $0x2b] sm:$0xff]  ;;  %v6191_v56 = vadd.f32 %v6189_v51, %v6187_v6  ;;  %v6183_v33 = vmul.f32 0.0020456284, %v6181_v3  ;;  %v6151_v47 = vld [vmem:[#allocation2 + $0x23] sm:$0xff]  ;;  %v6237_v8 = vld [vmem:[#allocation2 + $0x3a] sm:$0xff] }
 0xae3   : > { %v6159_v31 = vld [vmem:[#allocation2 + $0x24] sm:$0xff]  ;;  %v6206_v15 = vld [vmem:[#allocation2 + $0x2c] sm:$0xff]  ;;  %v6200_v11 = vadd.f32 %v6198_v60, %v6166_v43  ;;  %v6239_v57 = vadd.f32 %v6237_v8, %v6235_v27  ;;  %v6246_v41 = vld [vmem:[#allocation2 + $0x3b] sm:$0xff]  ;;  %v6215_v42 = vadd.f32 %v6197_v53, %v6151_v47  ;;  %v6233_v4 = vadd.f32 %v6231_v24, %v6223_v21 }
 0xae4   : > { %v6185_v28 = vadd.f32 %v6183_v33, %v6175_v45  ;;  %v6193_v63 = vmul.f32 0.00398434, %v6191_v56  ;;  %v6208_v17 = vadd.f32 %v6206_v15, %v6159_v31  ;;  %v6199_v30 = vld [vmem:[#allocation2 + $0x33] sm:$0xff]  ;;  %v6248_v32 = vadd.f32 %v6246_v41, %v6214_v38 }
 0xae5   : > { %v6202_v61 = vmul.f32 0.012103356, %v6200_v11  ;;  %v6241_v5 = vmul.f32 0.00398434, %v6239_v57  ;;  %v6263_v35 = vadd.f32 %v6245_v13, %v6199_v30  ;;  %v6217_v29 = vmul.f32 0.42370537, %v6215_v42 }
 0xae6   : > { %v6195_v50 = vadd.f32 %v6193_v63, %v6185_v28  ;;  %v6210_v25 = vmul.f32 0.057342287, %v6208_v17  ;;  %v6250_v59 = vmul.f32 0.012103356, %v6248_v32  ;;  %v6258_v52 = vmul.f32 0.057342287, %v6256_v19 }
 0xae7   : > { %v6243_v62 = vadd.f32 %v6241_v5, %v6233_v4  ;;  %v6265_v55 = vmul.f32 0.42370537, %v6263_v35 }
 0xae8   : > { %v6204_v16 = vadd.f32 %v6202_v61, %v6195_v50 }
 0xae9   : > { %v6252_v37 = vadd.f32 %v6250_v59, %v6243_v62 }
 0xaea   : > { %v6212_v23 = vadd.f32 %v6210_v25, %v6204_v16 }
 0xaeb   : > { %v6260_v14 = vadd.f32 %v6258_v52, %v6252_v37 }
 0xaec   : > { %v6219_v48 = vadd.f32 %v6217_v29, %v6212_v23 }
 0xaed   : > { %v6267_v54 = vadd.f32 %v6265_v55, %v6260_v14 }
 0xaee   : > { %v6323_v18 = vsub.f32 %v6219_v48, %v11935_v0 }
 0xaef   : > { %v6325_v49 = vsub.f32 %v6267_v54, %v11937_v46  ;;  %v6331_v46 = vstv %s11949_s7 }
 0xaf1   : > { %v6334_v1 = vadd.f32 %v6325_v49, %v6323_v18 }
 0xaf3   : > { %v6336_v38 = vadd.f32 %v6334_v1, %v6331_v46 }
 0xaf4   : > { %v8067_v43 = vpop.f32.mrb[4].mxu0 }
 0xaf5   : > { %6073 = vst [vmem:[#allocation2 + $0x50] sm:$0xff] %v8067_v43  ;;  %v6063_v39 = vpop.f32.mrb[5].mxu0  ;;  %8965 = vrcp.f32 %v6336_v38 }
 0xaf6   : > { %6072 = vst [vmem:[#allocation2 + $0x48] sm:$0xff] %v6063_v39  ;;  %v6271_v15 = vmul.f32 0.0016380112, %v6063_v39 }
 0xafd   : > { %v6262_v7 = vld [vmem:[#allocation2 + $0x45] sm:$0xff]  ;;  %v6293_v2 = vld [vmem:[#allocation2 + $0x4d] sm:$0xff] }
 0xafe   : > { %v6273_v6 = vld [vmem:[#allocation2 + $0x47] sm:$0xff] }
 0xaff   : > { %v6275_v34 = vld [vmem:[#allocation2 + $0x49] sm:$0xff]  ;;  %v8966_v20 = vpop.eup %8965 }
 0xb00   : > { %v6283_v3 = vld [vmem:[#allocation2 + $0x46] sm:$0xff]  ;;  %v6277_v51 = vadd.f32 %v6275_v34, %v6273_v6 }
 0xb01   : > { %v6285_v60 = vld [vmem:[#allocation2 + $0x4a] sm:$0xff] }
 0xb02   : > { %v6294_v12 = vld [vmem:[#allocation2 + $0x4b] sm:$0xff]  ;;  %v6287_v31 = vadd.f32 %v6285_v60, %v6283_v3  ;;  %v6279_v45 = vmul.f32 0.0020456284, %v6277_v51  ;;  %v6247_v11 = vld [vmem:[#allocation2 + $0x43] sm:$0xff] }
 0xb03   : > { %v6255_v0 = vld [vmem:[#allocation2 + $0x44] sm:$0xff]  ;;  %v6302_v56 = vld [vmem:[#allocation2 + $0x4c] sm:$0xff]  ;;  %v6296_v33 = vadd.f32 %v6294_v12, %v6262_v7  ;;  %v6311_v28 = vadd.f32 %v6293_v2, %v6247_v11 }
 0xb04   : > { %v6281_v9 = vadd.f32 %v6279_v45, %v6271_v15  ;;  %v6289_v47 = vmul.f32 0.00398434, %v6287_v31  ;;  %v6304_v53 = vadd.f32 %v6302_v56, %v6255_v0 }
 0xb05   : > { %v6298_v36 = vmul.f32 0.012103356, %v6296_v33  ;;  %v6313_v27 = vmul.f32 0.42370537, %v6311_v28 }
 0xb06   : > { %v6291_v21 = vadd.f32 %v6289_v47, %v6281_v9  ;;  %v6306_v44 = vmul.f32 0.057342287, %v6304_v53 }
 0xb08   : > { %v6300_v63 = vadd.f32 %v6298_v36, %v6291_v21 }
 0xb0a   : > { %v6308_v17 = vadd.f32 %v6306_v44, %v6300_v63 }
 0xb0c   : > { %v6315_v8 = vadd.f32 %v6313_v27, %v6308_v17 }
 0xb0e   : > { %v6327_v24 = vsub.f32 %v6315_v8, %v11939_v58 }
 0xb10   : > { %v6329_v57 = vmul.f32 2.0, %v6327_v24 }
 0xb12   : > { %v6332_v41 = vadd.f32 %v6331_v46, %v6329_v57 }
 0xb14   : > { %v6339_v50 = vmul.f32 %v8966_v20, %v6332_v41 }
 0xb16   : > { %v6357_v30 = vsel %vm11822_vm2, %v6339_v50, 0.0  ;;  %v6355_v61 = vmul.f32 %v11944_v26, %v6339_v50 }
 0xb17   : > { %6360 = vadd.xlane.f32.xlu1 %v6357_v30 }
 0xb18   : > { %v6370_v42 = vsel %vm11822_vm2, %v6355_v61, 0.0 }
 0xb1b   : > { %6373 = vadd.xlane.f32.xlu1 %v6370_v42 }
 0xba4   : > { %v6361_v13 = vpop.xlane.xlu1 %6360 }
 0xba5   : > { %v6362_v32 = vrot.slane %v6361_v13, 4 }
 0xba7   : > { %v6363_v4 = vadd.f32 %v6362_v32, %v6361_v13 }
 0xba8   : > { %v6374_v5 = vpop.xlane.xlu1 %6373 }
 0xba9   : > { %v6364_v19 = vrot.slane %v6363_v4, 2  ;;  %v6375_v58 = vrot.slane %v6374_v5, 4 }
 0xbab   : > { %v6376_v16 = vadd.f32 %v6375_v58, %v6374_v5  ;;  %v6365_v25 = vadd.f32 %v6364_v19, %v6363_v4 }
 0xbad   : > { %v6377_v62 = vrot.slane %v6376_v16, 2  ;;  %v6366_v59 = vrot.slane %v6365_v25, 1 }
 0xbaf   : > { %v6378_v35 = vadd.f32 %v6377_v62, %v6376_v16  ;;  %v6367_v23 = vadd.f32 %v6366_v59, %v6365_v25 }
 0xbb1   : > { %8873 = vpush %v6367_v23  ;;  %v6379_v29 = vrot.slane %v6378_v35, 1 }
 0xbb3   : > { %v6380_v26 = vadd.f32 %v6379_v29, %v6378_v35 }
 0xbb5   : > { %8875 = vpush %v6380_v26 }
 0xbe2   : > { %s8874_s8 = spop %8873 }
 0xbe3   : > { %s6369_s9 = smul.f32 0.041666668, %s8874_s8 }
 0xbe5   : > { %v6388_v40 = vstv %s6369_s9 }
 0xbe6   : > { %s8876_s10 = spop %8875  ;;  %v6389_v37 = vsel %vm6387_vm6, %v6388_v40, 0.0 }
 0xbe7   : > { %s6382_s11 = smul.f32 0.041666668, %s8876_s10 }
 0xbe9   : > { %v6390_v52 = vstv %s6382_s11 }
 0xbea   : > { %v6391_v48 = vsel %vm6385_vm7, %v6390_v52, %v6389_v37 }
 0xbeb   : > { %6392 = vst [vmem:[%s9031_s29] sm:$0xff] %v6391_v48 }
 0xbec PF: > { %s13_s12 = sadd.s32 1, %s8973_s12  }
 0xbed   : > { %p10_p9 = scmp.ge.s32.totalorder %s13_s12, 7  }
 0xbef   :  { %12 = sbr.rel (!%p10_p9) target bundleno = 1 (0x1), region = 88 }

</bundles_post_ra>
